<compile_context>
chip_gen: v6e
topology: v6e:2x2x1
jax: 0.10.0
libtpu: 0.0.40
codegen_flags: <defaults>
</compile_context>

<pallas_src>
import jax
import jax.numpy as jnp
from jax.experimental import pallas as pl
from jax.experimental.pallas import tpu as pltpu

# ----------------------------------------------------------------------------
# Static network dimensions (from the PyTorch spec; 30x30 input implied by
# Linear(768, 84): 48 * 4 * 4 = 768).
# ----------------------------------------------------------------------------
H = W = 30
CIN = 3
C1, K1 = 18, 5                  # Conv2d(3, 18, 5)   -> 26x26
C2, K2 = 48, 6                  # Conv2d(18, 48, 6)  ->  8x8
H1 = W1 = H - K1 + 1            # 26
HP1 = WP1 = H1 // 2             # 13
H2 = W2 = HP1 - K2 + 1          # 8
HP2 = WP2 = H2 // 2             # 4
NF = 84                         # Linear(768, 84)
NRBF = 10                       # RBF(84, 10)
NRBF_PAD = 128                  # lane-dense padded output width

L0 = 1024                       # padded lane length of flattened 30x30 map (mult of 128)
LP1 = 256                       # padded lane length of flattened 13x13 pooled map
L2 = 104                        # lane length of flattened conv2 output (8x8 valid in 8x13)


# ----------------------------------------------------------------------------
# Fused kernel: per grid step processes one image entirely in VMEM.
# Feature maps are kept transposed: (channels on sublanes, flat spatial on lanes).
# ----------------------------------------------------------------------------
def _lenet_kernel(x_ref, w1_ref, b1_ref, p1_ref, w2_ref, b2_ref, p2_ref,
                  wfc_ref, bfc_ref, ct_ref, cn_ref, sg_ref, out_ref):
    f32 = jnp.float32

    # ---- conv1 (5x5, 3->18) + tanh: k*k shifted matmuls, in-kernel "im2col" ----
    x = x_ref[0]                                          # (3, 1024)
    acc1 = jnp.zeros((C1, L0), f32)
    for di in range(K1):
        for dj in range(K1):
            s = di * W + dj
            xs = pltpu.roll(x, (L0 - s) % L0, axis=1) if s else x   # xs[:, o] = x[:, o+s]
            acc1 = acc1 + jnp.dot(w1_ref[di * K1 + dj], xs,
                                  preferred_element_type=f32)       # (18,3)@(3,1024)
    c1 = jnp.tanh(acc1 + b1_ref[...])                     # (18, 1024)

    # ---- AvgPool2d(2,2) + valid-crop, fused as a constant-matrix matmul --------
    pool1 = jnp.dot(c1, p1_ref[...], preferred_element_type=f32)    # (18, 256)

    # ---- conv2 (6x6, 18->48) + tanh --------------------------------------------
    acc2 = jnp.zeros((C2, L2), f32)
    for di in range(K2):
        for dj in range(K2):
            s = di * WP1 + dj
            ps = pltpu.roll(pool1, (LP1 - s) % LP1, axis=1) if s else pool1
            acc2 = acc2 + jnp.dot(w2_ref[di * K2 + dj], ps[:, :L2],
                                  preferred_element_type=f32)       # (48,18)@(18,104)
    c2 = jnp.tanh(acc2 + b2_ref[...])                     # (48, 104)

    # ---- AvgPool2d(2,2) (matmul) -> (channel, 4x4 position) --------------------
    pool2 = jnp.dot(c2, p2_ref[...], preferred_element_type=f32)    # (48, 16)

    # ---- flatten (NCHW order baked into the packed weights) + Linear + tanh ----
    fc = jnp.zeros((1, NF), f32)
    for c in range(C2):
        fc = fc + jnp.dot(pool2[c:c + 1, :], wfc_ref[c],
                          preferred_element_type=f32)                # (1,16)@(16,84)
    fc = jnp.tanh(fc + bfc_ref[...])                       # (1, 84)

    # ---- RBF head: exp(-sqrt(||x - c||^2) * sigma), via the matmul identity ----
    xx = jnp.sum(fc * fc, axis=1, keepdims=True)                     # (1, 1)
    cross = jnp.dot(fc, ct_ref[...], preferred_element_type=f32)     # (1, 128)
    d2 = jnp.maximum(xx + cn_ref[...] - 2.0 * cross, 0.0)
    row = jnp.exp(-jnp.sqrt(d2) * sg_ref[...])                       # (1, 128)

    # Lane-dense (8, 128) store; the host slices out the real (1, 10) row.
    out_ref[0] = jnp.broadcast_to(row, (8, NRBF_PAD))


# ----------------------------------------------------------------------------
# pallas_call wrapper
# ----------------------------------------------------------------------------
def lenet_forward(x_nchw, kp):
    # x_nchw: (B, 3, 30, 30) float32
    B = x_nchw.shape[0]
    xk = jnp.pad(x_nchw.reshape(B, CIN, H * W),
                 ((0, 0), (0, 0), (0, L0 - H * W)))        # (B, 3, 1024)

    out3 = pl.pallas_call(
        _lenet_kernel,
        out_shape=jax.ShapeDtypeStruct((B, 8, NRBF_PAD), jnp.float32),
        grid=(B,),
        in_specs=[
            pl.BlockSpec((1, CIN, L0), lambda b: (b, 0, 0)),          # x (per image)
            pl.BlockSpec((K1 * K1, C1, CIN), lambda b: (0, 0, 0)),    # w1
            pl.BlockSpec((C1, 1), lambda b: (0, 0)),                  # b1
            pl.BlockSpec((L0, LP1), lambda b: (0, 0)),                # pool1 matrix
            pl.BlockSpec((K2 * K2, C2, C1), lambda b: (0, 0, 0)),     # w2
            pl.BlockSpec((C2, 1), lambda b: (0, 0)),                  # b2
            pl.BlockSpec((L2, HP2 * WP2), lambda b: (0, 0)),          # pool2 matrix
            pl.BlockSpec((C2, HP2 * WP2, NF), lambda b: (0, 0, 0)),   # fc weights (packed)
            pl.BlockSpec((1, NF), lambda b: (0, 0)),                  # fc bias
            pl.BlockSpec((NF, NRBF_PAD), lambda b: (0, 0)),           # centres^T (padded)
            pl.BlockSpec((1, NRBF_PAD), lambda b: (0, 0)),            # ||centres||^2
            pl.BlockSpec((1, NRBF_PAD), lambda b: (0, 0)),            # sigmas (padded)
        ],
        out_specs=pl.BlockSpec((1, 8, NRBF_PAD), lambda b: (b, 0, 0)),
        compiler_params=pltpu.CompilerParams(
            dimension_semantics=("parallel",)),
    )(xk, kp["w1"], kp["b1"], kp["p1"], kp["w2"], kp["b2"], kp["p2"],
      kp["wfc"], kp["bfc"], kp["ct"], kp["cn"], kp["sg"])

    return out3[:, 0, :NRBF]                               # (B, 10)


# ----------------------------------------------------------------------------
# Parameter construction: PyTorch-layout params -> kernel-layout packed params.
# ----------------------------------------------------------------------------
def init_torch_params(key):
    ks = jax.random.split(key, 4)
    return {
        "conv1_w": 0.1 * jax.random.normal(ks[0], (C1, CIN, K1, K1), jnp.float32),
        "conv1_b": jnp.zeros((C1,), jnp.float32),
        "conv2_w": 0.05 * jax.random.normal(ks[1], (C2, C1, K2, K2), jnp.float32),
        "conv2_b": jnp.zeros((C2,), jnp.float32),
        "fc_w": 0.05 * jax.random.normal(ks[2], (NF, C2 * HP2 * WP2), jnp.float32),
        "fc_b": jnp.zeros((NF,), jnp.float32),
        "rbf_centres": jax.random.normal(ks[3], (NRBF, NF), jnp.float32),
        "rbf_sigmas": jnp.ones((NRBF,), jnp.float32),
    }


def _pool_matrix(h_valid, w_valid, row_stride, n_rows, n_cols):
    """P^T for AvgPool2d(2,2): P[q, o] = 0.25 iff flat index o = i*row_stride + j
    lies in the (valid-region) 2x2 window of pooled position q."""
    o = jnp.arange(n_rows)
    i, j = o // row_stride, o % row_stride
    q = jnp.arange(n_cols)
    tgt = (i // 2) * (w_valid // 2) + (j // 2)
    nq = (h_valid // 2) * (w_valid // 2)
    valid = (i < h_valid) & (j < w_valid)
    pt = jnp.where(valid[:, None] & (q[None, :] == tgt[:, None]) & (q[None, :] < nq),
                   0.25, 0.0)
    return pt.astype(jnp.float32)                          # (n_rows, n_cols)


def pack_params(tp):
    # conv weights -> (k*k, Cout, Cin), one slice per shift offset
    w1 = jnp.transpose(tp["conv1_w"], (2, 3, 0, 1)).reshape(K1 * K1, C1, CIN)
    w2 = jnp.transpose(tp["conv2_w"], (2, 3, 0, 1)).reshape(K2 * K2, C2, C1)
    b1 = tp["conv1_b"].reshape(C1, 1)
    b2 = tp["conv2_b"].reshape(C2, 1)
    # Linear weights repacked once so no runtime flatten/transpose is needed:
    # torch flatten index = c*16 + h*4 + w  ->  (channel, 4x4 position, out).
    wfc = jnp.transpose(tp["fc_w"].reshape(NF, C2, HP2 * WP2), (1, 2, 0))
    bfc = tp["fc_b"].reshape(1, NF)
    # RBF: centres^T, squared norms, sigmas, lane-padded to 128 (pad cols sliced off on host).
    ct = jnp.zeros((NF, NRBF_PAD), jnp.float32).at[:, :NRBF].set(tp["rbf_centres"].T)
    cn = jnp.zeros((1, NRBF_PAD), jnp.float32).at[0, :NRBF].set(
        jnp.sum(tp["rbf_centres"] ** 2, axis=1))
    sg = jnp.ones((1, NRBF_PAD), jnp.float32).at[0, :NRBF].set(tp["rbf_sigmas"])
    # Constant pooling (+ valid-crop) matrices.
    p1 = _pool_matrix(H1, W1, W, L0, LP1)                  # (1024, 256)
    p2 = _pool_matrix(H2, W2, WP1, L2, HP2 * WP2)          # (104, 16)
    return {"w1": w1, "b1": b1, "w2": w2, "b2": b2, "p1": p1, "p2": p2,
            "wfc": wfc, "bfc": bfc, "ct": ct, "cn": cn, "sg": sg}


if __name__ == "__main__":
    key = jax.random.PRNGKey(0)
    kx, kp = jax.random.split(key)
    x = jax.random.normal(kx, (2, CIN, H, W), jnp.float32)   # (B, 3, 30, 30)
    params = pack_params(init_torch_params(kp))

    fwd = jax.jit(lenet_forward)
    out = jax.block_until_ready(fwd(x, params))

    assert out.shape == (2, NRBF), out.shape
    assert bool(jnp.all(jnp.isfinite(out)))
    print("KERNEL_OK")
</pallas_src>

<mosaic_0001>
module attributes {stable_mosaic.version = 11 : i64} {
  func.func @_lenet_kernel(%arg0: i32, %arg1: memref<1x3x1024xf32, #tpu.memory_space<vmem>>, %arg2: memref<25x18x3xf32, #tpu.memory_space<vmem>>, %arg3: memref<18x1xf32, #tpu.memory_space<vmem>>, %arg4: memref<1024x256xf32, #tpu.memory_space<vmem>>, %arg5: memref<36x48x18xf32, #tpu.memory_space<vmem>>, %arg6: memref<48x1xf32, #tpu.memory_space<vmem>>, %arg7: memref<104x16xf32, #tpu.memory_space<vmem>>, %arg8: memref<48x16x84xf32, #tpu.memory_space<vmem>>, %arg9: memref<1x84xf32, #tpu.memory_space<vmem>>, %arg10: memref<84x128xf32, #tpu.memory_space<vmem>>, %arg11: memref<1x128xf32, #tpu.memory_space<vmem>>, %arg12: memref<1x128xf32, #tpu.memory_space<vmem>>, %arg13: memref<1x8x128xf32, #tpu.memory_space<vmem>>) attributes {dimension_semantics = [#tpu.dimension_semantics<parallel>], iteration_bounds = array<i64: 2>, scalar_prefetch = 0 : i64, scratch_operands = 0 : i64, tpu.core_type = #tpu.core_type<tc>, window_params = [{transform_indices = @transform_0, window_bounds = array<i64: 1, 3, 1024>}, {pipeline_mode = #tpu.pipeline_mode<synchronous>, transform_indices = @transform_1, window_bounds = array<i64: 25, 18, 3>}, {pipeline_mode = #tpu.pipeline_mode<synchronous>, transform_indices = @transform_2, window_bounds = array<i64: 18, 1>}, {pipeline_mode = #tpu.pipeline_mode<synchronous>, transform_indices = @transform_3, window_bounds = array<i64: 1024, 256>}, {pipeline_mode = #tpu.pipeline_mode<synchronous>, transform_indices = @transform_4, window_bounds = array<i64: 36, 48, 18>}, {pipeline_mode = #tpu.pipeline_mode<synchronous>, transform_indices = @transform_5, window_bounds = array<i64: 48, 1>}, {pipeline_mode = #tpu.pipeline_mode<synchronous>, transform_indices = @transform_6, window_bounds = array<i64: 104, 16>}, {pipeline_mode = #tpu.pipeline_mode<synchronous>, transform_indices = @transform_7, window_bounds = array<i64: 48, 16, 84>}, {pipeline_mode = #tpu.pipeline_mode<synchronous>, transform_indices = @transform_8, window_bounds = array<i64: 1, 84>}, {pipeline_mode = #tpu.pipeline_mode<synchronous>, transform_indices = @transform_9, window_bounds = array<i64: 84, 128>}, {pipeline_mode = #tpu.pipeline_mode<synchronous>, transform_indices = @transform_10, window_bounds = array<i64: 1, 128>}, {pipeline_mode = #tpu.pipeline_mode<synchronous>, transform_indices = @transform_11, window_bounds = array<i64: 1, 128>}, {transform_indices = @transform_12, window_bounds = array<i64: 1, 8, 128>}]} {
    %c0 = arith.constant 0 : index
    %c0_0 = arith.constant 0 : index
    %c0_1 = arith.constant 0 : index
    %0 = vector.load %arg1[%c0, %c0_0, %c0_1] : memref<1x3x1024xf32, #tpu.memory_space<vmem>>, vector<1x3x1024xf32>
    %1 = vector.shape_cast %0 : vector<1x3x1024xf32> to vector<3x1024xf32>
    %cst = arith.constant 0.000000e+00 : f32
    %2 = vector.broadcast %cst : f32 to vector<18x1024xf32>
    %c0_2 = arith.constant 0 : index
    %c0_3 = arith.constant 0 : index
    %c0_4 = arith.constant 0 : index
    %3 = vector.load %arg2[%c0_2, %c0_3, %c0_4] : memref<25x18x3xf32, #tpu.memory_space<vmem>>, vector<1x18x3xf32>
    %4 = vector.shape_cast %3 : vector<1x18x3xf32> to vector<18x3xf32>
    %cst_5 = arith.constant dense<0.000000e+00> : vector<18x1024xf32>
    %5 = tpu.matmul %4, %1, %cst_5 {dimension_numbers = #tpu.dot_dimension_numbers<[1], [0], [0], [1], [0, 0, 1, 1], [], []>} : vector<18x3xf32>, vector<3x1024xf32>, vector<18x1024xf32> -> vector<18x1024xf32>
    %6 = arith.addf %2, %5 : vector<18x1024xf32>
    %c1023_i32 = arith.constant 1023 : i32
    %7 = tpu.dynamic_rotate %1 by %c1023_i32 dim 1 : vector<3x1024xf32>, i32 -> vector<3x1024xf32>
    %c1 = arith.constant 1 : index
    %c0_6 = arith.constant 0 : index
    %c0_7 = arith.constant 0 : index
    %8 = vector.load %arg2[%c1, %c0_6, %c0_7] : memref<25x18x3xf32, #tpu.memory_space<vmem>>, vector<1x18x3xf32>
    %9 = vector.shape_cast %8 : vector<1x18x3xf32> to vector<18x3xf32>
    %cst_8 = arith.constant dense<0.000000e+00> : vector<18x1024xf32>
    %10 = tpu.matmul %9, %7, %cst_8 {dimension_numbers = #tpu.dot_dimension_numbers<[1], [0], [0], [1], [0, 0, 1, 1], [], []>} : vector<18x3xf32>, vector<3x1024xf32>, vector<18x1024xf32> -> vector<18x1024xf32>
    %11 = arith.addf %6, %10 : vector<18x1024xf32>
    %c1022_i32 = arith.constant 1022 : i32
    %12 = tpu.dynamic_rotate %1 by %c1022_i32 dim 1 : vector<3x1024xf32>, i32 -> vector<3x1024xf32>
    %c2 = arith.constant 2 : index
    %c0_9 = arith.constant 0 : index
    %c0_10 = arith.constant 0 : index
    %13 = vector.load %arg2[%c2, %c0_9, %c0_10] : memref<25x18x3xf32, #tpu.memory_space<vmem>>, vector<1x18x3xf32>
    %14 = vector.shape_cast %13 : vector<1x18x3xf32> to vector<18x3xf32>
    %cst_11 = arith.constant dense<0.000000e+00> : vector<18x1024xf32>
    %15 = tpu.matmul %14, %12, %cst_11 {dimension_numbers = #tpu.dot_dimension_numbers<[1], [0], [0], [1], [0, 0, 1, 1], [], []>} : vector<18x3xf32>, vector<3x1024xf32>, vector<18x1024xf32> -> vector<18x1024xf32>
    %16 = arith.addf %11, %15 : vector<18x1024xf32>
    %c1021_i32 = arith.constant 1021 : i32
    %17 = tpu.dynamic_rotate %1 by %c1021_i32 dim 1 : vector<3x1024xf32>, i32 -> vector<3x1024xf32>
    %c3 = arith.constant 3 : index
    %c0_12 = arith.constant 0 : index
    %c0_13 = arith.constant 0 : index
    %18 = vector.load %arg2[%c3, %c0_12, %c0_13] : memref<25x18x3xf32, #tpu.memory_space<vmem>>, vector<1x18x3xf32>
    %19 = vector.shape_cast %18 : vector<1x18x3xf32> to vector<18x3xf32>
    %cst_14 = arith.constant dense<0.000000e+00> : vector<18x1024xf32>
    %20 = tpu.matmul %19, %17, %cst_14 {dimension_numbers = #tpu.dot_dimension_numbers<[1], [0], [0], [1], [0, 0, 1, 1], [], []>} : vector<18x3xf32>, vector<3x1024xf32>, vector<18x1024xf32> -> vector<18x1024xf32>
    %21 = arith.addf %16, %20 : vector<18x1024xf32>
    %c1020_i32 = arith.constant 1020 : i32
    %22 = tpu.dynamic_rotate %1 by %c1020_i32 dim 1 : vector<3x1024xf32>, i32 -> vector<3x1024xf32>
    %c4 = arith.constant 4 : index
    %c0_15 = arith.constant 0 : index
    %c0_16 = arith.constant 0 : index
    %23 = vector.load %arg2[%c4, %c0_15, %c0_16] : memref<25x18x3xf32, #tpu.memory_space<vmem>>, vector<1x18x3xf32>
    %24 = vector.shape_cast %23 : vector<1x18x3xf32> to vector<18x3xf32>
    %cst_17 = arith.constant dense<0.000000e+00> : vector<18x1024xf32>
    %25 = tpu.matmul %24, %22, %cst_17 {dimension_numbers = #tpu.dot_dimension_numbers<[1], [0], [0], [1], [0, 0, 1, 1], [], []>} : vector<18x3xf32>, vector<3x1024xf32>, vector<18x1024xf32> -> vector<18x1024xf32>
    %26 = arith.addf %21, %25 : vector<18x1024xf32>
    %c994_i32 = arith.constant 994 : i32
    %27 = tpu.dynamic_rotate %1 by %c994_i32 dim 1 : vector<3x1024xf32>, i32 -> vector<3x1024xf32>
    %c5 = arith.constant 5 : index
    %c0_18 = arith.constant 0 : index
    %c0_19 = arith.constant 0 : index
    %28 = vector.load %arg2[%c5, %c0_18, %c0_19] : memref<25x18x3xf32, #tpu.memory_space<vmem>>, vector<1x18x3xf32>
    %29 = vector.shape_cast %28 : vector<1x18x3xf32> to vector<18x3xf32>
    %cst_20 = arith.constant dense<0.000000e+00> : vector<18x1024xf32>
    %30 = tpu.matmul %29, %27, %cst_20 {dimension_numbers = #tpu.dot_dimension_numbers<[1], [0], [0], [1], [0, 0, 1, 1], [], []>} : vector<18x3xf32>, vector<3x1024xf32>, vector<18x1024xf32> -> vector<18x1024xf32>
    %31 = arith.addf %26, %30 : vector<18x1024xf32>
    %c993_i32 = arith.constant 993 : i32
    %32 = tpu.dynamic_rotate %1 by %c993_i32 dim 1 : vector<3x1024xf32>, i32 -> vector<3x1024xf32>
    %c6 = arith.constant 6 : index
    %c0_21 = arith.constant 0 : index
    %c0_22 = arith.constant 0 : index
    %33 = vector.load %arg2[%c6, %c0_21, %c0_22] : memref<25x18x3xf32, #tpu.memory_space<vmem>>, vector<1x18x3xf32>
    %34 = vector.shape_cast %33 : vector<1x18x3xf32> to vector<18x3xf32>
    %cst_23 = arith.constant dense<0.000000e+00> : vector<18x1024xf32>
    %35 = tpu.matmul %34, %32, %cst_23 {dimension_numbers = #tpu.dot_dimension_numbers<[1], [0], [0], [1], [0, 0, 1, 1], [], []>} : vector<18x3xf32>, vector<3x1024xf32>, vector<18x1024xf32> -> vector<18x1024xf32>
    %36 = arith.addf %31, %35 : vector<18x1024xf32>
    %c992_i32 = arith.constant 992 : i32
    %37 = tpu.dynamic_rotate %1 by %c992_i32 dim 1 : vector<3x1024xf32>, i32 -> vector<3x1024xf32>
    %c7 = arith.constant 7 : index
    %c0_24 = arith.constant 0 : index
    %c0_25 = arith.constant 0 : index
    %38 = vector.load %arg2[%c7, %c0_24, %c0_25] : memref<25x18x3xf32, #tpu.memory_space<vmem>>, vector<1x18x3xf32>
    %39 = vector.shape_cast %38 : vector<1x18x3xf32> to vector<18x3xf32>
    %cst_26 = arith.constant dense<0.000000e+00> : vector<18x1024xf32>
    %40 = tpu.matmul %39, %37, %cst_26 {dimension_numbers = #tpu.dot_dimension_numbers<[1], [0], [0], [1], [0, 0, 1, 1], [], []>} : vector<18x3xf32>, vector<3x1024xf32>, vector<18x1024xf32> -> vector<18x1024xf32>
    %41 = arith.addf %36, %40 : vector<18x1024xf32>
    %c991_i32 = arith.constant 991 : i32
    %42 = tpu.dynamic_rotate %1 by %c991_i32 dim 1 : vector<3x1024xf32>, i32 -> vector<3x1024xf32>
    %c8 = arith.constant 8 : index
    %c0_27 = arith.constant 0 : index
    %c0_28 = arith.constant 0 : index
    %43 = vector.load %arg2[%c8, %c0_27, %c0_28] : memref<25x18x3xf32, #tpu.memory_space<vmem>>, vector<1x18x3xf32>
    %44 = vector.shape_cast %43 : vector<1x18x3xf32> to vector<18x3xf32>
    %cst_29 = arith.constant dense<0.000000e+00> : vector<18x1024xf32>
    %45 = tpu.matmul %44, %42, %cst_29 {dimension_numbers = #tpu.dot_dimension_numbers<[1], [0], [0], [1], [0, 0, 1, 1], [], []>} : vector<18x3xf32>, vector<3x1024xf32>, vector<18x1024xf32> -> vector<18x1024xf32>
    %46 = arith.addf %41, %45 : vector<18x1024xf32>
    %c990_i32 = arith.constant 990 : i32
    %47 = tpu.dynamic_rotate %1 by %c990_i32 dim 1 : vector<3x1024xf32>, i32 -> vector<3x1024xf32>
    %c9 = arith.constant 9 : index
    %c0_30 = arith.constant 0 : index
    %c0_31 = arith.constant 0 : index
    %48 = vector.load %arg2[%c9, %c0_30, %c0_31] : memref<25x18x3xf32, #tpu.memory_space<vmem>>, vector<1x18x3xf32>
    %49 = vector.shape_cast %48 : vector<1x18x3xf32> to vector<18x3xf32>
    %cst_32 = arith.constant dense<0.000000e+00> : vector<18x1024xf32>
    %50 = tpu.matmul %49, %47, %cst_32 {dimension_numbers = #tpu.dot_dimension_numbers<[1], [0], [0], [1], [0, 0, 1, 1], [], []>} : vector<18x3xf32>, vector<3x1024xf32>, vector<18x1024xf32> -> vector<18x1024xf32>
    %51 = arith.addf %46, %50 : vector<18x1024xf32>
    %c964_i32 = arith.constant 964 : i32
    %52 = tpu.dynamic_rotate %1 by %c964_i32 dim 1 : vector<3x1024xf32>, i32 -> vector<3x1024xf32>
    %c10 = arith.constant 10 : index
    %c0_33 = arith.constant 0 : index
    %c0_34 = arith.constant 0 : index
    %53 = vector.load %arg2[%c10, %c0_33, %c0_34] : memref<25x18x3xf32, #tpu.memory_space<vmem>>, vector<1x18x3xf32>
    %54 = vector.shape_cast %53 : vector<1x18x3xf32> to vector<18x3xf32>
    %cst_35 = arith.constant dense<0.000000e+00> : vector<18x1024xf32>
    %55 = tpu.matmul %54, %52, %cst_35 {dimension_numbers = #tpu.dot_dimension_numbers<[1], [0], [0], [1], [0, 0, 1, 1], [], []>} : vector<18x3xf32>, vector<3x1024xf32>, vector<18x1024xf32> -> vector<18x1024xf32>
    %56 = arith.addf %51, %55 : vector<18x1024xf32>
    %c963_i32 = arith.constant 963 : i32
    %57 = tpu.dynamic_rotate %1 by %c963_i32 dim 1 : vector<3x1024xf32>, i32 -> vector<3x1024xf32>
    %c11 = arith.constant 11 : index
    %c0_36 = arith.constant 0 : index
    %c0_37 = arith.constant 0 : index
    %58 = vector.load %arg2[%c11, %c0_36, %c0_37] : memref<25x18x3xf32, #tpu.memory_space<vmem>>, vector<1x18x3xf32>
    %59 = vector.shape_cast %58 : vector<1x18x3xf32> to vector<18x3xf32>
    %cst_38 = arith.constant dense<0.000000e+00> : vector<18x1024xf32>
    %60 = tpu.matmul %59, %57, %cst_38 {dimension_numbers = #tpu.dot_dimension_numbers<[1], [0], [0], [1], [0, 0, 1, 1], [], []>} : vector<18x3xf32>, vector<3x1024xf32>, vector<18x1024xf32> -> vector<18x1024xf32>
    %61 = arith.addf %56, %60 : vector<18x1024xf32>
    %c962_i32 = arith.constant 962 : i32
    %62 = tpu.dynamic_rotate %1 by %c962_i32 dim 1 : vector<3x1024xf32>, i32 -> vector<3x1024xf32>
    %c12 = arith.constant 12 : index
    %c0_39 = arith.constant 0 : index
    %c0_40 = arith.constant 0 : index
    %63 = vector.load %arg2[%c12, %c0_39, %c0_40] : memref<25x18x3xf32, #tpu.memory_space<vmem>>, vector<1x18x3xf32>
    %64 = vector.shape_cast %63 : vector<1x18x3xf32> to vector<18x3xf32>
    %cst_41 = arith.constant dense<0.000000e+00> : vector<18x1024xf32>
    %65 = tpu.matmul %64, %62, %cst_41 {dimension_numbers = #tpu.dot_dimension_numbers<[1], [0], [0], [1], [0, 0, 1, 1], [], []>} : vector<18x3xf32>, vector<3x1024xf32>, vector<18x1024xf32> -> vector<18x1024xf32>
    %66 = arith.addf %61, %65 : vector<18x1024xf32>
    %c961_i32 = arith.constant 961 : i32
    %67 = tpu.dynamic_rotate %1 by %c961_i32 dim 1 : vector<3x1024xf32>, i32 -> vector<3x1024xf32>
    %c13 = arith.constant 13 : index
    %c0_42 = arith.constant 0 : index
    %c0_43 = arith.constant 0 : index
    %68 = vector.load %arg2[%c13, %c0_42, %c0_43] : memref<25x18x3xf32, #tpu.memory_space<vmem>>, vector<1x18x3xf32>
    %69 = vector.shape_cast %68 : vector<1x18x3xf32> to vector<18x3xf32>
    %cst_44 = arith.constant dense<0.000000e+00> : vector<18x1024xf32>
    %70 = tpu.matmul %69, %67, %cst_44 {dimension_numbers = #tpu.dot_dimension_numbers<[1], [0], [0], [1], [0, 0, 1, 1], [], []>} : vector<18x3xf32>, vector<3x1024xf32>, vector<18x1024xf32> -> vector<18x1024xf32>
    %71 = arith.addf %66, %70 : vector<18x1024xf32>
    %c960_i32 = arith.constant 960 : i32
    %72 = tpu.dynamic_rotate %1 by %c960_i32 dim 1 : vector<3x1024xf32>, i32 -> vector<3x1024xf32>
    %c14 = arith.constant 14 : index
    %c0_45 = arith.constant 0 : index
    %c0_46 = arith.constant 0 : index
    %73 = vector.load %arg2[%c14, %c0_45, %c0_46] : memref<25x18x3xf32, #tpu.memory_space<vmem>>, vector<1x18x3xf32>
    %74 = vector.shape_cast %73 : vector<1x18x3xf32> to vector<18x3xf32>
    %cst_47 = arith.constant dense<0.000000e+00> : vector<18x1024xf32>
    %75 = tpu.matmul %74, %72, %cst_47 {dimension_numbers = #tpu.dot_dimension_numbers<[1], [0], [0], [1], [0, 0, 1, 1], [], []>} : vector<18x3xf32>, vector<3x1024xf32>, vector<18x1024xf32> -> vector<18x1024xf32>
    %76 = arith.addf %71, %75 : vector<18x1024xf32>
    %c934_i32 = arith.constant 934 : i32
    %77 = tpu.dynamic_rotate %1 by %c934_i32 dim 1 : vector<3x1024xf32>, i32 -> vector<3x1024xf32>
    %c15 = arith.constant 15 : index
    %c0_48 = arith.constant 0 : index
    %c0_49 = arith.constant 0 : index
    %78 = vector.load %arg2[%c15, %c0_48, %c0_49] : memref<25x18x3xf32, #tpu.memory_space<vmem>>, vector<1x18x3xf32>
    %79 = vector.shape_cast %78 : vector<1x18x3xf32> to vector<18x3xf32>
    %cst_50 = arith.constant dense<0.000000e+00> : vector<18x1024xf32>
    %80 = tpu.matmul %79, %77, %cst_50 {dimension_numbers = #tpu.dot_dimension_numbers<[1], [0], [0], [1], [0, 0, 1, 1], [], []>} : vector<18x3xf32>, vector<3x1024xf32>, vector<18x1024xf32> -> vector<18x1024xf32>
    %81 = arith.addf %76, %80 : vector<18x1024xf32>
    %c933_i32 = arith.constant 933 : i32
    %82 = tpu.dynamic_rotate %1 by %c933_i32 dim 1 : vector<3x1024xf32>, i32 -> vector<3x1024xf32>
    %c16 = arith.constant 16 : index
    %c0_51 = arith.constant 0 : index
    %c0_52 = arith.constant 0 : index
    %83 = vector.load %arg2[%c16, %c0_51, %c0_52] : memref<25x18x3xf32, #tpu.memory_space<vmem>>, vector<1x18x3xf32>
    %84 = vector.shape_cast %83 : vector<1x18x3xf32> to vector<18x3xf32>
    %cst_53 = arith.constant dense<0.000000e+00> : vector<18x1024xf32>
    %85 = tpu.matmul %84, %82, %cst_53 {dimension_numbers = #tpu.dot_dimension_numbers<[1], [0], [0], [1], [0, 0, 1, 1], [], []>} : vector<18x3xf32>, vector<3x1024xf32>, vector<18x1024xf32> -> vector<18x1024xf32>
    %86 = arith.addf %81, %85 : vector<18x1024xf32>
    %c932_i32 = arith.constant 932 : i32
    %87 = tpu.dynamic_rotate %1 by %c932_i32 dim 1 : vector<3x1024xf32>, i32 -> vector<3x1024xf32>
    %c17 = arith.constant 17 : index
    %c0_54 = arith.constant 0 : index
    %c0_55 = arith.constant 0 : index
    %88 = vector.load %arg2[%c17, %c0_54, %c0_55] : memref<25x18x3xf32, #tpu.memory_space<vmem>>, vector<1x18x3xf32>
    %89 = vector.shape_cast %88 : vector<1x18x3xf32> to vector<18x3xf32>
    %cst_56 = arith.constant dense<0.000000e+00> : vector<18x1024xf32>
    %90 = tpu.matmul %89, %87, %cst_56 {dimension_numbers = #tpu.dot_dimension_numbers<[1], [0], [0], [1], [0, 0, 1, 1], [], []>} : vector<18x3xf32>, vector<3x1024xf32>, vector<18x1024xf32> -> vector<18x1024xf32>
    %91 = arith.addf %86, %90 : vector<18x1024xf32>
    %c931_i32 = arith.constant 931 : i32
    %92 = tpu.dynamic_rotate %1 by %c931_i32 dim 1 : vector<3x1024xf32>, i32 -> vector<3x1024xf32>
    %c18 = arith.constant 18 : index
    %c0_57 = arith.constant 0 : index
    %c0_58 = arith.constant 0 : index
    %93 = vector.load %arg2[%c18, %c0_57, %c0_58] : memref<25x18x3xf32, #tpu.memory_space<vmem>>, vector<1x18x3xf32>
    %94 = vector.shape_cast %93 : vector<1x18x3xf32> to vector<18x3xf32>
    %cst_59 = arith.constant dense<0.000000e+00> : vector<18x1024xf32>
    %95 = tpu.matmul %94, %92, %cst_59 {dimension_numbers = #tpu.dot_dimension_numbers<[1], [0], [0], [1], [0, 0, 1, 1], [], []>} : vector<18x3xf32>, vector<3x1024xf32>, vector<18x1024xf32> -> vector<18x1024xf32>
    %96 = arith.addf %91, %95 : vector<18x1024xf32>
    %c930_i32 = arith.constant 930 : i32
    %97 = tpu.dynamic_rotate %1 by %c930_i32 dim 1 : vector<3x1024xf32>, i32 -> vector<3x1024xf32>
    %c19 = arith.constant 19 : index
    %c0_60 = arith.constant 0 : index
    %c0_61 = arith.constant 0 : index
    %98 = vector.load %arg2[%c19, %c0_60, %c0_61] : memref<25x18x3xf32, #tpu.memory_space<vmem>>, vector<1x18x3xf32>
    %99 = vector.shape_cast %98 : vector<1x18x3xf32> to vector<18x3xf32>
    %cst_62 = arith.constant dense<0.000000e+00> : vector<18x1024xf32>
    %100 = tpu.matmul %99, %97, %cst_62 {dimension_numbers = #tpu.dot_dimension_numbers<[1], [0], [0], [1], [0, 0, 1, 1], [], []>} : vector<18x3xf32>, vector<3x1024xf32>, vector<18x1024xf32> -> vector<18x1024xf32>
    %101 = arith.addf %96, %100 : vector<18x1024xf32>
    %c904_i32 = arith.constant 904 : i32
    %102 = tpu.dynamic_rotate %1 by %c904_i32 dim 1 : vector<3x1024xf32>, i32 -> vector<3x1024xf32>
    %c20 = arith.constant 20 : index
    %c0_63 = arith.constant 0 : index
    %c0_64 = arith.constant 0 : index
    %103 = vector.load %arg2[%c20, %c0_63, %c0_64] : memref<25x18x3xf32, #tpu.memory_space<vmem>>, vector<1x18x3xf32>
    %104 = vector.shape_cast %103 : vector<1x18x3xf32> to vector<18x3xf32>
    %cst_65 = arith.constant dense<0.000000e+00> : vector<18x1024xf32>
    %105 = tpu.matmul %104, %102, %cst_65 {dimension_numbers = #tpu.dot_dimension_numbers<[1], [0], [0], [1], [0, 0, 1, 1], [], []>} : vector<18x3xf32>, vector<3x1024xf32>, vector<18x1024xf32> -> vector<18x1024xf32>
    %106 = arith.addf %101, %105 : vector<18x1024xf32>
    %c903_i32 = arith.constant 903 : i32
    %107 = tpu.dynamic_rotate %1 by %c903_i32 dim 1 : vector<3x1024xf32>, i32 -> vector<3x1024xf32>
    %c21 = arith.constant 21 : index
    %c0_66 = arith.constant 0 : index
    %c0_67 = arith.constant 0 : index
    %108 = vector.load %arg2[%c21, %c0_66, %c0_67] : memref<25x18x3xf32, #tpu.memory_space<vmem>>, vector<1x18x3xf32>
    %109 = vector.shape_cast %108 : vector<1x18x3xf32> to vector<18x3xf32>
    %cst_68 = arith.constant dense<0.000000e+00> : vector<18x1024xf32>
    %110 = tpu.matmul %109, %107, %cst_68 {dimension_numbers = #tpu.dot_dimension_numbers<[1], [0], [0], [1], [0, 0, 1, 1], [], []>} : vector<18x3xf32>, vector<3x1024xf32>, vector<18x1024xf32> -> vector<18x1024xf32>
    %111 = arith.addf %106, %110 : vector<18x1024xf32>
    %c902_i32 = arith.constant 902 : i32
    %112 = tpu.dynamic_rotate %1 by %c902_i32 dim 1 : vector<3x1024xf32>, i32 -> vector<3x1024xf32>
    %c22 = arith.constant 22 : index
    %c0_69 = arith.constant 0 : index
    %c0_70 = arith.constant 0 : index
    %113 = vector.load %arg2[%c22, %c0_69, %c0_70] : memref<25x18x3xf32, #tpu.memory_space<vmem>>, vector<1x18x3xf32>
    %114 = vector.shape_cast %113 : vector<1x18x3xf32> to vector<18x3xf32>
    %cst_71 = arith.constant dense<0.000000e+00> : vector<18x1024xf32>
    %115 = tpu.matmul %114, %112, %cst_71 {dimension_numbers = #tpu.dot_dimension_numbers<[1], [0], [0], [1], [0, 0, 1, 1], [], []>} : vector<18x3xf32>, vector<3x1024xf32>, vector<18x1024xf32> -> vector<18x1024xf32>
    %116 = arith.addf %111, %115 : vector<18x1024xf32>
    %c901_i32 = arith.constant 901 : i32
    %117 = tpu.dynamic_rotate %1 by %c901_i32 dim 1 : vector<3x1024xf32>, i32 -> vector<3x1024xf32>
    %c23 = arith.constant 23 : index
    %c0_72 = arith.constant 0 : index
    %c0_73 = arith.constant 0 : index
    %118 = vector.load %arg2[%c23, %c0_72, %c0_73] : memref<25x18x3xf32, #tpu.memory_space<vmem>>, vector<1x18x3xf32>
    %119 = vector.shape_cast %118 : vector<1x18x3xf32> to vector<18x3xf32>
    %cst_74 = arith.constant dense<0.000000e+00> : vector<18x1024xf32>
    %120 = tpu.matmul %119, %117, %cst_74 {dimension_numbers = #tpu.dot_dimension_numbers<[1], [0], [0], [1], [0, 0, 1, 1], [], []>} : vector<18x3xf32>, vector<3x1024xf32>, vector<18x1024xf32> -> vector<18x1024xf32>
    %121 = arith.addf %116, %120 : vector<18x1024xf32>
    %c900_i32 = arith.constant 900 : i32
    %122 = tpu.dynamic_rotate %1 by %c900_i32 dim 1 : vector<3x1024xf32>, i32 -> vector<3x1024xf32>
    %c24 = arith.constant 24 : index
    %c0_75 = arith.constant 0 : index
    %c0_76 = arith.constant 0 : index
    %123 = vector.load %arg2[%c24, %c0_75, %c0_76] : memref<25x18x3xf32, #tpu.memory_space<vmem>>, vector<1x18x3xf32>
    %124 = vector.shape_cast %123 : vector<1x18x3xf32> to vector<18x3xf32>
    %cst_77 = arith.constant dense<0.000000e+00> : vector<18x1024xf32>
    %125 = tpu.matmul %124, %122, %cst_77 {dimension_numbers = #tpu.dot_dimension_numbers<[1], [0], [0], [1], [0, 0, 1, 1], [], []>} : vector<18x3xf32>, vector<3x1024xf32>, vector<18x1024xf32> -> vector<18x1024xf32>
    %126 = arith.addf %121, %125 : vector<18x1024xf32>
    %c0_78 = arith.constant 0 : index
    %c0_79 = arith.constant 0 : index
    %127 = vector.load %arg3[%c0_78, %c0_79] : memref<18x1xf32, #tpu.memory_space<vmem>>, vector<18x1xf32>
    %128 = vector.broadcast %127 : vector<18x1xf32> to vector<18x1024xf32>
    %129 = arith.addf %126, %128 : vector<18x1024xf32>
    %130 = math.tanh %129 : vector<18x1024xf32>
    %c0_80 = arith.constant 0 : index
    %c0_81 = arith.constant 0 : index
    %131 = vector.load %arg4[%c0_80, %c0_81] : memref<1024x256xf32, #tpu.memory_space<vmem>>, vector<1024x256xf32>
    %cst_82 = arith.constant dense<0.000000e+00> : vector<18x256xf32>
    %132 = tpu.matmul %130, %131, %cst_82 {dimension_numbers = #tpu.dot_dimension_numbers<[1], [0], [0], [1], [0, 0, 1, 1], [], []>} : vector<18x1024xf32>, vector<1024x256xf32>, vector<18x256xf32> -> vector<18x256xf32>
    %cst_83 = arith.constant 0.000000e+00 : f32
    %133 = vector.broadcast %cst_83 : f32 to vector<48x104xf32>
    %c0_84 = arith.constant 0 : index
    %c0_85 = arith.constant 0 : index
    %c0_86 = arith.constant 0 : index
    %134 = vector.load %arg5[%c0_84, %c0_85, %c0_86] : memref<36x48x18xf32, #tpu.memory_space<vmem>>, vector<1x48x18xf32>
    %135 = vector.shape_cast %134 : vector<1x48x18xf32> to vector<48x18xf32>
    %136 = vector.extract_strided_slice %132 {offsets = [0, 0], sizes = [18, 104], strides = [1, 1]} : vector<18x256xf32> to vector<18x104xf32>
    %cst_87 = arith.constant dense<0.000000e+00> : vector<48x104xf32>
    %137 = tpu.matmul %135, %136, %cst_87 {dimension_numbers = #tpu.dot_dimension_numbers<[1], [0], [0], [1], [0, 0, 1, 1], [], []>} : vector<48x18xf32>, vector<18x104xf32>, vector<48x104xf32> -> vector<48x104xf32>
    %138 = arith.addf %133, %137 : vector<48x104xf32>
    %c255_i32 = arith.constant 255 : i32
    %139 = tpu.dynamic_rotate %132 by %c255_i32 dim 1 : vector<18x256xf32>, i32 -> vector<18x256xf32>
    %c1_88 = arith.constant 1 : index
    %c0_89 = arith.constant 0 : index
    %c0_90 = arith.constant 0 : index
    %140 = vector.load %arg5[%c1_88, %c0_89, %c0_90] : memref<36x48x18xf32, #tpu.memory_space<vmem>>, vector<1x48x18xf32>
    %141 = vector.shape_cast %140 : vector<1x48x18xf32> to vector<48x18xf32>
    %142 = vector.extract_strided_slice %139 {offsets = [0, 0], sizes = [18, 104], strides = [1, 1]} : vector<18x256xf32> to vector<18x104xf32>
    %cst_91 = arith.constant dense<0.000000e+00> : vector<48x104xf32>
    %143 = tpu.matmul %141, %142, %cst_91 {dimension_numbers = #tpu.dot_dimension_numbers<[1], [0], [0], [1], [0, 0, 1, 1], [], []>} : vector<48x18xf32>, vector<18x104xf32>, vector<48x104xf32> -> vector<48x104xf32>
    %144 = arith.addf %138, %143 : vector<48x104xf32>
    %c254_i32 = arith.constant 254 : i32
    %145 = tpu.dynamic_rotate %132 by %c254_i32 dim 1 : vector<18x256xf32>, i32 -> vector<18x256xf32>
    %c2_92 = arith.constant 2 : index
    %c0_93 = arith.constant 0 : index
    %c0_94 = arith.constant 0 : index
    %146 = vector.load %arg5[%c2_92, %c0_93, %c0_94] : memref<36x48x18xf32, #tpu.memory_space<vmem>>, vector<1x48x18xf32>
    %147 = vector.shape_cast %146 : vector<1x48x18xf32> to vector<48x18xf32>
    %148 = vector.extract_strided_slice %145 {offsets = [0, 0], sizes = [18, 104], strides = [1, 1]} : vector<18x256xf32> to vector<18x104xf32>
    %cst_95 = arith.constant dense<0.000000e+00> : vector<48x104xf32>
    %149 = tpu.matmul %147, %148, %cst_95 {dimension_numbers = #tpu.dot_dimension_numbers<[1], [0], [0], [1], [0, 0, 1, 1], [], []>} : vector<48x18xf32>, vector<18x104xf32>, vector<48x104xf32> -> vector<48x104xf32>
    %150 = arith.addf %144, %149 : vector<48x104xf32>
    %c253_i32 = arith.constant 253 : i32
    %151 = tpu.dynamic_rotate %132 by %c253_i32 dim 1 : vector<18x256xf32>, i32 -> vector<18x256xf32>
    %c3_96 = arith.constant 3 : index
    %c0_97 = arith.constant 0 : index
    %c0_98 = arith.constant 0 : index
    %152 = vector.load %arg5[%c3_96, %c0_97, %c0_98] : memref<36x48x18xf32, #tpu.memory_space<vmem>>, vector<1x48x18xf32>
    %153 = vector.shape_cast %152 : vector<1x48x18xf32> to vector<48x18xf32>
    %154 = vector.extract_strided_slice %151 {offsets = [0, 0], sizes = [18, 104], strides = [1, 1]} : vector<18x256xf32> to vector<18x104xf32>
    %cst_99 = arith.constant dense<0.000000e+00> : vector<48x104xf32>
    %155 = tpu.matmul %153, %154, %cst_99 {dimension_numbers = #tpu.dot_dimension_numbers<[1], [0], [0], [1], [0, 0, 1, 1], [], []>} : vector<48x18xf32>, vector<18x104xf32>, vector<48x104xf32> -> vector<48x104xf32>
    %156 = arith.addf %150, %155 : vector<48x104xf32>
    %c252_i32 = arith.constant 252 : i32
    %157 = tpu.dynamic_rotate %132 by %c252_i32 dim 1 : vector<18x256xf32>, i32 -> vector<18x256xf32>
    %c4_100 = arith.constant 4 : index
    %c0_101 = arith.constant 0 : index
    %c0_102 = arith.constant 0 : index
    %158 = vector.load %arg5[%c4_100, %c0_101, %c0_102] : memref<36x48x18xf32, #tpu.memory_space<vmem>>, vector<1x48x18xf32>
    %159 = vector.shape_cast %158 : vector<1x48x18xf32> to vector<48x18xf32>
    %160 = vector.extract_strided_slice %157 {offsets = [0, 0], sizes = [18, 104], strides = [1, 1]} : vector<18x256xf32> to vector<18x104xf32>
    %cst_103 = arith.constant dense<0.000000e+00> : vector<48x104xf32>
    %161 = tpu.matmul %159, %160, %cst_103 {dimension_numbers = #tpu.dot_dimension_numbers<[1], [0], [0], [1], [0, 0, 1, 1], [], []>} : vector<48x18xf32>, vector<18x104xf32>, vector<48x104xf32> -> vector<48x104xf32>
    %162 = arith.addf %156, %161 : vector<48x104xf32>
    %c251_i32 = arith.constant 251 : i32
    %163 = tpu.dynamic_rotate %132 by %c251_i32 dim 1 : vector<18x256xf32>, i32 -> vector<18x256xf32>
    %c5_104 = arith.constant 5 : index
    %c0_105 = arith.constant 0 : index
    %c0_106 = arith.constant 0 : index
    %164 = vector.load %arg5[%c5_104, %c0_105, %c0_106] : memref<36x48x18xf32, #tpu.memory_space<vmem>>, vector<1x48x18xf32>
    %165 = vector.shape_cast %164 : vector<1x48x18xf32> to vector<48x18xf32>
    %166 = vector.extract_strided_slice %163 {offsets = [0, 0], sizes = [18, 104], strides = [1, 1]} : vector<18x256xf32> to vector<18x104xf32>
    %cst_107 = arith.constant dense<0.000000e+00> : vector<48x104xf32>
    %167 = tpu.matmul %165, %166, %cst_107 {dimension_numbers = #tpu.dot_dimension_numbers<[1], [0], [0], [1], [0, 0, 1, 1], [], []>} : vector<48x18xf32>, vector<18x104xf32>, vector<48x104xf32> -> vector<48x104xf32>
    %168 = arith.addf %162, %167 : vector<48x104xf32>
    %c243_i32 = arith.constant 243 : i32
    %169 = tpu.dynamic_rotate %132 by %c243_i32 dim 1 : vector<18x256xf32>, i32 -> vector<18x256xf32>
    %c6_108 = arith.constant 6 : index
    %c0_109 = arith.constant 0 : index
    %c0_110 = arith.constant 0 : index
    %170 = vector.load %arg5[%c6_108, %c0_109, %c0_110] : memref<36x48x18xf32, #tpu.memory_space<vmem>>, vector<1x48x18xf32>
    %171 = vector.shape_cast %170 : vector<1x48x18xf32> to vector<48x18xf32>
    %172 = vector.extract_strided_slice %169 {offsets = [0, 0], sizes = [18, 104], strides = [1, 1]} : vector<18x256xf32> to vector<18x104xf32>
    %cst_111 = arith.constant dense<0.000000e+00> : vector<48x104xf32>
    %173 = tpu.matmul %171, %172, %cst_111 {dimension_numbers = #tpu.dot_dimension_numbers<[1], [0], [0], [1], [0, 0, 1, 1], [], []>} : vector<48x18xf32>, vector<18x104xf32>, vector<48x104xf32> -> vector<48x104xf32>
    %174 = arith.addf %168, %173 : vector<48x104xf32>
    %c242_i32 = arith.constant 242 : i32
    %175 = tpu.dynamic_rotate %132 by %c242_i32 dim 1 : vector<18x256xf32>, i32 -> vector<18x256xf32>
    %c7_112 = arith.constant 7 : index
    %c0_113 = arith.constant 0 : index
    %c0_114 = arith.constant 0 : index
    %176 = vector.load %arg5[%c7_112, %c0_113, %c0_114] : memref<36x48x18xf32, #tpu.memory_space<vmem>>, vector<1x48x18xf32>
    %177 = vector.shape_cast %176 : vector<1x48x18xf32> to vector<48x18xf32>
    %178 = vector.extract_strided_slice %175 {offsets = [0, 0], sizes = [18, 104], strides = [1, 1]} : vector<18x256xf32> to vector<18x104xf32>
    %cst_115 = arith.constant dense<0.000000e+00> : vector<48x104xf32>
    %179 = tpu.matmul %177, %178, %cst_115 {dimension_numbers = #tpu.dot_dimension_numbers<[1], [0], [0], [1], [0, 0, 1, 1], [], []>} : vector<48x18xf32>, vector<18x104xf32>, vector<48x104xf32> -> vector<48x104xf32>
    %180 = arith.addf %174, %179 : vector<48x104xf32>
    %c241_i32 = arith.constant 241 : i32
    %181 = tpu.dynamic_rotate %132 by %c241_i32 dim 1 : vector<18x256xf32>, i32 -> vector<18x256xf32>
    %c8_116 = arith.constant 8 : index
    %c0_117 = arith.constant 0 : index
    %c0_118 = arith.constant 0 : index
    %182 = vector.load %arg5[%c8_116, %c0_117, %c0_118] : memref<36x48x18xf32, #tpu.memory_space<vmem>>, vector<1x48x18xf32>
    %183 = vector.shape_cast %182 : vector<1x48x18xf32> to vector<48x18xf32>
    %184 = vector.extract_strided_slice %181 {offsets = [0, 0], sizes = [18, 104], strides = [1, 1]} : vector<18x256xf32> to vector<18x104xf32>
    %cst_119 = arith.constant dense<0.000000e+00> : vector<48x104xf32>
    %185 = tpu.matmul %183, %184, %cst_119 {dimension_numbers = #tpu.dot_dimension_numbers<[1], [0], [0], [1], [0, 0, 1, 1], [], []>} : vector<48x18xf32>, vector<18x104xf32>, vector<48x104xf32> -> vector<48x104xf32>
    %186 = arith.addf %180, %185 : vector<48x104xf32>
    %c240_i32 = arith.constant 240 : i32
    %187 = tpu.dynamic_rotate %132 by %c240_i32 dim 1 : vector<18x256xf32>, i32 -> vector<18x256xf32>
    %c9_120 = arith.constant 9 : index
    %c0_121 = arith.constant 0 : index
    %c0_122 = arith.constant 0 : index
    %188 = vector.load %arg5[%c9_120, %c0_121, %c0_122] : memref<36x48x18xf32, #tpu.memory_space<vmem>>, vector<1x48x18xf32>
    %189 = vector.shape_cast %188 : vector<1x48x18xf32> to vector<48x18xf32>
    %190 = vector.extract_strided_slice %187 {offsets = [0, 0], sizes = [18, 104], strides = [1, 1]} : vector<18x256xf32> to vector<18x104xf32>
    %cst_123 = arith.constant dense<0.000000e+00> : vector<48x104xf32>
    %191 = tpu.matmul %189, %190, %cst_123 {dimension_numbers = #tpu.dot_dimension_numbers<[1], [0], [0], [1], [0, 0, 1, 1], [], []>} : vector<48x18xf32>, vector<18x104xf32>, vector<48x104xf32> -> vector<48x104xf32>
    %192 = arith.addf %186, %191 : vector<48x104xf32>
    %c239_i32 = arith.constant 239 : i32
    %193 = tpu.dynamic_rotate %132 by %c239_i32 dim 1 : vector<18x256xf32>, i32 -> vector<18x256xf32>
    %c10_124 = arith.constant 10 : index
    %c0_125 = arith.constant 0 : index
    %c0_126 = arith.constant 0 : index
    %194 = vector.load %arg5[%c10_124, %c0_125, %c0_126] : memref<36x48x18xf32, #tpu.memory_space<vmem>>, vector<1x48x18xf32>
    %195 = vector.shape_cast %194 : vector<1x48x18xf32> to vector<48x18xf32>
    %196 = vector.extract_strided_slice %193 {offsets = [0, 0], sizes = [18, 104], strides = [1, 1]} : vector<18x256xf32> to vector<18x104xf32>
    %cst_127 = arith.constant dense<0.000000e+00> : vector<48x104xf32>
    %197 = tpu.matmul %195, %196, %cst_127 {dimension_numbers = #tpu.dot_dimension_numbers<[1], [0], [0], [1], [0, 0, 1, 1], [], []>} : vector<48x18xf32>, vector<18x104xf32>, vector<48x104xf32> -> vector<48x104xf32>
    %198 = arith.addf %192, %197 : vector<48x104xf32>
    %c238_i32 = arith.constant 238 : i32
    %199 = tpu.dynamic_rotate %132 by %c238_i32 dim 1 : vector<18x256xf32>, i32 -> vector<18x256xf32>
    %c11_128 = arith.constant 11 : index
    %c0_129 = arith.constant 0 : index
    %c0_130 = arith.constant 0 : index
    %200 = vector.load %arg5[%c11_128, %c0_129, %c0_130] : memref<36x48x18xf32, #tpu.memory_space<vmem>>, vector<1x48x18xf32>
    %201 = vector.shape_cast %200 : vector<1x48x18xf32> to vector<48x18xf32>
    %202 = vector.extract_strided_slice %199 {offsets = [0, 0], sizes = [18, 104], strides = [1, 1]} : vector<18x256xf32> to vector<18x104xf32>
    %cst_131 = arith.constant dense<0.000000e+00> : vector<48x104xf32>
    %203 = tpu.matmul %201, %202, %cst_131 {dimension_numbers = #tpu.dot_dimension_numbers<[1], [0], [0], [1], [0, 0, 1, 1], [], []>} : vector<48x18xf32>, vector<18x104xf32>, vector<48x104xf32> -> vector<48x104xf32>
    %204 = arith.addf %198, %203 : vector<48x104xf32>
    %c230_i32 = arith.constant 230 : i32
    %205 = tpu.dynamic_rotate %132 by %c230_i32 dim 1 : vector<18x256xf32>, i32 -> vector<18x256xf32>
    %c12_132 = arith.constant 12 : index
    %c0_133 = arith.constant 0 : index
    %c0_134 = arith.constant 0 : index
    %206 = vector.load %arg5[%c12_132, %c0_133, %c0_134] : memref<36x48x18xf32, #tpu.memory_space<vmem>>, vector<1x48x18xf32>
    %207 = vector.shape_cast %206 : vector<1x48x18xf32> to vector<48x18xf32>
    %208 = vector.extract_strided_slice %205 {offsets = [0, 0], sizes = [18, 104], strides = [1, 1]} : vector<18x256xf32> to vector<18x104xf32>
    %cst_135 = arith.constant dense<0.000000e+00> : vector<48x104xf32>
    %209 = tpu.matmul %207, %208, %cst_135 {dimension_numbers = #tpu.dot_dimension_numbers<[1], [0], [0], [1], [0, 0, 1, 1], [], []>} : vector<48x18xf32>, vector<18x104xf32>, vector<48x104xf32> -> vector<48x104xf32>
    %210 = arith.addf %204, %209 : vector<48x104xf32>
    %c229_i32 = arith.constant 229 : i32
    %211 = tpu.dynamic_rotate %132 by %c229_i32 dim 1 : vector<18x256xf32>, i32 -> vector<18x256xf32>
    %c13_136 = arith.constant 13 : index
    %c0_137 = arith.constant 0 : index
    %c0_138 = arith.constant 0 : index
    %212 = vector.load %arg5[%c13_136, %c0_137, %c0_138] : memref<36x48x18xf32, #tpu.memory_space<vmem>>, vector<1x48x18xf32>
    %213 = vector.shape_cast %212 : vector<1x48x18xf32> to vector<48x18xf32>
    %214 = vector.extract_strided_slice %211 {offsets = [0, 0], sizes = [18, 104], strides = [1, 1]} : vector<18x256xf32> to vector<18x104xf32>
    %cst_139 = arith.constant dense<0.000000e+00> : vector<48x104xf32>
    %215 = tpu.matmul %213, %214, %cst_139 {dimension_numbers = #tpu.dot_dimension_numbers<[1], [0], [0], [1], [0, 0, 1, 1], [], []>} : vector<48x18xf32>, vector<18x104xf32>, vector<48x104xf32> -> vector<48x104xf32>
    %216 = arith.addf %210, %215 : vector<48x104xf32>
    %c228_i32 = arith.constant 228 : i32
    %217 = tpu.dynamic_rotate %132 by %c228_i32 dim 1 : vector<18x256xf32>, i32 -> vector<18x256xf32>
    %c14_140 = arith.constant 14 : index
    %c0_141 = arith.constant 0 : index
    %c0_142 = arith.constant 0 : index
    %218 = vector.load %arg5[%c14_140, %c0_141, %c0_142] : memref<36x48x18xf32, #tpu.memory_space<vmem>>, vector<1x48x18xf32>
    %219 = vector.shape_cast %218 : vector<1x48x18xf32> to vector<48x18xf32>
    %220 = vector.extract_strided_slice %217 {offsets = [0, 0], sizes = [18, 104], strides = [1, 1]} : vector<18x256xf32> to vector<18x104xf32>
    %cst_143 = arith.constant dense<0.000000e+00> : vector<48x104xf32>
    %221 = tpu.matmul %219, %220, %cst_143 {dimension_numbers = #tpu.dot_dimension_numbers<[1], [0], [0], [1], [0, 0, 1, 1], [], []>} : vector<48x18xf32>, vector<18x104xf32>, vector<48x104xf32> -> vector<48x104xf32>
    %222 = arith.addf %216, %221 : vector<48x104xf32>
    %c227_i32 = arith.constant 227 : i32
    %223 = tpu.dynamic_rotate %132 by %c227_i32 dim 1 : vector<18x256xf32>, i32 -> vector<18x256xf32>
    %c15_144 = arith.constant 15 : index
    %c0_145 = arith.constant 0 : index
    %c0_146 = arith.constant 0 : index
    %224 = vector.load %arg5[%c15_144, %c0_145, %c0_146] : memref<36x48x18xf32, #tpu.memory_space<vmem>>, vector<1x48x18xf32>
    %225 = vector.shape_cast %224 : vector<1x48x18xf32> to vector<48x18xf32>
    %226 = vector.extract_strided_slice %223 {offsets = [0, 0], sizes = [18, 104], strides = [1, 1]} : vector<18x256xf32> to vector<18x104xf32>
    %cst_147 = arith.constant dense<0.000000e+00> : vector<48x104xf32>
    %227 = tpu.matmul %225, %226, %cst_147 {dimension_numbers = #tpu.dot_dimension_numbers<[1], [0], [0], [1], [0, 0, 1, 1], [], []>} : vector<48x18xf32>, vector<18x104xf32>, vector<48x104xf32> -> vector<48x104xf32>
    %228 = arith.addf %222, %227 : vector<48x104xf32>
    %c226_i32 = arith.constant 226 : i32
    %229 = tpu.dynamic_rotate %132 by %c226_i32 dim 1 : vector<18x256xf32>, i32 -> vector<18x256xf32>
    %c16_148 = arith.constant 16 : index
    %c0_149 = arith.constant 0 : index
    %c0_150 = arith.constant 0 : index
    %230 = vector.load %arg5[%c16_148, %c0_149, %c0_150] : memref<36x48x18xf32, #tpu.memory_space<vmem>>, vector<1x48x18xf32>
    %231 = vector.shape_cast %230 : vector<1x48x18xf32> to vector<48x18xf32>
    %232 = vector.extract_strided_slice %229 {offsets = [0, 0], sizes = [18, 104], strides = [1, 1]} : vector<18x256xf32> to vector<18x104xf32>
    %cst_151 = arith.constant dense<0.000000e+00> : vector<48x104xf32>
    %233 = tpu.matmul %231, %232, %cst_151 {dimension_numbers = #tpu.dot_dimension_numbers<[1], [0], [0], [1], [0, 0, 1, 1], [], []>} : vector<48x18xf32>, vector<18x104xf32>, vector<48x104xf32> -> vector<48x104xf32>
    %234 = arith.addf %228, %233 : vector<48x104xf32>
    %c225_i32 = arith.constant 225 : i32
    %235 = tpu.dynamic_rotate %132 by %c225_i32 dim 1 : vector<18x256xf32>, i32 -> vector<18x256xf32>
    %c17_152 = arith.constant 17 : index
    %c0_153 = arith.constant 0 : index
    %c0_154 = arith.constant 0 : index
    %236 = vector.load %arg5[%c17_152, %c0_153, %c0_154] : memref<36x48x18xf32, #tpu.memory_space<vmem>>, vector<1x48x18xf32>
    %237 = vector.shape_cast %236 : vector<1x48x18xf32> to vector<48x18xf32>
    %238 = vector.extract_strided_slice %235 {offsets = [0, 0], sizes = [18, 104], strides = [1, 1]} : vector<18x256xf32> to vector<18x104xf32>
    %cst_155 = arith.constant dense<0.000000e+00> : vector<48x104xf32>
    %239 = tpu.matmul %237, %238, %cst_155 {dimension_numbers = #tpu.dot_dimension_numbers<[1], [0], [0], [1], [0, 0, 1, 1], [], []>} : vector<48x18xf32>, vector<18x104xf32>, vector<48x104xf32> -> vector<48x104xf32>
    %240 = arith.addf %234, %239 : vector<48x104xf32>
    %c217_i32 = arith.constant 217 : i32
    %241 = tpu.dynamic_rotate %132 by %c217_i32 dim 1 : vector<18x256xf32>, i32 -> vector<18x256xf32>
    %c18_156 = arith.constant 18 : index
    %c0_157 = arith.constant 0 : index
    %c0_158 = arith.constant 0 : index
    %242 = vector.load %arg5[%c18_156, %c0_157, %c0_158] : memref<36x48x18xf32, #tpu.memory_space<vmem>>, vector<1x48x18xf32>
    %243 = vector.shape_cast %242 : vector<1x48x18xf32> to vector<48x18xf32>
    %244 = vector.extract_strided_slice %241 {offsets = [0, 0], sizes = [18, 104], strides = [1, 1]} : vector<18x256xf32> to vector<18x104xf32>
    %cst_159 = arith.constant dense<0.000000e+00> : vector<48x104xf32>
    %245 = tpu.matmul %243, %244, %cst_159 {dimension_numbers = #tpu.dot_dimension_numbers<[1], [0], [0], [1], [0, 0, 1, 1], [], []>} : vector<48x18xf32>, vector<18x104xf32>, vector<48x104xf32> -> vector<48x104xf32>
    %246 = arith.addf %240, %245 : vector<48x104xf32>
    %c216_i32 = arith.constant 216 : i32
    %247 = tpu.dynamic_rotate %132 by %c216_i32 dim 1 : vector<18x256xf32>, i32 -> vector<18x256xf32>
    %c19_160 = arith.constant 19 : index
    %c0_161 = arith.constant 0 : index
    %c0_162 = arith.constant 0 : index
    %248 = vector.load %arg5[%c19_160, %c0_161, %c0_162] : memref<36x48x18xf32, #tpu.memory_space<vmem>>, vector<1x48x18xf32>
    %249 = vector.shape_cast %248 : vector<1x48x18xf32> to vector<48x18xf32>
    %250 = vector.extract_strided_slice %247 {offsets = [0, 0], sizes = [18, 104], strides = [1, 1]} : vector<18x256xf32> to vector<18x104xf32>
    %cst_163 = arith.constant dense<0.000000e+00> : vector<48x104xf32>
    %251 = tpu.matmul %249, %250, %cst_163 {dimension_numbers = #tpu.dot_dimension_numbers<[1], [0], [0], [1], [0, 0, 1, 1], [], []>} : vector<48x18xf32>, vector<18x104xf32>, vector<48x104xf32> -> vector<48x104xf32>
    %252 = arith.addf %246, %251 : vector<48x104xf32>
    %c215_i32 = arith.constant 215 : i32
    %253 = tpu.dynamic_rotate %132 by %c215_i32 dim 1 : vector<18x256xf32>, i32 -> vector<18x256xf32>
    %c20_164 = arith.constant 20 : index
    %c0_165 = arith.constant 0 : index
    %c0_166 = arith.constant 0 : index
    %254 = vector.load %arg5[%c20_164, %c0_165, %c0_166] : memref<36x48x18xf32, #tpu.memory_space<vmem>>, vector<1x48x18xf32>
    %255 = vector.shape_cast %254 : vector<1x48x18xf32> to vector<48x18xf32>
    %256 = vector.extract_strided_slice %253 {offsets = [0, 0], sizes = [18, 104], strides = [1, 1]} : vector<18x256xf32> to vector<18x104xf32>
    %cst_167 = arith.constant dense<0.000000e+00> : vector<48x104xf32>
    %257 = tpu.matmul %255, %256, %cst_167 {dimension_numbers = #tpu.dot_dimension_numbers<[1], [0], [0], [1], [0, 0, 1, 1], [], []>} : vector<48x18xf32>, vector<18x104xf32>, vector<48x104xf32> -> vector<48x104xf32>
    %258 = arith.addf %252, %257 : vector<48x104xf32>
    %c214_i32 = arith.constant 214 : i32
    %259 = tpu.dynamic_rotate %132 by %c214_i32 dim 1 : vector<18x256xf32>, i32 -> vector<18x256xf32>
    %c21_168 = arith.constant 21 : index
    %c0_169 = arith.constant 0 : index
    %c0_170 = arith.constant 0 : index
    %260 = vector.load %arg5[%c21_168, %c0_169, %c0_170] : memref<36x48x18xf32, #tpu.memory_space<vmem>>, vector<1x48x18xf32>
    %261 = vector.shape_cast %260 : vector<1x48x18xf32> to vector<48x18xf32>
    %262 = vector.extract_strided_slice %259 {offsets = [0, 0], sizes = [18, 104], strides = [1, 1]} : vector<18x256xf32> to vector<18x104xf32>
    %cst_171 = arith.constant dense<0.000000e+00> : vector<48x104xf32>
    %263 = tpu.matmul %261, %262, %cst_171 {dimension_numbers = #tpu.dot_dimension_numbers<[1], [0], [0], [1], [0, 0, 1, 1], [], []>} : vector<48x18xf32>, vector<18x104xf32>, vector<48x104xf32> -> vector<48x104xf32>
    %264 = arith.addf %258, %263 : vector<48x104xf32>
    %c213_i32 = arith.constant 213 : i32
    %265 = tpu.dynamic_rotate %132 by %c213_i32 dim 1 : vector<18x256xf32>, i32 -> vector<18x256xf32>
    %c22_172 = arith.constant 22 : index
    %c0_173 = arith.constant 0 : index
    %c0_174 = arith.constant 0 : index
    %266 = vector.load %arg5[%c22_172, %c0_173, %c0_174] : memref<36x48x18xf32, #tpu.memory_space<vmem>>, vector<1x48x18xf32>
    %267 = vector.shape_cast %266 : vector<1x48x18xf32> to vector<48x18xf32>
    %268 = vector.extract_strided_slice %265 {offsets = [0, 0], sizes = [18, 104], strides = [1, 1]} : vector<18x256xf32> to vector<18x104xf32>
    %cst_175 = arith.constant dense<0.000000e+00> : vector<48x104xf32>
    %269 = tpu.matmul %267, %268, %cst_175 {dimension_numbers = #tpu.dot_dimension_numbers<[1], [0], [0], [1], [0, 0, 1, 1], [], []>} : vector<48x18xf32>, vector<18x104xf32>, vector<48x104xf32> -> vector<48x104xf32>
    %270 = arith.addf %264, %269 : vector<48x104xf32>
    %c212_i32 = arith.constant 212 : i32
    %271 = tpu.dynamic_rotate %132 by %c212_i32 dim 1 : vector<18x256xf32>, i32 -> vector<18x256xf32>
    %c23_176 = arith.constant 23 : index
    %c0_177 = arith.constant 0 : index
    %c0_178 = arith.constant 0 : index
    %272 = vector.load %arg5[%c23_176, %c0_177, %c0_178] : memref<36x48x18xf32, #tpu.memory_space<vmem>>, vector<1x48x18xf32>
    %273 = vector.shape_cast %272 : vector<1x48x18xf32> to vector<48x18xf32>
    %274 = vector.extract_strided_slice %271 {offsets = [0, 0], sizes = [18, 104], strides = [1, 1]} : vector<18x256xf32> to vector<18x104xf32>
    %cst_179 = arith.constant dense<0.000000e+00> : vector<48x104xf32>
    %275 = tpu.matmul %273, %274, %cst_179 {dimension_numbers = #tpu.dot_dimension_numbers<[1], [0], [0], [1], [0, 0, 1, 1], [], []>} : vector<48x18xf32>, vector<18x104xf32>, vector<48x104xf32> -> vector<48x104xf32>
    %276 = arith.addf %270, %275 : vector<48x104xf32>
    %c204_i32 = arith.constant 204 : i32
    %277 = tpu.dynamic_rotate %132 by %c204_i32 dim 1 : vector<18x256xf32>, i32 -> vector<18x256xf32>
    %c24_180 = arith.constant 24 : index
    %c0_181 = arith.constant 0 : index
    %c0_182 = arith.constant 0 : index
    %278 = vector.load %arg5[%c24_180, %c0_181, %c0_182] : memref<36x48x18xf32, #tpu.memory_space<vmem>>, vector<1x48x18xf32>
    %279 = vector.shape_cast %278 : vector<1x48x18xf32> to vector<48x18xf32>
    %280 = vector.extract_strided_slice %277 {offsets = [0, 0], sizes = [18, 104], strides = [1, 1]} : vector<18x256xf32> to vector<18x104xf32>
    %cst_183 = arith.constant dense<0.000000e+00> : vector<48x104xf32>
    %281 = tpu.matmul %279, %280, %cst_183 {dimension_numbers = #tpu.dot_dimension_numbers<[1], [0], [0], [1], [0, 0, 1, 1], [], []>} : vector<48x18xf32>, vector<18x104xf32>, vector<48x104xf32> -> vector<48x104xf32>
    %282 = arith.addf %276, %281 : vector<48x104xf32>
    %c203_i32 = arith.constant 203 : i32
    %283 = tpu.dynamic_rotate %132 by %c203_i32 dim 1 : vector<18x256xf32>, i32 -> vector<18x256xf32>
    %c25 = arith.constant 25 : index
    %c0_184 = arith.constant 0 : index
    %c0_185 = arith.constant 0 : index
    %284 = vector.load %arg5[%c25, %c0_184, %c0_185] : memref<36x48x18xf32, #tpu.memory_space<vmem>>, vector<1x48x18xf32>
    %285 = vector.shape_cast %284 : vector<1x48x18xf32> to vector<48x18xf32>
    %286 = vector.extract_strided_slice %283 {offsets = [0, 0], sizes = [18, 104], strides = [1, 1]} : vector<18x256xf32> to vector<18x104xf32>
    %cst_186 = arith.constant dense<0.000000e+00> : vector<48x104xf32>
    %287 = tpu.matmul %285, %286, %cst_186 {dimension_numbers = #tpu.dot_dimension_numbers<[1], [0], [0], [1], [0, 0, 1, 1], [], []>} : vector<48x18xf32>, vector<18x104xf32>, vector<48x104xf32> -> vector<48x104xf32>
    %288 = arith.addf %282, %287 : vector<48x104xf32>
    %c202_i32 = arith.constant 202 : i32
    %289 = tpu.dynamic_rotate %132 by %c202_i32 dim 1 : vector<18x256xf32>, i32 -> vector<18x256xf32>
    %c26 = arith.constant 26 : index
    %c0_187 = arith.constant 0 : index
    %c0_188 = arith.constant 0 : index
    %290 = vector.load %arg5[%c26, %c0_187, %c0_188] : memref<36x48x18xf32, #tpu.memory_space<vmem>>, vector<1x48x18xf32>
    %291 = vector.shape_cast %290 : vector<1x48x18xf32> to vector<48x18xf32>
    %292 = vector.extract_strided_slice %289 {offsets = [0, 0], sizes = [18, 104], strides = [1, 1]} : vector<18x256xf32> to vector<18x104xf32>
    %cst_189 = arith.constant dense<0.000000e+00> : vector<48x104xf32>
    %293 = tpu.matmul %291, %292, %cst_189 {dimension_numbers = #tpu.dot_dimension_numbers<[1], [0], [0], [1], [0, 0, 1, 1], [], []>} : vector<48x18xf32>, vector<18x104xf32>, vector<48x104xf32> -> vector<48x104xf32>
    %294 = arith.addf %288, %293 : vector<48x104xf32>
    %c201_i32 = arith.constant 201 : i32
    %295 = tpu.dynamic_rotate %132 by %c201_i32 dim 1 : vector<18x256xf32>, i32 -> vector<18x256xf32>
    %c27 = arith.constant 27 : index
    %c0_190 = arith.constant 0 : index
    %c0_191 = arith.constant 0 : index
    %296 = vector.load %arg5[%c27, %c0_190, %c0_191] : memref<36x48x18xf32, #tpu.memory_space<vmem>>, vector<1x48x18xf32>
    %297 = vector.shape_cast %296 : vector<1x48x18xf32> to vector<48x18xf32>
    %298 = vector.extract_strided_slice %295 {offsets = [0, 0], sizes = [18, 104], strides = [1, 1]} : vector<18x256xf32> to vector<18x104xf32>
    %cst_192 = arith.constant dense<0.000000e+00> : vector<48x104xf32>
    %299 = tpu.matmul %297, %298, %cst_192 {dimension_numbers = #tpu.dot_dimension_numbers<[1], [0], [0], [1], [0, 0, 1, 1], [], []>} : vector<48x18xf32>, vector<18x104xf32>, vector<48x104xf32> -> vector<48x104xf32>
    %300 = arith.addf %294, %299 : vector<48x104xf32>
    %c200_i32 = arith.constant 200 : i32
    %301 = tpu.dynamic_rotate %132 by %c200_i32 dim 1 : vector<18x256xf32>, i32 -> vector<18x256xf32>
    %c28 = arith.constant 28 : index
    %c0_193 = arith.constant 0 : index
    %c0_194 = arith.constant 0 : index
    %302 = vector.load %arg5[%c28, %c0_193, %c0_194] : memref<36x48x18xf32, #tpu.memory_space<vmem>>, vector<1x48x18xf32>
    %303 = vector.shape_cast %302 : vector<1x48x18xf32> to vector<48x18xf32>
    %304 = vector.extract_strided_slice %301 {offsets = [0, 0], sizes = [18, 104], strides = [1, 1]} : vector<18x256xf32> to vector<18x104xf32>
    %cst_195 = arith.constant dense<0.000000e+00> : vector<48x104xf32>
    %305 = tpu.matmul %303, %304, %cst_195 {dimension_numbers = #tpu.dot_dimension_numbers<[1], [0], [0], [1], [0, 0, 1, 1], [], []>} : vector<48x18xf32>, vector<18x104xf32>, vector<48x104xf32> -> vector<48x104xf32>
    %306 = arith.addf %300, %305 : vector<48x104xf32>
    %c199_i32 = arith.constant 199 : i32
    %307 = tpu.dynamic_rotate %132 by %c199_i32 dim 1 : vector<18x256xf32>, i32 -> vector<18x256xf32>
    %c29 = arith.constant 29 : index
    %c0_196 = arith.constant 0 : index
    %c0_197 = arith.constant 0 : index
    %308 = vector.load %arg5[%c29, %c0_196, %c0_197] : memref<36x48x18xf32, #tpu.memory_space<vmem>>, vector<1x48x18xf32>
    %309 = vector.shape_cast %308 : vector<1x48x18xf32> to vector<48x18xf32>
    %310 = vector.extract_strided_slice %307 {offsets = [0, 0], sizes = [18, 104], strides = [1, 1]} : vector<18x256xf32> to vector<18x104xf32>
    %cst_198 = arith.constant dense<0.000000e+00> : vector<48x104xf32>
    %311 = tpu.matmul %309, %310, %cst_198 {dimension_numbers = #tpu.dot_dimension_numbers<[1], [0], [0], [1], [0, 0, 1, 1], [], []>} : vector<48x18xf32>, vector<18x104xf32>, vector<48x104xf32> -> vector<48x104xf32>
    %312 = arith.addf %306, %311 : vector<48x104xf32>
    %c191_i32 = arith.constant 191 : i32
    %313 = tpu.dynamic_rotate %132 by %c191_i32 dim 1 : vector<18x256xf32>, i32 -> vector<18x256xf32>
    %c30 = arith.constant 30 : index
    %c0_199 = arith.constant 0 : index
    %c0_200 = arith.constant 0 : index
    %314 = vector.load %arg5[%c30, %c0_199, %c0_200] : memref<36x48x18xf32, #tpu.memory_space<vmem>>, vector<1x48x18xf32>
    %315 = vector.shape_cast %314 : vector<1x48x18xf32> to vector<48x18xf32>
    %316 = vector.extract_strided_slice %313 {offsets = [0, 0], sizes = [18, 104], strides = [1, 1]} : vector<18x256xf32> to vector<18x104xf32>
    %cst_201 = arith.constant dense<0.000000e+00> : vector<48x104xf32>
    %317 = tpu.matmul %315, %316, %cst_201 {dimension_numbers = #tpu.dot_dimension_numbers<[1], [0], [0], [1], [0, 0, 1, 1], [], []>} : vector<48x18xf32>, vector<18x104xf32>, vector<48x104xf32> -> vector<48x104xf32>
    %318 = arith.addf %312, %317 : vector<48x104xf32>
    %c190_i32 = arith.constant 190 : i32
    %319 = tpu.dynamic_rotate %132 by %c190_i32 dim 1 : vector<18x256xf32>, i32 -> vector<18x256xf32>
    %c31 = arith.constant 31 : index
    %c0_202 = arith.constant 0 : index
    %c0_203 = arith.constant 0 : index
    %320 = vector.load %arg5[%c31, %c0_202, %c0_203] : memref<36x48x18xf32, #tpu.memory_space<vmem>>, vector<1x48x18xf32>
    %321 = vector.shape_cast %320 : vector<1x48x18xf32> to vector<48x18xf32>
    %322 = vector.extract_strided_slice %319 {offsets = [0, 0], sizes = [18, 104], strides = [1, 1]} : vector<18x256xf32> to vector<18x104xf32>
    %cst_204 = arith.constant dense<0.000000e+00> : vector<48x104xf32>
    %323 = tpu.matmul %321, %322, %cst_204 {dimension_numbers = #tpu.dot_dimension_numbers<[1], [0], [0], [1], [0, 0, 1, 1], [], []>} : vector<48x18xf32>, vector<18x104xf32>, vector<48x104xf32> -> vector<48x104xf32>
    %324 = arith.addf %318, %323 : vector<48x104xf32>
    %c189_i32 = arith.constant 189 : i32
    %325 = tpu.dynamic_rotate %132 by %c189_i32 dim 1 : vector<18x256xf32>, i32 -> vector<18x256xf32>
    %c32 = arith.constant 32 : index
    %c0_205 = arith.constant 0 : index
    %c0_206 = arith.constant 0 : index
    %326 = vector.load %arg5[%c32, %c0_205, %c0_206] : memref<36x48x18xf32, #tpu.memory_space<vmem>>, vector<1x48x18xf32>
    %327 = vector.shape_cast %326 : vector<1x48x18xf32> to vector<48x18xf32>
    %328 = vector.extract_strided_slice %325 {offsets = [0, 0], sizes = [18, 104], strides = [1, 1]} : vector<18x256xf32> to vector<18x104xf32>
    %cst_207 = arith.constant dense<0.000000e+00> : vector<48x104xf32>
    %329 = tpu.matmul %327, %328, %cst_207 {dimension_numbers = #tpu.dot_dimension_numbers<[1], [0], [0], [1], [0, 0, 1, 1], [], []>} : vector<48x18xf32>, vector<18x104xf32>, vector<48x104xf32> -> vector<48x104xf32>
    %330 = arith.addf %324, %329 : vector<48x104xf32>
    %c188_i32 = arith.constant 188 : i32
    %331 = tpu.dynamic_rotate %132 by %c188_i32 dim 1 : vector<18x256xf32>, i32 -> vector<18x256xf32>
    %c33 = arith.constant 33 : index
    %c0_208 = arith.constant 0 : index
    %c0_209 = arith.constant 0 : index
    %332 = vector.load %arg5[%c33, %c0_208, %c0_209] : memref<36x48x18xf32, #tpu.memory_space<vmem>>, vector<1x48x18xf32>
    %333 = vector.shape_cast %332 : vector<1x48x18xf32> to vector<48x18xf32>
    %334 = vector.extract_strided_slice %331 {offsets = [0, 0], sizes = [18, 104], strides = [1, 1]} : vector<18x256xf32> to vector<18x104xf32>
    %cst_210 = arith.constant dense<0.000000e+00> : vector<48x104xf32>
    %335 = tpu.matmul %333, %334, %cst_210 {dimension_numbers = #tpu.dot_dimension_numbers<[1], [0], [0], [1], [0, 0, 1, 1], [], []>} : vector<48x18xf32>, vector<18x104xf32>, vector<48x104xf32> -> vector<48x104xf32>
    %336 = arith.addf %330, %335 : vector<48x104xf32>
    %c187_i32 = arith.constant 187 : i32
    %337 = tpu.dynamic_rotate %132 by %c187_i32 dim 1 : vector<18x256xf32>, i32 -> vector<18x256xf32>
    %c34 = arith.constant 34 : index
    %c0_211 = arith.constant 0 : index
    %c0_212 = arith.constant 0 : index
    %338 = vector.load %arg5[%c34, %c0_211, %c0_212] : memref<36x48x18xf32, #tpu.memory_space<vmem>>, vector<1x48x18xf32>
    %339 = vector.shape_cast %338 : vector<1x48x18xf32> to vector<48x18xf32>
    %340 = vector.extract_strided_slice %337 {offsets = [0, 0], sizes = [18, 104], strides = [1, 1]} : vector<18x256xf32> to vector<18x104xf32>
    %cst_213 = arith.constant dense<0.000000e+00> : vector<48x104xf32>
    %341 = tpu.matmul %339, %340, %cst_213 {dimension_numbers = #tpu.dot_dimension_numbers<[1], [0], [0], [1], [0, 0, 1, 1], [], []>} : vector<48x18xf32>, vector<18x104xf32>, vector<48x104xf32> -> vector<48x104xf32>
    %342 = arith.addf %336, %341 : vector<48x104xf32>
    %c186_i32 = arith.constant 186 : i32
    %343 = tpu.dynamic_rotate %132 by %c186_i32 dim 1 : vector<18x256xf32>, i32 -> vector<18x256xf32>
    %c35 = arith.constant 35 : index
    %c0_214 = arith.constant 0 : index
    %c0_215 = arith.constant 0 : index
    %344 = vector.load %arg5[%c35, %c0_214, %c0_215] : memref<36x48x18xf32, #tpu.memory_space<vmem>>, vector<1x48x18xf32>
    %345 = vector.shape_cast %344 : vector<1x48x18xf32> to vector<48x18xf32>
    %346 = vector.extract_strided_slice %343 {offsets = [0, 0], sizes = [18, 104], strides = [1, 1]} : vector<18x256xf32> to vector<18x104xf32>
    %cst_216 = arith.constant dense<0.000000e+00> : vector<48x104xf32>
    %347 = tpu.matmul %345, %346, %cst_216 {dimension_numbers = #tpu.dot_dimension_numbers<[1], [0], [0], [1], [0, 0, 1, 1], [], []>} : vector<48x18xf32>, vector<18x104xf32>, vector<48x104xf32> -> vector<48x104xf32>
    %348 = arith.addf %342, %347 : vector<48x104xf32>
    %c0_217 = arith.constant 0 : index
    %c0_218 = arith.constant 0 : index
    %349 = vector.load %arg6[%c0_217, %c0_218] : memref<48x1xf32, #tpu.memory_space<vmem>>, vector<48x1xf32>
    %350 = vector.broadcast %349 : vector<48x1xf32> to vector<48x104xf32>
    %351 = arith.addf %348, %350 : vector<48x104xf32>
    %352 = math.tanh %351 : vector<48x104xf32>
    %c0_219 = arith.constant 0 : index
    %c0_220 = arith.constant 0 : index
    %353 = vector.load %arg7[%c0_219, %c0_220] : memref<104x16xf32, #tpu.memory_space<vmem>>, vector<104x16xf32>
    %cst_221 = arith.constant dense<0.000000e+00> : vector<48x16xf32>
    %354 = tpu.matmul %352, %353, %cst_221 {dimension_numbers = #tpu.dot_dimension_numbers<[1], [0], [0], [1], [0, 0, 1, 1], [], []>} : vector<48x104xf32>, vector<104x16xf32>, vector<48x16xf32> -> vector<48x16xf32>
    %cst_222 = arith.constant 0.000000e+00 : f32
    %355 = vector.broadcast %cst_222 : f32 to vector<1x84xf32>
    %356 = vector.extract_strided_slice %354 {offsets = [0, 0], sizes = [1, 16], strides = [1, 1]} : vector<48x16xf32> to vector<1x16xf32>
    %c0_223 = arith.constant 0 : index
    %c0_224 = arith.constant 0 : index
    %c0_225 = arith.constant 0 : index
    %357 = vector.load %arg8[%c0_223, %c0_224, %c0_225] : memref<48x16x84xf32, #tpu.memory_space<vmem>>, vector<1x16x84xf32>
    %358 = vector.shape_cast %357 : vector<1x16x84xf32> to vector<16x84xf32>
    %cst_226 = arith.constant dense<0.000000e+00> : vector<1x84xf32>
    %359 = tpu.matmul %356, %358, %cst_226 {dimension_numbers = #tpu.dot_dimension_numbers<[1], [0], [0], [1], [0, 0, 1, 1], [], []>} : vector<1x16xf32>, vector<16x84xf32>, vector<1x84xf32> -> vector<1x84xf32>
    %360 = arith.addf %355, %359 : vector<1x84xf32>
    %361 = vector.extract_strided_slice %354 {offsets = [1, 0], sizes = [1, 16], strides = [1, 1]} : vector<48x16xf32> to vector<1x16xf32>
    %c1_227 = arith.constant 1 : index
    %c0_228 = arith.constant 0 : index
    %c0_229 = arith.constant 0 : index
    %362 = vector.load %arg8[%c1_227, %c0_228, %c0_229] : memref<48x16x84xf32, #tpu.memory_space<vmem>>, vector<1x16x84xf32>
    %363 = vector.shape_cast %362 : vector<1x16x84xf32> to vector<16x84xf32>
    %cst_230 = arith.constant dense<0.000000e+00> : vector<1x84xf32>
    %364 = tpu.matmul %361, %363, %cst_230 {dimension_numbers = #tpu.dot_dimension_numbers<[1], [0], [0], [1], [0, 0, 1, 1], [], []>} : vector<1x16xf32>, vector<16x84xf32>, vector<1x84xf32> -> vector<1x84xf32>
    %365 = arith.addf %360, %364 : vector<1x84xf32>
    %366 = vector.extract_strided_slice %354 {offsets = [2, 0], sizes = [1, 16], strides = [1, 1]} : vector<48x16xf32> to vector<1x16xf32>
    %c2_231 = arith.constant 2 : index
    %c0_232 = arith.constant 0 : index
    %c0_233 = arith.constant 0 : index
    %367 = vector.load %arg8[%c2_231, %c0_232, %c0_233] : memref<48x16x84xf32, #tpu.memory_space<vmem>>, vector<1x16x84xf32>
    %368 = vector.shape_cast %367 : vector<1x16x84xf32> to vector<16x84xf32>
    %cst_234 = arith.constant dense<0.000000e+00> : vector<1x84xf32>
    %369 = tpu.matmul %366, %368, %cst_234 {dimension_numbers = #tpu.dot_dimension_numbers<[1], [0], [0], [1], [0, 0, 1, 1], [], []>} : vector<1x16xf32>, vector<16x84xf32>, vector<1x84xf32> -> vector<1x84xf32>
    %370 = arith.addf %365, %369 : vector<1x84xf32>
    %371 = vector.extract_strided_slice %354 {offsets = [3, 0], sizes = [1, 16], strides = [1, 1]} : vector<48x16xf32> to vector<1x16xf32>
    %c3_235 = arith.constant 3 : index
    %c0_236 = arith.constant 0 : index
    %c0_237 = arith.constant 0 : index
    %372 = vector.load %arg8[%c3_235, %c0_236, %c0_237] : memref<48x16x84xf32, #tpu.memory_space<vmem>>, vector<1x16x84xf32>
    %373 = vector.shape_cast %372 : vector<1x16x84xf32> to vector<16x84xf32>
    %cst_238 = arith.constant dense<0.000000e+00> : vector<1x84xf32>
    %374 = tpu.matmul %371, %373, %cst_238 {dimension_numbers = #tpu.dot_dimension_numbers<[1], [0], [0], [1], [0, 0, 1, 1], [], []>} : vector<1x16xf32>, vector<16x84xf32>, vector<1x84xf32> -> vector<1x84xf32>
    %375 = arith.addf %370, %374 : vector<1x84xf32>
    %376 = vector.extract_strided_slice %354 {offsets = [4, 0], sizes = [1, 16], strides = [1, 1]} : vector<48x16xf32> to vector<1x16xf32>
    %c4_239 = arith.constant 4 : index
    %c0_240 = arith.constant 0 : index
    %c0_241 = arith.constant 0 : index
    %377 = vector.load %arg8[%c4_239, %c0_240, %c0_241] : memref<48x16x84xf32, #tpu.memory_space<vmem>>, vector<1x16x84xf32>
    %378 = vector.shape_cast %377 : vector<1x16x84xf32> to vector<16x84xf32>
    %cst_242 = arith.constant dense<0.000000e+00> : vector<1x84xf32>
    %379 = tpu.matmul %376, %378, %cst_242 {dimension_numbers = #tpu.dot_dimension_numbers<[1], [0], [0], [1], [0, 0, 1, 1], [], []>} : vector<1x16xf32>, vector<16x84xf32>, vector<1x84xf32> -> vector<1x84xf32>
    %380 = arith.addf %375, %379 : vector<1x84xf32>
    %381 = vector.extract_strided_slice %354 {offsets = [5, 0], sizes = [1, 16], strides = [1, 1]} : vector<48x16xf32> to vector<1x16xf32>
    %c5_243 = arith.constant 5 : index
    %c0_244 = arith.constant 0 : index
    %c0_245 = arith.constant 0 : index
    %382 = vector.load %arg8[%c5_243, %c0_244, %c0_245] : memref<48x16x84xf32, #tpu.memory_space<vmem>>, vector<1x16x84xf32>
    %383 = vector.shape_cast %382 : vector<1x16x84xf32> to vector<16x84xf32>
    %cst_246 = arith.constant dense<0.000000e+00> : vector<1x84xf32>
    %384 = tpu.matmul %381, %383, %cst_246 {dimension_numbers = #tpu.dot_dimension_numbers<[1], [0], [0], [1], [0, 0, 1, 1], [], []>} : vector<1x16xf32>, vector<16x84xf32>, vector<1x84xf32> -> vector<1x84xf32>
    %385 = arith.addf %380, %384 : vector<1x84xf32>
    %386 = vector.extract_strided_slice %354 {offsets = [6, 0], sizes = [1, 16], strides = [1, 1]} : vector<48x16xf32> to vector<1x16xf32>
    %c6_247 = arith.constant 6 : index
    %c0_248 = arith.constant 0 : index
    %c0_249 = arith.constant 0 : index
    %387 = vector.load %arg8[%c6_247, %c0_248, %c0_249] : memref<48x16x84xf32, #tpu.memory_space<vmem>>, vector<1x16x84xf32>
    %388 = vector.shape_cast %387 : vector<1x16x84xf32> to vector<16x84xf32>
    %cst_250 = arith.constant dense<0.000000e+00> : vector<1x84xf32>
    %389 = tpu.matmul %386, %388, %cst_250 {dimension_numbers = #tpu.dot_dimension_numbers<[1], [0], [0], [1], [0, 0, 1, 1], [], []>} : vector<1x16xf32>, vector<16x84xf32>, vector<1x84xf32> -> vector<1x84xf32>
    %390 = arith.addf %385, %389 : vector<1x84xf32>
    %391 = vector.extract_strided_slice %354 {offsets = [7, 0], sizes = [1, 16], strides = [1, 1]} : vector<48x16xf32> to vector<1x16xf32>
    %c7_251 = arith.constant 7 : index
    %c0_252 = arith.constant 0 : index
    %c0_253 = arith.constant 0 : index
    %392 = vector.load %arg8[%c7_251, %c0_252, %c0_253] : memref<48x16x84xf32, #tpu.memory_space<vmem>>, vector<1x16x84xf32>
    %393 = vector.shape_cast %392 : vector<1x16x84xf32> to vector<16x84xf32>
    %cst_254 = arith.constant dense<0.000000e+00> : vector<1x84xf32>
    %394 = tpu.matmul %391, %393, %cst_254 {dimension_numbers = #tpu.dot_dimension_numbers<[1], [0], [0], [1], [0, 0, 1, 1], [], []>} : vector<1x16xf32>, vector<16x84xf32>, vector<1x84xf32> -> vector<1x84xf32>
    %395 = arith.addf %390, %394 : vector<1x84xf32>
    %396 = vector.extract_strided_slice %354 {offsets = [8, 0], sizes = [1, 16], strides = [1, 1]} : vector<48x16xf32> to vector<1x16xf32>
    %c8_255 = arith.constant 8 : index
    %c0_256 = arith.constant 0 : index
    %c0_257 = arith.constant 0 : index
    %397 = vector.load %arg8[%c8_255, %c0_256, %c0_257] : memref<48x16x84xf32, #tpu.memory_space<vmem>>, vector<1x16x84xf32>
    %398 = vector.shape_cast %397 : vector<1x16x84xf32> to vector<16x84xf32>
    %cst_258 = arith.constant dense<0.000000e+00> : vector<1x84xf32>
    %399 = tpu.matmul %396, %398, %cst_258 {dimension_numbers = #tpu.dot_dimension_numbers<[1], [0], [0], [1], [0, 0, 1, 1], [], []>} : vector<1x16xf32>, vector<16x84xf32>, vector<1x84xf32> -> vector<1x84xf32>
    %400 = arith.addf %395, %399 : vector<1x84xf32>
    %401 = vector.extract_strided_slice %354 {offsets = [9, 0], sizes = [1, 16], strides = [1, 1]} : vector<48x16xf32> to vector<1x16xf32>
    %c9_259 = arith.constant 9 : index
    %c0_260 = arith.constant 0 : index
    %c0_261 = arith.constant 0 : index
    %402 = vector.load %arg8[%c9_259, %c0_260, %c0_261] : memref<48x16x84xf32, #tpu.memory_space<vmem>>, vector<1x16x84xf32>
    %403 = vector.shape_cast %402 : vector<1x16x84xf32> to vector<16x84xf32>
    %cst_262 = arith.constant dense<0.000000e+00> : vector<1x84xf32>
    %404 = tpu.matmul %401, %403, %cst_262 {dimension_numbers = #tpu.dot_dimension_numbers<[1], [0], [0], [1], [0, 0, 1, 1], [], []>} : vector<1x16xf32>, vector<16x84xf32>, vector<1x84xf32> -> vector<1x84xf32>
    %405 = arith.addf %400, %404 : vector<1x84xf32>
    %406 = vector.extract_strided_slice %354 {offsets = [10, 0], sizes = [1, 16], strides = [1, 1]} : vector<48x16xf32> to vector<1x16xf32>
    %c10_263 = arith.constant 10 : index
    %c0_264 = arith.constant 0 : index
    %c0_265 = arith.constant 0 : index
    %407 = vector.load %arg8[%c10_263, %c0_264, %c0_265] : memref<48x16x84xf32, #tpu.memory_space<vmem>>, vector<1x16x84xf32>
    %408 = vector.shape_cast %407 : vector<1x16x84xf32> to vector<16x84xf32>
    %cst_266 = arith.constant dense<0.000000e+00> : vector<1x84xf32>
    %409 = tpu.matmul %406, %408, %cst_266 {dimension_numbers = #tpu.dot_dimension_numbers<[1], [0], [0], [1], [0, 0, 1, 1], [], []>} : vector<1x16xf32>, vector<16x84xf32>, vector<1x84xf32> -> vector<1x84xf32>
    %410 = arith.addf %405, %409 : vector<1x84xf32>
    %411 = vector.extract_strided_slice %354 {offsets = [11, 0], sizes = [1, 16], strides = [1, 1]} : vector<48x16xf32> to vector<1x16xf32>
    %c11_267 = arith.constant 11 : index
    %c0_268 = arith.constant 0 : index
    %c0_269 = arith.constant 0 : index
    %412 = vector.load %arg8[%c11_267, %c0_268, %c0_269] : memref<48x16x84xf32, #tpu.memory_space<vmem>>, vector<1x16x84xf32>
    %413 = vector.shape_cast %412 : vector<1x16x84xf32> to vector<16x84xf32>
    %cst_270 = arith.constant dense<0.000000e+00> : vector<1x84xf32>
    %414 = tpu.matmul %411, %413, %cst_270 {dimension_numbers = #tpu.dot_dimension_numbers<[1], [0], [0], [1], [0, 0, 1, 1], [], []>} : vector<1x16xf32>, vector<16x84xf32>, vector<1x84xf32> -> vector<1x84xf32>
    %415 = arith.addf %410, %414 : vector<1x84xf32>
    %416 = vector.extract_strided_slice %354 {offsets = [12, 0], sizes = [1, 16], strides = [1, 1]} : vector<48x16xf32> to vector<1x16xf32>
    %c12_271 = arith.constant 12 : index
    %c0_272 = arith.constant 0 : index
    %c0_273 = arith.constant 0 : index
    %417 = vector.load %arg8[%c12_271, %c0_272, %c0_273] : memref<48x16x84xf32, #tpu.memory_space<vmem>>, vector<1x16x84xf32>
    %418 = vector.shape_cast %417 : vector<1x16x84xf32> to vector<16x84xf32>
    %cst_274 = arith.constant dense<0.000000e+00> : vector<1x84xf32>
    %419 = tpu.matmul %416, %418, %cst_274 {dimension_numbers = #tpu.dot_dimension_numbers<[1], [0], [0], [1], [0, 0, 1, 1], [], []>} : vector<1x16xf32>, vector<16x84xf32>, vector<1x84xf32> -> vector<1x84xf32>
    %420 = arith.addf %415, %419 : vector<1x84xf32>
    %421 = vector.extract_strided_slice %354 {offsets = [13, 0], sizes = [1, 16], strides = [1, 1]} : vector<48x16xf32> to vector<1x16xf32>
    %c13_275 = arith.constant 13 : index
    %c0_276 = arith.constant 0 : index
    %c0_277 = arith.constant 0 : index
    %422 = vector.load %arg8[%c13_275, %c0_276, %c0_277] : memref<48x16x84xf32, #tpu.memory_space<vmem>>, vector<1x16x84xf32>
    %423 = vector.shape_cast %422 : vector<1x16x84xf32> to vector<16x84xf32>
    %cst_278 = arith.constant dense<0.000000e+00> : vector<1x84xf32>
    %424 = tpu.matmul %421, %423, %cst_278 {dimension_numbers = #tpu.dot_dimension_numbers<[1], [0], [0], [1], [0, 0, 1, 1], [], []>} : vector<1x16xf32>, vector<16x84xf32>, vector<1x84xf32> -> vector<1x84xf32>
    %425 = arith.addf %420, %424 : vector<1x84xf32>
    %426 = vector.extract_strided_slice %354 {offsets = [14, 0], sizes = [1, 16], strides = [1, 1]} : vector<48x16xf32> to vector<1x16xf32>
    %c14_279 = arith.constant 14 : index
    %c0_280 = arith.constant 0 : index
    %c0_281 = arith.constant 0 : index
    %427 = vector.load %arg8[%c14_279, %c0_280, %c0_281] : memref<48x16x84xf32, #tpu.memory_space<vmem>>, vector<1x16x84xf32>
    %428 = vector.shape_cast %427 : vector<1x16x84xf32> to vector<16x84xf32>
    %cst_282 = arith.constant dense<0.000000e+00> : vector<1x84xf32>
    %429 = tpu.matmul %426, %428, %cst_282 {dimension_numbers = #tpu.dot_dimension_numbers<[1], [0], [0], [1], [0, 0, 1, 1], [], []>} : vector<1x16xf32>, vector<16x84xf32>, vector<1x84xf32> -> vector<1x84xf32>
    %430 = arith.addf %425, %429 : vector<1x84xf32>
    %431 = vector.extract_strided_slice %354 {offsets = [15, 0], sizes = [1, 16], strides = [1, 1]} : vector<48x16xf32> to vector<1x16xf32>
    %c15_283 = arith.constant 15 : index
    %c0_284 = arith.constant 0 : index
    %c0_285 = arith.constant 0 : index
    %432 = vector.load %arg8[%c15_283, %c0_284, %c0_285] : memref<48x16x84xf32, #tpu.memory_space<vmem>>, vector<1x16x84xf32>
    %433 = vector.shape_cast %432 : vector<1x16x84xf32> to vector<16x84xf32>
    %cst_286 = arith.constant dense<0.000000e+00> : vector<1x84xf32>
    %434 = tpu.matmul %431, %433, %cst_286 {dimension_numbers = #tpu.dot_dimension_numbers<[1], [0], [0], [1], [0, 0, 1, 1], [], []>} : vector<1x16xf32>, vector<16x84xf32>, vector<1x84xf32> -> vector<1x84xf32>
    %435 = arith.addf %430, %434 : vector<1x84xf32>
    %436 = vector.extract_strided_slice %354 {offsets = [16, 0], sizes = [1, 16], strides = [1, 1]} : vector<48x16xf32> to vector<1x16xf32>
    %c16_287 = arith.constant 16 : index
    %c0_288 = arith.constant 0 : index
    %c0_289 = arith.constant 0 : index
    %437 = vector.load %arg8[%c16_287, %c0_288, %c0_289] : memref<48x16x84xf32, #tpu.memory_space<vmem>>, vector<1x16x84xf32>
    %438 = vector.shape_cast %437 : vector<1x16x84xf32> to vector<16x84xf32>
    %cst_290 = arith.constant dense<0.000000e+00> : vector<1x84xf32>
    %439 = tpu.matmul %436, %438, %cst_290 {dimension_numbers = #tpu.dot_dimension_numbers<[1], [0], [0], [1], [0, 0, 1, 1], [], []>} : vector<1x16xf32>, vector<16x84xf32>, vector<1x84xf32> -> vector<1x84xf32>
    %440 = arith.addf %435, %439 : vector<1x84xf32>
    %441 = vector.extract_strided_slice %354 {offsets = [17, 0], sizes = [1, 16], strides = [1, 1]} : vector<48x16xf32> to vector<1x16xf32>
    %c17_291 = arith.constant 17 : index
    %c0_292 = arith.constant 0 : index
    %c0_293 = arith.constant 0 : index
    %442 = vector.load %arg8[%c17_291, %c0_292, %c0_293] : memref<48x16x84xf32, #tpu.memory_space<vmem>>, vector<1x16x84xf32>
    %443 = vector.shape_cast %442 : vector<1x16x84xf32> to vector<16x84xf32>
    %cst_294 = arith.constant dense<0.000000e+00> : vector<1x84xf32>
    %444 = tpu.matmul %441, %443, %cst_294 {dimension_numbers = #tpu.dot_dimension_numbers<[1], [0], [0], [1], [0, 0, 1, 1], [], []>} : vector<1x16xf32>, vector<16x84xf32>, vector<1x84xf32> -> vector<1x84xf32>
    %445 = arith.addf %440, %444 : vector<1x84xf32>
    %446 = vector.extract_strided_slice %354 {offsets = [18, 0], sizes = [1, 16], strides = [1, 1]} : vector<48x16xf32> to vector<1x16xf32>
    %c18_295 = arith.constant 18 : index
    %c0_296 = arith.constant 0 : index
    %c0_297 = arith.constant 0 : index
    %447 = vector.load %arg8[%c18_295, %c0_296, %c0_297] : memref<48x16x84xf32, #tpu.memory_space<vmem>>, vector<1x16x84xf32>
    %448 = vector.shape_cast %447 : vector<1x16x84xf32> to vector<16x84xf32>
    %cst_298 = arith.constant dense<0.000000e+00> : vector<1x84xf32>
    %449 = tpu.matmul %446, %448, %cst_298 {dimension_numbers = #tpu.dot_dimension_numbers<[1], [0], [0], [1], [0, 0, 1, 1], [], []>} : vector<1x16xf32>, vector<16x84xf32>, vector<1x84xf32> -> vector<1x84xf32>
    %450 = arith.addf %445, %449 : vector<1x84xf32>
    %451 = vector.extract_strided_slice %354 {offsets = [19, 0], sizes = [1, 16], strides = [1, 1]} : vector<48x16xf32> to vector<1x16xf32>
    %c19_299 = arith.constant 19 : index
    %c0_300 = arith.constant 0 : index
    %c0_301 = arith.constant 0 : index
    %452 = vector.load %arg8[%c19_299, %c0_300, %c0_301] : memref<48x16x84xf32, #tpu.memory_space<vmem>>, vector<1x16x84xf32>
    %453 = vector.shape_cast %452 : vector<1x16x84xf32> to vector<16x84xf32>
    %cst_302 = arith.constant dense<0.000000e+00> : vector<1x84xf32>
    %454 = tpu.matmul %451, %453, %cst_302 {dimension_numbers = #tpu.dot_dimension_numbers<[1], [0], [0], [1], [0, 0, 1, 1], [], []>} : vector<1x16xf32>, vector<16x84xf32>, vector<1x84xf32> -> vector<1x84xf32>
    %455 = arith.addf %450, %454 : vector<1x84xf32>
    %456 = vector.extract_strided_slice %354 {offsets = [20, 0], sizes = [1, 16], strides = [1, 1]} : vector<48x16xf32> to vector<1x16xf32>
    %c20_303 = arith.constant 20 : index
    %c0_304 = arith.constant 0 : index
    %c0_305 = arith.constant 0 : index
    %457 = vector.load %arg8[%c20_303, %c0_304, %c0_305] : memref<48x16x84xf32, #tpu.memory_space<vmem>>, vector<1x16x84xf32>
    %458 = vector.shape_cast %457 : vector<1x16x84xf32> to vector<16x84xf32>
    %cst_306 = arith.constant dense<0.000000e+00> : vector<1x84xf32>
    %459 = tpu.matmul %456, %458, %cst_306 {dimension_numbers = #tpu.dot_dimension_numbers<[1], [0], [0], [1], [0, 0, 1, 1], [], []>} : vector<1x16xf32>, vector<16x84xf32>, vector<1x84xf32> -> vector<1x84xf32>
    %460 = arith.addf %455, %459 : vector<1x84xf32>
    %461 = vector.extract_strided_slice %354 {offsets = [21, 0], sizes = [1, 16], strides = [1, 1]} : vector<48x16xf32> to vector<1x16xf32>
    %c21_307 = arith.constant 21 : index
    %c0_308 = arith.constant 0 : index
    %c0_309 = arith.constant 0 : index
    %462 = vector.load %arg8[%c21_307, %c0_308, %c0_309] : memref<48x16x84xf32, #tpu.memory_space<vmem>>, vector<1x16x84xf32>
    %463 = vector.shape_cast %462 : vector<1x16x84xf32> to vector<16x84xf32>
    %cst_310 = arith.constant dense<0.000000e+00> : vector<1x84xf32>
    %464 = tpu.matmul %461, %463, %cst_310 {dimension_numbers = #tpu.dot_dimension_numbers<[1], [0], [0], [1], [0, 0, 1, 1], [], []>} : vector<1x16xf32>, vector<16x84xf32>, vector<1x84xf32> -> vector<1x84xf32>
    %465 = arith.addf %460, %464 : vector<1x84xf32>
    %466 = vector.extract_strided_slice %354 {offsets = [22, 0], sizes = [1, 16], strides = [1, 1]} : vector<48x16xf32> to vector<1x16xf32>
    %c22_311 = arith.constant 22 : index
    %c0_312 = arith.constant 0 : index
    %c0_313 = arith.constant 0 : index
    %467 = vector.load %arg8[%c22_311, %c0_312, %c0_313] : memref<48x16x84xf32, #tpu.memory_space<vmem>>, vector<1x16x84xf32>
    %468 = vector.shape_cast %467 : vector<1x16x84xf32> to vector<16x84xf32>
    %cst_314 = arith.constant dense<0.000000e+00> : vector<1x84xf32>
    %469 = tpu.matmul %466, %468, %cst_314 {dimension_numbers = #tpu.dot_dimension_numbers<[1], [0], [0], [1], [0, 0, 1, 1], [], []>} : vector<1x16xf32>, vector<16x84xf32>, vector<1x84xf32> -> vector<1x84xf32>
    %470 = arith.addf %465, %469 : vector<1x84xf32>
    %471 = vector.extract_strided_slice %354 {offsets = [23, 0], sizes = [1, 16], strides = [1, 1]} : vector<48x16xf32> to vector<1x16xf32>
    %c23_315 = arith.constant 23 : index
    %c0_316 = arith.constant 0 : index
    %c0_317 = arith.constant 0 : index
    %472 = vector.load %arg8[%c23_315, %c0_316, %c0_317] : memref<48x16x84xf32, #tpu.memory_space<vmem>>, vector<1x16x84xf32>
    %473 = vector.shape_cast %472 : vector<1x16x84xf32> to vector<16x84xf32>
    %cst_318 = arith.constant dense<0.000000e+00> : vector<1x84xf32>
    %474 = tpu.matmul %471, %473, %cst_318 {dimension_numbers = #tpu.dot_dimension_numbers<[1], [0], [0], [1], [0, 0, 1, 1], [], []>} : vector<1x16xf32>, vector<16x84xf32>, vector<1x84xf32> -> vector<1x84xf32>
    %475 = arith.addf %470, %474 : vector<1x84xf32>
    %476 = vector.extract_strided_slice %354 {offsets = [24, 0], sizes = [1, 16], strides = [1, 1]} : vector<48x16xf32> to vector<1x16xf32>
    %c24_319 = arith.constant 24 : index
    %c0_320 = arith.constant 0 : index
    %c0_321 = arith.constant 0 : index
    %477 = vector.load %arg8[%c24_319, %c0_320, %c0_321] : memref<48x16x84xf32, #tpu.memory_space<vmem>>, vector<1x16x84xf32>
    %478 = vector.shape_cast %477 : vector<1x16x84xf32> to vector<16x84xf32>
    %cst_322 = arith.constant dense<0.000000e+00> : vector<1x84xf32>
    %479 = tpu.matmul %476, %478, %cst_322 {dimension_numbers = #tpu.dot_dimension_numbers<[1], [0], [0], [1], [0, 0, 1, 1], [], []>} : vector<1x16xf32>, vector<16x84xf32>, vector<1x84xf32> -> vector<1x84xf32>
    %480 = arith.addf %475, %479 : vector<1x84xf32>
    %481 = vector.extract_strided_slice %354 {offsets = [25, 0], sizes = [1, 16], strides = [1, 1]} : vector<48x16xf32> to vector<1x16xf32>
    %c25_323 = arith.constant 25 : index
    %c0_324 = arith.constant 0 : index
    %c0_325 = arith.constant 0 : index
    %482 = vector.load %arg8[%c25_323, %c0_324, %c0_325] : memref<48x16x84xf32, #tpu.memory_space<vmem>>, vector<1x16x84xf32>
    %483 = vector.shape_cast %482 : vector<1x16x84xf32> to vector<16x84xf32>
    %cst_326 = arith.constant dense<0.000000e+00> : vector<1x84xf32>
    %484 = tpu.matmul %481, %483, %cst_326 {dimension_numbers = #tpu.dot_dimension_numbers<[1], [0], [0], [1], [0, 0, 1, 1], [], []>} : vector<1x16xf32>, vector<16x84xf32>, vector<1x84xf32> -> vector<1x84xf32>
    %485 = arith.addf %480, %484 : vector<1x84xf32>
    %486 = vector.extract_strided_slice %354 {offsets = [26, 0], sizes = [1, 16], strides = [1, 1]} : vector<48x16xf32> to vector<1x16xf32>
    %c26_327 = arith.constant 26 : index
    %c0_328 = arith.constant 0 : index
    %c0_329 = arith.constant 0 : index
    %487 = vector.load %arg8[%c26_327, %c0_328, %c0_329] : memref<48x16x84xf32, #tpu.memory_space<vmem>>, vector<1x16x84xf32>
    %488 = vector.shape_cast %487 : vector<1x16x84xf32> to vector<16x84xf32>
    %cst_330 = arith.constant dense<0.000000e+00> : vector<1x84xf32>
    %489 = tpu.matmul %486, %488, %cst_330 {dimension_numbers = #tpu.dot_dimension_numbers<[1], [0], [0], [1], [0, 0, 1, 1], [], []>} : vector<1x16xf32>, vector<16x84xf32>, vector<1x84xf32> -> vector<1x84xf32>
    %490 = arith.addf %485, %489 : vector<1x84xf32>
    %491 = vector.extract_strided_slice %354 {offsets = [27, 0], sizes = [1, 16], strides = [1, 1]} : vector<48x16xf32> to vector<1x16xf32>
    %c27_331 = arith.constant 27 : index
    %c0_332 = arith.constant 0 : index
    %c0_333 = arith.constant 0 : index
    %492 = vector.load %arg8[%c27_331, %c0_332, %c0_333] : memref<48x16x84xf32, #tpu.memory_space<vmem>>, vector<1x16x84xf32>
    %493 = vector.shape_cast %492 : vector<1x16x84xf32> to vector<16x84xf32>
    %cst_334 = arith.constant dense<0.000000e+00> : vector<1x84xf32>
    %494 = tpu.matmul %491, %493, %cst_334 {dimension_numbers = #tpu.dot_dimension_numbers<[1], [0], [0], [1], [0, 0, 1, 1], [], []>} : vector<1x16xf32>, vector<16x84xf32>, vector<1x84xf32> -> vector<1x84xf32>
    %495 = arith.addf %490, %494 : vector<1x84xf32>
    %496 = vector.extract_strided_slice %354 {offsets = [28, 0], sizes = [1, 16], strides = [1, 1]} : vector<48x16xf32> to vector<1x16xf32>
    %c28_335 = arith.constant 28 : index
    %c0_336 = arith.constant 0 : index
    %c0_337 = arith.constant 0 : index
    %497 = vector.load %arg8[%c28_335, %c0_336, %c0_337] : memref<48x16x84xf32, #tpu.memory_space<vmem>>, vector<1x16x84xf32>
    %498 = vector.shape_cast %497 : vector<1x16x84xf32> to vector<16x84xf32>
    %cst_338 = arith.constant dense<0.000000e+00> : vector<1x84xf32>
    %499 = tpu.matmul %496, %498, %cst_338 {dimension_numbers = #tpu.dot_dimension_numbers<[1], [0], [0], [1], [0, 0, 1, 1], [], []>} : vector<1x16xf32>, vector<16x84xf32>, vector<1x84xf32> -> vector<1x84xf32>
    %500 = arith.addf %495, %499 : vector<1x84xf32>
    %501 = vector.extract_strided_slice %354 {offsets = [29, 0], sizes = [1, 16], strides = [1, 1]} : vector<48x16xf32> to vector<1x16xf32>
    %c29_339 = arith.constant 29 : index
    %c0_340 = arith.constant 0 : index
    %c0_341 = arith.constant 0 : index
    %502 = vector.load %arg8[%c29_339, %c0_340, %c0_341] : memref<48x16x84xf32, #tpu.memory_space<vmem>>, vector<1x16x84xf32>
    %503 = vector.shape_cast %502 : vector<1x16x84xf32> to vector<16x84xf32>
    %cst_342 = arith.constant dense<0.000000e+00> : vector<1x84xf32>
    %504 = tpu.matmul %501, %503, %cst_342 {dimension_numbers = #tpu.dot_dimension_numbers<[1], [0], [0], [1], [0, 0, 1, 1], [], []>} : vector<1x16xf32>, vector<16x84xf32>, vector<1x84xf32> -> vector<1x84xf32>
    %505 = arith.addf %500, %504 : vector<1x84xf32>
    %506 = vector.extract_strided_slice %354 {offsets = [30, 0], sizes = [1, 16], strides = [1, 1]} : vector<48x16xf32> to vector<1x16xf32>
    %c30_343 = arith.constant 30 : index
    %c0_344 = arith.constant 0 : index
    %c0_345 = arith.constant 0 : index
    %507 = vector.load %arg8[%c30_343, %c0_344, %c0_345] : memref<48x16x84xf32, #tpu.memory_space<vmem>>, vector<1x16x84xf32>
    %508 = vector.shape_cast %507 : vector<1x16x84xf32> to vector<16x84xf32>
    %cst_346 = arith.constant dense<0.000000e+00> : vector<1x84xf32>
    %509 = tpu.matmul %506, %508, %cst_346 {dimension_numbers = #tpu.dot_dimension_numbers<[1], [0], [0], [1], [0, 0, 1, 1], [], []>} : vector<1x16xf32>, vector<16x84xf32>, vector<1x84xf32> -> vector<1x84xf32>
    %510 = arith.addf %505, %509 : vector<1x84xf32>
    %511 = vector.extract_strided_slice %354 {offsets = [31, 0], sizes = [1, 16], strides = [1, 1]} : vector<48x16xf32> to vector<1x16xf32>
    %c31_347 = arith.constant 31 : index
    %c0_348 = arith.constant 0 : index
    %c0_349 = arith.constant 0 : index
    %512 = vector.load %arg8[%c31_347, %c0_348, %c0_349] : memref<48x16x84xf32, #tpu.memory_space<vmem>>, vector<1x16x84xf32>
    %513 = vector.shape_cast %512 : vector<1x16x84xf32> to vector<16x84xf32>
    %cst_350 = arith.constant dense<0.000000e+00> : vector<1x84xf32>
    %514 = tpu.matmul %511, %513, %cst_350 {dimension_numbers = #tpu.dot_dimension_numbers<[1], [0], [0], [1], [0, 0, 1, 1], [], []>} : vector<1x16xf32>, vector<16x84xf32>, vector<1x84xf32> -> vector<1x84xf32>
    %515 = arith.addf %510, %514 : vector<1x84xf32>
    %516 = vector.extract_strided_slice %354 {offsets = [32, 0], sizes = [1, 16], strides = [1, 1]} : vector<48x16xf32> to vector<1x16xf32>
    %c32_351 = arith.constant 32 : index
    %c0_352 = arith.constant 0 : index
    %c0_353 = arith.constant 0 : index
    %517 = vector.load %arg8[%c32_351, %c0_352, %c0_353] : memref<48x16x84xf32, #tpu.memory_space<vmem>>, vector<1x16x84xf32>
    %518 = vector.shape_cast %517 : vector<1x16x84xf32> to vector<16x84xf32>
    %cst_354 = arith.constant dense<0.000000e+00> : vector<1x84xf32>
    %519 = tpu.matmul %516, %518, %cst_354 {dimension_numbers = #tpu.dot_dimension_numbers<[1], [0], [0], [1], [0, 0, 1, 1], [], []>} : vector<1x16xf32>, vector<16x84xf32>, vector<1x84xf32> -> vector<1x84xf32>
    %520 = arith.addf %515, %519 : vector<1x84xf32>
    %521 = vector.extract_strided_slice %354 {offsets = [33, 0], sizes = [1, 16], strides = [1, 1]} : vector<48x16xf32> to vector<1x16xf32>
    %c33_355 = arith.constant 33 : index
    %c0_356 = arith.constant 0 : index
    %c0_357 = arith.constant 0 : index
    %522 = vector.load %arg8[%c33_355, %c0_356, %c0_357] : memref<48x16x84xf32, #tpu.memory_space<vmem>>, vector<1x16x84xf32>
    %523 = vector.shape_cast %522 : vector<1x16x84xf32> to vector<16x84xf32>
    %cst_358 = arith.constant dense<0.000000e+00> : vector<1x84xf32>
    %524 = tpu.matmul %521, %523, %cst_358 {dimension_numbers = #tpu.dot_dimension_numbers<[1], [0], [0], [1], [0, 0, 1, 1], [], []>} : vector<1x16xf32>, vector<16x84xf32>, vector<1x84xf32> -> vector<1x84xf32>
    %525 = arith.addf %520, %524 : vector<1x84xf32>
    %526 = vector.extract_strided_slice %354 {offsets = [34, 0], sizes = [1, 16], strides = [1, 1]} : vector<48x16xf32> to vector<1x16xf32>
    %c34_359 = arith.constant 34 : index
    %c0_360 = arith.constant 0 : index
    %c0_361 = arith.constant 0 : index
    %527 = vector.load %arg8[%c34_359, %c0_360, %c0_361] : memref<48x16x84xf32, #tpu.memory_space<vmem>>, vector<1x16x84xf32>
    %528 = vector.shape_cast %527 : vector<1x16x84xf32> to vector<16x84xf32>
    %cst_362 = arith.constant dense<0.000000e+00> : vector<1x84xf32>
    %529 = tpu.matmul %526, %528, %cst_362 {dimension_numbers = #tpu.dot_dimension_numbers<[1], [0], [0], [1], [0, 0, 1, 1], [], []>} : vector<1x16xf32>, vector<16x84xf32>, vector<1x84xf32> -> vector<1x84xf32>
    %530 = arith.addf %525, %529 : vector<1x84xf32>
    %531 = vector.extract_strided_slice %354 {offsets = [35, 0], sizes = [1, 16], strides = [1, 1]} : vector<48x16xf32> to vector<1x16xf32>
    %c35_363 = arith.constant 35 : index
    %c0_364 = arith.constant 0 : index
    %c0_365 = arith.constant 0 : index
    %532 = vector.load %arg8[%c35_363, %c0_364, %c0_365] : memref<48x16x84xf32, #tpu.memory_space<vmem>>, vector<1x16x84xf32>
    %533 = vector.shape_cast %532 : vector<1x16x84xf32> to vector<16x84xf32>
    %cst_366 = arith.constant dense<0.000000e+00> : vector<1x84xf32>
    %534 = tpu.matmul %531, %533, %cst_366 {dimension_numbers = #tpu.dot_dimension_numbers<[1], [0], [0], [1], [0, 0, 1, 1], [], []>} : vector<1x16xf32>, vector<16x84xf32>, vector<1x84xf32> -> vector<1x84xf32>
    %535 = arith.addf %530, %534 : vector<1x84xf32>
    %536 = vector.extract_strided_slice %354 {offsets = [36, 0], sizes = [1, 16], strides = [1, 1]} : vector<48x16xf32> to vector<1x16xf32>
    %c36 = arith.constant 36 : index
    %c0_367 = arith.constant 0 : index
    %c0_368 = arith.constant 0 : index
    %537 = vector.load %arg8[%c36, %c0_367, %c0_368] : memref<48x16x84xf32, #tpu.memory_space<vmem>>, vector<1x16x84xf32>
    %538 = vector.shape_cast %537 : vector<1x16x84xf32> to vector<16x84xf32>
    %cst_369 = arith.constant dense<0.000000e+00> : vector<1x84xf32>
    %539 = tpu.matmul %536, %538, %cst_369 {dimension_numbers = #tpu.dot_dimension_numbers<[1], [0], [0], [1], [0, 0, 1, 1], [], []>} : vector<1x16xf32>, vector<16x84xf32>, vector<1x84xf32> -> vector<1x84xf32>
    %540 = arith.addf %535, %539 : vector<1x84xf32>
    %541 = vector.extract_strided_slice %354 {offsets = [37, 0], sizes = [1, 16], strides = [1, 1]} : vector<48x16xf32> to vector<1x16xf32>
    %c37 = arith.constant 37 : index
    %c0_370 = arith.constant 0 : index
    %c0_371 = arith.constant 0 : index
    %542 = vector.load %arg8[%c37, %c0_370, %c0_371] : memref<48x16x84xf32, #tpu.memory_space<vmem>>, vector<1x16x84xf32>
    %543 = vector.shape_cast %542 : vector<1x16x84xf32> to vector<16x84xf32>
    %cst_372 = arith.constant dense<0.000000e+00> : vector<1x84xf32>
    %544 = tpu.matmul %541, %543, %cst_372 {dimension_numbers = #tpu.dot_dimension_numbers<[1], [0], [0], [1], [0, 0, 1, 1], [], []>} : vector<1x16xf32>, vector<16x84xf32>, vector<1x84xf32> -> vector<1x84xf32>
    %545 = arith.addf %540, %544 : vector<1x84xf32>
    %546 = vector.extract_strided_slice %354 {offsets = [38, 0], sizes = [1, 16], strides = [1, 1]} : vector<48x16xf32> to vector<1x16xf32>
    %c38 = arith.constant 38 : index
    %c0_373 = arith.constant 0 : index
    %c0_374 = arith.constant 0 : index
    %547 = vector.load %arg8[%c38, %c0_373, %c0_374] : memref<48x16x84xf32, #tpu.memory_space<vmem>>, vector<1x16x84xf32>
    %548 = vector.shape_cast %547 : vector<1x16x84xf32> to vector<16x84xf32>
    %cst_375 = arith.constant dense<0.000000e+00> : vector<1x84xf32>
    %549 = tpu.matmul %546, %548, %cst_375 {dimension_numbers = #tpu.dot_dimension_numbers<[1], [0], [0], [1], [0, 0, 1, 1], [], []>} : vector<1x16xf32>, vector<16x84xf32>, vector<1x84xf32> -> vector<1x84xf32>
    %550 = arith.addf %545, %549 : vector<1x84xf32>
    %551 = vector.extract_strided_slice %354 {offsets = [39, 0], sizes = [1, 16], strides = [1, 1]} : vector<48x16xf32> to vector<1x16xf32>
    %c39 = arith.constant 39 : index
    %c0_376 = arith.constant 0 : index
    %c0_377 = arith.constant 0 : index
    %552 = vector.load %arg8[%c39, %c0_376, %c0_377] : memref<48x16x84xf32, #tpu.memory_space<vmem>>, vector<1x16x84xf32>
    %553 = vector.shape_cast %552 : vector<1x16x84xf32> to vector<16x84xf32>
    %cst_378 = arith.constant dense<0.000000e+00> : vector<1x84xf32>
    %554 = tpu.matmul %551, %553, %cst_378 {dimension_numbers = #tpu.dot_dimension_numbers<[1], [0], [0], [1], [0, 0, 1, 1], [], []>} : vector<1x16xf32>, vector<16x84xf32>, vector<1x84xf32> -> vector<1x84xf32>
    %555 = arith.addf %550, %554 : vector<1x84xf32>
    %556 = vector.extract_strided_slice %354 {offsets = [40, 0], sizes = [1, 16], strides = [1, 1]} : vector<48x16xf32> to vector<1x16xf32>
    %c40 = arith.constant 40 : index
    %c0_379 = arith.constant 0 : index
    %c0_380 = arith.constant 0 : index
    %557 = vector.load %arg8[%c40, %c0_379, %c0_380] : memref<48x16x84xf32, #tpu.memory_space<vmem>>, vector<1x16x84xf32>
    %558 = vector.shape_cast %557 : vector<1x16x84xf32> to vector<16x84xf32>
    %cst_381 = arith.constant dense<0.000000e+00> : vector<1x84xf32>
    %559 = tpu.matmul %556, %558, %cst_381 {dimension_numbers = #tpu.dot_dimension_numbers<[1], [0], [0], [1], [0, 0, 1, 1], [], []>} : vector<1x16xf32>, vector<16x84xf32>, vector<1x84xf32> -> vector<1x84xf32>
    %560 = arith.addf %555, %559 : vector<1x84xf32>
    %561 = vector.extract_strided_slice %354 {offsets = [41, 0], sizes = [1, 16], strides = [1, 1]} : vector<48x16xf32> to vector<1x16xf32>
    %c41 = arith.constant 41 : index
    %c0_382 = arith.constant 0 : index
    %c0_383 = arith.constant 0 : index
    %562 = vector.load %arg8[%c41, %c0_382, %c0_383] : memref<48x16x84xf32, #tpu.memory_space<vmem>>, vector<1x16x84xf32>
    %563 = vector.shape_cast %562 : vector<1x16x84xf32> to vector<16x84xf32>
    %cst_384 = arith.constant dense<0.000000e+00> : vector<1x84xf32>
    %564 = tpu.matmul %561, %563, %cst_384 {dimension_numbers = #tpu.dot_dimension_numbers<[1], [0], [0], [1], [0, 0, 1, 1], [], []>} : vector<1x16xf32>, vector<16x84xf32>, vector<1x84xf32> -> vector<1x84xf32>
    %565 = arith.addf %560, %564 : vector<1x84xf32>
    %566 = vector.extract_strided_slice %354 {offsets = [42, 0], sizes = [1, 16], strides = [1, 1]} : vector<48x16xf32> to vector<1x16xf32>
    %c42 = arith.constant 42 : index
    %c0_385 = arith.constant 0 : index
    %c0_386 = arith.constant 0 : index
    %567 = vector.load %arg8[%c42, %c0_385, %c0_386] : memref<48x16x84xf32, #tpu.memory_space<vmem>>, vector<1x16x84xf32>
    %568 = vector.shape_cast %567 : vector<1x16x84xf32> to vector<16x84xf32>
    %cst_387 = arith.constant dense<0.000000e+00> : vector<1x84xf32>
    %569 = tpu.matmul %566, %568, %cst_387 {dimension_numbers = #tpu.dot_dimension_numbers<[1], [0], [0], [1], [0, 0, 1, 1], [], []>} : vector<1x16xf32>, vector<16x84xf32>, vector<1x84xf32> -> vector<1x84xf32>
    %570 = arith.addf %565, %569 : vector<1x84xf32>
    %571 = vector.extract_strided_slice %354 {offsets = [43, 0], sizes = [1, 16], strides = [1, 1]} : vector<48x16xf32> to vector<1x16xf32>
    %c43 = arith.constant 43 : index
    %c0_388 = arith.constant 0 : index
    %c0_389 = arith.constant 0 : index
    %572 = vector.load %arg8[%c43, %c0_388, %c0_389] : memref<48x16x84xf32, #tpu.memory_space<vmem>>, vector<1x16x84xf32>
    %573 = vector.shape_cast %572 : vector<1x16x84xf32> to vector<16x84xf32>
    %cst_390 = arith.constant dense<0.000000e+00> : vector<1x84xf32>
    %574 = tpu.matmul %571, %573, %cst_390 {dimension_numbers = #tpu.dot_dimension_numbers<[1], [0], [0], [1], [0, 0, 1, 1], [], []>} : vector<1x16xf32>, vector<16x84xf32>, vector<1x84xf32> -> vector<1x84xf32>
    %575 = arith.addf %570, %574 : vector<1x84xf32>
    %576 = vector.extract_strided_slice %354 {offsets = [44, 0], sizes = [1, 16], strides = [1, 1]} : vector<48x16xf32> to vector<1x16xf32>
    %c44 = arith.constant 44 : index
    %c0_391 = arith.constant 0 : index
    %c0_392 = arith.constant 0 : index
    %577 = vector.load %arg8[%c44, %c0_391, %c0_392] : memref<48x16x84xf32, #tpu.memory_space<vmem>>, vector<1x16x84xf32>
    %578 = vector.shape_cast %577 : vector<1x16x84xf32> to vector<16x84xf32>
    %cst_393 = arith.constant dense<0.000000e+00> : vector<1x84xf32>
    %579 = tpu.matmul %576, %578, %cst_393 {dimension_numbers = #tpu.dot_dimension_numbers<[1], [0], [0], [1], [0, 0, 1, 1], [], []>} : vector<1x16xf32>, vector<16x84xf32>, vector<1x84xf32> -> vector<1x84xf32>
    %580 = arith.addf %575, %579 : vector<1x84xf32>
    %581 = vector.extract_strided_slice %354 {offsets = [45, 0], sizes = [1, 16], strides = [1, 1]} : vector<48x16xf32> to vector<1x16xf32>
    %c45 = arith.constant 45 : index
    %c0_394 = arith.constant 0 : index
    %c0_395 = arith.constant 0 : index
    %582 = vector.load %arg8[%c45, %c0_394, %c0_395] : memref<48x16x84xf32, #tpu.memory_space<vmem>>, vector<1x16x84xf32>
    %583 = vector.shape_cast %582 : vector<1x16x84xf32> to vector<16x84xf32>
    %cst_396 = arith.constant dense<0.000000e+00> : vector<1x84xf32>
    %584 = tpu.matmul %581, %583, %cst_396 {dimension_numbers = #tpu.dot_dimension_numbers<[1], [0], [0], [1], [0, 0, 1, 1], [], []>} : vector<1x16xf32>, vector<16x84xf32>, vector<1x84xf32> -> vector<1x84xf32>
    %585 = arith.addf %580, %584 : vector<1x84xf32>
    %586 = vector.extract_strided_slice %354 {offsets = [46, 0], sizes = [1, 16], strides = [1, 1]} : vector<48x16xf32> to vector<1x16xf32>
    %c46 = arith.constant 46 : index
    %c0_397 = arith.constant 0 : index
    %c0_398 = arith.constant 0 : index
    %587 = vector.load %arg8[%c46, %c0_397, %c0_398] : memref<48x16x84xf32, #tpu.memory_space<vmem>>, vector<1x16x84xf32>
    %588 = vector.shape_cast %587 : vector<1x16x84xf32> to vector<16x84xf32>
    %cst_399 = arith.constant dense<0.000000e+00> : vector<1x84xf32>
    %589 = tpu.matmul %586, %588, %cst_399 {dimension_numbers = #tpu.dot_dimension_numbers<[1], [0], [0], [1], [0, 0, 1, 1], [], []>} : vector<1x16xf32>, vector<16x84xf32>, vector<1x84xf32> -> vector<1x84xf32>
    %590 = arith.addf %585, %589 : vector<1x84xf32>
    %591 = vector.extract_strided_slice %354 {offsets = [47, 0], sizes = [1, 16], strides = [1, 1]} : vector<48x16xf32> to vector<1x16xf32>
    %c47 = arith.constant 47 : index
    %c0_400 = arith.constant 0 : index
    %c0_401 = arith.constant 0 : index
    %592 = vector.load %arg8[%c47, %c0_400, %c0_401] : memref<48x16x84xf32, #tpu.memory_space<vmem>>, vector<1x16x84xf32>
    %593 = vector.shape_cast %592 : vector<1x16x84xf32> to vector<16x84xf32>
    %cst_402 = arith.constant dense<0.000000e+00> : vector<1x84xf32>
    %594 = tpu.matmul %591, %593, %cst_402 {dimension_numbers = #tpu.dot_dimension_numbers<[1], [0], [0], [1], [0, 0, 1, 1], [], []>} : vector<1x16xf32>, vector<16x84xf32>, vector<1x84xf32> -> vector<1x84xf32>
    %595 = arith.addf %590, %594 : vector<1x84xf32>
    %c0_403 = arith.constant 0 : index
    %c0_404 = arith.constant 0 : index
    %596 = vector.load %arg9[%c0_403, %c0_404] : memref<1x84xf32, #tpu.memory_space<vmem>>, vector<1x84xf32>
    %597 = arith.addf %595, %596 : vector<1x84xf32>
    %598 = math.tanh %597 : vector<1x84xf32>
    %599 = arith.mulf %598, %598 : vector<1x84xf32>
    %cst_405 = arith.constant dense<0.000000e+00> : vector<1xf32>
    %600 = vector.multi_reduction <add>, %599, %cst_405 [1] : vector<1x84xf32> to vector<1xf32>
    %601 = vector.shape_cast %600 : vector<1xf32> to vector<1x1xf32>
    %c0_406 = arith.constant 0 : index
    %c0_407 = arith.constant 0 : index
    %602 = vector.load %arg10[%c0_406, %c0_407] : memref<84x128xf32, #tpu.memory_space<vmem>>, vector<84x128xf32>
    %cst_408 = arith.constant dense<0.000000e+00> : vector<1x128xf32>
    %603 = tpu.matmul %598, %602, %cst_408 {dimension_numbers = #tpu.dot_dimension_numbers<[1], [0], [0], [1], [0, 0, 1, 1], [], []>} : vector<1x84xf32>, vector<84x128xf32>, vector<1x128xf32> -> vector<1x128xf32>
    %c0_409 = arith.constant 0 : index
    %c0_410 = arith.constant 0 : index
    %604 = vector.load %arg11[%c0_409, %c0_410] : memref<1x128xf32, #tpu.memory_space<vmem>>, vector<1x128xf32>
    %605 = vector.broadcast %601 : vector<1x1xf32> to vector<1x128xf32>
    %606 = arith.addf %605, %604 : vector<1x128xf32>
    %cst_411 = arith.constant 2.000000e+00 : f32
    %607 = vector.broadcast %cst_411 : f32 to vector<1x128xf32>
    %608 = arith.mulf %607, %603 : vector<1x128xf32>
    %609 = arith.subf %606, %608 : vector<1x128xf32>
    %cst_412 = arith.constant 0.000000e+00 : f32
    %610 = vector.broadcast %cst_412 : f32 to vector<1x128xf32>
    %611 = arith.maximumf %609, %610 : vector<1x128xf32>
    %612 = math.sqrt %611 : vector<1x128xf32>
    %cst_413 = arith.constant 0.000000e+00 : f32
    %613 = vector.broadcast %cst_413 : f32 to vector<1x128xf32>
    %614 = arith.subf %613, %612 : vector<1x128xf32>
    %c0_414 = arith.constant 0 : index
    %c0_415 = arith.constant 0 : index
    %615 = vector.load %arg12[%c0_414, %c0_415] : memref<1x128xf32, #tpu.memory_space<vmem>>, vector<1x128xf32>
    %616 = arith.mulf %614, %615 : vector<1x128xf32>
    %617 = math.exp %616 : vector<1x128xf32>
    %618 = vector.shape_cast %617 : vector<1x128xf32> to vector<1x128xf32>
    %619 = vector.broadcast %618 : vector<1x128xf32> to vector<8x128xf32>
    %c0_416 = arith.constant 0 : index
    %c0_417 = arith.constant 0 : index
    %c0_418 = arith.constant 0 : index
    %620 = vector.load %arg13[%c0_416, %c0_417, %c0_418] : memref<1x8x128xf32, #tpu.memory_space<vmem>>, vector<1x8x128xf32>
    %621 = vector.shape_cast %620 : vector<1x8x128xf32> to vector<8x128xf32>
    %622 = vector.shape_cast %619 : vector<8x128xf32> to vector<1x8x128xf32>
    tpu.vector_store %arg13[%c0_416, %c0_417, %c0_418], %622 {strides = array<i32>} : memref<1x8x128xf32, #tpu.memory_space<vmem>>, vector<1x8x128xf32>,
    return
  }
  func.func @transform_0(%arg0: i32) -> (i32, i32, i32) {
    %c0_i32 = arith.constant 0 : i32
    %c0_i32_0 = arith.constant 0 : i32
    %c0_i32_1 = arith.constant 0 : i32
    return %arg0, %c0_i32, %c0_i32_0 : i32, i32, i32
  }
  func.func @transform_1(%arg0: i32) -> (i32, i32, i32) {
    %c0_i32 = arith.constant 0 : i32
    %c0_i32_0 = arith.constant 0 : i32
    %c0_i32_1 = arith.constant 0 : i32
    %c0_i32_2 = arith.constant 0 : i32
    return %c0_i32, %c0_i32_0, %c0_i32_1 : i32, i32, i32
  }
  func.func @transform_2(%arg0: i32) -> (i32, i32) {
    %c0_i32 = arith.constant 0 : i32
    %c0_i32_0 = arith.constant 0 : i32
    %c0_i32_1 = arith.constant 0 : i32
    return %c0_i32, %c0_i32_0 : i32, i32
  }
  func.func @transform_3(%arg0: i32) -> (i32, i32) {
    %c0_i32 = arith.constant 0 : i32
    %c0_i32_0 = arith.constant 0 : i32
    %c0_i32_1 = arith.constant 0 : i32
    return %c0_i32, %c0_i32_0 : i32, i32
  }
  func.func @transform_4(%arg0: i32) -> (i32, i32, i32) {
    %c0_i32 = arith.constant 0 : i32
    %c0_i32_0 = arith.constant 0 : i32
    %c0_i32_1 = arith.constant 0 : i32
    %c0_i32_2 = arith.constant 0 : i32
    return %c0_i32, %c0_i32_0, %c0_i32_1 : i32, i32, i32
  }
  func.func @transform_5(%arg0: i32) -> (i32, i32) {
    %c0_i32 = arith.constant 0 : i32
    %c0_i32_0 = arith.constant 0 : i32
    %c0_i32_1 = arith.constant 0 : i32
    return %c0_i32, %c0_i32_0 : i32, i32
  }
  func.func @transform_6(%arg0: i32) -> (i32, i32) {
    %c0_i32 = arith.constant 0 : i32
    %c0_i32_0 = arith.constant 0 : i32
    %c0_i32_1 = arith.constant 0 : i32
    return %c0_i32, %c0_i32_0 : i32, i32
  }
  func.func @transform_7(%arg0: i32) -> (i32, i32, i32) {
    %c0_i32 = arith.constant 0 : i32
    %c0_i32_0 = arith.constant 0 : i32
    %c0_i32_1 = arith.constant 0 : i32
    %c0_i32_2 = arith.constant 0 : i32
    return %c0_i32, %c0_i32_0, %c0_i32_1 : i32, i32, i32
  }
  func.func @transform_8(%arg0: i32) -> (i32, i32) {
    %c0_i32 = arith.constant 0 : i32
    %c0_i32_0 = arith.constant 0 : i32
    %c0_i32_1 = arith.constant 0 : i32
    return %c0_i32, %c0_i32_0 : i32, i32
  }
  func.func @transform_9(%arg0: i32) -> (i32, i32) {
    %c0_i32 = arith.constant 0 : i32
    %c0_i32_0 = arith.constant 0 : i32
    %c0_i32_1 = arith.constant 0 : i32
    return %c0_i32, %c0_i32_0 : i32, i32
  }
  func.func @transform_10(%arg0: i32) -> (i32, i32) {
    %c0_i32 = arith.constant 0 : i32
    %c0_i32_0 = arith.constant 0 : i32
    %c0_i32_1 = arith.constant 0 : i32
    return %c0_i32, %c0_i32_0 : i32, i32
  }
  func.func @transform_11(%arg0: i32) -> (i32, i32) {
    %c0_i32 = arith.constant 0 : i32
    %c0_i32_0 = arith.constant 0 : i32
    %c0_i32_1 = arith.constant 0 : i32
    return %c0_i32, %c0_i32_0 : i32, i32
  }
  func.func @transform_12(%arg0: i32) -> (i32, i32, i32) {
    %c0_i32 = arith.constant 0 : i32
    %c0_i32_0 = arith.constant 0 : i32
    %c0_i32_1 = arith.constant 0 : i32
    return %arg0, %c0_i32, %c0_i32_0 : i32, i32, i32
  }
}

</mosaic_0001>

<bundles_post_ra>
// kernel: lenet_forward.1
= control target key start
LH: loop header
LB: loop body
LE: loop exit
PB: predicated region body
PF: predicated region fallthrough
CT: control target
= control target key end

     0   :  { %s23585_s21 = smov 0   ;;  %s32193_s0 = inlined_call_operand.vmem [shape: f32[2,3,1024], index: 0, kind: input, shape index: {}]   ;;  %s32194_s1 = inlined_call_operand.vmem [shape: f32[25,18,3], index: 1, kind: input, shape index: {}]   ;;  %s32195_s2 = inlined_call_operand.vmem [shape: f32[18,1], index: 2, kind: input, shape index: {}]   ;;  %s32196_s3 = inlined_call_operand.vmem [shape: f32[1024,256], index: 3, kind: input, shape index: {}]   ;;  %s32197_s4 = inlined_call_operand.vmem [shape: f32[36,48,18], index: 4, kind: input, shape index: {}]   ;;  %s32198_s5 = inlined_call_operand.vmem [shape: f32[48,1], index: 5, kind: input, shape index: {}]   ;;  %s32199_s6 = inlined_call_operand.vmem [shape: f32[104,16], index: 6, kind: input, shape index: {}]   ;;  %s32200_s7 = inlined_call_operand.vmem [shape: f32[48,16,84], index: 7, kind: input, shape index: {}]   ;;  %s32201_s8 = inlined_call_operand.vmem [shape: f32[1,84], index: 8, kind: input, shape index: {}]   ;;  %s32202_s9 = inlined_call_operand.vmem [shape: f32[84,128], index: 9, kind: input, shape index: {}]   ;;  %s32203_s10 = inlined_call_operand.vmem [shape: f32[1,128], index: 10, kind: input, shape index: {}]   ;;  %s32204_s11 = inlined_call_operand.vmem [shape: f32[1,128], index: 11, kind: input, shape index: {}]   ;;  %s32205_s12 = inlined_call_operand.vmem [shape: f32[2,8,128], index: 12, kind: output, shape index: {}]  }
   0x1 LB: > { %s20682_s22 = sadd.s32 4294967295, %s23462_s21   ;;  %p20686_p0 = scmp.ge.s32.totalorder %s23462_s21, 1  ;;  %s23462_s21 = sphi %s23585_s21, %s22_s21  }
   0x2   : > { %p362_p1 = scmp.lt.s32.totalorder %s23462_s21, 3 }
   0x4   : > { %p363_p2 = pnand %p20686_p0, %p362_p1 }
   0x6   : > { %366 = sbr.rel (%p363_p2) target bundleno = 2773 (0xad5), region = 68 }
   0xb   : > { %p403_p3 = scmp.lt.s32.totalorder %s20682_s22, 1  ;;  %v32207_v0 = vmov 0.0   ;;  %s32259_s27 = smov 127   ;;  %v32206_v9 = vlaneseq  ;;  %vm472_vm1 = vcmask 1042432   ;;  %v23749_v16 = vld [vmem:[%s32194_s1 + $0x18] sm:$0xff]  ;;  %vm462_vm2 = vcmask 23552  }
   0xc   : > { %561 = vmatprep.mubr.f32.mxu0 %v32207_v0  ;;  %810 = vmatprep.mubr.f32.mxu1 %v32207_v0  ;;  %s32255_s28 = smov 126   ;;  %s32253_s29 = smov 125   ;;  %v23765_v21 = vld [vmem:[%s32194_s1 + $0x20] sm:$0xff]  ;;  %v23783_v27 = vld [vmem:[%s32194_s1 + $0x28] sm:$0x3]  ;;  %v23949_v48 = vld [vmem:[%s32194_s1 + $0x30] sm:$0xff] }
   0xd   : > { %s32571_s22 = smov (!%p403_p3, %s20682_s22), 1  ;;  %s32245_s30 = smov 124   ;;  %v23738_v11 = vand.u32 127, %v32206_v9  ;;  %v23836_v33 = vld [vmem:[%s32194_s1] sm:$0xff]  ;;  %v23857_v37 = vld [vmem:[%s32194_s1 + $0x8] sm:$0xff]  ;;  %v23973_v53 = vld [vmem:[%s32194_s1 + $0x38] sm:$0xff] }
   0xe   : > { %s21876_s23 = sshll.u32 %s32571_s22, 5  ;;  %s32217_s13 = smov 98   ;;  %v23879_v40 = vld [vmem:[%s32194_s1 + $0x10] sm:$0x3]  ;;  %v24002_v58 = vld [vmem:[%s32194_s1 + $0x40] sm:$0x3] }
   0xf   : > { %s23601_s26 = scalar_lea.vmem %s32193_s0, %s21876_s23  ;;  %s32219_s14 = smov 97   ;;  %32266 = vst [vmem:[#allocation2_spill] sm:$0xff] %v23738_v11  ;;  %vm449_vm0 = vcmp.lt.s32.totalorder %v23738_v11, 127  ;;  %vm1202_vm3 = vcmp.lt.s32.totalorder %v23738_v11, 126  ;;  %vm1620_vm4 = vcmp.lt.s32.totalorder %v23738_v11, 125  ;;  %vm2038_vm5 = vcmp.lt.s32.totalorder %v23738_v11, 124 }
  0x10   : > { %v23604_v1 = vld [vmem:[%s23601_s26] sm:$0x77]  ;;  %v23607_v2 = vld [vmem:[%s23601_s26 + $0x8] sm:$0x77]  ;;  %v23620_v5 = vld [vmem:[%s23601_s26 + $0x10] sm:$0x77] }
  0x11   : > { %431 = vrot.lane.b32.xlu1 %v23604_v1, %s32259_s27  ;;  %v23613_v3 = vcombine.high %v23604_v1, %v23604_v1  ;;  %v23617_v4 = vcombine.high %v23607_v2, %v23607_v2  ;;  %v23628_v6 = vcombine.high %v23620_v5, %v23620_v5  ;;  %v23631_v7 = vld [vmem:[%s23601_s26 + $0x18] sm:$0x77]  ;;  %s23471_s15 = smov 96   ;;  %s23472_s16 = smov 95   ;;  %vm2456_vm6 = vcmp.lt.s32.totalorder %v23738_v11, 98  ;;  %v10874_v9 = vld [vmem:[%s32196_s3 + $0x40] sm:$0xff] }
  0x12   : > { %v23639_v8 = vcombine.high %v23631_v7, %v23631_v7  ;;  %s23473_s25 = smov 94   ;;  %s23474_s19 = smov 68   ;;  %vm2874_vm7 = vcmp.lt.s32.totalorder %v23738_v11, 97  ;;  %vm3292_vm8 = vcmp.lt.s32.totalorder %v23738_v11, 96  ;;  %vm3710_vm9 = vcmp.lt.s32.totalorder %v23738_v11, 95 }
  0x13   : > { %433 = vrot.lane.b32.xlu0 %v23613_v3, %s32259_s27  ;;  %s23475_s24 = smov 67   ;;  %s23476_s20 = smov 66   ;;  %vm4128_vm10 = vcmp.lt.s32.totalorder %v23738_v11, 94  ;;  %vm4546_vm11 = vcmp.lt.s32.totalorder %v23738_v11, 68  ;;  %vm4964_vm12 = vcmp.lt.s32.totalorder %v23738_v11, 67  ;;  %vm5382_vm13 = vcmp.lt.s32.totalorder %v23738_v11, 66 }
  0x14   : > { %s23479_s17 = smov 38   ;;  %s23483_s18 = smov 34   ;;  %vm5800_vm14 = vcmp.lt.s32.totalorder %v23738_v11, 65  ;;  %vm6218_vm15 = vcmp.lt.s32.totalorder %v23738_v11, 64 }
  0x15   : > { %437 = vrot.lane.b32.xlu1 %v23617_v4, %s32259_s27  ;;  %s23486_s23 = smov 6  }
  0x17   : > { %435 = vrot.lane.b32.xlu0 %v23607_v2, %s32259_s27 }
  0x19   : > { %441 = vrot.lane.b32.xlu1 %v23628_v6, %s32259_s27 }
  0x1b   : > { %439 = vrot.lane.b32.xlu0 %v23620_v5, %s32259_s27 }
  0x1d   : > { %445 = vrot.lane.b32.xlu1 %v23639_v8, %s32259_s27 }
  0x1f   : > { %443 = vrot.lane.b32.xlu0 %v23631_v7, %s32259_s27 }
  0x21   : > { %1190 = vrot.lane.b32.xlu1 %v23607_v2, %s32255_s28 }
  0x23   : > { %1188 = vrot.lane.b32.xlu0 %v23613_v3, %s32255_s28 }
  0x25   : > { %1192 = vrot.lane.b32.xlu1 %v23617_v4, %s32255_s28 }
  0x27   : > { %1186 = vrot.lane.b32.xlu0 %v23604_v1, %s32255_s28 }
  0x29   : > { %1196 = vrot.lane.b32.xlu1 %v23628_v6, %s32255_s28 }
  0x2b   : > { %1194 = vrot.lane.b32.xlu0 %v23620_v5, %s32255_s28 }
  0x2d   : > { %1200 = vrot.lane.b32.xlu1 %v23639_v8, %s32255_s28 }
  0x2f   : > { %1198 = vrot.lane.b32.xlu0 %v23631_v7, %s32255_s28 }
  0x31   : > { %1608 = vrot.lane.b32.xlu1 %v23607_v2, %s32253_s29 }
  0x33   : > { %1606 = vrot.lane.b32.xlu0 %v23613_v3, %s32253_s29 }
  0x35   : > { %1610 = vrot.lane.b32.xlu1 %v23617_v4, %s32253_s29 }
  0x37   : > { %1604 = vrot.lane.b32.xlu0 %v23604_v1, %s32253_s29 }
  0x39   : > { %1614 = vrot.lane.b32.xlu1 %v23628_v6, %s32253_s29 }
  0x3b   : > { %1612 = vrot.lane.b32.xlu0 %v23620_v5, %s32253_s29 }
  0x3d   : > { %1618 = vrot.lane.b32.xlu1 %v23639_v8, %s32253_s29 }
  0x3f   : > { %1616 = vrot.lane.b32.xlu0 %v23631_v7, %s32253_s29 }
  0x41   : > { %2026 = vrot.lane.b32.xlu1 %v23607_v2, %s32245_s30 }
  0x43   : > { %2024 = vrot.lane.b32.xlu0 %v23613_v3, %s32245_s30 }
  0x45   : > { %2028 = vrot.lane.b32.xlu1 %v23617_v4, %s32245_s30 }
  0x47   : > { %2022 = vrot.lane.b32.xlu0 %v23604_v1, %s32245_s30 }
  0x49   : > { %2032 = vrot.lane.b32.xlu1 %v23628_v6, %s32245_s30 }
  0x4b   : > { %2030 = vrot.lane.b32.xlu0 %v23620_v5, %s32245_s30 }
  0x4d   : > { %2036 = vrot.lane.b32.xlu1 %v23639_v8, %s32245_s30 }
  0x4f   : > { %2034 = vrot.lane.b32.xlu0 %v23631_v7, %s32245_s30 }
  0x51   : > { %2444 = vrot.lane.b32.xlu1 %v23607_v2, %s32217_s13 }
  0x53   : > { %2442 = vrot.lane.b32.xlu0 %v23613_v3, %s32217_s13 }
  0x55   : > { %2446 = vrot.lane.b32.xlu1 %v23617_v4, %s32217_s13 }
  0x57   : > { %2440 = vrot.lane.b32.xlu0 %v23604_v1, %s32217_s13 }
  0x59   : > { %2450 = vrot.lane.b32.xlu1 %v23628_v6, %s32217_s13 }
  0x5b   : > { %2448 = vrot.lane.b32.xlu0 %v23620_v5, %s32217_s13 }
  0x5d   : > { %2454 = vrot.lane.b32.xlu1 %v23639_v8, %s32217_s13 }
  0x5f   : > { %2452 = vrot.lane.b32.xlu0 %v23631_v7, %s32217_s13 }
  0x61   : > { %2862 = vrot.lane.b32.xlu1 %v23607_v2, %s32219_s14 }
  0x63   : > { %2860 = vrot.lane.b32.xlu0 %v23613_v3, %s32219_s14 }
  0x65   : > { %2864 = vrot.lane.b32.xlu1 %v23617_v4, %s32219_s14 }
  0x67   : > { %2858 = vrot.lane.b32.xlu0 %v23604_v1, %s32219_s14 }
  0x69   : > { %2868 = vrot.lane.b32.xlu1 %v23628_v6, %s32219_s14 }
  0x6b   : > { %2866 = vrot.lane.b32.xlu0 %v23620_v5, %s32219_s14 }
  0x6d   : > { %2872 = vrot.lane.b32.xlu1 %v23639_v8, %s32219_s14 }
  0x6f   : > { %2870 = vrot.lane.b32.xlu0 %v23631_v7, %s32219_s14 }
  0x71   : > { %3280 = vrot.lane.b32.xlu1 %v23607_v2, %s23471_s15 }
  0x73   : > { %3278 = vrot.lane.b32.xlu0 %v23613_v3, %s23471_s15 }
  0x75   : > { %3282 = vrot.lane.b32.xlu1 %v23617_v4, %s23471_s15 }
  0x77   : > { %3276 = vrot.lane.b32.xlu0 %v23604_v1, %s23471_s15 }
  0x79   : > { %3286 = vrot.lane.b32.xlu1 %v23628_v6, %s23471_s15 }
  0x7b   : > { %3284 = vrot.lane.b32.xlu0 %v23620_v5, %s23471_s15 }
  0x7d   : > { %3290 = vrot.lane.b32.xlu1 %v23639_v8, %s23471_s15 }
  0x7f   : > { %3288 = vrot.lane.b32.xlu0 %v23631_v7, %s23471_s15  ;;  %s23480_s15 = smov 37  }
  0x81   : > { %3698 = vrot.lane.b32.xlu1 %v23607_v2, %s23472_s16 }
  0x83   : > { %v432_v10 = vpop.permute.xlu1 %431  ;;  %3696 = vrot.lane.b32.xlu0 %v23613_v3, %s23472_s16 }
  0x85   : > { %v434_v12 = vpop.permute.xlu0 %433  ;;  %3700 = vrot.lane.b32.xlu1 %v23617_v4, %s23472_s16 }
  0x86   : > { %v456_v18 = vsel %vm449_vm0, %v432_v10, %v434_v12 }
  0x87   : > { %v438_v13 = vpop.permute.xlu1 %437  ;;  %3694 = vrot.lane.b32.xlu0 %v23604_v1, %s23472_s16 }
  0x89   : > { %v436_v14 = vpop.permute.xlu0 %435  ;;  %3704 = vrot.lane.b32.xlu1 %v23628_v6, %s23472_s16 }
  0x8a   : > { %v455_v15 = vsel %vm449_vm0, %v434_v12, %v436_v14  ;;  %v454_v22 = vsel %vm449_vm0, %v436_v14, %v438_v13  ;;  %v24073_v14 = vld [vmem:[%s32194_s1 + $0x48] sm:$0xff] }
  0x8b   : > { %v442_v17 = vpop.permute.xlu1 %441  ;;  %20693 = vmatprep.subr.msk.mxu0 %vm472_vm1, %v455_v15  ;;  %3702 = vrot.lane.b32.xlu0 %v23620_v5, %s23472_s16 }
  0x8c   : > { %20694 = vmatpush1.msk.msra.mxu0 %vm472_vm1, %v456_v18 }
  0x8d   : > { %20695 = vmatmul.mubr.msk.f32.vlgmr.msra.gmra.mxu0 %vm462_vm2, %v23749_v16  ;;  %v440_v19 = vpop.permute.xlu0 %439  ;;  %3708 = vrot.lane.b32.xlu1 %v23639_v8, %s23472_s16 }
  0x8e   : > { %v453_v20 = vsel %vm449_vm0, %v438_v13, %v440_v19  ;;  %567 = vmatprep.mubr.f32.mxu0 %v32207_v0  ;;  %v452_v31 = vsel %vm449_vm0, %v440_v19, %v442_v17  ;;  %v24097_v19 = vld [vmem:[%s32194_s1 + $0x50] sm:$0xff] }
  0x8f   : > { %v446_v23 = vpop.permute.xlu1 %445  ;;  %20698 = vmatprep.subr.msk.mxu0 %vm472_vm1, %v453_v20  ;;  %3706 = vrot.lane.b32.xlu0 %v23631_v7, %s23472_s16  ;;  %s23477_s16 = smov 65  }
  0x90   : > { %20699 = vmatpush1.msk.msra.mxu0 %vm472_vm1, %v454_v22  ;;  %v457_v24 = vsel %vm449_vm0, %v446_v23, %v432_v10 }
  0x91   : > { %20696 = vmatmul.mubr.msk.f32.gmra.mxu0 %vm462_vm2, %v23765_v21  ;;  %20708 = vmatprep.subr.msk.mxu1 %vm472_vm1, %v457_v24  ;;  %v444_v25 = vpop.permute.xlu0 %443  ;;  %v24126_v24 = vld [vmem:[%s32194_s1 + $0x58] sm:$0x3] }
  0x92   : > { %v450_v26 = vsel %vm449_vm0, %v444_v25, %v446_v23  ;;  %573 = vmatprep.mubr.f32.mxu0 %v32207_v0  ;;  %v451_v28 = vsel %vm449_vm0, %v442_v17, %v444_v25  ;;  %4116 = vrot.lane.b32.xlu1 %v23607_v2, %s23473_s25 }
  0x93   : > { %20709 = vmatpush1.msk.msra.mxu1 %vm472_vm1, %v450_v26  ;;  %20703 = vmatprep.subr.msk.mxu0 %vm472_vm1, %v451_v28  ;;  %v23805_v30 = vpop.permute.xlu1 %1190 }
  0x94   : > { %20710 = vmatmul.mubr.msk.f32.vlgmr.msra.gmra.mxu1 %vm462_vm2, %v23749_v16  ;;  %20718 = vmatprep.subr.msk.mxu1 %vm472_vm1, %v23617_v4 }
  0x95   : > { %20697 = vmatmul.mubr.msk.f32.gmra.mxu0 %vm462_vm2, %v23783_v27  ;;  %816 = vmatprep.mubr.f32.mxu1 %v32207_v0  ;;  %v23798_v29 = vpop.permute.xlu0 %1188 }
  0x96   : > { %644 = vmatprep.mubr.f32.mxu0 %v32207_v0  ;;  %20719 = vmatpush1.msk.msra.mxu1 %vm472_vm1, %v23607_v2  ;;  %v1208_v47 = vsel %vm1202_vm3, %v23798_v29, %v23805_v30 }
  0x97   : > { %20728 = vmatprep.subr.msk.mxu1 %vm472_vm1, %v23639_v8  ;;  %4114 = vrot.lane.b32.xlu0 %v23613_v3, %s23473_s25  ;;  %v1193_v34 = vpop.permute.xlu1 %1192 }
  0x98   : > { %20711 = vmatmul.mubr.msk.f32.gmra.mxu1 %vm462_vm2, %v23765_v21  ;;  %4118 = vrot.lane.b32.xlu1 %v23617_v4, %s23473_s25  ;;  %v1207_v43 = vsel %vm1202_vm3, %v23805_v30, %v1193_v34 }
  0x99   : > { %20700 = vmatmul.mubr.msk.f32.vlgmr.msra.gmra.mxu0 %vm462_vm2, %v23749_v16  ;;  %822 = vmatprep.mubr.f32.mxu1 %v32207_v0  ;;  %v23818_v32 = vpop.permute.xlu0 %1186 }
  0x9a   : > { %20704 = vmatpush1.msk.msra.mxu0 %vm472_vm1, %v452_v31  ;;  %650 = vmatprep.mubr.f32.mxu0 %v32207_v0  ;;  %v1209_v54 = vsel %vm1202_vm3, %v23818_v32, %v23798_v29 }
  0x9b   : > { %20713 = vmatprep.subr.msk.mxu0 %vm472_vm1, %v23613_v3  ;;  %4112 = vrot.lane.b32.xlu0 %v23604_v1, %s23473_s25  ;;  %v23863_v38 = vpop.permute.xlu1 %1196 }
  0x9c   : > { %20712 = vmatmul.mubr.msk.f32.gmra.mxu1 %vm462_vm2, %v23783_v27  ;;  %4122 = vrot.lane.b32.xlu1 %v23628_v6, %s23473_s25 }
  0x9d   : > { %20701 = vmatmul.mubr.msk.f32.gmra.mxu0 %vm462_vm2, %v23765_v21  ;;  %1001 = vmatprep.mubr.f32.mxu1 %v32207_v0  ;;  %v23839_v35 = vpop.permute.xlu0 %1194 }
  0x9e   : > { %656 = vmatprep.mubr.f32.mxu0 %v32207_v0  ;;  %v1206_v36 = vsel %vm1202_vm3, %v1193_v34, %v23839_v35  ;;  %v1205_v63 = vsel %vm1202_vm3, %v23839_v35, %v23863_v38 }
  0x9f   : > { %4120 = vrot.lane.b32.xlu0 %v23620_v5, %s23473_s25  ;;  %v1201_v41 = vpop.permute.xlu1 %1200 }
  0xa0   : > { %20720 = vmatmul.mubr.msk.f32.vlgmr.msra.gmra.mxu1 %vm462_vm2, %v23836_v33  ;;  %4126 = vrot.lane.b32.xlu1 %v23639_v8, %s23473_s25  ;;  %v1210_v44 = vsel %vm1202_vm3, %v1201_v41, %v23818_v32 }
  0xa1   : > { %20702 = vmatmul.mubr.msk.f32.gmra.mxu0 %vm462_vm2, %v23783_v27  ;;  %1007 = vmatprep.mubr.f32.mxu1 %v32207_v0  ;;  %v23865_v39 = vpop.permute.xlu0 %1198 }
  0xa2   : > { %727 = vmatprep.mubr.f32.mxu0 %v32207_v0  ;;  %20729 = vmatpush1.msk.msra.mxu1 %vm472_vm1, %v23631_v7  ;;  %v1203_v51 = vsel %vm1202_vm3, %v23865_v39, %v1201_v41  ;;  %v1204_v57 = vsel %vm1202_vm3, %v23863_v38, %v23865_v39  ;;  %v24221_v38 = vld [vmem:[%s32194_s1 + $0x68] sm:$0xff] }
  0xa3   : > { %20741 = vmatprep.subr.msk.mxu1 %vm472_vm1, %v1206_v36  ;;  %4124 = vrot.lane.b32.xlu0 %v23631_v7, %s23473_s25  ;;  %v23916_v45 = vpop.permute.xlu1 %1608  ;;  %s23485_s25 = smov 7  }
  0xa4   : > { %20721 = vmatmul.mubr.msk.f32.gmra.mxu1 %vm462_vm2, %v23857_v37  ;;  %4534 = vrot.lane.b32.xlu1 %v23607_v2, %s23474_s19 }
  0xa5   : > { %20705 = vmatmul.mubr.msk.f32.vlgmr.msra.gmra.mxu0 %vm462_vm2, %v23749_v16  ;;  %1013 = vmatprep.mubr.f32.mxu1 %v32207_v0  ;;  %v23895_v42 = vpop.permute.xlu0 %1606 }
  0xa6   : > { %733 = vmatprep.mubr.f32.mxu0 %v32207_v0  ;;  %20714 = vmatpush1.msk.msra.mxu0 %vm472_vm1, %v23604_v1  ;;  %v1626_v13 = vsel %vm1620_vm4, %v23895_v42, %v23916_v45 }
  0xa7   : > { %20723 = vmatprep.subr.msk.mxu0 %vm472_vm1, %v23628_v6  ;;  %4532 = vrot.lane.b32.xlu0 %v23613_v3, %s23474_s19  ;;  %v1611_v49 = vpop.permute.xlu1 %1610 }
  0xa8   : > { %20722 = vmatmul.mubr.msk.f32.gmra.mxu1 %vm462_vm2, %v23879_v40  ;;  %4536 = vrot.lane.b32.xlu1 %v23617_v4, %s23474_s19  ;;  %v1625_v61 = vsel %vm1620_vm4, %v23916_v45, %v1611_v49 }
  0xa9   : > { %20706 = vmatmul.mubr.msk.f32.gmra.mxu0 %vm462_vm2, %v23765_v21  ;;  %1167 = vmatprep.mubr.f32.mxu1 %v32207_v0  ;;  %v23918_v46 = vpop.permute.xlu0 %1604 }
  0xaa   : > { %739 = vmatprep.mubr.f32.mxu0 %v32207_v0  ;;  %v1627_v20 = vsel %vm1620_vm4, %v23918_v46, %v23895_v42 }
  0xab   : > { %4530 = vrot.lane.b32.xlu0 %v23604_v1, %s23474_s19  ;;  %v23982_v55 = vpop.permute.xlu1 %1614 }
  0xac   : > { %20730 = vmatmul.mubr.msk.f32.vlgmr.msra.gmra.mxu1 %vm462_vm2, %v23836_v33  ;;  %4540 = vrot.lane.b32.xlu1 %v23628_v6, %s23474_s19 }
  0xad   : > { %20707 = vmatmul.mubr.msk.f32.gmra.mxu0 %vm462_vm2, %v23783_v27  ;;  %1173 = vmatprep.mubr.f32.mxu1 %v32207_v0  ;;  %v23952_v50 = vpop.permute.xlu0 %1612 }
  0xae   : > { %918 = vmatprep.mubr.f32.mxu0 %v32207_v0  ;;  %20742 = vmatpush1.msk.msra.mxu1 %vm472_vm1, %v1207_v43  ;;  %v1624_v52 = vsel %vm1620_vm4, %v1611_v49, %v23952_v50  ;;  %v1623_v29 = vsel %vm1620_vm4, %v23952_v50, %v23982_v55  ;;  %v24250_v43 = vld [vmem:[%s32194_s1 + $0x70] sm:$0x3] }
  0xaf   : > { %20751 = vmatprep.subr.msk.mxu1 %vm472_vm1, %v1210_v44  ;;  %4538 = vrot.lane.b32.xlu0 %v23620_v5, %s23474_s19  ;;  %v1619_v59 = vpop.permute.xlu1 %1618 }
  0xb0   : > { %20731 = vmatmul.mubr.msk.f32.gmra.mxu1 %vm462_vm2, %v23857_v37  ;;  %4544 = vrot.lane.b32.xlu1 %v23639_v8, %s23474_s19  ;;  %v1628_v62 = vsel %vm1620_vm4, %v1619_v59, %v23918_v46 }
  0xb1   : > { %20715 = vmatmul.mubr.msk.f32.vlgmr.msra.gmra.mxu0 %vm462_vm2, %v23836_v33  ;;  %1179 = vmatprep.mubr.f32.mxu1 %v32207_v0  ;;  %v23984_v56 = vpop.permute.xlu0 %1616 }
  0xb2   : > { %924 = vmatprep.mubr.f32.mxu0 %v32207_v0  ;;  %20724 = vmatpush1.msk.msra.mxu0 %vm472_vm1, %v23620_v5  ;;  %v1621_v17 = vsel %vm1620_vm4, %v23984_v56, %v1619_v59  ;;  %v1622_v23 = vsel %vm1620_vm4, %v23982_v55, %v23984_v56 }
  0xb3   : > { %20736 = vmatprep.subr.msk.mxu0 %vm472_vm1, %v1208_v47  ;;  %4542 = vrot.lane.b32.xlu0 %v23631_v7, %s23474_s19  ;;  %v24041_v10 = vpop.permute.xlu1 %2026  ;;  %s23478_s19 = smov 64  }
  0xb4   : > { %20732 = vmatmul.mubr.msk.f32.gmra.mxu1 %vm462_vm2, %v23879_v40  ;;  %4952 = vrot.lane.b32.xlu1 %v23607_v2, %s23475_s24 }
  0xb5   : > { %20716 = vmatmul.mubr.msk.f32.gmra.mxu0 %vm462_vm2, %v23857_v37  ;;  %1395 = vmatprep.mubr.f32.mxu1 %v32207_v0  ;;  %v24016_v60 = vpop.permute.xlu0 %2024 }
  0xb6   : > { %930 = vmatprep.mubr.f32.mxu0 %v32207_v0  ;;  %v2044_v32 = vsel %vm2038_vm5, %v24016_v60, %v24041_v10 }
  0xb7   : > { %4950 = vrot.lane.b32.xlu0 %v23613_v3, %s23475_s24  ;;  %v2029_v15 = vpop.permute.xlu1 %2028 }
  0xb8   : > { %20743 = vmatmul.mubr.msk.f32.vlgmr.msra.gmra.mxu1 %vm462_vm2, %v23949_v48  ;;  %4954 = vrot.lane.b32.xlu1 %v23617_v4, %s23475_s24  ;;  %v2043_v27 = vsel %vm2038_vm5, %v24041_v10, %v2029_v15 }
  0xb9   : > { %20717 = vmatmul.mubr.msk.f32.gmra.mxu0 %vm462_vm2, %v23879_v40  ;;  %1401 = vmatprep.mubr.f32.mxu1 %v32207_v0  ;;  %v24043_v12 = vpop.permute.xlu0 %2022 }
  0xba   : > { %1084 = vmatprep.mubr.f32.mxu0 %v32207_v0  ;;  %20752 = vmatpush1.msk.msra.mxu1 %vm472_vm1, %v1203_v51  ;;  %v2045_v39 = vsel %vm2038_vm5, %v24043_v12, %v24016_v60 }
  0xbb   : > { %20764 = vmatprep.subr.msk.mxu1 %vm472_vm1, %v1624_v52  ;;  %4948 = vrot.lane.b32.xlu0 %v23604_v1, %s23475_s24  ;;  %v24106_v21 = vpop.permute.xlu1 %2032  ;;  %v24321_v52 = vld [vmem:[%s32194_s1 + $0x78] sm:$0xff] }
  0xbc   : > { %20744 = vmatmul.mubr.msk.f32.gmra.mxu1 %vm462_vm2, %v23973_v53  ;;  %4958 = vrot.lane.b32.xlu1 %v23628_v6, %s23475_s24 }
  0xbd   : > { %20725 = vmatmul.mubr.msk.f32.vlgmr.msra.gmra.mxu0 %vm462_vm2, %v23836_v33  ;;  %1407 = vmatprep.mubr.f32.mxu1 %v32207_v0  ;;  %v24076_v16 = vpop.permute.xlu0 %2030  ;;  %v24197_v33 = vld [vmem:[%s32194_s1 + $0x60] sm:$0xff] }
  0xbe   : > { %20737 = vmatpush1.msk.msra.mxu0 %vm472_vm1, %v1209_v54  ;;  %1090 = vmatprep.mubr.f32.mxu0 %v32207_v0  ;;  %v2042_v18 = vsel %vm2038_vm5, %v2029_v15, %v24076_v16 }
  0xbf   : > { %20746 = vmatprep.subr.msk.mxu0 %vm472_vm1, %v1204_v57  ;;  %4956 = vrot.lane.b32.xlu0 %v23620_v5, %s23475_s24  ;;  %v2037_v25 = vpop.permute.xlu1 %2036  ;;  %v24345_v57 = vld [vmem:[%s32194_s1 + $0x80] sm:$0xff] }
  0xc0   : > { %20745 = vmatmul.mubr.msk.f32.gmra.mxu1 %vm462_vm2, %v24002_v58  ;;  %4962 = vrot.lane.b32.xlu1 %v23639_v8, %s23475_s24  ;;  %v2046_v28 = vsel %vm2038_vm5, %v2037_v25, %v24043_v12 }
  0xc1   : > { %20726 = vmatmul.mubr.msk.f32.gmra.mxu0 %vm462_vm2, %v23857_v37  ;;  %1561 = vmatprep.mubr.f32.mxu1 %v32207_v0  ;;  %v24108_v22 = vpop.permute.xlu0 %2034 }
  0xc2   : > { %1096 = vmatprep.mubr.f32.mxu0 %v32207_v0  ;;  %v2039_v36 = vsel %vm2038_vm5, %v24108_v22, %v2037_v25  ;;  %v2040_v42 = vsel %vm2038_vm5, %v24106_v21, %v24108_v22 }
  0xc3   : > { %4960 = vrot.lane.b32.xlu0 %v23631_v7, %s23475_s24  ;;  %v24165_v30 = vpop.permute.xlu1 %2444  ;;  %s23481_s24 = smov 36  }
  0xc4   : > { %20753 = vmatmul.mubr.msk.f32.vlgmr.msra.gmra.mxu1 %vm462_vm2, %v23949_v48  ;;  %5370 = vrot.lane.b32.xlu1 %v23607_v2, %s23476_s20 }
  0xc5   : > { %20727 = vmatmul.mubr.msk.f32.gmra.mxu0 %vm462_vm2, %v23879_v40  ;;  %1567 = vmatprep.mubr.f32.mxu1 %v32207_v0  ;;  %v24140_v26 = vpop.permute.xlu0 %2442 }
  0xc6   : > { %1312 = vmatprep.mubr.f32.mxu0 %v32207_v0  ;;  %20765 = vmatpush1.msk.msra.mxu1 %vm472_vm1, %v1625_v61  ;;  %v2462_v51 = vsel %vm2456_vm6, %v24140_v26, %v24165_v30 }
  0xc7   : > { %20774 = vmatprep.subr.msk.mxu1 %vm472_vm1, %v1628_v62  ;;  %5368 = vrot.lane.b32.xlu0 %v23613_v3, %s23476_s20  ;;  %v2447_v34 = vpop.permute.xlu1 %2446  ;;  %v24372_v62 = vld [vmem:[%s32194_s1 + $0x88] sm:$0x3] }
  0xc8   : > { %20754 = vmatmul.mubr.msk.f32.gmra.mxu1 %vm462_vm2, %v23973_v53  ;;  %5372 = vrot.lane.b32.xlu1 %v23617_v4, %s23476_s20  ;;  %v2461_v46 = vsel %vm2456_vm6, %v24165_v30, %v2447_v34 }
  0xc9   : > { %20738 = vmatmul.mubr.msk.f32.vlgmr.msra.gmra.mxu0 %vm462_vm2, %v23949_v48  ;;  %1573 = vmatprep.mubr.f32.mxu1 %v32207_v0  ;;  %v24167_v31 = vpop.permute.xlu0 %2440 }
  0xca   : > { %20747 = vmatpush1.msk.msra.mxu0 %vm472_vm1, %v1205_v63  ;;  %1318 = vmatprep.mubr.f32.mxu0 %v32207_v0 }
  0xcb   : > { %20759 = vmatprep.subr.msk.mxu0 %vm472_vm1, %v1626_v13  ;;  %5366 = vrot.lane.b32.xlu0 %v23604_v1, %s23476_s20  ;;  %v24230_v40 = vpop.permute.xlu1 %2450 }
  0xcc   : > { %20755 = vmatmul.mubr.msk.f32.gmra.mxu1 %vm462_vm2, %v24002_v58  ;;  %5376 = vrot.lane.b32.xlu1 %v23628_v6, %s23476_s20 }
  0xcd   : > { %20739 = vmatmul.mubr.msk.f32.gmra.mxu0 %vm462_vm2, %v23973_v53  ;;  %1813 = vmatprep.mubr.f32.mxu1 %v32207_v0  ;;  %v24200_v35 = vpop.permute.xlu0 %2448 }
  0xce   : > { %1324 = vmatprep.mubr.f32.mxu0 %v32207_v0  ;;  %v2460_v37 = vsel %vm2456_vm6, %v2447_v34, %v24200_v35 }
  0xcf   : > { %5374 = vrot.lane.b32.xlu0 %v23620_v5, %s23476_s20  ;;  %v2455_v44 = vpop.permute.xlu1 %2454 }
  0xd0   : > { %20766 = vmatmul.mubr.msk.f32.vlgmr.msra.gmra.mxu1 %vm462_vm2, %v24073_v14  ;;  %5380 = vrot.lane.b32.xlu1 %v23639_v8, %s23476_s20  ;;  %v2464_v47 = vsel %vm2456_vm6, %v2455_v44, %v24167_v31 }
  0xd1   : > { %20740 = vmatmul.mubr.msk.f32.gmra.mxu0 %vm462_vm2, %v24002_v58  ;;  %1819 = vmatprep.mubr.f32.mxu1 %v32207_v0  ;;  %v24232_v41 = vpop.permute.xlu0 %2452 }
  0xd2   : > { %1478 = vmatprep.mubr.f32.mxu0 %v32207_v0  ;;  %20775 = vmatpush1.msk.msra.mxu1 %vm472_vm1, %v1621_v17  ;;  %v2457_v55 = vsel %vm2456_vm6, %v24232_v41, %v2455_v44  ;;  %v2458_v61 = vsel %vm2456_vm6, %v24230_v40, %v24232_v41  ;;  %v24607_v44 = vld [vmem:[%s32194_s1 + $0xb8] sm:$0x3] }
  0xd3   : > { %20787 = vmatprep.subr.msk.mxu1 %vm472_vm1, %v2042_v18  ;;  %5378 = vrot.lane.b32.xlu0 %v23631_v7, %s23476_s20  ;;  %v24289_v49 = vpop.permute.xlu1 %2862  ;;  %v24439_v18 = vld [vmem:[%s32194_s1 + $0x90] sm:$0xff]  ;;  %s23482_s20 = smov 35  }
  0xd4   : > { %20767 = vmatmul.mubr.msk.f32.gmra.mxu1 %vm462_vm2, %v24097_v19  ;;  %5788 = vrot.lane.b32.xlu1 %v23607_v2, %s23477_s16 }
  0xd5   : > { %20748 = vmatmul.mubr.msk.f32.vlgmr.msra.gmra.mxu0 %vm462_vm2, %v23949_v48  ;;  %1825 = vmatprep.mubr.f32.mxu1 %v32207_v0  ;;  %v24264_v45 = vpop.permute.xlu0 %2860  ;;  %v2041_v48 = vsel %vm2038_vm5, %v24076_v16, %v24106_v21 }
  0xd6   : > { %20760 = vmatpush1.msk.msra.mxu0 %vm472_vm1, %v1627_v20  ;;  %1484 = vmatprep.mubr.f32.mxu0 %v32207_v0  ;;  %v2880_v17 = vsel %vm2874_vm7, %v24264_v45, %v24289_v49 }
  0xd7   : > { %20769 = vmatprep.subr.msk.mxu0 %vm472_vm1, %v1622_v23  ;;  %5786 = vrot.lane.b32.xlu0 %v23613_v3, %s23477_s16  ;;  %v24463_v23 = vld [vmem:[%s32194_s1 + $0x98] sm:$0xff] }
  0xd8   : > { %20768 = vmatmul.mubr.msk.f32.gmra.mxu1 %vm462_vm2, %v24126_v24  ;;  %5790 = vrot.lane.b32.xlu1 %v23617_v4, %s23477_s16 }
  0xd9   : > { %20749 = vmatmul.mubr.msk.f32.gmra.mxu0 %vm462_vm2, %v23973_v53  ;;  %1979 = vmatprep.mubr.f32.mxu1 %v32207_v0  ;;  %v24291_v50 = vpop.permute.xlu0 %2858  ;;  %v2865_v53 = vpop.permute.xlu1 %2864 }
  0xda   : > { %1490 = vmatprep.mubr.f32.mxu0 %v32207_v0  ;;  %v2879_v12 = vsel %vm2874_vm7, %v24289_v49, %v2865_v53 }
  0xdb   : > { %5784 = vrot.lane.b32.xlu0 %v23604_v1, %s23477_s16 }
  0xdc   : > { %20776 = vmatmul.mubr.msk.f32.vlgmr.msra.gmra.mxu1 %vm462_vm2, %v24073_v14  ;;  %5794 = vrot.lane.b32.xlu1 %v23628_v6, %s23477_s16 }
  0xdd   : > { %20750 = vmatmul.mubr.msk.f32.gmra.mxu0 %vm462_vm2, %v24002_v58  ;;  %1985 = vmatprep.mubr.f32.mxu1 %v32207_v0  ;;  %v24324_v54 = vpop.permute.xlu0 %2866  ;;  %v2463_v58 = vsel %vm2456_vm6, %v24167_v31, %v24140_v26  ;;  %v24354_v59 = vpop.permute.xlu1 %2868 }
  0xde   : > { %1730 = vmatprep.mubr.f32.mxu0 %v32207_v0  ;;  %20788 = vmatpush1.msk.msra.mxu1 %vm472_vm1, %v2043_v27  ;;  %v2878_v56 = vsel %vm2874_vm7, %v2865_v53, %v24324_v54  ;;  %v24488_v27 = vld [vmem:[%s32194_s1 + $0xa0] sm:$0x3] }
  0xdf   : > { %20797 = vmatprep.subr.msk.mxu1 %vm472_vm1, %v2046_v28  ;;  %5792 = vrot.lane.b32.xlu0 %v23620_v5, %s23477_s16  ;;  %v24650_v53 = vld [vmem:[%s23601_s26] sm:$0x77] }
  0xe0   : > { %20777 = vmatmul.mubr.msk.f32.gmra.mxu1 %vm462_vm2, %v24097_v19  ;;  %5798 = vrot.lane.b32.xlu1 %v23639_v8, %s23477_s16 }
  0xe1   : > { %20761 = vmatmul.mubr.msk.f32.vlgmr.msra.gmra.mxu0 %vm462_vm2, %v24073_v14  ;;  %1991 = vmatprep.mubr.f32.mxu1 %v32207_v0  ;;  %v24356_v60 = vpop.permute.xlu0 %2870  ;;  %v2873_v63 = vpop.permute.xlu1 %2872 }
  0xe2   : > { %20770 = vmatpush1.msk.msra.mxu0 %vm472_vm1, %v1623_v29  ;;  %1736 = vmatprep.mubr.f32.mxu0 %v32207_v0  ;;  %v2882_v13 = vsel %vm2874_vm7, %v2873_v63, %v24291_v50  ;;  %v2875_v21 = vsel %vm2874_vm7, %v24356_v60, %v2873_v63  ;;  %v2876_v26 = vsel %vm2874_vm7, %v24354_v59, %v24356_v60 }
  0xe3   : > { %20782 = vmatprep.subr.msk.mxu0 %vm472_vm1, %v2044_v32  ;;  %5796 = vrot.lane.b32.xlu0 %v23631_v7, %s23477_s16  ;;  %s23484_s16 = smov 8  }
  0xe4   : > { %20778 = vmatmul.mubr.msk.f32.gmra.mxu1 %vm462_vm2, %v24126_v24  ;;  %6206 = vrot.lane.b32.xlu1 %v23607_v2, %s23478_s19 }
  0xe5   : > { %20762 = vmatmul.mubr.msk.f32.gmra.mxu0 %vm462_vm2, %v24097_v19  ;;  %2231 = vmatprep.mubr.f32.mxu1 %v32207_v0  ;;  %v24382_v10 = vpop.permute.xlu0 %3278  ;;  %v24407_v15 = vpop.permute.xlu1 %3280 }
  0xe6   : > { %1742 = vmatprep.mubr.f32.mxu0 %v32207_v0  ;;  %v3298_v34 = vsel %vm3292_vm8, %v24382_v10, %v24407_v15 }
  0xe7   : > { %6204 = vrot.lane.b32.xlu0 %v23613_v3, %s23478_s19 }
  0xe8   : > { %20789 = vmatmul.mubr.msk.f32.vlgmr.msra.gmra.mxu1 %vm462_vm2, %v24197_v33  ;;  %6208 = vrot.lane.b32.xlu1 %v23617_v4, %s23478_s19 }
  0xe9   : > { %20763 = vmatmul.mubr.msk.f32.gmra.mxu0 %vm462_vm2, %v24126_v24  ;;  %2237 = vmatprep.mubr.f32.mxu1 %v32207_v0  ;;  %v24409_v16 = vpop.permute.xlu0 %3276 }
  0xea   : > { %1896 = vmatprep.mubr.f32.mxu0 %v32207_v0  ;;  %20798 = vmatpush1.msk.msra.mxu1 %vm472_vm1, %v2039_v36 }
  0xeb   : > { %20810 = vmatprep.subr.msk.mxu1 %vm472_vm1, %v2460_v37  ;;  %6202 = vrot.lane.b32.xlu0 %v23604_v1, %s23478_s19  ;;  %v24565_v37 = vld [vmem:[%s23601_s26 + $0x18] sm:$0x77] }
  0xec   : > { %20790 = vmatmul.mubr.msk.f32.gmra.mxu1 %vm462_vm2, %v24221_v38  ;;  %6212 = vrot.lane.b32.xlu1 %v23628_v6, %s23478_s19 }
  0xed   : > { %20771 = vmatmul.mubr.msk.f32.vlgmr.msra.gmra.mxu0 %vm462_vm2, %v24073_v14  ;;  %2243 = vmatprep.mubr.f32.mxu1 %v32207_v0  ;;  %v2459_v14 = vsel %vm2456_vm6, %v24200_v35, %v24230_v40  ;;  %v24442_v20 = vpop.permute.xlu0 %3284  ;;  %v3299_v40 = vsel %vm3292_vm8, %v24409_v16, %v24382_v10 }
  0xee   : > { %20783 = vmatpush1.msk.msra.mxu0 %vm472_vm1, %v2045_v39  ;;  %1902 = vmatprep.mubr.f32.mxu0 %v32207_v0  ;;  %v24582_v39 = vld [vmem:[%s32194_s1 + $0xb0] sm:$0xff] }
  0xef   : > { %20792 = vmatprep.subr.msk.mxu0 %vm472_vm1, %v2040_v42  ;;  %6210 = vrot.lane.b32.xlu0 %v23620_v5, %s23478_s19 }
  0xf0   : > { %20791 = vmatmul.mubr.msk.f32.gmra.mxu1 %vm462_vm2, %v24250_v43  ;;  %6216 = vrot.lane.b32.xlu1 %v23639_v8, %s23478_s19 }
  0xf1   : > { %20772 = vmatmul.mubr.msk.f32.gmra.mxu0 %vm462_vm2, %v24097_v19  ;;  %2397 = vmatprep.mubr.f32.mxu1 %v32207_v0  ;;  %v3283_v19 = vpop.permute.xlu1 %3282  ;;  %v24474_v25 = vpop.permute.xlu0 %3288 }
  0xf2   : > { %1908 = vmatprep.mubr.f32.mxu0 %v32207_v0  ;;  %v3296_v22 = vsel %vm3292_vm8, %v3283_v19, %v24442_v20  ;;  %v3297_v30 = vsel %vm3292_vm8, %v24407_v15, %v3283_v19 }
  0xf3   : > { %6214 = vrot.lane.b32.xlu0 %v23631_v7, %s23478_s19  ;;  %s23487_s19 = smov 5  }
  0xf4   : > { %20799 = vmatmul.mubr.msk.f32.vlgmr.msra.gmra.mxu1 %vm462_vm2, %v24197_v33  ;;  %6624 = vrot.lane.b32.xlu1 %v23607_v2, %s23479_s17 }
  0xf5   : > { %20773 = vmatmul.mubr.msk.f32.gmra.mxu0 %vm462_vm2, %v24126_v24  ;;  %2403 = vmatprep.mubr.f32.mxu1 %v32207_v0  ;;  %v24472_v24 = vpop.permute.xlu1 %3286  ;;  %v24498_v29 = vpop.permute.xlu0 %3696 }
  0xf6   : > { %2148 = vmatprep.mubr.f32.mxu0 %v32207_v0  ;;  %20811 = vmatpush1.msk.msra.mxu1 %vm472_vm1, %v2461_v46 }
  0xf7   : > { %20820 = vmatprep.subr.msk.mxu1 %vm472_vm1, %v2464_v47  ;;  %6622 = vrot.lane.b32.xlu0 %v23613_v3, %s23479_s17 }
  0xf8   : > { %20800 = vmatmul.mubr.msk.f32.gmra.mxu1 %vm462_vm2, %v24221_v38  ;;  %6626 = vrot.lane.b32.xlu1 %v23617_v4, %s23479_s17 }
  0xf9   : > { %20784 = vmatmul.mubr.msk.f32.vlgmr.msra.gmra.mxu0 %vm462_vm2, %v24197_v33  ;;  %2409 = vmatprep.mubr.f32.mxu1 %v32207_v0  ;;  %v3291_v28 = vpop.permute.xlu1 %3290 }
  0xfa   : > { %20793 = vmatpush1.msk.msra.mxu0 %vm472_vm1, %v2041_v48  ;;  %2154 = vmatprep.mubr.f32.mxu0 %v32207_v0  ;;  %v3300_v31 = vsel %vm3292_vm8, %v3291_v28, %v24409_v16  ;;  %v3293_v36 = vsel %vm3292_vm8, %v24474_v25, %v3291_v28  ;;  %v24626_v48 = vld [vmem:[%s23601_s26 + $0x8] sm:$0x77] }
  0xfb   : > { %20805 = vmatprep.subr.msk.mxu0 %vm472_vm1, %v2462_v51  ;;  %6620 = vrot.lane.b32.xlu0 %v23604_v1, %s23479_s17 }
  0xfc   : > { %20801 = vmatmul.mubr.msk.f32.gmra.mxu1 %vm462_vm2, %v24250_v43  ;;  %6630 = vrot.lane.b32.xlu1 %v23628_v6, %s23479_s17 }
  0xfd   : > { %20785 = vmatmul.mubr.msk.f32.gmra.mxu0 %vm462_vm2, %v24221_v38  ;;  %2649 = vmatprep.mubr.f32.mxu1 %v32207_v0  ;;  %v24523_v32 = vpop.permute.xlu1 %3698 }
  0xfe   : > { %2160 = vmatprep.mubr.f32.mxu0 %v32207_v0 }
  0xff   : > { %6628 = vrot.lane.b32.xlu0 %v23620_v5, %s23479_s17 }
 0x100   : > { %20812 = vmatmul.mubr.msk.f32.vlgmr.msra.gmra.mxu1 %vm462_vm2, %v24321_v52  ;;  %6634 = vrot.lane.b32.xlu1 %v23639_v8, %s23479_s17 }
 0x101   : > { %20786 = vmatmul.mubr.msk.f32.gmra.mxu0 %vm462_vm2, %v24250_v43  ;;  %2655 = vmatprep.mubr.f32.mxu1 %v32207_v0  ;;  %v3701_v35 = vpop.permute.xlu1 %3700 }
 0x102   : > { %2314 = vmatprep.mubr.f32.mxu0 %v32207_v0  ;;  %20821 = vmatpush1.msk.msra.mxu1 %vm472_vm1, %v2457_v55  ;;  %v3715_v47 = vsel %vm3710_vm9, %v24523_v32, %v3701_v35  ;;  %v24669_v55 = vld [vmem:[%s23601_s26 + $0x10] sm:$0x77] }
 0x103   : > { %20833 = vmatprep.subr.msk.mxu1 %vm472_vm1, %v2878_v56  ;;  %6632 = vrot.lane.b32.xlu0 %v23631_v7, %s23479_s17  ;;  %v24683_v56 = vld [vmem:[%s32194_s1 + $0xc0] sm:$0xff]  ;;  %s23488_s17 = smov 4  }
 0x104   : > { %20813 = vmatmul.mubr.msk.f32.gmra.mxu1 %vm462_vm2, %v24345_v57  ;;  %7042 = vrot.lane.b32.xlu1 %v23607_v2, %s23480_s15 }
 0x105   : > { %20794 = vmatmul.mubr.msk.f32.vlgmr.msra.gmra.mxu0 %vm462_vm2, %v24197_v33  ;;  %2661 = vmatprep.mubr.f32.mxu1 %v32207_v0  ;;  %v24525_v33 = vpop.permute.xlu0 %3694  ;;  %v24591_v41 = vpop.permute.xlu1 %3704 }
 0x106   : > { %20806 = vmatpush1.msk.msra.mxu0 %vm472_vm1, %v2463_v58  ;;  %2320 = vmatprep.mubr.f32.mxu0 %v32207_v0  ;;  %v3717_v63 = vsel %vm3710_vm9, %v24525_v33, %v24498_v29 }
 0x107   : > { %20815 = vmatprep.subr.msk.mxu0 %vm472_vm1, %v2458_v61  ;;  %7040 = vrot.lane.b32.xlu0 %v23613_v3, %s23480_s15  ;;  %v24707_v61 = vld [vmem:[%s32194_s1 + $0xc8] sm:$0xff] }
 0x108   : > { %20814 = vmatmul.mubr.msk.f32.gmra.mxu1 %vm462_vm2, %v24372_v62  ;;  %7044 = vrot.lane.b32.xlu1 %v23617_v4, %s23480_s15 }
 0x109   : > { %20795 = vmatmul.mubr.msk.f32.gmra.mxu0 %vm462_vm2, %v24221_v38  ;;  %2815 = vmatprep.mubr.f32.mxu1 %v32207_v0 }
 0x10a   : > { %2326 = vmatprep.mubr.f32.mxu0 %v32207_v0 }
 0x10b   : > { %7038 = vrot.lane.b32.xlu0 %v23604_v1, %s23480_s15 }
 0x10c   : > { %20822 = vmatmul.mubr.msk.f32.vlgmr.msra.gmra.mxu1 %vm462_vm2, %v24321_v52  ;;  %7048 = vrot.lane.b32.xlu1 %v23628_v6, %s23480_s15 }
 0x10d   : > { %20796 = vmatmul.mubr.msk.f32.gmra.mxu0 %vm462_vm2, %v24250_v43  ;;  %2821 = vmatprep.mubr.f32.mxu1 %v32207_v0  ;;  %v3294_v43 = vsel %vm3292_vm8, %v24472_v24, %v24474_v25 }
 0x10e   : > { %2566 = vmatprep.mubr.f32.mxu0 %v32207_v0  ;;  %20834 = vmatpush1.msk.msra.mxu1 %vm472_vm1, %v2879_v12 }
 0x10f   : > { %20843 = vmatprep.subr.msk.mxu1 %vm472_vm1, %v2882_v13  ;;  %7046 = vrot.lane.b32.xlu0 %v23620_v5, %s23480_s15 }
 0x110   : > { %20823 = vmatmul.mubr.msk.f32.gmra.mxu1 %vm462_vm2, %v24345_v57  ;;  %7052 = vrot.lane.b32.xlu1 %v23639_v8, %s23480_s15 }
 0x111   : > { %20807 = vmatmul.mubr.msk.f32.vlgmr.msra.gmra.mxu0 %vm462_vm2, %v24321_v52  ;;  %2827 = vmatprep.mubr.f32.mxu1 %v32207_v0 }
 0x112   : > { %20816 = vmatpush1.msk.msra.mxu0 %vm472_vm1, %v2459_v14  ;;  %2572 = vmatprep.mubr.f32.mxu0 %v32207_v0  ;;  %v24734_v14 = vld [vmem:[%s32194_s1 + $0xd0] sm:$0x3] }
 0x113   : > { %20828 = vmatprep.subr.msk.mxu0 %vm472_vm1, %v2880_v17  ;;  %7050 = vrot.lane.b32.xlu0 %v23631_v7, %s23480_s15  ;;  %v2881_v7 = vsel %vm2874_vm7, %v24291_v50, %v24264_v45  ;;  %v3709_v45 = vpop.permute.xlu1 %3708  ;;  %v3295_v50 = vsel %vm3292_vm8, %v24442_v20, %v24472_v24  ;;  %vm6636_vm8 = vcmp.lt.s32.totalorder %v23738_v11, 38  ;;  %s32229_s15 = smov 113  }
 0x114   : > { %20824 = vmatmul.mubr.msk.f32.gmra.mxu1 %vm462_vm2, %v24372_v62  ;;  %7460 = vrot.lane.b32.xlu1 %v23607_v2, %s23481_s24  ;;  %v2877_v2 = vsel %vm2874_vm7, %v24324_v54, %v24354_v59  ;;  %v3718_v49 = vsel %vm3710_vm9, %v3709_v45, %v24525_v33  ;;  %v3716_v54 = vsel %vm3710_vm9, %v24498_v29, %v24523_v32 }
 0x115   : > { %20808 = vmatmul.mubr.msk.f32.gmra.mxu0 %vm462_vm2, %v24345_v57  ;;  %3067 = vmatprep.mubr.f32.mxu1 %v32207_v0 }
 0x116   : > { %2578 = vmatprep.mubr.f32.mxu0 %v32207_v0 }
 0x117   : > { %7458 = vrot.lane.b32.xlu0 %v23613_v3, %s23481_s24  ;;  %v24645_v51 = vpop.permute.xlu1 %4116 }
 0x118   : > { %20835 = vmatmul.mubr.msk.f32.vlgmr.msra.gmra.mxu1 %vm462_vm2, %v24439_v18  ;;  %7462 = vrot.lane.b32.xlu1 %v23617_v4, %s23481_s24 }
 0x119   : > { %20809 = vmatmul.mubr.msk.f32.gmra.mxu0 %vm462_vm2, %v24372_v62  ;;  %3073 = vmatprep.mubr.f32.mxu1 %v32207_v0 }
 0x11a   : > { %2732 = vmatprep.mubr.f32.mxu0 %v32207_v0  ;;  %20844 = vmatpush1.msk.msra.mxu1 %vm472_vm1, %v2875_v21 }
 0x11b   : > { %20856 = vmatprep.subr.msk.mxu1 %vm472_vm1, %v3296_v22  ;;  %7456 = vrot.lane.b32.xlu0 %v23604_v1, %s23481_s24  ;;  %v24555_v1 = vld [vmem:[%s32194_s1 + $0xa8] sm:$0xff] }
 0x11c   : > { %20836 = vmatmul.mubr.msk.f32.gmra.mxu1 %vm462_vm2, %v24463_v23  ;;  %7466 = vrot.lane.b32.xlu1 %v23628_v6, %s23481_s24 }
 0x11d   : > { %20817 = vmatmul.mubr.msk.f32.vlgmr.msra.gmra.mxu0 %vm462_vm2, %v24321_v52  ;;  %3079 = vmatprep.mubr.f32.mxu1 %v32207_v0 }
 0x11e   : > { %20829 = vmatpush1.msk.msra.mxu0 %vm472_vm1, %v2881_v7  ;;  %2738 = vmatprep.mubr.f32.mxu0 %v32207_v0 }
 0x11f   : > { %20838 = vmatprep.subr.msk.mxu0 %vm472_vm1, %v2876_v26  ;;  %7464 = vrot.lane.b32.xlu0 %v23620_v5, %s23481_s24  ;;  %v24558_v5 = vpop.permute.xlu0 %3702 }
 0x120   : > { %20837 = vmatmul.mubr.msk.f32.gmra.mxu1 %vm462_vm2, %v24488_v27  ;;  %v3714_v38 = vsel %vm3710_vm9, %v3701_v35, %v24558_v5  ;;  %7470 = vrot.lane.b32.xlu1 %v23639_v8, %s23481_s24  ;;  %v3713_v25 = vsel %vm3710_vm9, %v24558_v5, %v24591_v41 }
 0x121   : > { %20818 = vmatmul.mubr.msk.f32.gmra.mxu0 %vm462_vm2, %v24345_v57  ;;  %3233 = vmatprep.mubr.f32.mxu1 %v32207_v0  ;;  %v4119_v57 = vpop.permute.xlu1 %4118 }
 0x122   : > { %2744 = vmatprep.mubr.f32.mxu0 %v32207_v0  ;;  %v4133_v20 = vsel %vm4128_vm10, %v24645_v51, %v4119_v57 }
 0x123   : > { %7468 = vrot.lane.b32.xlu0 %v24565_v37, %s23481_s24  ;;  %v24593_v42 = vpop.permute.xlu0 %3706  ;;  %s32241_s24 = smov 115  }
 0x124   : > { %20845 = vmatmul.mubr.msk.f32.vlgmr.msra.gmra.mxu1 %vm462_vm2, %v24439_v18  ;;  %7878 = vrot.lane.b32.xlu1 %v24626_v48, %s23482_s20  ;;  %v3711_v59 = vsel %vm3710_vm9, %v24593_v42, %v3709_v45  ;;  %v3712_v12 = vsel %vm3710_vm9, %v24591_v41, %v24593_v42  ;;  %vm7054_vm9 = vcmp.lt.s32.totalorder %v23738_v11, 37 }
 0x125   : > { %20819 = vmatmul.mubr.msk.f32.gmra.mxu0 %vm462_vm2, %v24372_v62  ;;  %3239 = vmatprep.mubr.f32.mxu1 %v32207_v0  ;;  %v24711_v62 = vpop.permute.xlu1 %4122 }
 0x126   : > { %2984 = vmatprep.mubr.f32.mxu0 %v32207_v0  ;;  %20857 = vmatpush1.msk.msra.mxu1 %vm472_vm1, %v3297_v30 }
 0x127   : > { %20866 = vmatprep.subr.msk.mxu1 %vm472_vm1, %v3300_v31  ;;  %v24617_v46 = vpop.permute.xlu0 %4114  ;;  %7876 = vrot.lane.b32.xlu0 %v23613_v3, %s23482_s20 }
 0x128   : > { %20846 = vmatmul.mubr.msk.f32.gmra.mxu1 %vm462_vm2, %v24463_v23  ;;  %7880 = vrot.lane.b32.xlu1 %v23617_v4, %s23482_s20  ;;  %v4134_v29 = vsel %vm4128_vm10, %v24617_v46, %v24645_v51 }
 0x129   : > { %20830 = vmatmul.mubr.msk.f32.vlgmr.msra.gmra.mxu0 %vm462_vm2, %v24439_v18  ;;  %3245 = vmatprep.mubr.f32.mxu1 %v32207_v0  ;;  %v4127_v16 = vpop.permute.xlu1 %4126 }
 0x12a   : > { %20839 = vmatpush1.msk.msra.mxu0 %vm472_vm1, %v2877_v2  ;;  %2990 = vmatprep.mubr.f32.mxu0 %v32207_v0 }
 0x12b   : > { %20851 = vmatprep.subr.msk.mxu0 %vm472_vm1, %v3298_v34  ;;  %v24647_v52 = vpop.permute.xlu0 %4112  ;;  %7874 = vrot.lane.b32.xlu0 %v24650_v53, %s23482_s20 }
 0x12c   : > { %20847 = vmatmul.mubr.msk.f32.gmra.mxu1 %vm462_vm2, %v24488_v27  ;;  %7884 = vrot.lane.b32.xlu1 %v23628_v6, %s23482_s20  ;;  %v4136_v22 = vsel %vm4128_vm10, %v4127_v16, %v24647_v52 }
 0x12d   : > { %20831 = vmatmul.mubr.msk.f32.gmra.mxu0 %vm462_vm2, %v24463_v23  ;;  %3485 = vmatprep.mubr.f32.mxu1 %v32207_v0  ;;  %v24776_v24 = vpop.permute.xlu1 %4534 }
 0x12e   : > { %2996 = vmatprep.mubr.f32.mxu0 %v32207_v0 }
 0x12f   : > { %7882 = vrot.lane.b32.xlu0 %v24669_v55, %s23482_s20  ;;  %v24686_v58 = vpop.permute.xlu0 %4120 }
 0x130   : > { %20858 = vmatmul.mubr.msk.f32.vlgmr.msra.gmra.mxu1 %vm462_vm2, %v24555_v1  ;;  %v4132_v60 = vsel %vm4128_vm10, %v4119_v57, %v24686_v58  ;;  %7888 = vrot.lane.b32.xlu1 %v23639_v8, %s23482_s20 }
 0x131   : > { %20832 = vmatmul.mubr.msk.f32.gmra.mxu0 %vm462_vm2, %v24488_v27  ;;  %3491 = vmatprep.mubr.f32.mxu1 %v32207_v0  ;;  %v4537_v33 = vpop.permute.xlu1 %4536 }
 0x132   : > { %3150 = vmatprep.mubr.f32.mxu0 %v32207_v0  ;;  %20867 = vmatpush1.msk.msra.mxu1 %vm472_vm1, %v3293_v36 }
 0x133   : > { %20879 = vmatprep.subr.msk.mxu1 %vm472_vm1, %v3714_v38  ;;  %7886 = vrot.lane.b32.xlu0 %v24565_v37, %s23482_s20  ;;  %v24718_v10 = vpop.permute.xlu0 %4124  ;;  %s32213_s20 = smov 100  }
 0x134   : > { %20859 = vmatmul.mubr.msk.f32.gmra.mxu1 %vm462_vm2, %v24582_v39  ;;  %8296 = vrot.lane.b32.xlu1 %v24626_v48, %s23483_s18  ;;  %v4129_v38 = vsel %vm4128_vm10, %v24718_v10, %v4127_v16  ;;  %v4130_v57 = vsel %vm4128_vm10, %v24711_v62, %v24718_v10 }
 0x135   : > { %20840 = vmatmul.mubr.msk.f32.vlgmr.msra.gmra.mxu0 %vm462_vm2, %v24439_v18  ;;  %3497 = vmatprep.mubr.f32.mxu1 %v32207_v0  ;;  %v24853_v45 = vpop.permute.xlu1 %4540 }
 0x136   : > { %20852 = vmatpush1.msk.msra.mxu0 %vm472_vm1, %v3299_v40  ;;  %3156 = vmatprep.mubr.f32.mxu0 %v32207_v0 }
 0x137   : > { %20861 = vmatprep.subr.msk.mxu0 %vm472_vm1, %v3294_v43  ;;  %v24748_v18 = vpop.permute.xlu0 %4532  ;;  %8294 = vrot.lane.b32.xlu0 %v23613_v3, %s23483_s18  ;;  %v24849_v43 = vld [vmem:[%s32194_s1 + $0xe0] sm:$0xff] }
 0x138   : > { %20860 = vmatmul.mubr.msk.f32.gmra.mxu1 %vm462_vm2, %v24607_v44  ;;  %8298 = vrot.lane.b32.xlu1 %v23617_v4, %s23483_s18 }
 0x139   : > { %20841 = vmatmul.mubr.msk.f32.gmra.mxu0 %vm462_vm2, %v24463_v23  ;;  %3651 = vmatprep.mubr.f32.mxu1 %v32207_v0 }
 0x13a   : > { %3162 = vmatprep.mubr.f32.mxu0 %v32207_v0 }
 0x13b   : > { %8292 = vrot.lane.b32.xlu0 %v24650_v53, %s23483_s18 }
 0x13c   : > { %20868 = vmatmul.mubr.msk.f32.vlgmr.msra.gmra.mxu1 %vm462_vm2, %v24555_v1  ;;  %8302 = vrot.lane.b32.xlu1 %v23628_v6, %s23483_s18 }
 0x13d   : > { %20842 = vmatmul.mubr.msk.f32.gmra.mxu0 %vm462_vm2, %v24488_v27  ;;  %3657 = vmatprep.mubr.f32.mxu1 %v32207_v0  ;;  %v24785_v27 = vpop.permute.xlu0 %4530 }
 0x13e   : > { %3402 = vmatprep.mubr.f32.mxu0 %v32207_v0  ;;  %20880 = vmatpush1.msk.msra.mxu1 %vm472_vm1, %v3715_v47  ;;  %v4135_v47 = vsel %vm4128_vm10, %v24647_v52, %v24617_v46  ;;  %v24880_v46 = vld [vmem:[%s32194_s1 + $0xe8] sm:$0x3] }
 0x13f   : > { %20889 = vmatprep.subr.msk.mxu1 %vm472_vm1, %v3718_v49  ;;  %8300 = vrot.lane.b32.xlu0 %v24669_v55, %s23483_s18 }
 0x140   : > { %20869 = vmatmul.mubr.msk.f32.gmra.mxu1 %vm462_vm2, %v24582_v39  ;;  %8306 = vrot.lane.b32.xlu1 %v23639_v8, %s23483_s18 }
 0x141   : > { %20853 = vmatmul.mubr.msk.f32.vlgmr.msra.gmra.mxu0 %vm462_vm2, %v24555_v1  ;;  %3663 = vmatprep.mubr.f32.mxu1 %v32207_v0  ;;  %v24824_v35 = vpop.permute.xlu0 %4538 }
 0x142   : > { %20862 = vmatpush1.msk.msra.mxu0 %vm472_vm1, %v3295_v50  ;;  %3408 = vmatprep.mubr.f32.mxu0 %v32207_v0  ;;  %v4550_v40 = vsel %vm4546_vm11, %v4537_v33, %v24824_v35 }
 0x143   : > { %20874 = vmatprep.subr.msk.mxu0 %vm472_vm1, %v3716_v54  ;;  %8304 = vrot.lane.b32.xlu0 %v24565_v37, %s23483_s18  ;;  %s32233_s18 = smov 102  }
 0x144   : > { %20870 = vmatmul.mubr.msk.f32.gmra.mxu1 %vm462_vm2, %v24607_v44  ;;  %8714 = vrot.lane.b32.xlu1 %v24626_v48, %s23484_s16 }
 0x145   : > { %20854 = vmatmul.mubr.msk.f32.gmra.mxu0 %vm462_vm2, %v24582_v39  ;;  %3903 = vmatprep.mubr.f32.mxu1 %v32207_v0  ;;  %v24862_v51 = vpop.permute.xlu0 %4542 }
 0x146   : > { %3414 = vmatprep.mubr.f32.mxu0 %v32207_v0 }
 0x147   : > { %8712 = vrot.lane.b32.xlu0 %v23613_v3, %s23484_s16 }
 0x148   : > { %20881 = vmatmul.mubr.msk.f32.vlgmr.msra.gmra.mxu1 %vm462_vm2, %v24683_v56  ;;  %8716 = vrot.lane.b32.xlu1 %v23617_v4, %s23484_s16 }
 0x149   : > { %20855 = vmatmul.mubr.msk.f32.gmra.mxu0 %vm462_vm2, %v24607_v44  ;;  %3909 = vmatprep.mubr.f32.mxu1 %v32207_v0 }
 0x14a   : > { %3568 = vmatprep.mubr.f32.mxu0 %v32207_v0  ;;  %20890 = vmatpush1.msk.msra.mxu1 %vm472_vm1, %v3711_v59 }
 0x14b   : > { %20902 = vmatprep.subr.msk.mxu1 %vm472_vm1, %v4132_v60  ;;  %8710 = vrot.lane.b32.xlu0 %v24650_v53, %s23484_s16 }
 0x14c   : > { %20882 = vmatmul.mubr.msk.f32.gmra.mxu1 %vm462_vm2, %v24707_v61  ;;  %8720 = vrot.lane.b32.xlu1 %v23628_v6, %s23484_s16 }
 0x14d   : > { %v24726_v13 = vpop.f32.mrf.mxu0  ;;  %20863 = vmatmul.mubr.msk.f32.vlgmr.msra.gmra.mxu0 %vm462_vm2, %v24555_v1  ;;  %3915 = vmatprep.mubr.f32.mxu1 %v32207_v0  ;;  %v24821_v1 = vld [vmem:[%s32194_s1 + $0xd8] sm:$0xff] }
 0x14e   : > { %20875 = vmatpush1.msk.msra.mxu0 %vm472_vm1, %v3717_v63  ;;  %3574 = vmatprep.mubr.f32.mxu0 %v32207_v0 }
 0x14f   : > { %v24738_v15 = vpop.f32.mrf.mxu0  ;;  %20884 = vmatprep.subr.msk.mxu0 %vm472_vm1, %v3712_v12  ;;  %8718 = vrot.lane.b32.xlu0 %v24669_v55, %s23484_s16 }
 0x150   : > { %20883 = vmatmul.mubr.msk.f32.gmra.mxu1 %vm462_vm2, %v24734_v14  ;;  %8724 = vrot.lane.b32.xlu1 %v23639_v8, %s23484_s16 }
 0x151   : > { %v24743_v17 = vpop.f32.mrf.mxu0  ;;  %20864 = vmatmul.mubr.msk.f32.gmra.mxu0 %vm462_vm2, %v24582_v39  ;;  %4069 = vmatprep.mubr.f32.mxu1 %v32207_v0 }
 0x152   : > { %3580 = vmatprep.mubr.f32.mxu0 %v32207_v0 }
 0x153   : > { %v24751_v19 = vpop.f32.mrf.mxu0  ;;  %8722 = vrot.lane.b32.xlu0 %v24565_v37, %s23484_s16  ;;  %s32237_s16 = smov 112  }
 0x154   : > { %v24760_v21 = vpop.f32.mrf.mxu1  ;;  %20891 = vmatmul.mubr.msk.f32.vlgmr.msra.gmra.mxu1 %vm462_vm2, %v24683_v56  ;;  %9132 = vrot.lane.b32.xlu1 %v24626_v48, %s23485_s25 }
 0x155   : > { %v24767_v23 = vpop.f32.mrf.mxu0  ;;  %20865 = vmatmul.mubr.msk.f32.gmra.mxu0 %vm462_vm2, %v24607_v44  ;;  %4075 = vmatprep.mubr.f32.mxu1 %v32207_v0 }
 0x156   : > { %v24772_v7 = vpop.f32.mrf.mxu1  ;;  %3820 = vmatprep.mubr.f32.mxu0 %v32207_v0  ;;  %20903 = vmatpush1.msk.msra.mxu1 %vm472_vm1, %v4133_v20 }
 0x157   : > { %v24782_v26 = vpop.f32.mrf.mxu0  ;;  %20912 = vmatprep.subr.msk.mxu1 %vm472_vm1, %v4136_v22  ;;  %v24900_v22 = vpop.permute.xlu0 %4950  ;;  %9130 = vrot.lane.b32.xlu0 %v23613_v3, %s23485_s25 }
 0x158   : > { %v24789_v28 = vpop.f32.mrf.mxu1  ;;  %20892 = vmatmul.mubr.msk.f32.gmra.mxu1 %vm462_vm2, %v24707_v61  ;;  %9134 = vrot.lane.b32.xlu1 %v23617_v4, %s23485_s25 }
 0x159   : > { %v646_v30 = vpop.f32.mrf.mxu0  ;;  %20876 = vmatmul.mubr.msk.f32.vlgmr.msra.gmra.mxu0 %vm462_vm2, %v24683_v56  ;;  %4081 = vmatprep.mubr.f32.mxu1 %v32207_v0 }
 0x15a   : > { %20885 = vmatpush1.msk.msra.mxu0 %vm472_vm1, %v3713_v25  ;;  %v24803_v31 = vpop.f32.mrf.mxu1  ;;  %3826 = vmatprep.mubr.f32.mxu0 %v32207_v0 }
 0x15b   : > { %v648_v2 = vpop.f32.mrf.mxu0  ;;  %20897 = vmatprep.subr.msk.mxu0 %vm472_vm1, %v4134_v29  ;;  %9128 = vrot.lane.b32.xlu0 %v24650_v53, %s23485_s25 }
 0x15c   : > { %v24809_v32 = vpop.f32.mrf.mxu1  ;;  %20893 = vmatmul.mubr.msk.f32.gmra.mxu1 %vm462_vm2, %v24734_v14  ;;  %9138 = vrot.lane.b32.xlu1 %v23628_v6, %s23485_s25 }
 0x15d   : > { %v652_v34 = vpop.f32.mrf.mxu0  ;;  %20877 = vmatmul.mubr.msk.f32.gmra.mxu0 %vm462_vm2, %v24707_v61  ;;  %4321 = vmatprep.mubr.f32.mxu1 %v32207_v0 }
 0x15e   : > { %v24826_v5 = vpop.f32.mrf.mxu1  ;;  %3832 = vmatprep.mubr.f32.mxu0 %v32207_v0 }
 0x15f   : > { %v654_v36 = vpop.f32.mrf.mxu0  ;;  %9136 = vrot.lane.b32.xlu0 %v24669_v55, %s23485_s25 }
 0x160   : > { %v1003_v39 = vpop.f32.mrf.mxu1  ;;  %20904 = vmatmul.mubr.msk.f32.vlgmr.msra.gmra.mxu1 %vm462_vm2, %v24821_v1  ;;  %9142 = vrot.lane.b32.xlu1 %v23639_v8, %s23485_s25 }
 0x161   : > { %v24841_v41 = vadd.f32 %v1003_v39, %v646_v30  ;;  %v658_v42 = vpop.f32.mrf.mxu0  ;;  %20878 = vmatmul.mubr.msk.f32.gmra.mxu0 %vm462_vm2, %v24734_v14  ;;  %4327 = vmatprep.mubr.f32.mxu1 %v32207_v0 }
 0x162   : > { %v1005_v44 = vpop.f32.mrf.mxu1  ;;  %3986 = vmatprep.mubr.f32.mxu0 %v32207_v0  ;;  %20913 = vmatpush1.msk.msra.mxu1 %vm472_vm1, %v4129_v38 }
 0x163   : > { %v24859_v49 = vadd.f32 %v1005_v44, %v648_v2  ;;  %v660_v50 = vpop.f32.mrf.mxu0  ;;  %20925 = vmatprep.subr.msk.mxu1 %vm472_vm1, %v4550_v40  ;;  %v4551_v2 = vsel %vm4546_vm11, %v24776_v24, %v4537_v33  ;;  %9140 = vrot.lane.b32.xlu0 %v24565_v37, %s23485_s25  ;;  %s32239_s25 = smov 114  }
 0x164   : > { %v1009_v54 = vpop.f32.mrf.mxu1  ;;  %20905 = vmatmul.mubr.msk.f32.gmra.mxu1 %vm462_vm2, %v24849_v43  ;;  %9550 = vrot.lane.b32.xlu1 %v24626_v48, %s23486_s23 }
 0x165   : > { %v24870_v59 = vadd.f32 %v1009_v54, %v652_v34  ;;  %v24872_v60 = vpop.f32.mrf.mxu0  ;;  %20886 = vmatmul.mubr.msk.f32.vlgmr.msra.gmra.mxu0 %vm462_vm2, %v24683_v56  ;;  %4333 = vmatprep.mubr.f32.mxu1 %v32207_v0  ;;  %v24891_v56 = vpop.permute.xlu1 %4544 }
 0x166   : > { %20898 = vmatpush1.msk.msra.mxu0 %vm472_vm1, %v4135_v47  ;;  %v1011_v52 = vpop.f32.mrf.mxu1  ;;  %3992 = vmatprep.mubr.f32.mxu0 %v32207_v0  ;;  %v4554_v34 = vsel %vm4546_vm11, %v24891_v56, %v24785_v27 }
 0x167   : > { %v24884_v63 = vadd.f32 %v1011_v52, %v654_v36  ;;  %v24886_v10 = vpop.f32.mrf.mxu0  ;;  %20907 = vmatprep.subr.msk.mxu0 %vm472_vm1, %v4130_v57  ;;  %9548 = vrot.lane.b32.xlu0 %v23613_v3, %s23486_s23 }
 0x168   : > { %v1015_v12 = vpop.f32.mrf.mxu1  ;;  %20906 = vmatmul.mubr.msk.f32.gmra.mxu1 %vm462_vm2, %v24880_v46  ;;  %9552 = vrot.lane.b32.xlu1 %v23617_v4, %s23486_s23 }
 0x169   : > { %v24893_v16 = vadd.f32 %v1015_v12, %v658_v42  ;;  %v24895_v20 = vpop.f32.mrf.mxu0  ;;  %20887 = vmatmul.mubr.msk.f32.gmra.mxu0 %vm462_vm2, %v24707_v61  ;;  %4487 = vmatprep.mubr.f32.mxu1 %v32207_v0  ;;  %v24930_v39 = vpop.permute.xlu1 %4952 }
 0x16a   : > { %v1017_v25 = vpop.f32.mrf.mxu1  ;;  %3998 = vmatprep.mubr.f32.mxu0 %v32207_v0 }
 0x16b   : > { %v24903_v29 = vadd.f32 %v1017_v25, %v660_v50  ;;  %v24905_v30 = vpop.f32.mrf.mxu0  ;;  %9546 = vrot.lane.b32.xlu0 %v24650_v53, %s23486_s23 }
 0x16c   : > { %v1169_v61 = vpop.f32.mrf.mxu1  ;;  %20914 = vmatmul.mubr.msk.f32.vlgmr.msra.gmra.mxu1 %vm462_vm2, %v24821_v1  ;;  %9556 = vrot.lane.b32.xlu1 %v23628_v6, %s23486_s23 }
 0x16d   : > { %v24921_v36 = vadd.f32 %v1169_v61, %v24760_v21  ;;  %v24923_v33 = vpop.f32.mrf.mxu0  ;;  %20888 = vmatmul.mubr.msk.f32.gmra.mxu0 %vm462_vm2, %v24734_v14  ;;  %4493 = vmatprep.mubr.f32.mxu1 %v32207_v0  ;;  %v4131_v21 = vsel %vm4128_vm10, %v24686_v58, %v24711_v62  ;;  %v24942_v14 = vpop.permute.xlu0 %4948  ;;  %v4552_v58 = vsel %vm4546_vm11, %v24748_v18, %v24776_v24  ;;  %vm7472_vm10 = vcmp.lt.s32.totalorder %v23738_v11, 36 }
 0x16e   : > { %v1171_v38 = vpop.f32.mrf.mxu1  ;;  %4238 = vmatprep.mubr.f32.mxu0 %v32207_v0  ;;  %20926 = vmatpush1.msk.msra.mxu1 %vm472_vm1, %v4551_v2 }
 0x16f   : > { %v24937_v40 = vadd.f32 %v1171_v38, %v24772_v7  ;;  %v24939_v42 = vpop.f32.mrf.mxu0  ;;  %20935 = vmatprep.subr.msk.mxu1 %vm472_vm1, %v4554_v34  ;;  %v4547_v34 = vsel %vm4546_vm11, %v24862_v51, %v24891_v56  ;;  %9554 = vrot.lane.b32.xlu0 %v24669_v55, %s23486_s23 }
 0x170   : > { %v1175_v44 = vpop.f32.mrf.mxu1  ;;  %20915 = vmatmul.mubr.msk.f32.gmra.mxu1 %vm462_vm2, %v24849_v43  ;;  %9560 = vrot.lane.b32.xlu1 %v23639_v8, %s23486_s23 }
 0x171   : > { %v24955_v62 = vadd.f32 %v1175_v44, %v24789_v28  ;;  %v920_v7 = vpop.f32.mrf.mxu0  ;;  %20899 = vmatmul.mubr.msk.f32.vlgmr.msra.gmra.mxu0 %vm462_vm2, %v24821_v1  ;;  %4499 = vmatprep.mubr.f32.mxu1 %v32207_v0  ;;  %v24992_v12 = vpop.permute.xlu0 %4956 }
 0x172   : > { %v24961_v47 = vadd.f32 %v920_v7, %v24726_v13  ;;  %20908 = vmatpush1.msk.msra.mxu0 %vm472_vm1, %v4131_v21  ;;  %v1177_v50 = vpop.f32.mrf.mxu1  ;;  %4244 = vmatprep.mubr.f32.mxu0 %v32207_v0  ;;  %v24976_v13 = vpop.permute.xlu1 %4954  ;;  %v4553_v7 = vsel %vm4546_vm11, %v24785_v27, %v24748_v18  ;;  %v4548_v18 = vsel %vm4546_vm11, %v24853_v45, %v24862_v51 }
 0x173   : > { %v24966_v24 = vadd.f32 %v1177_v50, %v24803_v31  ;;  %v922_v54 = vpop.f32.mrf.mxu0  ;;  %20920 = vmatprep.subr.msk.mxu0 %vm472_vm1, %v4552_v58  ;;  %9558 = vrot.lane.b32.xlu0 %v24565_v37, %s23486_s23  ;;  %v25419_v37 = vld [vmem:[%s32194_s1 + $0x128] sm:$0xff]  ;;  %s32243_s23 = smov 123  }
 0x174   : > { %v24972_v28 = vadd.f32 %v922_v54, %v24738_v15  ;;  %v1181_v57 = vpop.f32.mrf.mxu1  ;;  %20916 = vmatmul.mubr.msk.f32.gmra.mxu1 %vm462_vm2, %v24880_v46  ;;  %v24989_v15 = vld [vmem:[%s32194_s1 + $0xf0] sm:$0xff]  ;;  %9968 = vrot.lane.b32.xlu1 %v24626_v48, %s23487_s19 }
 0x175   : > { %v24981_v31 = vadd.f32 %v1181_v57, %v24809_v32  ;;  %v926_v52 = vpop.f32.mrf.mxu0  ;;  %20900 = vmatmul.mubr.msk.f32.gmra.mxu0 %vm462_vm2, %v24849_v43  ;;  %4739 = vmatprep.mubr.f32.mxu1 %v32207_v0 }
 0x176   : > { %v24995_v25 = vadd.f32 %v926_v52, %v24743_v17  ;;  %v1183_v32 = vpop.f32.mrf.mxu1  ;;  %4250 = vmatprep.mubr.f32.mxu0 %v32207_v0 }
 0x177   : > { %v24999_v2 = vadd.f32 %v1183_v32, %v24826_v5  ;;  %v928_v61 = vpop.f32.mrf.mxu0  ;;  %v4968_v5 = vsel %vm4964_vm12, %v24976_v13, %v24992_v12  ;;  %9966 = vrot.lane.b32.xlu0 %v23613_v3, %s23487_s19 }
 0x178   : > { %v25008_v38 = vadd.f32 %v928_v61, %v24751_v19  ;;  %v1397_v17 = vpop.f32.mrf.mxu1  ;;  %20927 = vmatmul.mubr.msk.f32.vlgmr.msra.gmra.mxu1 %vm462_vm2, %v24989_v15  ;;  %v25027_v19 = vld [vmem:[%s32194_s1 + $0xf8] sm:$0xff]  ;;  %9970 = vrot.lane.b32.xlu1 %v23617_v4, %s23487_s19 }
 0x179   : > { %v25019_v56 = vadd.f32 %v1397_v17, %v24841_v41  ;;  %v932_v21 = vpop.f32.mrf.mxu0  ;;  %20901 = vmatmul.mubr.msk.f32.gmra.mxu0 %vm462_vm2, %v24880_v46  ;;  %4745 = vmatprep.mubr.f32.mxu1 %v32207_v0  ;;  %v25034_v41 = vpop.permute.xlu1 %4958 }
 0x17a   : > { %v25030_v44 = vadd.f32 %v932_v21, %v24767_v23  ;;  %v1399_v58 = vpop.f32.mrf.mxu1  ;;  %4404 = vmatprep.mubr.f32.mxu0 %v32207_v0  ;;  %20936 = vmatpush1.msk.msra.mxu1 %vm472_vm1, %v4547_v34  ;;  %v25044_v23 = vpop.permute.xlu0 %4960 }
 0x17b   : > { %v25041_v50 = vadd.f32 %v1399_v58, %v24859_v49  ;;  %v934_v54 = vpop.f32.mrf.mxu0  ;;  %20948 = vmatprep.subr.msk.mxu1 %vm472_vm1, %v4968_v5  ;;  %9964 = vrot.lane.b32.xlu0 %v24650_v53, %s23487_s19 }
 0x17c   : > { %v25047_v57 = vadd.f32 %v934_v54, %v24782_v26  ;;  %v1403_v52 = vpop.f32.mrf.mxu1  ;;  %20928 = vmatmul.mubr.msk.f32.gmra.mxu1 %vm462_vm2, %v25027_v19  ;;  %v25064_v26 = vld [vmem:[%s32194_s1 + $0x100] sm:$0x3]  ;;  %9974 = vrot.lane.b32.xlu1 %v23628_v6, %s23487_s19 }
 0x17d   : > { %v25056_v27 = vadd.f32 %v1403_v52, %v24870_v59  ;;  %v1086_v49 = vpop.f32.mrf.mxu0  ;;  %20909 = vmatmul.mubr.msk.f32.vlgmr.msra.gmra.mxu0 %vm462_vm2, %v24821_v1  ;;  %4751 = vmatprep.mubr.f32.mxu1 %v32207_v0 }
 0x17e   : > { %v25067_v32 = vadd.f32 %v1086_v49, %v24872_v60  ;;  %20921 = vmatpush1.msk.msra.mxu0 %vm472_vm1, %v4553_v7  ;;  %v1405_v51 = vpop.f32.mrf.mxu1  ;;  %4410 = vmatprep.mubr.f32.mxu0 %v32207_v0  ;;  %v25080_v60 = vpop.permute.xlu1 %4962 }
 0x17f   : > { %v25072_v59 = vadd.f32 %v1405_v51, %v24884_v63  ;;  %v1088_v61 = vpop.f32.mrf.mxu0  ;;  %20930 = vmatprep.subr.msk.mxu0 %vm472_vm1, %v4548_v18  ;;  %v25088_v63 = vpop.permute.xlu0 %5368  ;;  %9972 = vrot.lane.b32.xlu0 %v24669_v55, %s23487_s19  ;;  %v25577_v55 = vld [vmem:[%s32194_s1 + $0x138] sm:$0xff] }
 0x180   : > { %v25076_v1 = vadd.f32 %v1088_v61, %v24886_v10  ;;  %v1409_v34 = vpop.f32.mrf.mxu1  ;;  %20929 = vmatmul.mubr.msk.f32.gmra.mxu1 %vm462_vm2, %v25064_v26  ;;  %9978 = vrot.lane.b32.xlu1 %v23639_v8, %s23487_s19 }
 0x181   : > { %v25083_v17 = vadd.f32 %v1409_v34, %v24893_v16  ;;  %v1092_v5 = vpop.f32.mrf.mxu0  ;;  %20910 = vmatmul.mubr.msk.f32.gmra.mxu0 %vm462_vm2, %v24849_v43  ;;  %4905 = vmatprep.mubr.f32.mxu1 %v32207_v0  ;;  %v4969_v16 = vsel %vm4964_vm12, %v24930_v39, %v24976_v13 }
 0x182   : > { %v25091_v10 = vadd.f32 %v1092_v5, %v24895_v20  ;;  %v1411_v21 = vpop.f32.mrf.mxu1  ;;  %4416 = vmatprep.mubr.f32.mxu0 %v32207_v0  ;;  %v25125_v18 = vpop.permute.xlu1 %5370 }
 0x183   : > { %v25095_v58 = vadd.f32 %v1411_v21, %v24903_v29  ;;  %v1094_v7 = vpop.f32.mrf.mxu0  ;;  %v4972_v29 = vsel %vm4964_vm12, %v25080_v60, %v24942_v14 }
 0x184   : > { %v25106_v43 = vadd.f32 %v1094_v7, %v24905_v30  ;;  %v1563_v20 = vpop.f32.mrf.mxu1  ;;  %20937 = vmatmul.mubr.msk.f32.vlgmr.msra.gmra.mxu1 %vm462_vm2, %v24989_v15 }
 0x185   : > { %v25115_v13 = vadd.f32 %v1563_v20, %v24921_v36  ;;  %v1098_v54 = vpop.f32.mrf.mxu0  ;;  %20911 = vmatmul.mubr.msk.f32.gmra.mxu0 %vm462_vm2, %v24880_v46  ;;  %4911 = vmatprep.mubr.f32.mxu1 %v32207_v0  ;;  %v4549_v36 = vsel %vm4546_vm11, %v24824_v35, %v24853_v45  ;;  %v4970_v35 = vsel %vm4964_vm12, %v24900_v22, %v24930_v39  ;;  %vm7890_vm11 = vcmp.lt.s32.totalorder %v23738_v11, 35 }
 0x186   : > { %v25121_v30 = vadd.f32 %v1098_v54, %v24923_v33  ;;  %v1565_v52 = vpop.f32.mrf.mxu1  ;;  %4656 = vmatprep.mubr.f32.mxu0 %v32207_v0  ;;  %20949 = vmatpush1.msk.msra.mxu1 %vm472_vm1, %v4969_v16  ;;  %v25135_v33 = vpop.permute.xlu0 %5366 }
 0x187   : > { %v25132_v49 = vadd.f32 %v1565_v52, %v24937_v40  ;;  %v1100_v46 = vpop.f32.mrf.mxu0  ;;  %20958 = vmatprep.subr.msk.mxu1 %vm472_vm1, %v4972_v29  ;;  %v4965_v52 = vsel %vm4964_vm12, %v25044_v23, %v25080_v60 }
 0x188   : > { %v25140_v51 = vadd.f32 %v1100_v46, %v24939_v42  ;;  %v1569_v61 = vpop.f32.mrf.mxu1  ;;  %20938 = vmatmul.mubr.msk.f32.gmra.mxu1 %vm462_vm2, %v25027_v19 }
 0x189   : > { %v25151_v45 = vadd.f32 %v1569_v61, %v24955_v62  ;;  %v1314_v40 = vpop.f32.mrf.mxu0  ;;  %20922 = vmatmul.mubr.msk.f32.vlgmr.msra.gmra.mxu0 %vm462_vm2, %v24989_v15  ;;  %4917 = vmatprep.mubr.f32.mxu1 %v32207_v0 }
 0x18a   : > { %v25157_v42 = vadd.f32 %v1314_v40, %v24961_v47  ;;  %20931 = vmatpush1.msk.msra.mxu0 %vm472_vm1, %v4549_v36  ;;  %v1571_v34 = vpop.f32.mrf.mxu1  ;;  %4662 = vmatprep.mubr.f32.mxu0 %v32207_v0  ;;  %v25172_v47 = vpop.permute.xlu1 %5372  ;;  %v4971_v40 = vsel %vm4964_vm12, %v24942_v14, %v24900_v22  ;;  %v4966_v22 = vsel %vm4964_vm12, %v25034_v41, %v25044_v23 }
 0x18b   : > { %v25162_v39 = vadd.f32 %v1571_v34, %v24966_v24  ;;  %v1316_v5 = vpop.f32.mrf.mxu0  ;;  %20943 = vmatprep.subr.msk.mxu0 %vm472_vm1, %v4970_v35  ;;  %v25188_v16 = vpop.permute.xlu0 %5374 }
 0x18c   : > { %v25168_v62 = vadd.f32 %v1316_v5, %v24972_v28  ;;  %v1575_v21 = vpop.f32.mrf.mxu1  ;;  %20939 = vmatmul.mubr.msk.f32.gmra.mxu1 %vm462_vm2, %v25064_v26  ;;  %v25185_v28 = vld [vmem:[%s32194_s1 + $0x108] sm:$0xff] }
 0x18d   : > { %v25177_v24 = vadd.f32 %v1575_v21, %v24981_v31  ;;  %v1320_v7 = vpop.f32.mrf.mxu0  ;;  %20923 = vmatmul.mubr.msk.f32.gmra.mxu0 %vm462_vm2, %v25027_v19  ;;  %5157 = vmatprep.mubr.f32.mxu1 %v32207_v0 }
 0x18e   : > { %v25191_v20 = vadd.f32 %v1320_v7, %v24995_v25  ;;  %v1577_v31 = vpop.f32.mrf.mxu1  ;;  %4668 = vmatprep.mubr.f32.mxu0 %v32207_v0 }
 0x18f   : > { %v25195_v29 = vadd.f32 %v1577_v31, %v24999_v2  ;;  %v1322_v54 = vpop.f32.mrf.mxu0  ;;  %v5386_v2 = vsel %vm5382_vm13, %v25172_v47, %v25188_v16 }
 0x190   : > { %v25204_v36 = vadd.f32 %v1322_v54, %v25008_v38  ;;  %v1815_v25 = vpop.f32.mrf.mxu1  ;;  %20950 = vmatmul.mubr.msk.f32.vlgmr.msra.gmra.mxu1 %vm462_vm2, %v25185_v28  ;;  %v25223_v38 = vld [vmem:[%s32194_s1 + $0x110] sm:$0xff] }
 0x191   : > { %v25215_v60 = vadd.f32 %v1815_v25, %v25019_v56  ;;  %v1326_v46 = vpop.f32.mrf.mxu0  ;;  %20924 = vmatmul.mubr.msk.f32.gmra.mxu0 %vm462_vm2, %v25064_v26  ;;  %5163 = vmatprep.mubr.f32.mxu1 %v32207_v0  ;;  %v25230_v56 = vpop.permute.xlu1 %5376 }
 0x192   : > { %v25226_v61 = vadd.f32 %v1326_v46, %v25030_v44  ;;  %v1817_v35 = vpop.f32.mrf.mxu1  ;;  %4822 = vmatprep.mubr.f32.mxu0 %v32207_v0  ;;  %20959 = vmatpush1.msk.msra.mxu1 %vm472_vm1, %v4965_v52  ;;  %v25240_v44 = vpop.permute.xlu0 %5378 }
 0x193   : > { %v25237_v34 = vadd.f32 %v1817_v35, %v25041_v50  ;;  %v1328_v5 = vpop.f32.mrf.mxu0  ;;  %20971 = vmatprep.subr.msk.mxu1 %vm472_vm1, %v5386_v2 }
 0x194   : > { %v25243_v21 = vadd.f32 %v1328_v5, %v25047_v57  ;;  %v1821_v7 = vpop.f32.mrf.mxu1  ;;  %20951 = vmatmul.mubr.msk.f32.gmra.mxu1 %vm462_vm2, %v25223_v38  ;;  %v25260_v57 = vld [vmem:[%s32194_s1 + $0x118] sm:$0x3] }
 0x195   : > { %v25252_v14 = vadd.f32 %v1821_v7, %v25056_v27  ;;  %v1480_v50 = vpop.f32.mrf.mxu0  ;;  %20932 = vmatmul.mubr.msk.f32.vlgmr.msra.gmra.mxu0 %vm462_vm2, %v24989_v15  ;;  %5169 = vmatprep.mubr.f32.mxu1 %v32207_v0 }
 0x196   : > { %v25263_v31 = vadd.f32 %v1480_v50, %v25067_v32  ;;  %20944 = vmatpush1.msk.msra.mxu0 %vm472_vm1, %v4971_v40  ;;  %v1823_v23 = vpop.f32.mrf.mxu1  ;;  %4828 = vmatprep.mubr.f32.mxu0 %v32207_v0  ;;  %v25276_v32 = vpop.permute.xlu1 %5380 }
 0x197   : > { %v25268_v27 = vadd.f32 %v1823_v23, %v25072_v59  ;;  %v1482_v54 = vpop.f32.mrf.mxu0  ;;  %20953 = vmatprep.subr.msk.mxu0 %vm472_vm1, %v4966_v22  ;;  %v25284_v59 = vpop.permute.xlu0 %5786 }
 0x198   : > { %v25272_v15 = vadd.f32 %v1482_v54, %v25076_v1  ;;  %v1827_v52 = vpop.f32.mrf.mxu1  ;;  %20952 = vmatmul.mubr.msk.f32.gmra.mxu1 %vm462_vm2, %v25260_v57 }
 0x199   : > { %v25279_v25 = vadd.f32 %v1827_v52, %v25083_v17  ;;  %v1486_v2 = vpop.f32.mrf.mxu0  ;;  %20933 = vmatmul.mubr.msk.f32.gmra.mxu0 %vm462_vm2, %v25027_v19  ;;  %5323 = vmatprep.mubr.f32.mxu1 %v32207_v0  ;;  %v5387_v17 = vsel %vm5382_vm13, %v25125_v18, %v25172_v47 }
 0x19a   : > { %v25287_v1 = vadd.f32 %v1486_v2, %v25091_v10  ;;  %v1829_v46 = vpop.f32.mrf.mxu1  ;;  %4834 = vmatprep.mubr.f32.mxu0 %v32207_v0  ;;  %v25321_v22 = vpop.permute.xlu1 %5788 }
 0x19b   : > { %v25291_v35 = vadd.f32 %v1829_v46, %v25095_v58  ;;  %v1488_v40 = vpop.f32.mrf.mxu0  ;;  %v5390_v58 = vsel %vm5382_vm13, %v25276_v32, %v25135_v33 }
 0x19c   : > { %v25302_v19 = vadd.f32 %v1488_v40, %v25106_v43  ;;  %v1981_v10 = vpop.f32.mrf.mxu1  ;;  %20960 = vmatmul.mubr.msk.f32.vlgmr.msra.gmra.mxu1 %vm462_vm2, %v25185_v28 }
 0x19d   : > { %v25311_v47 = vadd.f32 %v1981_v10, %v25115_v13  ;;  %v1492_v5 = vpop.f32.mrf.mxu0  ;;  %20934 = vmatmul.mubr.msk.f32.gmra.mxu0 %vm462_vm2, %v25064_v26  ;;  %5329 = vmatprep.mubr.f32.mxu1 %v32207_v0  ;;  %v4967_v13 = vsel %vm4964_vm12, %v24992_v12, %v25034_v41  ;;  %v5388_v12 = vsel %vm5382_vm13, %v25088_v63, %v25125_v18  ;;  %vm8308_vm12 = vcmp.lt.s32.totalorder %v23738_v11, 34 }
 0x19e   : > { %v25317_v43 = vadd.f32 %v1492_v5, %v25121_v30  ;;  %v1983_v7 = vpop.f32.mrf.mxu1  ;;  %5074 = vmatprep.mubr.f32.mxu0 %v32207_v0  ;;  %20972 = vmatpush1.msk.msra.mxu1 %vm472_vm1, %v5387_v17  ;;  %v25331_v30 = vpop.permute.xlu0 %5784 }
 0x19f   : > { %v25328_v50 = vadd.f32 %v1983_v7, %v25132_v49  ;;  %v1494_v26 = vpop.f32.mrf.mxu0  ;;  %20981 = vmatprep.subr.msk.mxu1 %vm472_vm1, %v5390_v58  ;;  %v5383_v7 = vsel %vm5382_vm13, %v25240_v44, %v25276_v32 }
 0x1a0   : > { %v25336_v23 = vadd.f32 %v1494_v26, %v25140_v51  ;;  %v1987_v54 = vpop.f32.mrf.mxu1  ;;  %20961 = vmatmul.mubr.msk.f32.gmra.mxu1 %vm462_vm2, %v25223_v38 }
 0x1a1   : > { %v25347_v41 = vadd.f32 %v1987_v54, %v25151_v45  ;;  %v1732_v49 = vpop.f32.mrf.mxu0  ;;  %20945 = vmatmul.mubr.msk.f32.vlgmr.msra.gmra.mxu0 %vm462_vm2, %v25185_v28  ;;  %5335 = vmatprep.mubr.f32.mxu1 %v32207_v0 }
 0x1a2   : > { %v25353_v51 = vadd.f32 %v1732_v49, %v25157_v42  ;;  %20954 = vmatpush1.msk.msra.mxu0 %vm472_vm1, %v4967_v13  ;;  %v1989_v52 = vpop.f32.mrf.mxu1  ;;  %5080 = vmatprep.mubr.f32.mxu0 %v32207_v0  ;;  %v25368_v42 = vpop.permute.xlu1 %5790 }
 0x1a3   : > { %v25358_v18 = vadd.f32 %v1989_v52, %v25162_v39  ;;  %v1734_v2 = vpop.f32.mrf.mxu0  ;;  %20966 = vmatprep.subr.msk.mxu0 %vm472_vm1, %v5388_v12  ;;  %v25384_v17 = vpop.permute.xlu0 %5792  ;;  %v5389_v12 = vsel %vm5382_vm13, %v25135_v33, %v25088_v63  ;;  %v5384_v63 = vsel %vm5382_vm13, %v25230_v56, %v25240_v44 }
 0x1a4   : > { %v25364_v45 = vadd.f32 %v1734_v2, %v25168_v62  ;;  %v1993_v46 = vpop.f32.mrf.mxu1  ;;  %20962 = vmatmul.mubr.msk.f32.gmra.mxu1 %vm462_vm2, %v25260_v57  ;;  %v25381_v62 = vld [vmem:[%s32194_s1 + $0x120] sm:$0xff] }
 0x1a5   : > { %v25373_v39 = vadd.f32 %v1993_v46, %v25177_v24  ;;  %v1738_v40 = vpop.f32.mrf.mxu0  ;;  %20946 = vmatmul.mubr.msk.f32.gmra.mxu0 %vm462_vm2, %v25223_v38  ;;  %5575 = vmatprep.mubr.f32.mxu1 %v32207_v0 }
 0x1a6   : > { %v25387_v10 = vadd.f32 %v1738_v40, %v25191_v20  ;;  %v1995_v24 = vpop.f32.mrf.mxu1  ;;  %5086 = vmatprep.mubr.f32.mxu0 %v32207_v0 }
 0x1a7   : > { %v25391_v58 = vadd.f32 %v1995_v24, %v25195_v29  ;;  %v1740_v5 = vpop.f32.mrf.mxu0  ;;  %v5804_v29 = vsel %vm5800_vm14, %v25368_v42, %v25384_v17 }
 0x1a8   : > { %v25400_v13 = vadd.f32 %v1740_v5, %v25204_v36  ;;  %v2233_v20 = vpop.f32.mrf.mxu1  ;;  %20973 = vmatmul.mubr.msk.f32.vlgmr.msra.gmra.mxu1 %vm462_vm2, %v25381_v62 }
 0x1a9   : > { %v25411_v32 = vadd.f32 %v2233_v20, %v25215_v60  ;;  %v1744_v26 = vpop.f32.mrf.mxu0  ;;  %20947 = vmatmul.mubr.msk.f32.gmra.mxu0 %vm462_vm2, %v25260_v57  ;;  %5581 = vmatprep.mubr.f32.mxu1 %v32207_v0  ;;  %v25426_v60 = vpop.permute.xlu1 %5794 }
 0x1aa   : > { %v25422_v36 = vadd.f32 %v1744_v26, %v25226_v61  ;;  %v2235_v54 = vpop.f32.mrf.mxu1  ;;  %5240 = vmatprep.mubr.f32.mxu0 %v32207_v0  ;;  %20982 = vmatpush1.msk.msra.mxu1 %vm472_vm1, %v5383_v7  ;;  %v25436_v61 = vpop.permute.xlu0 %5796 }
 0x1ab   : > { %v25433_v49 = vadd.f32 %v2235_v54, %v25237_v34  ;;  %v1746_v52 = vpop.f32.mrf.mxu0  ;;  %20994 = vmatprep.subr.msk.mxu1 %vm472_vm1, %v5804_v29 }
 0x1ac   : > { %v25439_v2 = vadd.f32 %v1746_v52, %v25243_v21  ;;  %v2239_v46 = vpop.f32.mrf.mxu1  ;;  %20974 = vmatmul.mubr.msk.f32.gmra.mxu1 %vm462_vm2, %v25419_v37  ;;  %v25456_v21 = vld [vmem:[%s32194_s1 + $0x130] sm:$0x3] }
 0x1ad   : > { %v25448_v33 = vadd.f32 %v2239_v46, %v25252_v14  ;;  %v1898_v34 = vpop.f32.mrf.mxu0  ;;  %20955 = vmatmul.mubr.msk.f32.vlgmr.msra.gmra.mxu0 %vm462_vm2, %v25185_v28  ;;  %5587 = vmatprep.mubr.f32.mxu1 %v32207_v0 }
 0x1ae   : > { %v25459_v40 = vadd.f32 %v1898_v34, %v25263_v31  ;;  %20967 = vmatpush1.msk.msra.mxu0 %vm472_vm1, %v5389_v12  ;;  %v2241_v44 = vpop.f32.mrf.mxu1  ;;  %5246 = vmatprep.mubr.f32.mxu0 %v32207_v0  ;;  %v25472_v31 = vpop.permute.xlu1 %5798 }
 0x1af   : > { %v25464_v14 = vadd.f32 %v2241_v44, %v25268_v27  ;;  %v1900_v24 = vpop.f32.mrf.mxu0  ;;  %20976 = vmatprep.subr.msk.mxu0 %vm472_vm1, %v5384_v63  ;;  %v25480_v27 = vpop.permute.xlu0 %6204 }
 0x1b0   : > { %v25468_v28 = vadd.f32 %v1900_v24, %v25272_v15  ;;  %v2245_v5 = vpop.f32.mrf.mxu1  ;;  %20975 = vmatmul.mubr.msk.f32.gmra.mxu1 %vm462_vm2, %v25456_v21 }
 0x1b1   : > { %v25475_v7 = vadd.f32 %v2245_v5, %v25279_v25  ;;  %v1904_v20 = vpop.f32.mrf.mxu0  ;;  %20956 = vmatmul.mubr.msk.f32.gmra.mxu0 %vm462_vm2, %v25223_v38  ;;  %5741 = vmatprep.mubr.f32.mxu1 %v32207_v0  ;;  %v5805_v25 = vsel %vm5800_vm14, %v25321_v22, %v25368_v42 }
 0x1b2   : > { %v25483_v15 = vadd.f32 %v1904_v20, %v25287_v1  ;;  %v2247_v29 = vpop.f32.mrf.mxu1  ;;  %5252 = vmatprep.mubr.f32.mxu0 %v32207_v0  ;;  %v25517_v52 = vpop.permute.xlu1 %6206 }
 0x1b3   : > { %v25487_v26 = vadd.f32 %v2247_v29, %v25291_v35  ;;  %v1906_v54 = vpop.f32.mrf.mxu0  ;;  %v5808_v35 = vsel %vm5800_vm14, %v25472_v31, %v25331_v30 }
 0x1b4   : > { %v25498_v38 = vadd.f32 %v1906_v54, %v25302_v19  ;;  %v2399_v1 = vpop.f32.mrf.mxu1  ;;  %20983 = vmatmul.mubr.msk.f32.vlgmr.msra.gmra.mxu1 %vm462_vm2, %v25381_v62 }
 0x1b5   : > { %v25507_v42 = vadd.f32 %v2399_v1, %v25311_v47  ;;  %v1910_v12 = vpop.f32.mrf.mxu0  ;;  %20957 = vmatmul.mubr.msk.f32.gmra.mxu0 %vm462_vm2, %v25260_v57  ;;  %5747 = vmatprep.mubr.f32.mxu1 %v32207_v0  ;;  %v5385_v47 = vsel %vm5382_vm13, %v25188_v16, %v25230_v56  ;;  %v5806_v16 = vsel %vm5800_vm14, %v25284_v59, %v25321_v22  ;;  %v25594_v1 = vld [vmem:[%s23601_s26 + $0x18] sm:$0x77]  ;;  %vm8726_vm13 = vcmp.lt.s32.totalorder %v23738_v11, 8 }
 0x1b6   : > { %v25513_v48 = vadd.f32 %v1910_v12, %v25317_v43  ;;  %v2401_v19 = vpop.f32.mrf.mxu1  ;;  %5492 = vmatprep.mubr.f32.mxu0 %v32207_v0  ;;  %20995 = vmatpush1.msk.msra.mxu1 %vm472_vm1, %v5805_v25  ;;  %v25527_v43 = vpop.permute.xlu0 %6202  ;;  %v5801_v25 = vsel %vm5800_vm14, %v25436_v61, %v25472_v31 }
 0x1b7   : > { %v25524_v46 = vadd.f32 %v2401_v19, %v25328_v50  ;;  %v1912_v57 = vpop.f32.mrf.mxu0  ;;  %21004 = vmatprep.subr.msk.mxu1 %vm472_vm1, %v5808_v35  ;;  %9976 = vrot.lane.b32.xlu0 %v25594_v1, %s23487_s19  ;;  %s32235_s19 = smov 101  }
 0x1b8   : > { %v25532_v63 = vadd.f32 %v1912_v57, %v25336_v23  ;;  %v2405_v34 = vpop.f32.mrf.mxu1  ;;  %20984 = vmatmul.mubr.msk.f32.gmra.mxu1 %vm462_vm2, %v25419_v37  ;;  %v5807_v57 = vsel %vm5800_vm14, %v25331_v30, %v25284_v59  ;;  %v5802_v59 = vsel %vm5800_vm14, %v25426_v60, %v25436_v61 }
 0x1b9   : > { %v25543_v56 = vadd.f32 %v2405_v34, %v25347_v41  ;;  %v2150_v50 = vpop.f32.mrf.mxu0  ;;  %20968 = vmatmul.mubr.msk.f32.vlgmr.msra.gmra.mxu0 %vm462_vm2, %v25381_v62  ;;  %5753 = vmatprep.mubr.f32.mxu1 %v32207_v0 }
 0x1ba   : > { %v25549_v53 = vadd.f32 %v2150_v50, %v25353_v51  ;;  %20977 = vmatpush1.msk.msra.mxu0 %vm472_vm1, %v5385_v47  ;;  %v2407_v23 = vpop.f32.mrf.mxu1  ;;  %5498 = vmatprep.mubr.f32.mxu0 %v32207_v0  ;;  %v25564_v51 = vpop.permute.xlu1 %6208 }
 0x1bb   : > { %v25554_v22 = vadd.f32 %v2407_v23, %v25358_v18  ;;  %v2152_v44 = vpop.f32.mrf.mxu0  ;;  %20989 = vmatprep.subr.msk.mxu0 %vm472_vm1, %v5806_v16  ;;  %10384 = vrot.lane.b32.xlu0 %v23613_v3, %s23488_s17 }
 0x1bc   : > { %v25560_v41 = vadd.f32 %v2152_v44, %v25364_v45  ;;  %v2411_v24 = vpop.f32.mrf.mxu1  ;;  %20985 = vmatmul.mubr.msk.f32.gmra.mxu1 %vm462_vm2, %v25456_v21  ;;  %v25580_v45 = vpop.permute.xlu0 %6210 }
 0x1bd   : > { %v25569_v18 = vadd.f32 %v2411_v24, %v25373_v39  ;;  %v2156_v5 = vpop.f32.mrf.mxu0  ;;  %20969 = vmatmul.mubr.msk.f32.gmra.mxu0 %vm462_vm2, %v25419_v37  ;;  %5993 = vmatprep.mubr.f32.mxu1 %v32207_v0 }
 0x1be   : > { %v25583_v20 = vadd.f32 %v2156_v5, %v25387_v10  ;;  %v2413_v39 = vpop.f32.mrf.mxu1  ;;  %5504 = vmatprep.mubr.f32.mxu0 %v32207_v0 }
 0x1bf   : > { %v25587_v29 = vadd.f32 %v2413_v39, %v25391_v58  ;;  %v2158_v54 = vpop.f32.mrf.mxu0  ;;  %v6222_v58 = vsel %vm6218_vm15, %v25564_v51, %v25580_v45 }
 0x1c0   : > { %v25599_v10 = vadd.f32 %v2158_v54, %v25400_v13  ;;  %v2651_v35 = vpop.f32.mrf.mxu1  ;;  %20996 = vmatmul.mubr.msk.f32.vlgmr.msra.gmra.mxu1 %vm462_vm2, %v25577_v55  ;;  %v25618_v13 = vld [vmem:[%s32194_s1 + $0x140] sm:$0xff] }
 0x1c1   : > { %v25610_v31 = vadd.f32 %v2651_v35, %v25411_v32  ;;  %v2162_v12 = vpop.f32.mrf.mxu0  ;;  %20970 = vmatmul.mubr.msk.f32.gmra.mxu0 %vm462_vm2, %v25456_v21  ;;  %5999 = vmatprep.mubr.f32.mxu1 %v32207_v0  ;;  %v25625_v32 = vpop.permute.xlu1 %6212 }
 0x1c2   : > { %v25621_v19 = vadd.f32 %v2162_v12, %v25422_v36  ;;  %v2653_v47 = vpop.f32.mrf.mxu1  ;;  %5658 = vmatprep.mubr.f32.mxu0 %v32207_v0  ;;  %21005 = vmatpush1.msk.msra.mxu1 %vm472_vm1, %v5801_v25  ;;  %v25635_v36 = vpop.permute.xlu0 %6214 }
 0x1c3   : > { %v25632_v34 = vadd.f32 %v2653_v47, %v25433_v49  ;;  %v2164_v16 = vpop.f32.mrf.mxu0  ;;  %21017 = vmatprep.subr.msk.mxu1 %vm472_vm1, %v6222_v58 }
 0x1c4   : > { %v25638_v50 = vadd.f32 %v2164_v16, %v25439_v2  ;;  %v2657_v23 = vpop.f32.mrf.mxu1  ;;  %20997 = vmatmul.mubr.msk.f32.gmra.mxu1 %vm462_vm2, %v25618_v13  ;;  %v25655_v2 = vld [vmem:[%s32194_s1 + $0x148] sm:$0x3] }
 0x1c5   : > { %v25647_v30 = vadd.f32 %v2657_v23, %v25448_v33  ;;  %v2316_v49 = vpop.f32.mrf.mxu0  ;;  %20978 = vmatmul.mubr.msk.f32.vlgmr.msra.gmra.mxu0 %vm462_vm2, %v25381_v62  ;;  %6005 = vmatprep.mubr.f32.mxu1 %v32207_v0  ;;  %v23454_v23 = vld [vmem:[%s23601_s26] sm:$0x77] }
 0x1c6   : > { %v25658_v44 = vadd.f32 %v2316_v49, %v25459_v40  ;;  %20990 = vmatpush1.msk.msra.mxu0 %vm472_vm1, %v5807_v57  ;;  %v2659_v61 = vpop.f32.mrf.mxu1  ;;  %5664 = vmatprep.mubr.f32.mxu0 %v32207_v0  ;;  %v25671_v40 = vpop.permute.xlu1 %6216 }
 0x1c7   : > { %v25663_v33 = vadd.f32 %v2659_v61, %v25464_v14  ;;  %v2318_v24 = vpop.f32.mrf.mxu0  ;;  %20999 = vmatprep.subr.msk.mxu0 %vm472_vm1, %v5802_v59  ;;  %v25679_v14 = vpop.permute.xlu0 %6622  ;;  %10382 = vrot.lane.b32.xlu0 %v23454_v23, %s23488_s17 }
 0x1c8   : > { %v25667_v62 = vadd.f32 %v2318_v24, %v25468_v28  ;;  %v2663_v5 = vpop.f32.mrf.mxu1  ;;  %20998 = vmatmul.mubr.msk.f32.gmra.mxu1 %vm462_vm2, %v25655_v2 }
 0x1c9   : > { %v25674_v39 = vadd.f32 %v2663_v5, %v25475_v7  ;;  %v2322_v54 = vpop.f32.mrf.mxu0  ;;  %20979 = vmatmul.mubr.msk.f32.gmra.mxu0 %vm462_vm2, %v25419_v37  ;;  %6159 = vmatprep.mubr.f32.mxu1 %v32207_v0  ;;  %v6223_v7 = vsel %vm6218_vm15, %v25517_v52, %v25564_v51  ;;  %v23453_v37 = vld [vmem:[%s23601_s26 + $0x8] sm:$0x77] }
 0x1ca   : > { %v25682_v28 = vadd.f32 %v2322_v54, %v25483_v15  ;;  %v2665_v25 = vpop.f32.mrf.mxu1  ;;  %5670 = vmatprep.mubr.f32.mxu0 %v32207_v0  ;;  %10386 = vrot.lane.b32.xlu1 %v23453_v37, %s23488_s17  ;;  %v25716_v57 = vpop.permute.xlu1 %6624  ;;  %v6219_v37 = vsel %vm6218_vm15, %v25635_v36, %v25671_v40 }
 0x1cb   : > { %v25686_v35 = vadd.f32 %v2665_v25, %v25487_v26  ;;  %v2324_v58 = vpop.f32.mrf.mxu0  ;;  %v6226_v26 = vsel %vm6218_vm15, %v25671_v40, %v25527_v43 }
 0x1cc   : > { %v25697_v15 = vadd.f32 %v2324_v58, %v25498_v38  ;;  %v2817_v12 = vpop.f32.mrf.mxu1  ;;  %21006 = vmatmul.mubr.msk.f32.vlgmr.msra.gmra.mxu1 %vm462_vm2, %v25577_v55 }
 0x1cd   : > { %v25706_v51 = vadd.f32 %v2817_v12, %v25507_v42  ;;  %v2328_v3 = vpop.f32.mrf.mxu0  ;;  %20980 = vmatmul.mubr.msk.f32.gmra.mxu0 %vm462_vm2, %v25456_v21  ;;  %6165 = vmatprep.mubr.f32.mxu1 %v32207_v0  ;;  %v5803_v42 = vsel %vm5800_vm14, %v25384_v17, %v25426_v60  ;;  %v6224_v17 = vsel %vm6218_vm15, %v25480_v27, %v25517_v52  ;;  %vm9144_vm14 = vcmp.lt.s32.totalorder %v23738_v11, 7 }
 0x1ce   : > { %v25712_v38 = vadd.f32 %v2328_v3, %v25513_v48  ;;  %v2819_v47 = vpop.f32.mrf.mxu1  ;;  %5910 = vmatprep.mubr.f32.mxu0 %v32207_v0  ;;  %21018 = vmatpush1.msk.msra.mxu1 %vm472_vm1, %v6223_v7  ;;  %v25726_v48 = vpop.permute.xlu0 %6620 }
 0x1cf   : > { %v25723_v16 = vadd.f32 %v2819_v47, %v25524_v46  ;;  %v2330_v21 = vpop.f32.mrf.mxu0  ;;  %21027 = vmatprep.subr.msk.mxu1 %vm472_vm1, %v6226_v26  ;;  %10388 = vrot.lane.b32.xlu1 %v23617_v4, %s23488_s17 }
 0x1d0   : > { %v25731_v59 = vadd.f32 %v2330_v21, %v25532_v63  ;;  %v2823_v49 = vpop.f32.mrf.mxu1  ;;  %21007 = vmatmul.mubr.msk.f32.gmra.mxu1 %vm462_vm2, %v25618_v13 }
 0x1d1   : > { %v25742_v60 = vadd.f32 %v2823_v49, %v25543_v56  ;;  %v2568_v46 = vpop.f32.mrf.mxu0  ;;  %20991 = vmatmul.mubr.msk.f32.vlgmr.msra.gmra.mxu0 %vm462_vm2, %v25577_v55  ;;  %6171 = vmatprep.mubr.f32.mxu1 %v32207_v0  ;;  %v23455_v56 = vld [vmem:[%s23601_s26 + $0x10] sm:$0x77]  ;;  %s32211_s26 = smov 110  }
 0x1d2   : > { %v25748_v63 = vadd.f32 %v2568_v46, %v25549_v53  ;;  %21000 = vmatpush1.msk.msra.mxu0 %vm472_vm1, %v5803_v42  ;;  %v2825_v61 = vpop.f32.mrf.mxu1  ;;  %5916 = vmatprep.mubr.f32.mxu0 %v32207_v0  ;;  %v25763_v53 = vpop.permute.xlu1 %6626 }
 0x1d3   : > { %v25753_v52 = vadd.f32 %v2825_v61, %v25554_v22  ;;  %v2570_v4 = vpop.f32.mrf.mxu0  ;;  %21012 = vmatprep.subr.msk.mxu0 %vm472_vm1, %v6224_v17  ;;  %10390 = vrot.lane.b32.xlu0 %v23455_v56, %s23488_s17  ;;  %v25779_v25 = vpop.permute.xlu0 %6628 }
 0x1d4   : > { %v25759_v24 = vadd.f32 %v2570_v4, %v25560_v41  ;;  %v2829_v5 = vpop.f32.mrf.mxu1  ;;  %21008 = vmatmul.mubr.msk.f32.gmra.mxu1 %vm462_vm2, %v25655_v2  ;;  %10392 = vrot.lane.b32.xlu1 %v23628_v6, %s23488_s17  ;;  %v25776_v41 = vld [vmem:[%s32194_s1 + $0x150] sm:$0xff] }
 0x1d5   : > { %v25768_v22 = vadd.f32 %v2829_v5, %v25569_v18  ;;  %v2574_v54 = vpop.f32.mrf.mxu0  ;;  %20992 = vmatmul.mubr.msk.f32.gmra.mxu0 %vm462_vm2, %v25618_v13  ;;  %6411 = vmatprep.mubr.f32.mxu1 %v32207_v0 }
 0x1d6   : > { %v25782_v6 = vadd.f32 %v2574_v54, %v25583_v20  ;;  %v2831_v18 = vpop.f32.mrf.mxu1  ;;  %5922 = vmatprep.mubr.f32.mxu0 %v32207_v0 }
 0x1d7   : > { %v25786_v58 = vadd.f32 %v2831_v18, %v25587_v29  ;;  %v2576_v7 = vpop.f32.mrf.mxu0  ;;  %10394 = vrot.lane.b32.xlu0 %v25594_v1, %s23488_s17  ;;  %v6640_v29 = vsel %vm6636_vm8, %v25763_v53, %v25779_v25  ;;  %v25814_v1 = vld [vmem:[%s32194_s1 + $0x158] sm:$0xff] }
 0x1d8   : > { %v25795_v12 = vadd.f32 %v2576_v7, %v25599_v10  ;;  %v3069_v20 = vpop.f32.mrf.mxu1  ;;  %21019 = vmatmul.mubr.msk.f32.vlgmr.msra.gmra.mxu1 %vm462_vm2, %v25776_v41  ;;  %10396 = vrot.lane.b32.xlu1 %v23639_v8, %s23488_s17  ;;  %v25821_v8 = vpop.permute.xlu1 %6630  ;;  %s32231_s17 = smov 111  }
 0x1d9   : > { %v25806_v40 = vadd.f32 %v3069_v20, %v25610_v31  ;;  %v2580_v26 = vpop.f32.mrf.mxu0  ;;  %20993 = vmatmul.mubr.msk.f32.gmra.mxu0 %vm462_vm2, %v25655_v2  ;;  %6417 = vmatprep.mubr.f32.mxu1 %v32207_v0  ;;  %v6225_v31 = vsel %vm6218_vm15, %v25527_v43, %v25480_v27  ;;  %v6220_v27 = vsel %vm6218_vm15, %v25625_v32, %v25635_v36 }
 0x1da   : > { %v25817_v10 = vadd.f32 %v2580_v26, %v25621_v19  ;;  %v3071_v3 = vpop.f32.mrf.mxu1  ;;  %6076 = vmatprep.mubr.f32.mxu0 %v32207_v0  ;;  %21028 = vmatpush1.msk.msra.mxu1 %vm472_vm1, %v6219_v37  ;;  %v25831_v19 = vpop.permute.xlu0 %6632 }
 0x1db   : > { %v25828_v47 = vadd.f32 %v3071_v3, %v25632_v34  ;;  %v2582_v42 = vpop.f32.mrf.mxu0  ;;  %21040 = vmatprep.subr.msk.mxu1 %vm472_vm1, %v6640_v29 }
 0x1dc   : > { %v25834_v21 = vadd.f32 %v2582_v42, %v25638_v50  ;;  %v3075_v23 = vpop.f32.mrf.mxu1  ;;  %21020 = vmatmul.mubr.msk.f32.gmra.mxu1 %vm462_vm2, %v25814_v1  ;;  %v25851_v50 = vld [vmem:[%s32194_s1 + $0x160] sm:$0x3] }
 0x1dd   : > { %v25843_v43 = vadd.f32 %v3075_v23, %v25647_v30  ;;  %v2734_v34 = vpop.f32.mrf.mxu0  ;;  %21001 = vmatmul.mubr.msk.f32.vlgmr.msra.gmra.mxu0 %vm462_vm2, %v25577_v55  ;;  %6423 = vmatprep.mubr.f32.mxu1 %v32207_v0 }
 0x1de   : > { %v25854_v49 = vadd.f32 %v2734_v34, %v25658_v44  ;;  %21013 = vmatpush1.msk.msra.mxu0 %vm472_vm1, %v6225_v31  ;;  %v3077_v36 = vpop.f32.mrf.mxu1  ;;  %6082 = vmatprep.mubr.f32.mxu0 %v32207_v0  ;;  %v6635_v44 = vpop.permute.xlu1 %6634 }
 0x1df   : > { %v25859_v30 = vadd.f32 %v3077_v36, %v25663_v33  ;;  %v2736_v17 = vpop.f32.mrf.mxu0  ;;  %21022 = vmatprep.subr.msk.mxu0 %vm472_vm1, %v6220_v27  ;;  %v25873_v33 = vpop.permute.xlu0 %7040 }
 0x1e0   : > { %v25863_v55 = vadd.f32 %v2736_v17, %v25667_v62  ;;  %v3081_v46 = vpop.f32.mrf.mxu1  ;;  %21021 = vmatmul.mubr.msk.f32.gmra.mxu1 %vm462_vm2, %v25851_v50 }
 0x1e1   : > { %v25868_v61 = vadd.f32 %v3081_v46, %v25674_v39  ;;  %v2740_v4 = vpop.f32.mrf.mxu0  ;;  %21002 = vmatmul.mubr.msk.f32.gmra.mxu0 %vm462_vm2, %v25618_v13  ;;  %6577 = vmatprep.mubr.f32.mxu1 %v32207_v0  ;;  %v6641_v39 = vsel %vm6636_vm8, %v25716_v57, %v25763_v53  ;;  %v6637_v46 = vsel %vm6636_vm8, %v25831_v19, %v6635_v44 }
 0x1e2   : > { %v25876_v56 = vadd.f32 %v2740_v4, %v25682_v28  ;;  %v3083_v62 = vpop.f32.mrf.mxu1  ;;  %6088 = vmatprep.mubr.f32.mxu0 %v32207_v0  ;;  %v6644_v28 = vsel %vm6636_vm8, %v6635_v44, %v25726_v48  ;;  %v25905_v37 = vpop.permute.xlu1 %7042 }
 0x1e3   : > { %v25880_v5 = vadd.f32 %v3083_v62, %v25686_v35  ;;  %v2742_v54 = vpop.f32.mrf.mxu0 }
 0x1e4   : > { %v25887_v13 = vadd.f32 %v2742_v54, %v25697_v15  ;;  %v3235_v18 = vpop.f32.mrf.mxu1  ;;  %21029 = vmatmul.mubr.msk.f32.vlgmr.msra.gmra.mxu1 %vm462_vm2, %v25776_v41 }
 0x1e5   : > { %v25895_v35 = vadd.f32 %v3235_v18, %v25706_v51  ;;  %v2746_v7 = vpop.f32.mrf.mxu0  ;;  %21003 = vmatmul.mubr.msk.f32.gmra.mxu0 %vm462_vm2, %v25655_v2  ;;  %6583 = vmatprep.mubr.f32.mxu1 %v32207_v0  ;;  %v6221_v51 = vsel %vm6218_vm15, %v25580_v45, %v25625_v32  ;;  %v6642_v45 = vsel %vm6636_vm8, %v25679_v14, %v25716_v57  ;;  %vm9562_vm15 = vcmp.lt.s32.totalorder %v23738_v11, 6 }
 0x1e6   : > { %v25901_v15 = vadd.f32 %v2746_v7, %v25712_v38  ;;  %v3237_v53 = vpop.f32.mrf.mxu1  ;;  %6328 = vmatprep.mubr.f32.mxu0 %v32207_v0  ;;  %21041 = vmatpush1.msk.msra.mxu1 %vm472_vm1, %v6641_v39  ;;  %v25915_v38 = vpop.permute.xlu0 %7038  ;;  %v6643_v18 = vsel %vm6636_vm8, %v25726_v48, %v25679_v14  ;;  %v6638_v14 = vsel %vm6636_vm8, %v25821_v8, %v25831_v19 }
 0x1e7   : > { %v25912_v20 = vadd.f32 %v3237_v53, %v25723_v16  ;;  %v2748_v2 = vpop.f32.mrf.mxu0  ;;  %21050 = vmatprep.subr.msk.mxu1 %vm472_vm1, %v6644_v28 }
 0x1e8   : > { %v25918_v29 = vadd.f32 %v2748_v2, %v25731_v59  ;;  %v3241_v26 = vpop.f32.mrf.mxu1  ;;  %21030 = vmatmul.mubr.msk.f32.gmra.mxu1 %vm462_vm2, %v25814_v1 }
 0x1e9   : > { %v25927_v32 = vadd.f32 %v3241_v26, %v25742_v60  ;;  %v2986_v16 = vpop.f32.mrf.mxu0  ;;  %21014 = vmatmul.mubr.msk.f32.vlgmr.msra.gmra.mxu0 %vm462_vm2, %v25776_v41  ;;  %6589 = vmatprep.mubr.f32.mxu1 %v32207_v0 }
 0x1ea   : > { %v25933_v59 = vadd.f32 %v2986_v16, %v25748_v63  ;;  %21023 = vmatpush1.msk.msra.mxu0 %vm472_vm1, %v6221_v51  ;;  %v3243_v3 = vpop.f32.mrf.mxu1  ;;  %6334 = vmatprep.mubr.f32.mxu0 %v32207_v0  ;;  %v25946_v63 = vpop.permute.xlu1 %7044 }
 0x1eb   : > { %v25938_v31 = vadd.f32 %v3243_v3, %v25753_v52  ;;  %v2988_v57 = vpop.f32.mrf.mxu0  ;;  %21035 = vmatprep.subr.msk.mxu0 %vm472_vm1, %v6642_v45  ;;  %v25957_v52 = vld [vmem:[%s32194_s1 + $0x168] sm:$0xff] }
 0x1ec   : > { %v25942_v60 = vadd.f32 %v2988_v57, %v25759_v24  ;;  %v3247_v42 = vpop.f32.mrf.mxu1  ;;  %21031 = vmatmul.mubr.msk.f32.gmra.mxu1 %vm462_vm2, %v25851_v50  ;;  %v25960_v24 = vpop.permute.xlu0 %7046 }
 0x1ed   : > { %v25949_v23 = vadd.f32 %v3247_v42, %v25768_v22  ;;  %v2992_v27 = vpop.f32.mrf.mxu0  ;;  %21015 = vmatmul.mubr.msk.f32.gmra.mxu0 %vm462_vm2, %v25814_v1  ;;  %6829 = vmatprep.mubr.f32.mxu1 %v32207_v0 }
 0x1ee   : > { %v25963_v34 = vadd.f32 %v2992_v27, %v25782_v6  ;;  %v3249_v22 = vpop.f32.mrf.mxu1  ;;  %6340 = vmatprep.mubr.f32.mxu0 %v32207_v0  ;;  %v7058_v6 = vsel %vm7054_vm9, %v25946_v63, %v25960_v24 }
 0x1ef   : > { %v25967_v36 = vadd.f32 %v3249_v22, %v25786_v58  ;;  %v2994_v17 = vpop.f32.mrf.mxu0 }
 0x1f0   : > { %v25973_v4 = vadd.f32 %v2994_v17, %v25795_v12  ;;  %v3487_v62 = vpop.f32.mrf.mxu1  ;;  %21042 = vmatmul.mubr.msk.f32.vlgmr.msra.gmra.mxu1 %vm462_vm2, %v25957_v52  ;;  %v25990_v12 = vld [vmem:[%s32194_s1 + $0x170] sm:$0xff] }
 0x1f1   : > { %v25982_v58 = vadd.f32 %v3487_v62, %v25806_v40  ;;  %v2998_v54 = vpop.f32.mrf.mxu0  ;;  %21016 = vmatmul.mubr.msk.f32.gmra.mxu0 %vm462_vm2, %v25851_v50  ;;  %6835 = vmatprep.mubr.f32.mxu1 %v32207_v0  ;;  %v25997_v40 = vpop.permute.xlu1 %7048 }
 0x1f2   : > { %v25993_v44 = vadd.f32 %v2998_v54, %v25817_v10  ;;  %v3489_v39 = vpop.f32.mrf.mxu1  ;;  %6494 = vmatprep.mubr.f32.mxu0 %v32207_v0  ;;  %21051 = vmatpush1.msk.msra.mxu1 %vm472_vm1, %v6637_v46  ;;  %v26007_v10 = vpop.permute.xlu0 %7050 }
 0x1f3   : > { %v26004_v28 = vadd.f32 %v3489_v39, %v25828_v47  ;;  %v3000_v7 = vpop.f32.mrf.mxu0  ;;  %21063 = vmatprep.subr.msk.mxu1 %vm472_vm1, %v7058_v6 }
 0x1f4   : > { %v26010_v53 = vadd.f32 %v3000_v7, %v25834_v21  ;;  %v3493_v51 = vpop.f32.mrf.mxu1  ;;  %21043 = vmatmul.mubr.msk.f32.gmra.mxu1 %vm462_vm2, %v25990_v12  ;;  %v26027_v21 = vld [vmem:[%s32194_s1 + $0x178] sm:$0x3] }
 0x1f5   : > { %v26019_v48 = vadd.f32 %v3493_v51, %v25843_v43  ;;  %v3152_v47 = vpop.f32.mrf.mxu0  ;;  %21024 = vmatmul.mubr.msk.f32.vlgmr.msra.gmra.mxu0 %vm462_vm2, %v25776_v41  ;;  %6841 = vmatprep.mubr.f32.mxu1 %v32207_v0 }
 0x1f6   : > { %v26030_v2 = vadd.f32 %v3152_v47, %v25854_v49  ;;  %21036 = vmatpush1.msk.msra.mxu0 %vm472_vm1, %v6643_v18  ;;  %v3495_v19 = vpop.f32.mrf.mxu1  ;;  %6500 = vmatprep.mubr.f32.mxu0 %v32207_v0  ;;  %v7053_v49 = vpop.permute.xlu1 %7052 }
 0x1f7   : > { %v26035_v43 = vadd.f32 %v3495_v19, %v25859_v30  ;;  %v3154_v26 = vpop.f32.mrf.mxu0  ;;  %21045 = vmatprep.subr.msk.mxu0 %vm472_vm1, %v6638_v14  ;;  %v26049_v30 = vpop.permute.xlu0 %7458 }
 0x1f8   : > { %v26039_v41 = vadd.f32 %v3154_v26, %v25863_v55  ;;  %v3499_v45 = vpop.f32.mrf.mxu1  ;;  %21044 = vmatmul.mubr.msk.f32.gmra.mxu1 %vm462_vm2, %v26027_v21 }
 0x1f9   : > { %v26044_v16 = vadd.f32 %v3499_v45, %v25868_v61  ;;  %v3158_v3 = vpop.f32.mrf.mxu0  ;;  %21025 = vmatmul.mubr.msk.f32.gmra.mxu0 %vm462_vm2, %v25814_v1  ;;  %6995 = vmatprep.mubr.f32.mxu1 %v32207_v0  ;;  %v7059_v61 = vsel %vm7054_vm9, %v25905_v37, %v25946_v63  ;;  %v7055_v45 = vsel %vm7054_vm9, %v26007_v10, %v7053_v49 }
 0x1fa   : > { %v26052_v57 = vadd.f32 %v3158_v3, %v25876_v56  ;;  %v3501_v55 = vpop.f32.mrf.mxu1  ;;  %6506 = vmatprep.mubr.f32.mxu0 %v32207_v0  ;;  %v7062_v56 = vsel %vm7054_vm9, %v7053_v49, %v25915_v38  ;;  %v26081_v46 = vpop.permute.xlu1 %7460 }
 0x1fb   : > { %v26056_v42 = vadd.f32 %v3501_v55, %v25880_v5  ;;  %v3160_v27 = vpop.f32.mrf.mxu0 }
 0x1fc   : > { %v26063_v1 = vadd.f32 %v3160_v27, %v25887_v13  ;;  %v3653_v22 = vpop.f32.mrf.mxu1  ;;  %21052 = vmatmul.mubr.msk.f32.vlgmr.msra.gmra.mxu1 %vm462_vm2, %v25957_v52 }
 0x1fd   : > { %v26071_v5 = vadd.f32 %v3653_v22, %v25895_v35  ;;  %v3164_v17 = vpop.f32.mrf.mxu0  ;;  %21026 = vmatmul.mubr.msk.f32.gmra.mxu0 %vm462_vm2, %v25851_v50  ;;  %7001 = vmatprep.mubr.f32.mxu1 %v32207_v0  ;;  %v6639_v35 = vsel %vm6636_vm8, %v25779_v25, %v25821_v8  ;;  %v7060_v25 = vsel %vm7054_vm9, %v25873_v33, %v25905_v37  ;;  %vm9980_vm8 = vcmp.lt.s32.totalorder %v23738_v11, 5 }
 0x1fe   : > { %v26077_v13 = vadd.f32 %v3164_v17, %v25901_v15  ;;  %v3655_v63 = vpop.f32.mrf.mxu1  ;;  %6746 = vmatprep.mubr.f32.mxu0 %v32207_v0  ;;  %21064 = vmatpush1.msk.msra.mxu1 %vm472_vm1, %v7059_v61  ;;  %v26091_v15 = vpop.permute.xlu0 %7456  ;;  %v7061_v22 = vsel %vm7054_vm9, %v25915_v38, %v25873_v33  ;;  %v7056_v33 = vsel %vm7054_vm9, %v25997_v40, %v26007_v10 }
 0x1ff   : > { %v26088_v62 = vadd.f32 %v3655_v63, %v25912_v20  ;;  %v3166_v50 = vpop.f32.mrf.mxu0  ;;  %21073 = vmatprep.subr.msk.mxu1 %vm472_vm1, %v7062_v56 }
 0x200   : > { %v26094_v6 = vadd.f32 %v3166_v50, %v25918_v29  ;;  %v3659_v54 = vpop.f32.mrf.mxu1  ;;  %21053 = vmatmul.mubr.msk.f32.gmra.mxu1 %vm462_vm2, %v25990_v12 }
 0x201   : > { %v26103_v8 = vadd.f32 %v3659_v54, %v25927_v32  ;;  %v3404_v20 = vpop.f32.mrf.mxu0  ;;  %21037 = vmatmul.mubr.msk.f32.vlgmr.msra.gmra.mxu0 %vm462_vm2, %v25957_v52  ;;  %7007 = vmatprep.mubr.f32.mxu1 %v32207_v0 }
 0x202   : > { %v26109_v29 = vadd.f32 %v3404_v20, %v25933_v59  ;;  %21046 = vmatpush1.msk.msra.mxu0 %vm472_vm1, %v6639_v35  ;;  %v3661_v39 = vpop.f32.mrf.mxu1  ;;  %6752 = vmatprep.mubr.f32.mxu0 %v32207_v0  ;;  %v26122_v59 = vpop.permute.xlu1 %7462 }
 0x203   : > { %v26114_v18 = vadd.f32 %v3661_v39, %v25938_v31  ;;  %v3406_v37 = vpop.f32.mrf.mxu0  ;;  %21058 = vmatprep.subr.msk.mxu0 %vm472_vm1, %v7060_v25  ;;  %v26133_v31 = vld [vmem:[%s32194_s1 + $0x180] sm:$0xff] }
 0x204   : > { %v26118_v32 = vadd.f32 %v3406_v37, %v25942_v60  ;;  %v3665_v7 = vpop.f32.mrf.mxu1  ;;  %21054 = vmatmul.mubr.msk.f32.gmra.mxu1 %vm462_vm2, %v26027_v21  ;;  %v26136_v60 = vpop.permute.xlu0 %7464 }
 0x205   : > { %v26125_v51 = vadd.f32 %v3665_v7, %v25949_v23  ;;  %v3410_v14 = vpop.f32.mrf.mxu0  ;;  %21038 = vmatmul.mubr.msk.f32.gmra.mxu0 %vm462_vm2, %v25990_v12  ;;  %7247 = vmatprep.mubr.f32.mxu1 %v32207_v0 }
 0x206   : > { %v26139_v47 = vadd.f32 %v3410_v14, %v25963_v34  ;;  %v3667_v23 = vpop.f32.mrf.mxu1  ;;  %6758 = vmatprep.mubr.f32.mxu0 %v32207_v0  ;;  %v7476_v34 = vsel %vm7472_vm10, %v26122_v59, %v26136_v60 }
 0x207   : > { %v26143_v19 = vadd.f32 %v3667_v23, %v25967_v36  ;;  %v3412_v26 = vpop.f32.mrf.mxu0 }
 0x208   : > { %v26149_v3 = vadd.f32 %v3412_v26, %v25973_v4  ;;  %v3905_v55 = vpop.f32.mrf.mxu1  ;;  %21065 = vmatmul.mubr.msk.f32.vlgmr.msra.gmra.mxu1 %vm462_vm2, %v26133_v31  ;;  %v26166_v4 = vld [vmem:[%s32194_s1 + $0x188] sm:$0xff] }
 0x209   : > { %v26158_v36 = vadd.f32 %v3905_v55, %v25982_v58  ;;  %v3416_v27 = vpop.f32.mrf.mxu0  ;;  %21039 = vmatmul.mubr.msk.f32.gmra.mxu0 %vm462_vm2, %v26027_v21  ;;  %7253 = vmatprep.mubr.f32.mxu1 %v32207_v0  ;;  %v26173_v58 = vpop.permute.xlu1 %7466 }
 0x20a   : > { %v26169_v49 = vadd.f32 %v3416_v27, %v25993_v44  ;;  %v3907_v61 = vpop.f32.mrf.mxu1  ;;  %6912 = vmatprep.mubr.f32.mxu0 %v32207_v0  ;;  %21074 = vmatpush1.msk.msra.mxu1 %vm472_vm1, %v7055_v45  ;;  %v26183_v44 = vpop.permute.xlu0 %7468 }
 0x20b   : > { %v26180_v56 = vadd.f32 %v3907_v61, %v26004_v28  ;;  %v3418_v17 = vpop.f32.mrf.mxu0  ;;  %21086 = vmatprep.subr.msk.mxu1 %vm472_vm1, %v7476_v34 }
 0x20c   : > { %v26186_v63 = vadd.f32 %v3418_v17, %v26010_v53  ;;  %v3911_v35 = vpop.f32.mrf.mxu1  ;;  %21066 = vmatmul.mubr.msk.f32.gmra.mxu1 %vm462_vm2, %v26166_v4  ;;  %v26203_v53 = vld [vmem:[%s32194_s1 + $0x190] sm:$0x3] }
 0x20d   : > { %v26195_v38 = vadd.f32 %v3911_v35, %v26019_v48  ;;  %v3570_v28 = vpop.f32.mrf.mxu0  ;;  %21047 = vmatmul.mubr.msk.f32.vlgmr.msra.gmra.mxu0 %vm462_vm2, %v25957_v52  ;;  %7259 = vmatprep.mubr.f32.mxu1 %v32207_v0 }
 0x20e   : > { %v26206_v50 = vadd.f32 %v3570_v28, %v26030_v2  ;;  %21059 = vmatpush1.msk.msra.mxu0 %vm472_vm1, %v7061_v22  ;;  %v3913_v10 = vpop.f32.mrf.mxu1  ;;  %6918 = vmatprep.mubr.f32.mxu0 %v32207_v0  ;;  %v7471_v2 = vpop.permute.xlu1 %7470 }
 0x20f   : > { %v26211_v48 = vadd.f32 %v3913_v10, %v26035_v43  ;;  %v3572_v54 = vpop.f32.mrf.mxu0  ;;  %21068 = vmatprep.subr.msk.mxu0 %vm472_vm1, %v7056_v33  ;;  %v26225_v43 = vpop.permute.xlu0 %7876 }
 0x210   : > { %v26215_v52 = vadd.f32 %v3572_v54, %v26039_v41  ;;  %v3917_v25 = vpop.f32.mrf.mxu1  ;;  %21067 = vmatmul.mubr.msk.f32.gmra.mxu1 %vm462_vm2, %v26203_v53 }
 0x211   : > { %v26220_v20 = vadd.f32 %v3917_v25, %v26044_v16  ;;  %v3576_v39 = vpop.f32.mrf.mxu0  ;;  %21048 = vmatmul.mubr.msk.f32.gmra.mxu0 %vm462_vm2, %v25990_v12  ;;  %7413 = vmatprep.mubr.f32.mxu1 %v32207_v0  ;;  %v7477_v16 = vsel %vm7472_vm10, %v26081_v46, %v26122_v59  ;;  %v7473_v25 = vsel %vm7472_vm10, %v26183_v44, %v7471_v2 }
 0x212   : > { %v26228_v37 = vadd.f32 %v3576_v39, %v26052_v57  ;;  %v3919_v41 = vpop.f32.mrf.mxu1  ;;  %6924 = vmatprep.mubr.f32.mxu0 %v32207_v0  ;;  %v7480_v57 = vsel %vm7472_vm10, %v7471_v2, %v26091_v15  ;;  %v26257_v45 = vpop.permute.xlu1 %7878 }
 0x213   : > { %v26232_v7 = vadd.f32 %v3919_v41, %v26056_v42  ;;  %v3578_v14 = vpop.f32.mrf.mxu0 }
 0x214   : > { %v26239_v12 = vadd.f32 %v3578_v14, %v26063_v1  ;;  %v4071_v23 = vpop.f32.mrf.mxu1  ;;  %21075 = vmatmul.mubr.msk.f32.vlgmr.msra.gmra.mxu1 %vm462_vm2, %v26133_v31 }
 0x215   : > { %v26247_v42 = vadd.f32 %v4071_v23, %v26071_v5  ;;  %v3582_v26 = vpop.f32.mrf.mxu0  ;;  %21049 = vmatmul.mubr.msk.f32.gmra.mxu0 %vm462_vm2, %v26027_v21  ;;  %7419 = vmatprep.mubr.f32.mxu1 %v32207_v0  ;;  %v7057_v5 = vsel %vm7054_vm9, %v25960_v24, %v25997_v40  ;;  %v7478_v24 = vsel %vm7472_vm10, %v26049_v30, %v26081_v46  ;;  %vm10398_vm9 = vcmp.lt.s32.totalorder %v23738_v11, 4  ;;  %v10870_v11 = vld [vmem:[%s32196_s3 + $0x20] sm:$0xff] }
 0x216   : > { %v26253_v1 = vadd.f32 %v3582_v26, %v26077_v13  ;;  %v4073_v59 = vpop.f32.mrf.mxu1  ;;  %7164 = vmatprep.mubr.f32.mxu0 %v32207_v0  ;;  %21087 = vmatpush1.msk.msra.mxu1 %vm472_vm1, %v7477_v16  ;;  %v26267_v13 = vpop.permute.xlu0 %7874  ;;  %v7479_v23 = vsel %vm7472_vm10, %v26091_v15, %v26049_v30  ;;  %v7474_v30 = vsel %vm7472_vm10, %v26173_v58, %v26183_v44 }
 0x217   : > { %v26264_v55 = vadd.f32 %v4073_v59, %v26088_v62  ;;  %v3584_v21 = vpop.f32.mrf.mxu0  ;;  %21096 = vmatprep.subr.msk.mxu1 %vm472_vm1, %v7480_v57 }
 0x218   : > { %v26270_v34 = vadd.f32 %v3584_v21, %v26094_v6  ;;  %v4077_v27 = vpop.f32.mrf.mxu1  ;;  %21076 = vmatmul.mubr.msk.f32.gmra.mxu1 %vm462_vm2, %v26166_v4 }
 0x219   : > { %v26279_v40 = vadd.f32 %v4077_v27, %v26103_v8  ;;  %v3822_v62 = vpop.f32.mrf.mxu0  ;;  %21060 = vmatmul.mubr.msk.f32.vlgmr.msra.gmra.mxu0 %vm462_vm2, %v26133_v31  ;;  %7425 = vmatprep.mubr.f32.mxu1 %v32207_v0 }
 0x21a   : > { %v26285_v6 = vadd.f32 %v3822_v62, %v26109_v29  ;;  %21069 = vmatpush1.msk.msra.mxu0 %vm472_vm1, %v7057_v5  ;;  %v4079_v61 = vpop.f32.mrf.mxu1  ;;  %7170 = vmatprep.mubr.f32.mxu0 %v32207_v0  ;;  %v26298_v29 = vpop.permute.xlu1 %7880 }
 0x21b   : > { %v26290_v22 = vadd.f32 %v4079_v61, %v26114_v18  ;;  %v3824_v46 = vpop.f32.mrf.mxu0  ;;  %21081 = vmatprep.subr.msk.mxu0 %vm472_vm1, %v7478_v24  ;;  %v26309_v18 = vld [vmem:[%s32194_s1 + $0x198] sm:$0xff] }
 0x21c   : > { %v26294_v8 = vadd.f32 %v3824_v46, %v26118_v32  ;;  %v4083_v17 = vpop.f32.mrf.mxu1  ;;  %21077 = vmatmul.mubr.msk.f32.gmra.mxu1 %vm462_vm2, %v26203_v53  ;;  %v26312_v32 = vpop.permute.xlu0 %7882 }
 0x21d   : > { %v26301_v35 = vadd.f32 %v4083_v17, %v26125_v51  ;;  %v3828_v33 = vpop.f32.mrf.mxu0  ;;  %21061 = vmatmul.mubr.msk.f32.gmra.mxu0 %vm462_vm2, %v26166_v4  ;;  %7665 = vmatprep.mubr.f32.mxu1 %v32207_v0 }
 0x21e   : > { %v26315_v28 = vadd.f32 %v3828_v33, %v26139_v47  ;;  %v4085_v51 = vpop.f32.mrf.mxu1  ;;  %7176 = vmatprep.mubr.f32.mxu0 %v32207_v0  ;;  %v7894_v47 = vsel %vm7890_vm11, %v26298_v29, %v26312_v32 }
 0x21f   : > { %v26319_v10 = vadd.f32 %v4085_v51, %v26143_v19  ;;  %v3830_v54 = vpop.f32.mrf.mxu0 }
 0x220   : > { %v26325_v39 = vadd.f32 %v3830_v54, %v26149_v3  ;;  %v4323_v41 = vpop.f32.mrf.mxu1  ;;  %21088 = vmatmul.mubr.msk.f32.vlgmr.msra.gmra.mxu1 %vm462_vm2, %v26309_v18  ;;  %v26342_v3 = vld [vmem:[%s32194_s1 + $0x1a0] sm:$0xff] }
 0x221   : > { %v26334_v19 = vadd.f32 %v4323_v41, %v26158_v36  ;;  %v3834_v14 = vpop.f32.mrf.mxu0  ;;  %21062 = vmatmul.mubr.msk.f32.gmra.mxu0 %vm462_vm2, %v26203_v53  ;;  %7671 = vmatprep.mubr.f32.mxu1 %v32207_v0  ;;  %v26349_v36 = vpop.permute.xlu1 %7884 }
 0x222   : > { %v26345_v2 = vadd.f32 %v3834_v14, %v26169_v49  ;;  %v4325_v16 = vpop.f32.mrf.mxu1  ;;  %7330 = vmatprep.mubr.f32.mxu0 %v32207_v0  ;;  %21097 = vmatpush1.msk.msra.mxu1 %vm472_vm1, %v7473_v25  ;;  %v26359_v49 = vpop.permute.xlu0 %7886 }
 0x223   : > { %v26356_v57 = vadd.f32 %v4325_v16, %v26180_v56  ;;  %v3836_v26 = vpop.f32.mrf.mxu0  ;;  %21109 = vmatprep.subr.msk.mxu1 %vm472_vm1, %v7894_v47 }
 0x224   : > { %v26362_v59 = vadd.f32 %v3836_v26, %v26186_v63  ;;  %v4329_v5 = vpop.f32.mrf.mxu1  ;;  %21089 = vmatmul.mubr.msk.f32.gmra.mxu1 %vm462_vm2, %v26342_v3  ;;  %v26379_v63 = vld [vmem:[%s32194_s1 + $0x1a8] sm:$0x3] }
 0x225   : > { %v26371_v15 = vadd.f32 %v4329_v5, %v26195_v38  ;;  %v3988_v56 = vpop.f32.mrf.mxu0  ;;  %21070 = vmatmul.mubr.msk.f32.vlgmr.msra.gmra.mxu0 %vm462_vm2, %v26133_v31  ;;  %7677 = vmatprep.mubr.f32.mxu1 %v32207_v0 }
 0x226   : > { %v26382_v21 = vadd.f32 %v3988_v56, %v26206_v50  ;;  %21082 = vmatpush1.msk.msra.mxu0 %vm472_vm1, %v7479_v23  ;;  %v4331_v44 = vpop.f32.mrf.mxu1  ;;  %7336 = vmatprep.mubr.f32.mxu0 %v32207_v0  ;;  %v7889_v50 = vpop.permute.xlu1 %7888 }
 0x227   : > { %v26387_v38 = vadd.f32 %v4331_v44, %v26211_v48  ;;  %v3990_v27 = vpop.f32.mrf.mxu0  ;;  %21091 = vmatprep.subr.msk.mxu0 %vm472_vm1, %v7474_v30  ;;  %v26401_v48 = vpop.permute.xlu0 %8294 }
 0x228   : > { %v26391_v31 = vadd.f32 %v3990_v27, %v26215_v52  ;;  %v4335_v24 = vpop.f32.mrf.mxu1  ;;  %21090 = vmatmul.mubr.msk.f32.gmra.mxu1 %vm462_vm2, %v26379_v63 }
 0x229   : > { %v26396_v62 = vadd.f32 %v4335_v24, %v26220_v20  ;;  %v3994_v61 = vpop.f32.mrf.mxu0  ;;  %21071 = vmatmul.mubr.msk.f32.gmra.mxu0 %vm462_vm2, %v26166_v4  ;;  %7831 = vmatprep.mubr.f32.mxu1 %v32207_v0  ;;  %v7895_v20 = vsel %vm7890_vm11, %v26257_v45, %v26298_v29  ;;  %v7891_v24 = vsel %vm7890_vm11, %v26359_v49, %v7889_v50 }
 0x22a   : > { %v26404_v46 = vadd.f32 %v3994_v61, %v26228_v37  ;;  %v4337_v52 = vpop.f32.mrf.mxu1  ;;  %7342 = vmatprep.mubr.f32.mxu0 %v32207_v0  ;;  %v7898_v37 = vsel %vm7890_vm11, %v7889_v50, %v26267_v13  ;;  %v26433_v25 = vpop.permute.xlu1 %8296 }
 0x22b   : > { %v26408_v17 = vadd.f32 %v4337_v52, %v26232_v7  ;;  %v3996_v33 = vpop.f32.mrf.mxu0 }
 0x22c   : > { %v26415_v4 = vadd.f32 %v3996_v33, %v26239_v12  ;;  %v4489_v51 = vpop.f32.mrf.mxu1  ;;  %21098 = vmatmul.mubr.msk.f32.vlgmr.msra.gmra.mxu1 %vm462_vm2, %v26309_v18 }
 0x22d   : > { %v26423_v7 = vadd.f32 %v4489_v51, %v26247_v42  ;;  %v4000_v54 = vpop.f32.mrf.mxu0  ;;  %21072 = vmatmul.mubr.msk.f32.gmra.mxu0 %vm462_vm2, %v26203_v53  ;;  %7837 = vmatprep.mubr.f32.mxu1 %v32207_v0  ;;  %v7475_v42 = vsel %vm7472_vm10, %v26136_v60, %v26173_v58  ;;  %v7896_v60 = vsel %vm7890_vm11, %v26225_v43, %v26257_v45 }
 0x22e   : > { %v26429_v12 = vadd.f32 %v4000_v54, %v26253_v1  ;;  %v4491_v29 = vpop.f32.mrf.mxu1  ;;  %7582 = vmatprep.mubr.f32.mxu0 %v32207_v0  ;;  %21110 = vmatpush1.msk.msra.mxu1 %vm472_vm1, %v7895_v20  ;;  %v26443_v1 = vpop.permute.xlu0 %8292  ;;  %v7897_v51 = vsel %vm7890_vm11, %v26267_v13, %v26225_v43  ;;  %v7892_v43 = vsel %vm7890_vm11, %v26349_v36, %v26359_v49 }
 0x22f   : > { %v26440_v41 = vadd.f32 %v4491_v29, %v26264_v55  ;;  %v4002_v53 = vpop.f32.mrf.mxu0  ;;  %21119 = vmatprep.subr.msk.mxu1 %vm472_vm1, %v7898_v37 }
 0x230   : > { %v26446_v47 = vadd.f32 %v4002_v53, %v26270_v34  ;;  %v4495_v14 = vpop.f32.mrf.mxu1  ;;  %21099 = vmatmul.mubr.msk.f32.gmra.mxu1 %vm462_vm2, %v26342_v3 }
 0x231   : > { %v26455_v58 = vadd.f32 %v4495_v14, %v26279_v40  ;;  %v4240_v55 = vpop.f32.mrf.mxu0  ;;  %21083 = vmatmul.mubr.msk.f32.vlgmr.msra.gmra.mxu0 %vm462_vm2, %v26309_v18  ;;  %7843 = vmatprep.mubr.f32.mxu1 %v32207_v0 }
 0x232   : > { %v26461_v34 = vadd.f32 %v4240_v55, %v26285_v6  ;;  %21092 = vmatpush1.msk.msra.mxu0 %vm472_vm1, %v7475_v42  ;;  %v4497_v16 = vpop.f32.mrf.mxu1  ;;  %7588 = vmatprep.mubr.f32.mxu0 %v32207_v0  ;;  %v26474_v6 = vpop.permute.xlu1 %8298 }
 0x233   : > { %v26466_v23 = vadd.f32 %v4497_v16, %v26290_v22  ;;  %v4242_v45 = vpop.f32.mrf.mxu0  ;;  %21104 = vmatprep.subr.msk.mxu0 %vm472_vm1, %v7896_v60  ;;  %v26485_v22 = vld [vmem:[%s32194_s1 + $0x1b0] sm:$0xff] }
 0x234   : > { %v26470_v40 = vadd.f32 %v4242_v45, %v26294_v8  ;;  %v4501_v26 = vpop.f32.mrf.mxu1  ;;  %21100 = vmatmul.mubr.msk.f32.gmra.mxu1 %vm462_vm2, %v26379_v63  ;;  %v26488_v8 = vpop.permute.xlu0 %8300 }
 0x235   : > { %v26477_v5 = vadd.f32 %v4501_v26, %v26301_v35  ;;  %v4246_v30 = vpop.f32.mrf.mxu0  ;;  %21084 = vmatmul.mubr.msk.f32.gmra.mxu0 %vm462_vm2, %v26342_v3  ;;  %8083 = vmatprep.mubr.f32.mxu1 %v32207_v0 }
 0x236   : > { %v26491_v56 = vadd.f32 %v4246_v30, %v26315_v28  ;;  %v4503_v35 = vpop.f32.mrf.mxu1  ;;  %7594 = vmatprep.mubr.f32.mxu0 %v32207_v0  ;;  %v8312_v28 = vsel %vm8308_vm12, %v26474_v6, %v26488_v8 }
 0x237   : > { %v26495_v44 = vadd.f32 %v4503_v35, %v26319_v10  ;;  %v4248_v27 = vpop.f32.mrf.mxu0 }
 0x238   : > { %v26501_v61 = vadd.f32 %v4248_v27, %v26325_v39  ;;  %v4741_v52 = vpop.f32.mrf.mxu1  ;;  %21111 = vmatmul.mubr.msk.f32.vlgmr.msra.gmra.mxu1 %vm462_vm2, %v26485_v22  ;;  %v26518_v39 = vld [vmem:[%s32194_s1 + $0x1b8] sm:$0xff] }
 0x239   : > { %v26510_v10 = vadd.f32 %v4741_v52, %v26334_v19  ;;  %v4252_v33 = vpop.f32.mrf.mxu0  ;;  %21085 = vmatmul.mubr.msk.f32.gmra.mxu0 %vm462_vm2, %v26379_v63  ;;  %8089 = vmatprep.mubr.f32.mxu1 %v32207_v0  ;;  %v26525_v19 = vpop.permute.xlu1 %8302 }
 0x23a   : > { %v26521_v50 = vadd.f32 %v4252_v33, %v26345_v2  ;;  %v4743_v20 = vpop.f32.mrf.mxu1  ;;  %7748 = vmatprep.mubr.f32.mxu0 %v32207_v0  ;;  %21120 = vmatpush1.msk.msra.mxu1 %vm472_vm1, %v7891_v24  ;;  %v26535_v2 = vpop.permute.xlu0 %8304 }
 0x23b   : > { %v26532_v37 = vadd.f32 %v4743_v20, %v26356_v57  ;;  %v4254_v54 = vpop.f32.mrf.mxu0  ;;  %21132 = vmatprep.subr.msk.mxu1 %vm472_vm1, %v8312_v28 }
 0x23c   : > { %v26538_v29 = vadd.f32 %v4254_v54, %v26362_v59  ;;  %v4747_v42 = vpop.f32.mrf.mxu1  ;;  %21112 = vmatmul.mubr.msk.f32.gmra.mxu1 %vm462_vm2, %v26518_v39  ;;  %v26555_v59 = vld [vmem:[%s32194_s1 + $0x1c0] sm:$0x3] }
 0x23d   : > { %v26547_v13 = vadd.f32 %v4747_v42, %v26371_v15  ;;  %v4406_v57 = vpop.f32.mrf.mxu0  ;;  %21093 = vmatmul.mubr.msk.f32.vlgmr.msra.gmra.mxu0 %vm462_vm2, %v26309_v18  ;;  %8095 = vmatprep.mubr.f32.mxu1 %v32207_v0 }
 0x23e   : > { %v26558_v53 = vadd.f32 %v4406_v57, %v26382_v21  ;;  %21105 = vmatpush1.msk.msra.mxu0 %vm472_vm1, %v7897_v51  ;;  %v4749_v49 = vpop.f32.mrf.mxu1  ;;  %7754 = vmatprep.mubr.f32.mxu0 %v32207_v0  ;;  %v8307_v21 = vpop.permute.xlu1 %8306 }
 0x23f   : > { %v26563_v15 = vadd.f32 %v4749_v49, %v26387_v38  ;;  %v4408_v14 = vpop.f32.mrf.mxu0  ;;  %21114 = vmatprep.subr.msk.mxu0 %vm472_vm1, %v7892_v43  ;;  %v26577_v38 = vpop.permute.xlu0 %8712 }
 0x240   : > { %v26567_v18 = vadd.f32 %v4408_v14, %v26391_v31  ;;  %v4753_v60 = vpop.f32.mrf.mxu1  ;;  %21113 = vmatmul.mubr.msk.f32.gmra.mxu1 %vm462_vm2, %v26555_v59 }
 0x241   : > { %v26572_v55 = vadd.f32 %v4753_v60, %v26396_v62  ;;  %v4412_v16 = vpop.f32.mrf.mxu0  ;;  %21094 = vmatmul.mubr.msk.f32.gmra.mxu0 %vm462_vm2, %v26342_v3  ;;  %8249 = vmatprep.mubr.f32.mxu1 %v32207_v0  ;;  %v8313_v62 = vsel %vm8308_vm12, %v26433_v25, %v26474_v6  ;;  %v8309_v60 = vsel %vm8308_vm12, %v26535_v2, %v8307_v21 }
 0x242   : > { %v26580_v45 = vadd.f32 %v4412_v16, %v26404_v46  ;;  %v4755_v31 = vpop.f32.mrf.mxu1  ;;  %7760 = vmatprep.mubr.f32.mxu0 %v32207_v0  ;;  %v8316_v46 = vsel %vm8308_vm12, %v8307_v21, %v26443_v1  ;;  %v26609_v24 = vpop.permute.xlu1 %8714 }
 0x243   : > { %v26584_v26 = vadd.f32 %v4755_v31, %v26408_v17  ;;  %v4414_v30 = vpop.f32.mrf.mxu0 }
 0x244   : > { %v26591_v3 = vadd.f32 %v4414_v30, %v26415_v4  ;;  %v4907_v35 = vpop.f32.mrf.mxu1  ;;  %21121 = vmatmul.mubr.msk.f32.vlgmr.msra.gmra.mxu1 %vm462_vm2, %v26485_v22 }
 0x245   : > { %v26599_v17 = vadd.f32 %v4907_v35, %v26423_v7  ;;  %v4418_v27 = vpop.f32.mrf.mxu0  ;;  %21095 = vmatmul.mubr.msk.f32.gmra.mxu0 %vm462_vm2, %v26379_v63  ;;  %8255 = vmatprep.mubr.f32.mxu1 %v32207_v0  ;;  %v7893_v7 = vsel %vm7890_vm11, %v26312_v32, %v26349_v36  ;;  %v8314_v32 = vsel %vm8308_vm12, %v26401_v48, %v26433_v25 }
 0x246   : > { %v26605_v4 = vadd.f32 %v4418_v27, %v26429_v12  ;;  %v4909_v6 = vpop.f32.mrf.mxu1  ;;  %8000 = vmatprep.mubr.f32.mxu0 %v32207_v0  ;;  %21133 = vmatpush1.msk.msra.mxu1 %vm472_vm1, %v8313_v62  ;;  %v26619_v12 = vpop.permute.xlu0 %8710  ;;  %v8315_v35 = vsel %vm8308_vm12, %v26443_v1, %v26401_v48  ;;  %v8310_v48 = vsel %vm8308_vm12, %v26525_v19, %v26535_v2 }
 0x247   : > { %v26616_v52 = vadd.f32 %v4909_v6, %v26440_v41  ;;  %v4420_v63 = vpop.f32.mrf.mxu0  ;;  %21142 = vmatprep.subr.msk.mxu1 %vm472_vm1, %v8316_v46 }
 0x248   : > { %v26622_v28 = vadd.f32 %v4420_v63, %v26446_v47  ;;  %v4913_v33 = vpop.f32.mrf.mxu1  ;;  %21122 = vmatmul.mubr.msk.f32.gmra.mxu1 %vm462_vm2, %v26518_v39 }
 0x249   : > { %v26631_v36 = vadd.f32 %v4913_v33, %v26455_v58  ;;  %v4658_v41 = vpop.f32.mrf.mxu0  ;;  %21106 = vmatmul.mubr.msk.f32.vlgmr.msra.gmra.mxu0 %vm462_vm2, %v26485_v22  ;;  %8261 = vmatprep.mubr.f32.mxu1 %v32207_v0 }
 0x24a   : > { %v26637_v47 = vadd.f32 %v4658_v41, %v26461_v34  ;;  %21115 = vmatpush1.msk.msra.mxu0 %vm472_vm1, %v7893_v7  ;;  %v4915_v20 = vpop.f32.mrf.mxu1  ;;  %8006 = vmatprep.mubr.f32.mxu0 %v32207_v0  ;;  %v26650_v34 = vpop.permute.xlu1 %8716 }
 0x24b   : > { %v26642_v51 = vadd.f32 %v4915_v20, %v26466_v23  ;;  %v4660_v25 = vpop.f32.mrf.mxu0  ;;  %21127 = vmatprep.subr.msk.mxu0 %vm472_vm1, %v8314_v32  ;;  %v26661_v23 = vld [vmem:[%s32194_s1 + $0x1c8] sm:$0xff] }
 0x24c   : > { %v26646_v58 = vadd.f32 %v4660_v25, %v26470_v40  ;;  %v4919_v54 = vpop.f32.mrf.mxu1  ;;  %21123 = vmatmul.mubr.msk.f32.gmra.mxu1 %vm462_vm2, %v26555_v59  ;;  %v26664_v40 = vpop.permute.xlu0 %8718 }
 0x24d   : > { %v26653_v42 = vadd.f32 %v4919_v54, %v26477_v5  ;;  %v4664_v43 = vpop.f32.mrf.mxu0  ;;  %21107 = vmatmul.mubr.msk.f32.gmra.mxu0 %vm462_vm2, %v26518_v39  ;;  %8501 = vmatprep.mubr.f32.mxu1 %v32207_v0 }
 0x24e   : > { %v26667_v57 = vadd.f32 %v4664_v43, %v26491_v56  ;;  %v4921_v5 = vpop.f32.mrf.mxu1  ;;  %8012 = vmatprep.mubr.f32.mxu0 %v32207_v0  ;;  %v8730_v56 = vsel %vm8726_vm13, %v26650_v34, %v26664_v40 }
 0x24f   : > { %v26671_v49 = vadd.f32 %v4921_v5, %v26495_v44  ;;  %v4666_v14 = vpop.f32.mrf.mxu0 }
 0x250   : > { %v26677_v16 = vadd.f32 %v4666_v14, %v26501_v61  ;;  %v5159_v31 = vpop.f32.mrf.mxu1  ;;  %21134 = vmatmul.mubr.msk.f32.vlgmr.msra.gmra.mxu1 %vm462_vm2, %v26661_v23  ;;  %v26694_v61 = vld [vmem:[%s32194_s1 + $0x1d0] sm:$0xff] }
 0x251   : > { %v26686_v44 = vadd.f32 %v5159_v31, %v26510_v10  ;;  %v4670_v30 = vpop.f32.mrf.mxu0  ;;  %21108 = vmatmul.mubr.msk.f32.gmra.mxu0 %vm462_vm2, %v26555_v59  ;;  %8507 = vmatprep.mubr.f32.mxu1 %v32207_v0  ;;  %v26701_v10 = vpop.permute.xlu1 %8720 }
 0x252   : > { %v26697_v21 = vadd.f32 %v4670_v30, %v26521_v50  ;;  %v5161_v62 = vpop.f32.mrf.mxu1  ;;  %8166 = vmatprep.mubr.f32.mxu0 %v32207_v0  ;;  %21143 = vmatpush1.msk.msra.mxu1 %vm472_vm1, %v8309_v60  ;;  %v26711_v50 = vpop.permute.xlu0 %8722 }
 0x253   : > { %v26708_v46 = vadd.f32 %v5161_v62, %v26532_v37  ;;  %v4672_v27 = vpop.f32.mrf.mxu0  ;;  %21155 = vmatprep.subr.msk.mxu1 %vm472_vm1, %v8730_v56 }
 0x254   : > { %v26714_v6 = vadd.f32 %v4672_v27, %v26538_v29  ;;  %v5165_v7 = vpop.f32.mrf.mxu1  ;;  %21135 = vmatmul.mubr.msk.f32.gmra.mxu1 %vm462_vm2, %v26694_v61  ;;  %v26731_v29 = vld [vmem:[%s32194_s1 + $0x1d8] sm:$0x3] }
 0x255   : > { %v26723_v1 = vadd.f32 %v5165_v7, %v26547_v13  ;;  %v4824_v37 = vpop.f32.mrf.mxu0  ;;  %21116 = vmatmul.mubr.msk.f32.vlgmr.msra.gmra.mxu0 %vm462_vm2, %v26485_v22  ;;  %8513 = vmatprep.mubr.f32.mxu1 %v32207_v0 }
 0x256   : > { %v26734_v63 = vadd.f32 %v4824_v37, %v26558_v53  ;;  %21128 = vmatpush1.msk.msra.mxu0 %vm472_vm1, %v8315_v35  ;;  %v5167_v2 = vpop.f32.mrf.mxu1  ;;  %8172 = vmatprep.mubr.f32.mxu0 %v32207_v0  ;;  %v8725_v53 = vpop.permute.xlu1 %8724 }
 0x257   : > { %v26739_v13 = vadd.f32 %v5167_v2, %v26563_v15  ;;  %v4826_v33 = vpop.f32.mrf.mxu0  ;;  %21137 = vmatprep.subr.msk.mxu0 %vm472_vm1, %v8310_v48  ;;  %v26753_v15 = vpop.permute.xlu0 %9130 }
 0x258   : > { %v26743_v22 = vadd.f32 %v4826_v33, %v26567_v18  ;;  %v5171_v32 = vpop.f32.mrf.mxu1  ;;  %21136 = vmatmul.mubr.msk.f32.gmra.mxu1 %vm462_vm2, %v26731_v29 }
 0x259   : > { %v26748_v41 = vadd.f32 %v5171_v32, %v26572_v55  ;;  %v4830_v20 = vpop.f32.mrf.mxu0  ;;  %21117 = vmatmul.mubr.msk.f32.gmra.mxu0 %vm462_vm2, %v26518_v39  ;;  %8667 = vmatprep.mubr.f32.mxu1 %v32207_v0  ;;  %v8731_v55 = vsel %vm8726_vm13, %v26609_v24, %v26650_v34  ;;  %v8727_v32 = vsel %vm8726_vm13, %v26711_v50, %v8725_v53 }
 0x25a   : > { %v26756_v25 = vadd.f32 %v4830_v20, %v26580_v45  ;;  %v5173_v18 = vpop.f32.mrf.mxu1  ;;  %8178 = vmatprep.mubr.f32.mxu0 %v32207_v0  ;;  %v8734_v45 = vsel %vm8726_vm13, %v8725_v53, %v26619_v12  ;;  %v26785_v60 = vpop.permute.xlu1 %9132 }
 0x25b   : > { %v26760_v54 = vadd.f32 %v5173_v18, %v26584_v26  ;;  %v4832_v43 = vpop.f32.mrf.mxu0 }
 0x25c   : > { %v26767_v39 = vadd.f32 %v4832_v43, %v26591_v3  ;;  %v5325_v5 = vpop.f32.mrf.mxu1  ;;  %21144 = vmatmul.mubr.msk.f32.vlgmr.msra.gmra.mxu1 %vm462_vm2, %v26661_v23 }
 0x25d   : > { %v26775_v26 = vadd.f32 %v5325_v5, %v26599_v17  ;;  %v4836_v14 = vpop.f32.mrf.mxu0  ;;  %21118 = vmatmul.mubr.msk.f32.gmra.mxu0 %vm462_vm2, %v26555_v59  ;;  %8673 = vmatprep.mubr.f32.mxu1 %v32207_v0  ;;  %v8311_v17 = vsel %vm8308_vm12, %v26488_v8, %v26525_v19  ;;  %v8732_v8 = vsel %vm8726_vm13, %v26577_v38, %v26609_v24 }
 0x25e   : > { %v26781_v3 = vadd.f32 %v4836_v14, %v26605_v4  ;;  %v5327_v34 = vpop.f32.mrf.mxu1  ;;  %8418 = vmatprep.mubr.f32.mxu0 %v32207_v0  ;;  %21156 = vmatpush1.msk.msra.mxu1 %vm472_vm1, %v8731_v55  ;;  %v26795_v4 = vpop.permute.xlu0 %9128  ;;  %v8733_v5 = vsel %vm8726_vm13, %v26619_v12, %v26577_v38  ;;  %v8728_v38 = vsel %vm8726_vm13, %v26701_v10, %v26711_v50 }
 0x25f   : > { %v26792_v31 = vadd.f32 %v5327_v34, %v26616_v52  ;;  %v4838_v59 = vpop.f32.mrf.mxu0  ;;  %21165 = vmatprep.subr.msk.mxu1 %vm472_vm1, %v8734_v45 }
 0x260   : > { %v26798_v56 = vadd.f32 %v4838_v59, %v26622_v28  ;;  %v5331_v30 = vpop.f32.mrf.mxu1  ;;  %21145 = vmatmul.mubr.msk.f32.gmra.mxu1 %vm462_vm2, %v26694_v61 }
 0x261   : > { %v26807_v19 = vadd.f32 %v5331_v30, %v26631_v36  ;;  %v5076_v52 = vpop.f32.mrf.mxu0  ;;  %21129 = vmatmul.mubr.msk.f32.vlgmr.msra.gmra.mxu0 %vm462_vm2, %v26661_v23  ;;  %8679 = vmatprep.mubr.f32.mxu1 %v32207_v0 }
 0x262   : > { %v26813_v28 = vadd.f32 %v5076_v52, %v26637_v47  ;;  %21138 = vmatpush1.msk.msra.mxu0 %vm472_vm1, %v8311_v17  ;;  %v5333_v62 = vpop.f32.mrf.mxu1  ;;  %8424 = vmatprep.mubr.f32.mxu0 %v32207_v0  ;;  %v26826_v47 = vpop.permute.xlu1 %9134 }
 0x263   : > { %v26818_v35 = vadd.f32 %v5333_v62, %v26642_v51  ;;  %v5078_v24 = vpop.f32.mrf.mxu0  ;;  %21150 = vmatprep.subr.msk.mxu0 %vm472_vm1, %v8732_v8  ;;  %v26837_v51 = vld [vmem:[%s32194_s1 + $0x1e0] sm:$0xff] }
 0x264   : > { %v26822_v36 = vadd.f32 %v5078_v24, %v26646_v58  ;;  %v5337_v27 = vpop.f32.mrf.mxu1  ;;  %21146 = vmatmul.mubr.msk.f32.gmra.mxu1 %vm462_vm2, %v26731_v29  ;;  %v26840_v58 = vpop.permute.xlu0 %9136 }
 0x265   : > { %v26829_v7 = vadd.f32 %v5337_v27, %v26653_v42  ;;  %v5082_v48 = vpop.f32.mrf.mxu0  ;;  %21130 = vmatmul.mubr.msk.f32.gmra.mxu0 %vm462_vm2, %v26694_v61  ;;  %8919 = vmatprep.mubr.f32.mxu1 %v32207_v0 }
 0x266   : > { %v26843_v37 = vadd.f32 %v5082_v48, %v26667_v57  ;;  %v5339_v42 = vpop.f32.mrf.mxu1  ;;  %8430 = vmatprep.mubr.f32.mxu0 %v32207_v0  ;;  %v9148_v57 = vsel %vm9144_vm14, %v26826_v47, %v26840_v58 }
 0x267   : > { %v26847_v2 = vadd.f32 %v5339_v42, %v26671_v49  ;;  %v5084_v33 = vpop.f32.mrf.mxu0 }
 0x268   : > { %v26853_v20 = vadd.f32 %v5084_v33, %v26677_v16  ;;  %v5577_v18 = vpop.f32.mrf.mxu1  ;;  %21157 = vmatmul.mubr.msk.f32.vlgmr.msra.gmra.mxu1 %vm462_vm2, %v26837_v51  ;;  %v26870_v16 = vld [vmem:[%s32194_s1 + $0x1e8] sm:$0xff] }
 0x269   : > { %v26862_v49 = vadd.f32 %v5577_v18, %v26686_v44  ;;  %v5088_v43 = vpop.f32.mrf.mxu0  ;;  %21131 = vmatmul.mubr.msk.f32.gmra.mxu0 %vm462_vm2, %v26731_v29  ;;  %8925 = vmatprep.mubr.f32.mxu1 %v32207_v0  ;;  %v26877_v44 = vpop.permute.xlu1 %9138 }
 0x26a   : > { %v26873_v53 = vadd.f32 %v5088_v43, %v26697_v21  ;;  %v5579_v55 = vpop.f32.mrf.mxu1  ;;  %8584 = vmatprep.mubr.f32.mxu0 %v32207_v0  ;;  %21166 = vmatpush1.msk.msra.mxu1 %vm472_vm1, %v8727_v32  ;;  %v26887_v21 = vpop.permute.xlu0 %9140 }
 0x26b   : > { %v26884_v45 = vadd.f32 %v5579_v55, %v26708_v46  ;;  %v5090_v14 = vpop.f32.mrf.mxu0  ;;  %21178 = vmatprep.subr.msk.mxu1 %vm472_vm1, %v9148_v57 }
 0x26c   : > { %v26890_v34 = vadd.f32 %v5090_v14, %v26714_v6  ;;  %v5583_v17 = vpop.f32.mrf.mxu1  ;;  %21158 = vmatmul.mubr.msk.f32.gmra.mxu1 %vm462_vm2, %v26870_v16  ;;  %v26907_v6 = vld [vmem:[%s32194_s1 + $0x1f0] sm:$0x3] }
 0x26d   : > { %v26899_v12 = vadd.f32 %v5583_v17, %v26723_v1  ;;  %v5242_v46 = vpop.f32.mrf.mxu0  ;;  %21139 = vmatmul.mubr.msk.f32.vlgmr.msra.gmra.mxu0 %vm462_vm2, %v26661_v23  ;;  %8931 = vmatprep.mubr.f32.mxu1 %v32207_v0 }
 0x26e   : > { %v26910_v59 = vadd.f32 %v5242_v46, %v26734_v63  ;;  %21151 = vmatpush1.msk.msra.mxu0 %vm472_vm1, %v8733_v5  ;;  %v5585_v50 = vpop.f32.mrf.mxu1  ;;  %8590 = vmatprep.mubr.f32.mxu0 %v32207_v0  ;;  %v9143_v63 = vpop.permute.xlu1 %9142 }
 0x26f   : > { %v26915_v1 = vadd.f32 %v5585_v50, %v26739_v13  ;;  %v5244_v30 = vpop.f32.mrf.mxu0  ;;  %21160 = vmatprep.subr.msk.mxu0 %vm472_vm1, %v8728_v38  ;;  %v26929_v13 = vpop.permute.xlu0 %9548 }
 0x270   : > { %v26919_v23 = vadd.f32 %v5244_v30, %v26743_v22  ;;  %v5589_v8 = vpop.f32.mrf.mxu1  ;;  %21159 = vmatmul.mubr.msk.f32.gmra.mxu1 %vm462_vm2, %v26907_v6 }
 0x271   : > { %v26924_v52 = vadd.f32 %v5589_v8, %v26748_v41  ;;  %v5248_v62 = vpop.f32.mrf.mxu0  ;;  %21140 = vmatmul.mubr.msk.f32.gmra.mxu0 %vm462_vm2, %v26694_v61  ;;  %9085 = vmatprep.mubr.f32.mxu1 %v32207_v0  ;;  %v9149_v41 = vsel %vm9144_vm14, %v26785_v60, %v26826_v47  ;;  %v9145_v8 = vsel %vm9144_vm14, %v26887_v21, %v9143_v63 }
 0x272   : > { %v26932_v24 = vadd.f32 %v5248_v62, %v26756_v25  ;;  %v5591_v22 = vpop.f32.mrf.mxu1  ;;  %8596 = vmatprep.mubr.f32.mxu0 %v32207_v0  ;;  %v9152_v25 = vsel %vm9144_vm14, %v9143_v63, %v26795_v4  ;;  %v26961_v32 = vpop.permute.xlu1 %9550 }
 0x273   : > { %v26936_v27 = vadd.f32 %v5591_v22, %v26760_v54  ;;  %v5250_v48 = vpop.f32.mrf.mxu0 }
 0x274   : > { %v26943_v61 = vadd.f32 %v5250_v48, %v26767_v39  ;;  %v5743_v42 = vpop.f32.mrf.mxu1  ;;  %21167 = vmatmul.mubr.msk.f32.vlgmr.msra.gmra.mxu1 %vm462_vm2, %v26837_v51 }
 0x275   : > { %v26951_v54 = vadd.f32 %v5743_v42, %v26775_v26  ;;  %v5254_v33 = vpop.f32.mrf.mxu0  ;;  %21141 = vmatmul.mubr.msk.f32.gmra.mxu0 %vm462_vm2, %v26731_v29  ;;  %9091 = vmatprep.mubr.f32.mxu1 %v32207_v0  ;;  %v8729_v26 = vsel %vm8726_vm13, %v26664_v40, %v26701_v10  ;;  %v9150_v40 = vsel %vm9144_vm14, %v26753_v15, %v26785_v60 }
 0x276   : > { %v26957_v39 = vadd.f32 %v5254_v33, %v26781_v3  ;;  %v5745_v47 = vpop.f32.mrf.mxu1  ;;  %8836 = vmatprep.mubr.f32.mxu0 %v32207_v0  ;;  %21179 = vmatpush1.msk.msra.mxu1 %vm472_vm1, %v9149_v41  ;;  %v26971_v3 = vpop.permute.xlu0 %9546  ;;  %v9151_v42 = vsel %vm9144_vm14, %v26795_v4, %v26753_v15  ;;  %v9146_v15 = vsel %vm9144_vm14, %v26877_v44, %v26887_v21 }
 0x277   : > { %v26968_v18 = vadd.f32 %v5745_v47, %v26792_v31  ;;  %v5256_v29 = vpop.f32.mrf.mxu0  ;;  %21188 = vmatprep.subr.msk.mxu1 %vm472_vm1, %v9152_v25 }
 0x278   : > { %v26974_v57 = vadd.f32 %v5256_v29, %v26798_v56  ;;  %v5749_v43 = vpop.f32.mrf.mxu1  ;;  %21168 = vmatmul.mubr.msk.f32.gmra.mxu1 %vm462_vm2, %v26870_v16 }
 0x279   : > { %v26983_v10 = vadd.f32 %v5749_v43, %v26807_v19  ;;  %v5494_v31 = vpop.f32.mrf.mxu0  ;;  %21152 = vmatmul.mubr.msk.f32.vlgmr.msra.gmra.mxu0 %vm462_vm2, %v26837_v51  ;;  %9097 = vmatprep.mubr.f32.mxu1 %v32207_v0 }
 0x27a   : > { %v26989_v56 = vadd.f32 %v5494_v31, %v26813_v28  ;;  %21161 = vmatpush1.msk.msra.mxu0 %vm472_vm1, %v8729_v26  ;;  %v5751_v55 = vpop.f32.mrf.mxu1  ;;  %8842 = vmatprep.mubr.f32.mxu0 %v32207_v0  ;;  %v27002_v28 = vpop.permute.xlu1 %9552 }
 0x27b   : > { %v26994_v5 = vadd.f32 %v5751_v55, %v26818_v35  ;;  %v5496_v60 = vpop.f32.mrf.mxu0  ;;  %21173 = vmatprep.subr.msk.mxu0 %vm472_vm1, %v9150_v40  ;;  %v27013_v35 = vld [vmem:[%s32194_s1 + $0x1f8] sm:$0xff] }
 0x27c   : > { %v26998_v19 = vadd.f32 %v5496_v60, %v26822_v36  ;;  %v5755_v14 = vpop.f32.mrf.mxu1  ;;  %21169 = vmatmul.mubr.msk.f32.gmra.mxu1 %vm462_vm2, %v26907_v6  ;;  %v27016_v36 = vpop.permute.xlu0 %9554 }
 0x27d   : > { %v27005_v17 = vadd.f32 %v5755_v14, %v26829_v7  ;;  %v5500_v38 = vpop.f32.mrf.mxu0  ;;  %21153 = vmatmul.mubr.msk.f32.gmra.mxu0 %vm462_vm2, %v26870_v16  ;;  %9337 = vmatprep.mubr.f32.mxu1 %v32207_v0 }
 0x27e   : > { %v27019_v46 = vadd.f32 %v5500_v38, %v26843_v37  ;;  %v5757_v7 = vpop.f32.mrf.mxu1  ;;  %8848 = vmatprep.mubr.f32.mxu0 %v32207_v0  ;;  %v9566_v37 = vsel %vm9562_vm15, %v27002_v28, %v27016_v36 }
 0x27f   : > { %v27023_v50 = vadd.f32 %v5757_v7, %v26847_v2  ;;  %v5502_v30 = vpop.f32.mrf.mxu0 }
 0x280   : > { %v27029_v62 = vadd.f32 %v5502_v30, %v26853_v20  ;;  %v5995_v22 = vpop.f32.mrf.mxu1  ;;  %21180 = vmatmul.mubr.msk.f32.vlgmr.msra.gmra.mxu1 %vm462_vm2, %v27013_v35  ;;  %v27046_v20 = vld [vmem:[%s32194_s1 + $0x200] sm:$0xff] }
 0x281   : > { %v27038_v2 = vadd.f32 %v5995_v22, %v26862_v49  ;;  %v5506_v48 = vpop.f32.mrf.mxu0  ;;  %21154 = vmatmul.mubr.msk.f32.gmra.mxu0 %vm462_vm2, %v26907_v6  ;;  %9343 = vmatprep.mubr.f32.mxu1 %v32207_v0  ;;  %v27053_v49 = vpop.permute.xlu1 %9556 }
 0x282   : > { %v27049_v63 = vadd.f32 %v5506_v48, %v26873_v53  ;;  %v5997_v41 = vpop.f32.mrf.mxu1  ;;  %9002 = vmatprep.mubr.f32.mxu0 %v32207_v0  ;;  %21189 = vmatpush1.msk.msra.mxu1 %vm472_vm1, %v9145_v8  ;;  %v27063_v53 = vpop.permute.xlu0 %9558  ;;  %v10800_v48 = vld [vmem:[%s32195_s2] sm:$0xff] }
 0x283   : > { %v27060_v25 = vadd.f32 %v5997_v41, %v26884_v45  ;;  %v5508_v33 = vpop.f32.mrf.mxu0  ;;  %21201 = vmatprep.subr.msk.mxu1 %vm472_vm1, %v9566_v37  ;;  %v23489_v37 = vmov 0  }
 0x284   : > { %v27066_v47 = vadd.f32 %v5508_v33, %v26890_v34  ;;  %v6001_v26 = vpop.f32.mrf.mxu1  ;;  %21181 = vmatmul.mubr.msk.f32.gmra.mxu1 %vm462_vm2, %v27046_v20  ;;  %v27083_v34 = vld [vmem:[%s32194_s1 + $0x208] sm:$0x3]  ;;  %23376 = vset.pattern.permute.xlu0 %v23489_v37 }
 0x285   : > { %v27075_v4 = vadd.f32 %v6001_v26, %v26899_v12  ;;  %v5660_v45 = vpop.f32.mrf.mxu0  ;;  %21162 = vmatmul.mubr.msk.f32.vlgmr.msra.gmra.mxu0 %vm462_vm2, %v26837_v51  ;;  %9349 = vmatprep.mubr.f32.mxu1 %v32207_v0 }
 0x286   : > { %v27086_v29 = vadd.f32 %v5660_v45, %v26910_v59  ;;  %21174 = vmatpush1.msk.msra.mxu0 %vm472_vm1, %v9151_v42  ;;  %v6003_v21 = vpop.f32.mrf.mxu1  ;;  %9008 = vmatprep.mubr.f32.mxu0 %v32207_v0  ;;  %v27099_v59 = vpop.permute.xlu1 %9560 }
 0x287   : > { %v27091_v12 = vadd.f32 %v6003_v21, %v26915_v1  ;;  %v5662_v43 = vpop.f32.mrf.mxu0  ;;  %21183 = vmatprep.subr.msk.mxu0 %vm472_vm1, %v9146_v15  ;;  %v27107_v1 = vpop.permute.xlu0 %9966  ;;  %10805 = vperm.xlu0 %23376, %v10800_v48  }
 0x288   : > { %v27095_v51 = vadd.f32 %v5662_v43, %v26919_v23  ;;  %v6007_v40 = vpop.f32.mrf.mxu1  ;;  %21182 = vmatmul.mubr.msk.f32.gmra.mxu1 %vm462_vm2, %v27083_v34  ;;  %23377 = vset.pattern.permute.xlu1 %v23489_v37 }
 0x289   : > { %v27102_v31 = vadd.f32 %v6007_v40, %v26924_v52  ;;  %v5666_v55 = vpop.f32.mrf.mxu0  ;;  %21163 = vmatmul.mubr.msk.f32.gmra.mxu0 %vm462_vm2, %v26870_v16  ;;  %9503 = vmatprep.mubr.f32.mxu1 %v32207_v0  ;;  %v9567_v52 = vsel %vm9562_vm15, %v26961_v32, %v27002_v28 }
 0x28a   : > { %v27110_v23 = vadd.f32 %v5666_v55, %v26932_v24  ;;  %v6009_v60 = vpop.f32.mrf.mxu1  ;;  %9014 = vmatprep.mubr.f32.mxu0 %v32207_v0  ;;  %v9570_v24 = vsel %vm9562_vm15, %v27099_v59, %v26971_v3  ;;  %v27140_v8 = vpop.permute.xlu1 %9968 }
 0x28b   : > { %v27114_v14 = vadd.f32 %v6009_v60, %v26936_v27  ;;  %v5668_v38 = vpop.f32.mrf.mxu0 }
 0x28c   : > { %v27121_v16 = vadd.f32 %v5668_v38, %v26943_v61  ;;  %v6161_v7 = vpop.f32.mrf.mxu1  ;;  %21190 = vmatmul.mubr.msk.f32.vlgmr.msra.gmra.mxu1 %vm462_vm2, %v27013_v35  ;;  %v9563_v38 = vsel %vm9562_vm15, %v27063_v53, %v27099_v59 }
 0x28d   : > { %v27130_v27 = vadd.f32 %v6161_v7, %v26951_v54  ;;  %v5672_v30 = vpop.f32.mrf.mxu0  ;;  %21164 = vmatmul.mubr.msk.f32.gmra.mxu0 %vm462_vm2, %v26907_v6  ;;  %9509 = vmatprep.mubr.f32.mxu1 %v32207_v0  ;;  %v9147_v54 = vsel %vm9144_vm14, %v26840_v58, %v26877_v44  ;;  %v9568_v58 = vsel %vm9562_vm15, %v26929_v13, %v26961_v32 }
 0x28e   : > { %v27136_v61 = vadd.f32 %v5672_v30, %v26957_v39  ;;  %v6163_v28 = vpop.f32.mrf.mxu1  ;;  %9254 = vmatprep.mubr.f32.mxu0 %v32207_v0  ;;  %21202 = vmatpush1.msk.msra.mxu1 %vm472_vm1, %v9567_v52  ;;  %v27150_v39 = vpop.permute.xlu0 %9964  ;;  %v10802_v52 = vld [vmem:[%s32195_s2 + $0x10] sm:$0x3] }
 0x28f   : > { %v27147_v22 = vadd.f32 %v6163_v28, %v26968_v18  ;;  %v5674_v6 = vpop.f32.mrf.mxu0  ;;  %21211 = vmatprep.subr.msk.mxu1 %vm472_vm1, %v9570_v24  ;;  %v27187_v45 = vpop.permute.xlu1 %9970 }
 0x290   : > { %v27156_v41 = vadd.f32 %v5674_v6, %v26974_v57  ;;  %v6167_v42 = vpop.f32.mrf.mxu1  ;;  %21191 = vmatmul.mubr.msk.f32.gmra.mxu1 %vm462_vm2, %v27046_v20 }
 0x291   : > { %v27165_v44 = vadd.f32 %v6167_v42, %v26983_v10  ;;  %v5912_v18 = vpop.f32.mrf.mxu0  ;;  %21175 = vmatmul.mubr.msk.f32.vlgmr.msra.gmra.mxu0 %vm462_vm2, %v27013_v35  ;;  %9515 = vmatprep.mubr.f32.mxu1 %v32207_v0  ;;  %v10801_v10 = vld [vmem:[%s32195_s2 + $0x8] sm:$0xff] }
 0x292   : > { %v27171_v57 = vadd.f32 %v5912_v18, %v26989_v56  ;;  %21184 = vmatpush1.msk.msra.mxu0 %vm472_vm1, %v9147_v54  ;;  %v6169_v33 = vpop.f32.mrf.mxu1  ;;  %9260 = vmatprep.mubr.f32.mxu0 %v32207_v0  ;;  %v27201_v43 = vpop.permute.xlu0 %9972  ;;  %v9569_v54 = vsel %vm9562_vm15, %v26971_v3, %v26929_v13  ;;  %v9564_v13 = vsel %vm9562_vm15, %v27053_v49, %v27063_v53 }
 0x293   : > { %v27176_v32 = vadd.f32 %v6169_v33, %v26994_v5  ;;  %v5914_v26 = vpop.f32.mrf.mxu0  ;;  %21196 = vmatprep.subr.msk.mxu0 %vm472_vm1, %v9568_v58  ;;  %10810 = vperm.xlu1 %23377, %v10801_v10  }
 0x294   : > { %v27183_v15 = vadd.f32 %v5914_v26, %v26998_v19  ;;  %v6173_v56 = vpop.f32.mrf.mxu1  ;;  %21192 = vmatmul.mubr.msk.f32.gmra.mxu1 %vm462_vm2, %v27083_v34  ;;  %v27198_v19 = vld [vmem:[%s32194_s1 + $0x210] sm:$0xff] }
 0x295   : > { %v27190_v5 = vadd.f32 %v6173_v56, %v27005_v17  ;;  %v5918_v21 = vpop.f32.mrf.mxu0  ;;  %21176 = vmatmul.mubr.msk.f32.gmra.mxu0 %vm462_vm2, %v27046_v20  ;;  %9755 = vmatprep.mubr.f32.mxu1 %v32207_v0 }
 0x296   : > { %v27204_v40 = vadd.f32 %v5918_v21, %v27019_v46  ;;  %v6175_v17 = vpop.f32.mrf.mxu1  ;;  %9266 = vmatprep.mubr.f32.mxu0 %v32207_v0 }
 0x297   : > { %v27208_v55 = vadd.f32 %v6175_v17, %v27023_v50  ;;  %v5920_v60 = vpop.f32.mrf.mxu0  ;;  %v9984_v50 = vsel %vm9980_vm8, %v27187_v45, %v27201_v43  ;;  %10815 = vperm.xlu1 %23377, %v10802_v52  }
 0x298   : > { %v27218_v7 = vadd.f32 %v5920_v60, %v27029_v62  ;;  %v6413_v46 = vpop.f32.mrf.mxu1  ;;  %21203 = vmatmul.mubr.msk.f32.vlgmr.msra.gmra.mxu1 %vm462_vm2, %v27198_v19  ;;  %v27235_v62 = vld [vmem:[%s32194_s1 + $0x218] sm:$0xff] }
 0x299   : > { %v27227_v24 = vadd.f32 %v6413_v46, %v27038_v2  ;;  %v5924_v59 = vpop.f32.mrf.mxu0  ;;  %21177 = vmatmul.mubr.msk.f32.gmra.mxu0 %vm462_vm2, %v27083_v34  ;;  %9761 = vmatprep.mubr.f32.mxu1 %v32207_v0  ;;  %v27242_v2 = vpop.permute.xlu1 %9974 }
 0x29a   : > { %v27238_v30 = vadd.f32 %v5924_v59, %v27049_v63  ;;  %v6415_v28 = vpop.f32.mrf.mxu1  ;;  %9420 = vmatprep.mubr.f32.mxu0 %v32207_v0  ;;  %21212 = vmatpush1.msk.msra.mxu1 %vm472_vm1, %v9563_v38  ;;  %v27252_v63 = vpop.permute.xlu0 %9976 }
 0x29b   : > { %v27249_v6 = vadd.f32 %v6415_v28, %v27060_v25  ;;  %v5926_v37 = vpop.f32.mrf.mxu0  ;;  %21224 = vmatprep.subr.msk.mxu1 %vm472_vm1, %v9984_v50 }
 0x29c   : > { %v27255_v48 = vadd.f32 %v5926_v37, %v27066_v47  ;;  %v6419_v42 = vpop.f32.mrf.mxu1  ;;  %21204 = vmatmul.mubr.msk.f32.gmra.mxu1 %vm462_vm2, %v27235_v62  ;;  %v27272_v47 = vld [vmem:[%s32194_s1 + $0x220] sm:$0x3] }
 0x29d   : > { %v27264_v3 = vadd.f32 %v6419_v42, %v27075_v4  ;;  %v6078_v25 = vpop.f32.mrf.mxu0  ;;  %21185 = vmatmul.mubr.msk.f32.vlgmr.msra.gmra.mxu0 %vm462_vm2, %v27013_v35  ;;  %9767 = vmatprep.mubr.f32.mxu1 %v32207_v0 }
 0x29e   : > { %v27275_v58 = vadd.f32 %v6078_v25, %v27086_v29  ;;  %21197 = vmatpush1.msk.msra.mxu0 %vm472_vm1, %v9569_v54  ;;  %v6421_v53 = vpop.f32.mrf.mxu1  ;;  %9426 = vmatprep.mubr.f32.mxu0 %v32207_v0  ;;  %v9979_v29 = vpop.permute.xlu1 %9978 }
 0x29f   : > { %v27280_v4 = vadd.f32 %v6421_v53, %v27091_v12  ;;  %v6080_v18 = vpop.f32.mrf.mxu0  ;;  %21206 = vmatprep.subr.msk.mxu0 %vm472_vm1, %v9564_v13  ;;  %v27294_v12 = vpop.permute.xlu0 %10384 }
 0x2a0   : > { %v27284_v35 = vadd.f32 %v6080_v18, %v27095_v51  ;;  %v6425_v33 = vpop.f32.mrf.mxu1  ;;  %21205 = vmatmul.mubr.msk.f32.gmra.mxu1 %vm462_vm2, %v27272_v47 }
 0x2a1   : > { %v27289_v26 = vadd.f32 %v6425_v33, %v27102_v31  ;;  %v6084_v10 = vpop.f32.mrf.mxu0  ;;  %21186 = vmatmul.mubr.msk.f32.gmra.mxu0 %vm462_vm2, %v27046_v20  ;;  %9921 = vmatprep.mubr.f32.mxu1 %v32207_v0  ;;  %v9985_v31 = vsel %vm9980_vm8, %v27140_v8, %v27187_v45  ;;  %v9981_v33 = vsel %vm9980_vm8, %v27252_v63, %v9979_v29 }
 0x2a2   : > { %v27297_v56 = vadd.f32 %v6084_v10, %v27110_v23  ;;  %v6427_v51 = vpop.f32.mrf.mxu1  ;;  %9432 = vmatprep.mubr.f32.mxu0 %v32207_v0  ;;  %v9988_v23 = vsel %vm9980_vm8, %v9979_v29, %v27150_v39  ;;  %v27326_v52 = vpop.permute.xlu1 %10386 }
 0x2a3   : > { %v27301_v21 = vadd.f32 %v6427_v51, %v27114_v14  ;;  %v6086_v17 = vpop.f32.mrf.mxu0 }
 0x2a4   : > { %v27308_v20 = vadd.f32 %v6086_v17, %v27121_v16  ;;  %v6579_v60 = vpop.f32.mrf.mxu1  ;;  %21213 = vmatmul.mubr.msk.f32.vlgmr.msra.gmra.mxu1 %vm462_vm2, %v27198_v19 }
 0x2a5   : > { %v27316_v14 = vadd.f32 %v6579_v60, %v27130_v27  ;;  %v6090_v38 = vpop.f32.mrf.mxu0  ;;  %21187 = vmatmul.mubr.msk.f32.gmra.mxu0 %vm462_vm2, %v27083_v34  ;;  %9927 = vmatprep.mubr.f32.mxu1 %v32207_v0  ;;  %v9565_v27 = vsel %vm9562_vm15, %v27016_v36, %v27053_v49  ;;  %v9986_v36 = vsel %vm9980_vm8, %v27107_v1, %v27140_v8 }
 0x2a6   : > { %v27322_v16 = vadd.f32 %v6090_v38, %v27136_v61  ;;  %v6581_v45 = vpop.f32.mrf.mxu1  ;;  %9672 = vmatprep.mubr.f32.mxu0 %v32207_v0  ;;  %21225 = vmatpush1.msk.msra.mxu1 %vm472_vm1, %v9985_v31  ;;  %v27336_v61 = vpop.permute.xlu0 %10382 }
 0x2a7   : > { %v27333_v46 = vadd.f32 %v6581_v45, %v27147_v22  ;;  %v6092_v34 = vpop.f32.mrf.mxu0  ;;  %21234 = vmatprep.subr.msk.mxu1 %vm472_vm1, %v9988_v23 }
 0x2a8   : > { %v27339_v50 = vadd.f32 %v6092_v34, %v27156_v41  ;;  %v6585_v59 = vpop.f32.mrf.mxu1  ;;  %21214 = vmatmul.mubr.msk.f32.gmra.mxu1 %vm462_vm2, %v27235_v62 }
 0x2a9   : > { %v27348_v49 = vadd.f32 %v6585_v59, %v27165_v44  ;;  %v6330_v22 = vpop.f32.mrf.mxu0  ;;  %21198 = vmatmul.mubr.msk.f32.vlgmr.msra.gmra.mxu0 %vm462_vm2, %v27198_v19  ;;  %9933 = vmatprep.mubr.f32.mxu1 %v32207_v0 }
 0x2aa   : > { %v27354_v41 = vadd.f32 %v6330_v22, %v27171_v57  ;;  %21207 = vmatpush1.msk.msra.mxu0 %vm472_vm1, %v9565_v27  ;;  %v6587_v28 = vpop.f32.mrf.mxu1  ;;  %9678 = vmatprep.mubr.f32.mxu0 %v32207_v0  ;;  %v10389_v57 = vpop.permute.xlu1 %10388 }
 0x2ab   : > { %v27359_v54 = vadd.f32 %v6587_v28, %v27176_v32  ;;  %v6332_v8 = vpop.f32.mrf.mxu0  ;;  %21219 = vmatprep.subr.msk.mxu0 %vm472_vm1, %v9986_v36  ;;  %v27376_v32 = vld [vmem:[%s32194_s1 + $0x228] sm:$0xff] }
 0x2ac   : > { %v27363_v44 = vadd.f32 %v6332_v8, %v27183_v15  ;;  %v6591_v37 = vpop.f32.mrf.mxu1  ;;  %21215 = vmatmul.mubr.msk.f32.gmra.mxu1 %vm462_vm2, %v27272_v47  ;;  %v27379_v15 = vpop.permute.xlu0 %10390 }
 0x2ad   : > { %32267 = vst [vmem:[#allocation3_spill] sm:$0xff] %v27359_v54  ;;  %v27368_v42 = vadd.f32 %v6591_v37, %v27190_v5  ;;  %v6336_v13 = vpop.f32.mrf.mxu0  ;;  %21199 = vmatmul.mubr.msk.f32.gmra.mxu0 %vm462_vm2, %v27235_v62  ;;  %10173 = vmatprep.mubr.f32.mxu1 %v32207_v0 }
 0x2ae   : > { %v27382_v25 = vadd.f32 %v6336_v13, %v27204_v40  ;;  %v6593_v5 = vpop.f32.mrf.mxu1  ;;  %9684 = vmatprep.mubr.f32.mxu0 %v32207_v0  ;;  %v10402_v40 = vsel %vm10398_vm9, %v10389_v57, %v27379_v15  ;;  %v27423_v38 = vpop.permute.xlu1 %10392 }
 0x2af   : > { %v27386_v53 = vadd.f32 %v6593_v5, %v27208_v55  ;;  %v6338_v18 = vpop.f32.mrf.mxu0 }
 0x2b0   : > { %v27392_v10 = vadd.f32 %v6338_v18, %v27218_v7  ;;  %v6831_v51 = vpop.f32.mrf.mxu1  ;;  %21226 = vmatmul.mubr.msk.f32.vlgmr.msra.gmra.mxu1 %vm462_vm2, %v27376_v32  ;;  %v27408_v7 = vld [vmem:[%s32194_s1 + $0x230] sm:$0xff] }
 0x2b1   : > { %32268 = vst [vmem:[#allocation4_spill] sm:$0xff] %v27386_v53  ;;  %v27400_v17 = vadd.f32 %v6831_v51, %v27227_v24  ;;  %v6342_v55 = vpop.f32.mrf.mxu0  ;;  %21200 = vmatmul.mubr.msk.f32.gmra.mxu0 %vm462_vm2, %v27272_v47  ;;  %10179 = vmatprep.mubr.f32.mxu1 %v32207_v0  ;;  %v9987_v24 = vsel %vm9980_vm8, %v27150_v39, %v27107_v1 }
 0x2b2   : > { %v27411_v29 = vadd.f32 %v6342_v55, %v27238_v30  ;;  %v6833_v31 = vpop.f32.mrf.mxu1  ;;  %9838 = vmatprep.mubr.f32.mxu0 %v32207_v0  ;;  %21235 = vmatpush1.msk.msra.mxu1 %vm472_vm1, %v9981_v33  ;;  %v9982_v1 = vsel %vm9980_vm8, %v27242_v2, %v27252_v63  ;;  %v10404_v33 = vsel %vm10398_vm9, %v27294_v12, %v27326_v52 }
 0x2b3   : > { %v27420_v60 = vadd.f32 %v6833_v31, %v27249_v6  ;;  %v6344_v23 = vpop.f32.mrf.mxu0  ;;  %21247 = vmatprep.subr.msk.mxu1 %vm472_vm1, %v10402_v40  ;;  %v10395_v40 = vpop.permute.xlu0 %10394  ;;  %v27539_v31 = vld [vmem:[%s32194_s1 + $0x240] sm:$0xff] }
 0x2b4   : > { %v27426_v30 = vadd.f32 %v6344_v23, %v27255_v48  ;;  %v6837_v45 = vpop.f32.mrf.mxu1  ;;  %21227 = vmatmul.mubr.msk.f32.gmra.mxu1 %vm462_vm2, %v27408_v7  ;;  %v27443_v48 = vld [vmem:[%s32194_s1 + $0x238] sm:$0x3] }
 0x2b5   : > { %v27435_v39 = vadd.f32 %v6837_v45, %v27264_v3  ;;  %v6496_v6 = vpop.f32.mrf.mxu0  ;;  %21208 = vmatmul.mubr.msk.f32.vlgmr.msra.gmra.mxu0 %vm462_vm2, %v27198_v19  ;;  %10185 = vmatprep.mubr.f32.mxu1 %v32207_v0 }
 0x2b6   : > { %v27446_v27 = vadd.f32 %v6496_v6, %v27275_v58  ;;  %21220 = vmatpush1.msk.msra.mxu0 %vm472_vm1, %v9987_v24  ;;  %v6839_v63 = vpop.f32.mrf.mxu1  ;;  %9844 = vmatprep.mubr.f32.mxu0 %v32207_v0 }
 0x2b7   : > { %v27451_v3 = vadd.f32 %v6839_v63, %v27280_v4  ;;  %v6498_v34 = vpop.f32.mrf.mxu0  ;;  %21229 = vmatprep.subr.msk.mxu0 %vm472_vm1, %v9982_v1  ;;  %v10397_v4 = vpop.permute.xlu1 %10396  ;;  %v27563_v63 = vld [vmem:[%s32194_s1 + $0x248] sm:$0xff] }
 0x2b8   : > { %v27455_v19 = vadd.f32 %v6498_v34, %v27284_v35  ;;  %v6843_v59 = vpop.f32.mrf.mxu1  ;;  %21228 = vmatmul.mubr.msk.f32.gmra.mxu1 %vm462_vm2, %v27443_v48  ;;  %v10399_v23 = vsel %vm10398_vm9, %v10395_v40, %v10397_v4 }
 0x2b9   : > { %v27460_v58 = vadd.f32 %v6843_v59, %v27289_v26  ;;  %v6502_v36 = vpop.f32.mrf.mxu0  ;;  %21209 = vmatmul.mubr.msk.f32.gmra.mxu0 %vm462_vm2, %v27235_v62  ;;  %10339 = vmatprep.mubr.f32.mxu1 %v32207_v0  ;;  %v10403_v26 = vsel %vm10398_vm9, %v27326_v52, %v10389_v57 }
 0x2ba   : > { %v27466_v22 = vadd.f32 %v6502_v36, %v27297_v56  ;;  %v6845_v28 = vpop.f32.mrf.mxu1  ;;  %9850 = vmatprep.mubr.f32.mxu0 %v32207_v0  ;;  %v10406_v56 = vsel %vm10398_vm9, %v10397_v4, %v27336_v61 }
 0x2bb   : > { %v27470_v35 = vadd.f32 %v6845_v28, %v27301_v21  ;;  %v6504_v8 = vpop.f32.mrf.mxu0 }
 0x2bc   : > { %v27476_v37 = vadd.f32 %v6504_v8, %v27308_v20  ;;  %v6997_v62 = vpop.f32.mrf.mxu1  ;;  %21236 = vmatmul.mubr.msk.f32.vlgmr.msra.gmra.mxu1 %vm462_vm2, %v27376_v32 }
 0x2bd   : > { %v27484_v13 = vadd.f32 %v6997_v62, %v27316_v14  ;;  %v6508_v21 = vpop.f32.mrf.mxu0  ;;  %21210 = vmatmul.mubr.msk.f32.gmra.mxu0 %vm462_vm2, %v27272_v47  ;;  %10345 = vmatprep.mubr.f32.mxu1 %v32207_v0  ;;  %v9983_v14 = vsel %vm9980_vm8, %v27201_v43, %v27242_v2 }
 0x2be   : > { %32269 = vst [vmem:[#allocation5_spill] sm:$0xff] %v27476_v37  ;;  %v27490_v20 = vadd.f32 %v6508_v21, %v27322_v16  ;;  %v6999_v57 = vpop.f32.mrf.mxu1  ;;  %10090 = vmatprep.mubr.f32.mxu0 %v32207_v0  ;;  %21248 = vmatpush1.msk.msra.mxu1 %vm472_vm1, %v10403_v26  ;;  %v10918_v37 = vld [vmem:[%s32196_s3 + $0x1a0] sm:$0xff] }
 0x2bf   : > { %v27499_v5 = vadd.f32 %v6999_v57, %v27333_v46  ;;  %v6510_v18 = vpop.f32.mrf.mxu0  ;;  %21257 = vmatprep.subr.msk.mxu1 %vm472_vm1, %v10406_v56 }
 0x2c0   : > { %v27503_v47 = vadd.f32 %v6510_v18, %v27339_v50  ;;  %v7003_v16 = vpop.f32.mrf.mxu1  ;;  %21237 = vmatmul.mubr.msk.f32.gmra.mxu1 %vm462_vm2, %v27408_v7  ;;  %v10401_v18 = vsel %vm10398_vm9, %v27379_v15, %v27423_v38 }
 0x2c1   : > { %v27512_v43 = vadd.f32 %v7003_v16, %v27348_v49  ;;  %v6748_v2 = vpop.f32.mrf.mxu0  ;;  %21221 = vmatmul.mubr.msk.f32.vlgmr.msra.gmra.mxu0 %vm462_vm2, %v27376_v32  ;;  %10351 = vmatprep.mubr.f32.mxu1 %v32207_v0 }
 0x2c2   : > { %32270 = vst [vmem:[#allocation6_spill] sm:$0xff] %v27503_v47  ;;  %v27518_v46 = vadd.f32 %v6748_v2, %v27354_v41  ;;  %21230 = vmatpush1.msk.msra.mxu0 %vm472_vm1, %v9983_v14  ;;  %v27521_v50 = vpop.f32.mrf.mxu1  ;;  %10096 = vmatprep.mubr.f32.mxu0 %v32207_v0 }
 0x2c3   : > { %32271 = vst [vmem:[#allocation7_spill] sm:$0xff] %v27521_v50  ;;  %v6750_v51 = vpop.f32.mrf.mxu0  ;;  %21242 = vmatprep.subr.msk.mxu0 %vm472_vm1, %v10404_v33 }
 0x2c4   : > { %v27526_v52 = vadd.f32 %v6750_v51, %v27363_v44  ;;  %v7009_v49 = vpop.f32.mrf.mxu1  ;;  %21238 = vmatmul.mubr.msk.f32.gmra.mxu1 %vm462_vm2, %v27443_v48 }
 0x2c5   : > { %v27531_v41 = vadd.f32 %v7009_v49, %v27368_v42  ;;  %v6754_v55 = vpop.f32.mrf.mxu0  ;;  %21222 = vmatmul.mubr.msk.f32.gmra.mxu0 %vm462_vm2, %v27408_v7  ;;  %10591 = vmatprep.mubr.f32.mxu1 %v32207_v0 }
 0x2c6   : > { %v27542_v44 = vadd.f32 %v6754_v55, %v27382_v25  ;;  %v27544_v24 = vpop.f32.mrf.mxu1  ;;  %10102 = vmatprep.mubr.f32.mxu0 %v32207_v0 }
 0x2c7   : > { %32272 = vst [vmem:[#allocation8_spill] sm:$0xff] %v27544_v24  ;;  %v6756_v42 = vpop.f32.mrf.mxu0 }
 0x2c8   : > { %v27550_v45 = vadd.f32 %v6756_v42, %v27392_v10  ;;  %v7249_v1 = vpop.f32.mrf.mxu1  ;;  %21249 = vmatmul.mubr.msk.f32.vlgmr.msra.gmra.mxu1 %vm462_vm2, %v27539_v31  ;;  %v10959_v42 = vld [vmem:[%s32196_s3 + $0x2e8] sm:$0xff] }
 0x2c9   : > { %v27555_v6 = vadd.f32 %v7249_v1, %v27400_v17  ;;  %v6760_v25 = vpop.f32.mrf.mxu0  ;;  %21223 = vmatmul.mubr.msk.f32.gmra.mxu0 %vm462_vm2, %v27443_v48  ;;  %10597 = vmatprep.mubr.f32.mxu1 %v32207_v0  ;;  %v10405_v17 = vsel %vm10398_vm9, %v27336_v61, %v27294_v12  ;;  %v27593_v12 = vld [vmem:[%s32194_s1 + $0x250] sm:$0x3] }
 0x2ca   : > { %v27566_v10 = vadd.f32 %v6760_v25, %v27411_v29  ;;  %v27568_v34 = vpop.f32.mrf.mxu1  ;;  %10256 = vmatprep.mubr.f32.mxu0 %v32207_v0  ;;  %21258 = vmatpush1.msk.msra.mxu1 %vm472_vm1, %v10399_v23  ;;  %v10400_v29 = vsel %vm10398_vm9, %v27423_v38, %v10395_v40 }
 0x2cb   : > { %v6762_v59 = vpop.f32.mrf.mxu0 }
 0x2cc   : > { %v27577_v36 = vadd.f32 %v6762_v59, %v27426_v30  ;;  %v7255_v4 = vpop.f32.mrf.mxu1  ;;  %21250 = vmatmul.mubr.msk.f32.gmra.mxu1 %vm462_vm2, %v27563_v63 }
 0x2cd   : > { %v27585_v28 = vadd.f32 %v7255_v4, %v27435_v39  ;;  %v6914_v8 = vpop.f32.mrf.mxu0  ;;  %21231 = vmatmul.mubr.msk.f32.vlgmr.msra.gmra.mxu0 %vm462_vm2, %v27376_v32  ;;  %10603 = vmatprep.mubr.f32.mxu1 %v32207_v0 }
 0x2ce   : > { %32273 = vst [vmem:[#allocation9_spill] sm:$0xff] %v27577_v36  ;;  %v27596_v61 = vadd.f32 %v6914_v8, %v27446_v27  ;;  %21243 = vmatpush1.msk.msra.mxu0 %vm472_vm1, %v10405_v17  ;;  %v27599_v30 = vpop.f32.mrf.mxu1  ;;  %10262 = vmatprep.mubr.f32.mxu0 %v32207_v0  ;;  %v10957_v17 = vld [vmem:[%s32196_s3 + $0x2d8] sm:$0xff]  ;;  %v10955_v8 = vld [vmem:[%s32196_s3 + $0x2c8] sm:$0xff] }
 0x2cf   : > { %v6916_v39 = vpop.f32.mrf.mxu0  ;;  %21252 = vmatprep.subr.msk.mxu0 %vm472_vm1, %v10400_v29 }
 0x2d0   : > { %v27604_v32 = vadd.f32 %v6916_v39, %v27455_v19  ;;  %v7261_v26 = vpop.f32.mrf.mxu1  ;;  %21251 = vmatmul.mubr.msk.f32.gmra.mxu1 %vm462_vm2, %v27593_v12 }
 0x2d1   : > { %v27609_v62 = vadd.f32 %v7261_v26, %v27460_v58  ;;  %v6920_v27 = vpop.f32.mrf.mxu0  ;;  %21232 = vmatmul.mubr.msk.f32.gmra.mxu0 %vm462_vm2, %v27408_v7  ;;  %10757 = vmatprep.mubr.f32.mxu1 %v32207_v0 }
 0x2d2   : > { %32274 = vst [vmem:[#allocation10_spill] sm:$0xff] %v27604_v32  ;;  %v27615_v56 = vadd.f32 %v6920_v27, %v27466_v22  ;;  %v27617_v21 = vpop.f32.mrf.mxu1  ;;  %10268 = vmatprep.mubr.f32.mxu0 %v32207_v0 }
 0x2d3   : > { %v27620_v19 = vpop.f32.mrf.mxu0 }
 0x2d4   : > { %32275 = vst [vmem:[#allocation11_spill] sm:$0xff] %v27620_v19  ;;  %v7415_v57 = vpop.f32.mrf.mxu1  ;;  %21259 = vmatmul.mubr.msk.f32.vlgmr.msra.gmra.mxu1 %vm462_vm2, %v27539_v31 }
 0x2d5   : > { %v27625_v58 = vadd.f32 %v7415_v57, %v27484_v13  ;;  %v6926_v14 = vpop.f32.mrf.mxu0  ;;  %21233 = vmatmul.mubr.msk.f32.gmra.mxu0 %vm462_vm2, %v27443_v48  ;;  %10763 = vmatprep.mubr.f32.mxu1 %v32207_v0  ;;  %v10953_v57 = vld [vmem:[%s32196_s3 + $0x2b8] sm:$0xff] }
 0x2d6   : > { %v27631_v7 = vadd.f32 %v6926_v14, %v27490_v20  ;;  %v27633_v22 = vpop.f32.mrf.mxu1  ;;  %10508 = vmatprep.mubr.f32.mxu0 %v32207_v0 }
 0x2d7   : > { %v27640_v13 = vpop.f32.mrf.mxu0 }
 0x2d8   : > { %32276 = vst [vmem:[#allocation12_spill] sm:$0xff] %v27640_v13  ;;  %v7421_v16 = vpop.f32.mrf.mxu1  ;;  %21260 = vmatmul.mubr.msk.f32.gmra.mxu1 %vm462_vm2, %v27563_v63  ;;  %v10926_v13 = vld [vmem:[%s32196_s3 + $0x1e0] sm:$0xff] }
 0x2d9   : > { %v27645_v48 = vadd.f32 %v7421_v16, %v27512_v43  ;;  %v7166_v20 = vpop.f32.mrf.mxu0  ;;  %21244 = vmatmul.mubr.msk.f32.vlgmr.msra.gmra.mxu0 %vm462_vm2, %v27539_v31  ;;  %10769 = vmatprep.mubr.f32.mxu1 %v32207_v0 }
 0x2da   : > { %v27651_v33 = vadd.f32 %v7166_v20, %v27518_v46  ;;  %21253 = vmatpush1.msk.msra.mxu0 %vm472_vm1, %v10401_v18  ;;  %v27654_v15 = vpop.f32.mrf.mxu1  ;;  %10514 = vmatprep.mubr.f32.mxu0 %v32207_v0  ;;  %v10961_v46 = vld [vmem:[%s32196_s3 + $0x2f8] sm:$0xff]  ;;  %vm11501_vm1 = vcmask 1041408  }
 0x2db   : > { %32277 = vst [vmem:[#allocation13_spill] sm:$0xff] %v27654_v15  ;;  %v27657_v38 = vpop.f32.mrf.mxu0  ;;  %11205 = vmatprep.subr.mxu1 %v10961_v46  ;;  %v10949_v46 = vld [vmem:[%s32196_s3 + $0x298] sm:$0xff] }
 0x2dc   : > { %v7427_v2 = vpop.f32.mrf.mxu1  ;;  %21261 = vmatmul.mubr.msk.f32.gmra.mxu1 %vm462_vm2, %v27593_v12 }
 0x2dd   : > { %v27662_v43 = vadd.f32 %v7427_v2, %v27531_v41  ;;  %v7172_v51 = vpop.f32.mrf.mxu0  ;;  %21245 = vmatmul.mubr.msk.f32.gmra.mxu0 %vm462_vm2, %v27563_v63  ;;  %v10960_v41 = vld [vmem:[%s32196_s3 + $0x2f0] sm:$0xff] }
 0x2de   : > { %v27670_v49 = vadd.f32 %v7172_v51, %v27542_v44  ;;  %v27672_v40 = vpop.f32.mrf.mxu1  ;;  %10520 = vmatprep.mubr.f32.mxu0 %v32207_v0  ;;  %11206 = vmatpush1.msra.mxu1 %v10960_v41  ;;  %v10958_v44 = vld [vmem:[%s32196_s3 + $0x2e0] sm:$0xff] }
 0x2df   : > { %32278 = vst [vmem:[#allocation14_spill] sm:$0xff] %v27672_v40  ;;  %v27678_v55 = vpop.f32.mrf.mxu0  ;;  %11207 = vmatprep.subr.mxu1 %v10959_v42 }
 0x2e0   : > { %v7667_v23 = vpop.f32.mrf.mxu1  ;;  %11208 = vmatpush1.msra.mxu1 %v10958_v44 }
 0x2e1   : > { %v27687_v1 = vadd.f32 %v7667_v23, %v27555_v6  ;;  %v7178_v25 = vpop.f32.mrf.mxu0  ;;  %21246 = vmatmul.mubr.msk.f32.gmra.mxu0 %vm462_vm2, %v27593_v12  ;;  %11209 = vmatprep.subr.mxu1 %v10957_v17  ;;  %v10956_v6 = vld [vmem:[%s32196_s3 + $0x2d0] sm:$0xff] }
 0x2e2   : > { %v27695_v59 = vadd.f32 %v7178_v25, %v27566_v10  ;;  %v27697_v4 = vpop.f32.mrf.mxu1  ;;  %10674 = vmatprep.mubr.f32.mxu0 %v32207_v0  ;;  %11210 = vmatpush1.msra.mxu1 %v10956_v6  ;;  %v10954_v10 = vld [vmem:[%s32196_s3 + $0x2c0] sm:$0xff]  ;;  %v10945_v6 = vld [vmem:[%s32196_s3 + $0x278] sm:$0xff] }
 0x2e3   : > { %v27703_v29 = vpop.f32.mrf.mxu0  ;;  %11211 = vmatprep.subr.mxu1 %v10955_v8 }
 0x2e4   : > { %32279 = vst [vmem:[#allocation15_spill] sm:$0xff] %v27703_v29  ;;  %v7673_v39 = vpop.f32.mrf.mxu1  ;;  %11212 = vmatpush1.msra.mxu1 %v10954_v10  ;;  %v10944_v10 = vld [vmem:[%s32196_s3 + $0x270] sm:$0xff] }
 0x2e5   : > { %v27712_v26 = vadd.f32 %v7673_v39, %v27585_v28  ;;  %v7332_v27 = vpop.f32.mrf.mxu0  ;;  %21254 = vmatmul.mubr.msk.f32.vlgmr.msra.gmra.mxu0 %vm462_vm2, %v27539_v31  ;;  %11213 = vmatprep.subr.mxu1 %v10953_v57  ;;  %v10952_v28 = vld [vmem:[%s32196_s3 + $0x2b0] sm:$0xff]  ;;  %v10951_v31 = vld [vmem:[%s32196_s3 + $0x2a8] sm:$0xff] }
 0x2e6   : > { %v27720_v14 = vadd.f32 %v7332_v27, %v27596_v61  ;;  %v27722_v18 = vpop.f32.mrf.mxu1  ;;  %10680 = vmatprep.mubr.f32.mxu0 %v32207_v0  ;;  %11214 = vmatpush1.msra.mxu1 %v10952_v28  ;;  %v10950_v61 = vld [vmem:[%s32196_s3 + $0x2a0] sm:$0xff]  ;;  %v10943_v27 = vld [vmem:[%s32196_s3 + $0x268] sm:$0xff] }
 0x2e7   : > { %v27728_v16 = vpop.f32.mrf.mxu0  ;;  %11215 = vmatprep.subr.mxu1 %v10951_v31  ;;  %v10895_v28 = vld [vmem:[%s32196_s3 + $0xe8] sm:$0xff]  ;;  %v10942_v31 = vld [vmem:[%s32196_s3 + $0x260] sm:$0xff] }
 0x2e8   : > { %32280 = vst [vmem:[#allocation16_spill] sm:$0xff] %v27728_v16  ;;  %v7679_v20 = vpop.f32.mrf.mxu1  ;;  %11216 = vmatpush1.msra.mxu1 %v10950_v61 }
 0x2e9   : > { %v27737_v2 = vadd.f32 %v7679_v20, %v27609_v62  ;;  %v7338_v51 = vpop.f32.mrf.mxu0  ;;  %21255 = vmatmul.mubr.msk.f32.gmra.mxu0 %vm462_vm2, %v27563_v63  ;;  %11217 = vmatprep.subr.mxu1 %v10949_v46  ;;  %v10948_v62 = vld [vmem:[%s32196_s3 + $0x290] sm:$0xff]  ;;  %v10947_v63 = vld [vmem:[%s32196_s3 + $0x288] sm:$0xff]  ;;  %v10941_v46 = vld [vmem:[%s32196_s3 + $0x258] sm:$0xff] }
 0x2ea   : > { %v27745_v41 = vadd.f32 %v7338_v51, %v27615_v56  ;;  %v27747_v42 = vpop.f32.mrf.mxu1  ;;  %10686 = vmatprep.mubr.f32.mxu0 %v32207_v0  ;;  %11218 = vmatpush1.msra.mxu1 %v10948_v62  ;;  %v10946_v56 = vld [vmem:[%s32196_s3 + $0x280] sm:$0xff] }
 0x2eb   : > { %v27753_v23 = vpop.f32.mrf.mxu0  ;;  %11219 = vmatprep.subr.mxu1 %v10947_v63  ;;  %v10894_v51 = vld [vmem:[%s32196_s3 + $0xe0] sm:$0xff] }
 0x2ec   : > { %32281 = vst [vmem:[#allocation17_spill] sm:$0xff] %v27753_v23  ;;  %v7833_v44 = vpop.f32.mrf.mxu1  ;;  %11220 = vmatpush1.msra.mxu1 %v10946_v56  ;;  %v10922_v23 = vld [vmem:[%s32196_s3 + $0x1c0] sm:$0xff] }
 0x2ed   : > { %v27762_v25 = vadd.f32 %v7833_v44, %v27625_v58  ;;  %v7344_v17 = vpop.f32.mrf.mxu0  ;;  %21256 = vmatmul.mubr.msk.f32.gmra.mxu0 %vm462_vm2, %v27593_v12  ;;  %11221 = vmatprep.subr.mxu1 %v10945_v6  ;;  %v10897_v58 = vld [vmem:[%s32196_s3 + $0xf8] sm:$0xff]  ;;  %v10940_v44 = vld [vmem:[%s32196_s3 + $0x250] sm:$0xff]  ;;  %vm11482_vm2 = vcmask 146432  }
 0x2ee   : > { %v27770_v8 = vadd.f32 %v7344_v17, %v27631_v7  ;;  %v27772_v39 = vpop.f32.mrf.mxu1  ;;  %11122 = vmatprep.subr.mxu0 %v10897_v58  ;;  %11222 = vmatpush1.msra.mxu1 %v10944_v10  ;;  %v10896_v7 = vld [vmem:[%s32196_s3 + $0xf0] sm:$0xff]  ;;  %v10939_v17 = vld [vmem:[%s32196_s3 + $0x248] sm:$0xff]  ;;  %v10938_v10 = vld [vmem:[%s32196_s3 + $0x240] sm:$0xff] }
 0x2ef   : > { %v27780_v12 = vpop.f32.mrf.mxu0  ;;  %11123 = vmatpush1.msra.mxu0 %v10896_v7  ;;  %11223 = vmatprep.subr.mxu1 %v10943_v27  ;;  %v10891_v58 = vld [vmem:[%s32196_s3 + $0xc8] sm:$0xff] }
 0x2f0   : > { %32282 = vst [vmem:[#allocation18_spill] sm:$0xff] %v27780_v12  ;;  %v7839_v57 = vpop.f32.mrf.mxu1  ;;  %11124 = vmatprep.subr.mxu0 %v10895_v28  ;;  %11224 = vmatpush1.msra.mxu1 %v10942_v31  ;;  %v10937_v28 = vld [vmem:[%s32196_s3 + $0x238] sm:$0xff]  ;;  %v10866_v12 = vld [vmem:[%s32196_s3] sm:$0xff] }
 0x2f1   : > { %v27795_v20 = vadd.f32 %v7839_v57, %v27645_v48  ;;  %v7584_v61 = vpop.f32.mrf.mxu0  ;;  %11125 = vmatpush1.msra.mxu0 %v10894_v51  ;;  %11225 = vmatprep.subr.mxu1 %v10941_v46  ;;  %v10893_v48 = vld [vmem:[%s32196_s3 + $0xd8] sm:$0xff]  ;;  %v10890_v57 = vld [vmem:[%s32196_s3 + $0xc0] sm:$0xff]  ;;  %v10936_v51 = vld [vmem:[%s32196_s3 + $0x230] sm:$0xff] }
 0x2f2   : > { %v27804_v62 = vadd.f32 %v7584_v61, %v27651_v33  ;;  %v27806_v63 = vpop.f32.mrf.mxu1  ;;  %11126 = vmatprep.subr.mxu0 %v10893_v48  ;;  %11226 = vmatpush1.msra.mxu1 %v10940_v44  ;;  %v10892_v33 = vld [vmem:[%s32196_s3 + $0xd0] sm:$0xff]  ;;  %v10935_v48 = vld [vmem:[%s32196_s3 + $0x228] sm:$0xff] }
 0x2f3   : > { %32283 = vst [vmem:[#allocation19_spill] sm:$0xff] %v27806_v63  ;;  %v27814_v56 = vpop.f32.mrf.mxu0  ;;  %11127 = vmatpush1.msra.mxu0 %v10892_v33  ;;  %11227 = vmatprep.subr.mxu1 %v10939_v17  ;;  %v10887_v33 = vld [vmem:[%s32196_s3 + $0xa8] sm:$0xff]  ;;  %v10934_v17 = vld [vmem:[%s32196_s3 + $0x220] sm:$0xff] }
 0x2f4   : > { %v7845_v6 = vpop.f32.mrf.mxu1  ;;  %11128 = vmatprep.subr.mxu0 %v10891_v58  ;;  %11228 = vmatpush1.msra.mxu1 %v10938_v10  ;;  %v10886_v10 = vld [vmem:[%s32196_s3 + $0xa0] sm:$0xff] }
 0x2f5   : > { %v27829_v7 = vadd.f32 %v7845_v6, %v27662_v43  ;;  %v7590_v27 = vpop.f32.mrf.mxu0  ;;  %11129 = vmatpush1.msra.mxu0 %v10890_v57  ;;  %11229 = vmatprep.subr.mxu1 %v10937_v28  ;;  %v10889_v43 = vld [vmem:[%s32196_s3 + $0xb8] sm:$0xff] }
 0x2f6   : > { %v27838_v31 = vadd.f32 %v7590_v27, %v27670_v49  ;;  %v27840_v61 = vpop.f32.mrf.mxu1  ;;  %11130 = vmatprep.subr.mxu0 %v10889_v43  ;;  %11230 = vmatpush1.msra.mxu1 %v10936_v51  ;;  %v10888_v49 = vld [vmem:[%s32196_s3 + $0xb0] sm:$0xff]  ;;  %v10933_v27 = vld [vmem:[%s32196_s3 + $0x218] sm:$0xff] }
 0x2f7   : > { %32284 = vst [vmem:[#allocation20_spill] sm:$0xff] %v27840_v61  ;;  %v27848_v46 = vpop.f32.mrf.mxu0  ;;  %11131 = vmatpush1.msra.mxu0 %v10888_v49  ;;  %11231 = vmatprep.subr.mxu1 %v10935_v48  ;;  %v10932_v43 = vld [vmem:[%s32196_s3 + $0x210] sm:$0xff]  ;;  %v10931_v49 = vld [vmem:[%s32196_s3 + $0x208] sm:$0xff] }
 0x2f8   : > { %32285 = vst [vmem:[#allocation21_spill] sm:$0xff] %v27848_v46  ;;  %v8085_v44 = vpop.f32.mrf.mxu1  ;;  %11132 = vmatprep.subr.mxu0 %v10887_v33  ;;  %11232 = vmatpush1.msra.mxu1 %v10934_v17  ;;  %v10930_v33 = vld [vmem:[%s32196_s3 + $0x200] sm:$0xff] }
 0x2f9   : > { %v27863_v6 = vadd.f32 %v8085_v44, %v27687_v1  ;;  %v7596_v58 = vpop.f32.mrf.mxu0  ;;  %11133 = vmatpush1.msra.mxu0 %v10886_v10  ;;  %11233 = vmatprep.subr.mxu1 %v10933_v27  ;;  %v10885_v1 = vld [vmem:[%s32196_s3 + $0x98] sm:$0xff]  ;;  %v10883_v44 = vld [vmem:[%s32196_s3 + $0x88] sm:$0xff]  ;;  %v10882_v10 = vld [vmem:[%s32196_s3 + $0x80] sm:$0xff] }
 0x2fa   : > { %v27872_v57 = vadd.f32 %v7596_v58, %v27695_v59  ;;  %v27874_v28 = vpop.f32.mrf.mxu1  ;;  %11134 = vmatprep.subr.mxu0 %v10885_v1  ;;  %11234 = vmatpush1.msra.mxu1 %v10932_v43  ;;  %v10884_v59 = vld [vmem:[%s32196_s3 + $0x90] sm:$0xff]  ;;  %v10993_v27 = vld [vmem:[%s32196_s3 + $0x3f8] sm:$0xff] }
 0x2fb   : > { %v27882_v51 = vpop.f32.mrf.mxu0  ;;  %11135 = vmatpush1.msra.mxu0 %v10884_v59  ;;  %11235 = vmatprep.subr.mxu1 %v10931_v49  ;;  %v10992_v59 = vld [vmem:[%s32196_s3 + $0x3f0] sm:$0xff] }
 0x2fc   : > { %32286 = vst [vmem:[#allocation22_spill] sm:$0xff] %v27882_v51  ;;  %v8091_v48 = vpop.f32.mrf.mxu1  ;;  %11136 = vmatprep.subr.mxu0 %v10883_v44  ;;  %11236 = vmatpush1.msra.mxu1 %v10930_v33  ;;  %v10879_v33 = vld [vmem:[%s32196_s3 + $0x68] sm:$0xff] }
 0x2fd   : > { %v27897_v17 = vadd.f32 %v8091_v48, %v27712_v26  ;;  %v7750_v58 = vpop.f32.mrf.mxu0  ;;  %11137 = vmatpush1.msra.mxu0 %v10882_v10  ;;  %11237 = vmatprep.subr.mxu1 %v10993_v27  ;;  %v10881_v26 = vld [vmem:[%s32196_s3 + $0x78] sm:$0xff]  ;;  %v10991_v48 = vld [vmem:[%s32196_s3 + $0x3e8] sm:$0xff] }
 0x2fe   : > { %v27906_v1 = vadd.f32 %v7750_v58, %v27720_v14  ;;  %v27908_v43 = vpop.f32.mrf.mxu1  ;;  %11138 = vmatprep.subr.mxu0 %v10881_v26  ;;  %11238 = vmatpush2.msra.mxu1 %v10992_v59  ;;  %v10880_v14 = vld [vmem:[%s32196_s3 + $0x70] sm:$0xff]  ;;  %v10990_v58 = vld [vmem:[%s32196_s3 + $0x3e0] sm:$0xff]  ;;  %v10989_v59 = vld [vmem:[%s32196_s3 + $0x3d8] sm:$0xff] }
 0x2ff   : > { %v27916_v49 = vpop.f32.mrf.mxu0  ;;  %11139 = vmatpush1.msra.mxu0 %v10880_v14  ;;  %11239 = vmatprep.subr.mxu1 %v10991_v48  ;;  %v10878_v26 = vld [vmem:[%s32196_s3 + $0x60] sm:$0xff] }
 0x300   : > { %32287 = vst [vmem:[#allocation23_spill] sm:$0xff] %v27916_v49  ;;  %v8097_v44 = vpop.f32.mrf.mxu1  ;;  %11140 = vmatprep.subr.mxu0 %v10879_v33  ;;  %11240 = vmatpush2.msra.mxu1 %v10990_v58  ;;  %v10987_v58 = vld [vmem:[%s32196_s3 + $0x3c8] sm:$0xff] }
 0x301   : > { %v27931_v10 = vadd.f32 %v8097_v44, %v27737_v2  ;;  %v7756_v27 = vpop.f32.mrf.mxu0  ;;  %11141 = vmatpush1.msra.mxu0 %v10878_v26  ;;  %11241 = vmatprep.subr.mxu1 %v10989_v59  ;;  %v10877_v2 = vld [vmem:[%s32196_s3 + $0x58] sm:$0xff]  ;;  %v10988_v44 = vld [vmem:[%s32196_s3 + $0x3d0] sm:$0xff]  ;;  %v10875_v26 = vld [vmem:[%s32196_s3 + $0x48] sm:$0xff] }
 0x302   : > { %v27940_v14 = vadd.f32 %v7756_v27, %v27745_v41  ;;  %v27942_v48 = vpop.f32.mrf.mxu1  ;;  %11142 = vmatprep.subr.mxu0 %v10877_v2  ;;  %11242 = vmatpush2.msra.mxu1 %v10988_v44  ;;  %v10876_v41 = vld [vmem:[%s32196_s3 + $0x50] sm:$0xff]  ;;  %v10986_v59 = vld [vmem:[%s32196_s3 + $0x3c0] sm:$0xff] }
 0x303   : > { %v27950_v33 = vpop.f32.mrf.mxu0  ;;  %11143 = vmatpush1.msra.mxu0 %v10876_v41  ;;  %11243 = vmatprep.subr.mxu1 %v10987_v58  ;;  %v10985_v41 = vld [vmem:[%s32196_s3 + $0x3b8] sm:$0xff] }
 0x304   : > { %32288 = vst [vmem:[#allocation24_spill] sm:$0xff] %v27950_v33  ;;  %v8251_v27 = vpop.f32.mrf.mxu1  ;;  %11144 = vmatprep.subr.mxu0 %v10875_v26  ;;  %11244 = vmatpush2.msra.mxu1 %v10986_v59 }
 0x305   : > { %v27965_v2 = vadd.f32 %v8251_v27, %v27762_v25  ;;  %v7762_v44 = vpop.f32.mrf.mxu0  ;;  %11145 = vmatpush1.msra.mxu0 %v10874_v9  ;;  %11245 = vmatprep.subr.mxu1 %v10985_v41  ;;  %v10873_v25 = vld [vmem:[%s32196_s3 + $0x38] sm:$0xff]  ;;  %v10984_v27 = vld [vmem:[%s32196_s3 + $0x3b0] sm:$0xff]  ;;  %v10983_v9 = vld [vmem:[%s32196_s3 + $0x3a8] sm:$0xff] }
 0x306   : > { %v27974_v58 = vadd.f32 %v7762_v44, %v27770_v8  ;;  %v27976_v0 = vpop.f32.mrf.mxu1  ;;  %11146 = vmatprep.subr.mxu0 %v10873_v25  ;;  %11246 = vmatpush2.msra.mxu1 %v10984_v27  ;;  %v10872_v8 = vld [vmem:[%s32196_s3 + $0x30] sm:$0xff]  ;;  %v10871_v44 = vld [vmem:[%s32196_s3 + $0x28] sm:$0xff]  ;;  %v10982_v41 = vld [vmem:[%s32196_s3 + $0x3a0] sm:$0xff] }
 0x307   : > { %v27984_v26 = vpop.f32.mrf.mxu0  ;;  %11147 = vmatpush1.msra.mxu0 %v10872_v8  ;;  %11247 = vmatprep.subr.mxu1 %v10983_v9  ;;  %v10981_v8 = vld [vmem:[%s32196_s3 + $0x398] sm:$0xff] }
 0x308   : > { %32289 = vst [vmem:[#allocation25_spill] sm:$0xff] %v27984_v26  ;;  %v8257_v59 = vpop.f32.mrf.mxu1  ;;  %11148 = vmatprep.subr.mxu0 %v10871_v44  ;;  %11248 = vmatpush2.msra.mxu1 %v10982_v41 }
 0x309   : > { %v27999_v25 = vadd.f32 %v8257_v59, %v27795_v20  ;;  %v8002_v27 = vpop.f32.mrf.mxu0  ;;  %11149 = vmatpush1.msra.mxu0 %v10870_v11  ;;  %11249 = vmatprep.subr.mxu1 %v10981_v8  ;;  %v10869_v20 = vld [vmem:[%s32196_s3 + $0x18] sm:$0xff]  ;;  %v10980_v59 = vld [vmem:[%s32196_s3 + $0x390] sm:$0xff]  ;;  %v10979_v11 = vld [vmem:[%s32196_s3 + $0x388] sm:$0xff] }
 0x30a   : > { %v28008_v9 = vadd.f32 %v8002_v27, %v27804_v62  ;;  %v28010_v26 = vpop.f32.mrf.mxu1  ;;  %11150 = vmatprep.subr.mxu0 %v10869_v20  ;;  %11250 = vmatpush2.msra.mxu1 %v10980_v59  ;;  %v10868_v62 = vld [vmem:[%s32196_s3 + $0x10] sm:$0xff]  ;;  %v10867_v27 = vld [vmem:[%s32196_s3 + $0x8] sm:$0xff]  ;;  %v10978_v8 = vld [vmem:[%s32196_s3 + $0x380] sm:$0xff] }
 0x30b   : > { %32290 = vst [vmem:[#allocation26_spill] sm:$0xff] %v28010_v26  ;;  %v28018_v44 = vpop.f32.mrf.mxu0  ;;  %11151 = vmatpush1.msra.mxu0 %v10868_v62  ;;  %11251 = vmatprep.subr.mxu1 %v10979_v11  ;;  %v10977_v62 = vld [vmem:[%s32196_s3 + $0x378] sm:$0xff] }
 0x30c   : > { %v8263_v41 = vpop.f32.mrf.mxu1  ;;  %11152 = vmatprep.subr.mxu0 %v10867_v27  ;;  %11252 = vmatpush2.msra.mxu1 %v10978_v8 }
 0x30d   : > { %v28033_v20 = vadd.f32 %v8263_v41, %v27829_v7  ;;  %v8008_v59 = vpop.f32.mrf.mxu0  ;;  %11153 = vmatpush1.msra.mxu0 %v10866_v12  ;;  %11253 = vmatprep.subr.mxu1 %v10977_v62  ;;  %v10929_v7 = vld [vmem:[%s32196_s3 + $0x1f8] sm:$0xff]  ;;  %v10976_v41 = vld [vmem:[%s32196_s3 + $0x370] sm:$0xff]  ;;  %v10975_v12 = vld [vmem:[%s32196_s3 + $0x368] sm:$0xff] }
 0x30e   : > { %v28042_v11 = vadd.f32 %v8008_v59, %v27838_v31  ;;  %v28044_v33 = vpop.f32.mrf.mxu1  ;;  %11154 = vmatprep.subr.mxu0 %v10929_v7  ;;  %11254 = vmatpush2.msra.mxu1 %v10976_v41  ;;  %v10928_v31 = vld [vmem:[%s32196_s3 + $0x1f0] sm:$0xff]  ;;  %v10927_v59 = vld [vmem:[%s32196_s3 + $0x1e8] sm:$0xff]  ;;  %v10974_v62 = vld [vmem:[%s32196_s3 + $0x360] sm:$0xff] }
 0x30f   : > { %32291 = vst [vmem:[#allocation27_spill] sm:$0xff] %v28044_v33  ;;  %v28052_v27 = vpop.f32.mrf.mxu0  ;;  %11155 = vmatpush2.msra.mxu0 %v10928_v31  ;;  %11255 = vmatprep.subr.mxu1 %v10975_v12  ;;  %v10973_v31 = vld [vmem:[%s32196_s3 + $0x358] sm:$0xff] }
 0x310   : > { %32292 = vst [vmem:[#allocation28_spill] sm:$0xff] %v28052_v27  ;;  %v8503_v8 = vpop.f32.mrf.mxu1  ;;  %11156 = vmatprep.subr.mxu0 %v10927_v59  ;;  %11256 = vmatpush2.msra.mxu1 %v10974_v62 }
 0x311   : > { %v28067_v7 = vadd.f32 %v8503_v8, %v27863_v6  ;;  %v8014_v41 = vpop.f32.mrf.mxu0  ;;  %11157 = vmatpush2.msra.mxu0 %v10926_v13  ;;  %11257 = vmatprep.subr.mxu1 %v10973_v31  ;;  %v10925_v6 = vld [vmem:[%s32196_s3 + $0x1d8] sm:$0xff]  ;;  %v10972_v8 = vld [vmem:[%s32196_s3 + $0x350] sm:$0xff]  ;;  %v10971_v13 = vld [vmem:[%s32196_s3 + $0x348] sm:$0xff] }
 0x312   : > { %v28076_v12 = vadd.f32 %v8014_v41, %v27872_v57  ;;  %v28078_v47 = vpop.f32.mrf.mxu1  ;;  %11158 = vmatprep.subr.mxu0 %v10925_v6  ;;  %11258 = vmatpush2.msra.mxu1 %v10972_v8  ;;  %v10924_v57 = vld [vmem:[%s32196_s3 + $0x1d0] sm:$0xff]  ;;  %v10923_v41 = vld [vmem:[%s32196_s3 + $0x1c8] sm:$0xff]  ;;  %v10970_v31 = vld [vmem:[%s32196_s3 + $0x340] sm:$0xff] }
 0x313   : > { %v28086_v59 = vpop.f32.mrf.mxu0  ;;  %11159 = vmatpush2.msra.mxu0 %v10924_v57  ;;  %11259 = vmatprep.subr.mxu1 %v10971_v13  ;;  %v10969_v57 = vld [vmem:[%s32196_s3 + $0x338] sm:$0xff] }
 0x314   : > { %32293 = vst [vmem:[#allocation29_spill] sm:$0xff] %v28086_v59  ;;  %v8509_v62 = vpop.f32.mrf.mxu1  ;;  %11160 = vmatprep.subr.mxu0 %v10923_v41  ;;  %11260 = vmatpush2.msra.mxu1 %v10970_v31 }
 0x315   : > { %v28101_v6 = vadd.f32 %v8509_v62, %v27897_v17  ;;  %v8168_v8 = vpop.f32.mrf.mxu0  ;;  %11161 = vmatpush2.msra.mxu0 %v10922_v23  ;;  %11261 = vmatprep.subr.mxu1 %v10969_v57  ;;  %v10921_v17 = vld [vmem:[%s32196_s3 + $0x1b8] sm:$0xff]  ;;  %v10968_v62 = vld [vmem:[%s32196_s3 + $0x330] sm:$0xff]  ;;  %v10967_v23 = vld [vmem:[%s32196_s3 + $0x328] sm:$0xff] }
 0x316   : > { %v28110_v13 = vadd.f32 %v8168_v8, %v27906_v1  ;;  %v28112_v19 = vpop.f32.mrf.mxu1  ;;  %11162 = vmatprep.subr.mxu0 %v10921_v17  ;;  %11262 = vmatpush2.msra.mxu1 %v10968_v62  ;;  %v10920_v1 = vld [vmem:[%s32196_s3 + $0x1b0] sm:$0xff]  ;;  %v10919_v8 = vld [vmem:[%s32196_s3 + $0x1a8] sm:$0xff]  ;;  %v10966_v57 = vld [vmem:[%s32196_s3 + $0x320] sm:$0xff] }
 0x317   : > { %v28120_v41 = vpop.f32.mrf.mxu0  ;;  %11163 = vmatpush2.msra.mxu0 %v10920_v1  ;;  %11263 = vmatprep.subr.mxu1 %v10967_v23  ;;  %v10965_v1 = vld [vmem:[%s32196_s3 + $0x318] sm:$0xff] }
 0x318   : > { %32294 = vst [vmem:[#allocation30_spill] sm:$0xff] %v28120_v41  ;;  %v8515_v31 = vpop.f32.mrf.mxu1  ;;  %11164 = vmatprep.subr.mxu0 %v10919_v8  ;;  %11264 = vmatpush2.msra.mxu1 %v10966_v57 }
 0x319   : > { %v28135_v17 = vadd.f32 %v8515_v31, %v27931_v10  ;;  %v8174_v62 = vpop.f32.mrf.mxu0  ;;  %11165 = vmatpush2.msra.mxu0 %v10918_v37  ;;  %11265 = vmatprep.subr.mxu1 %v10965_v1  ;;  %v10917_v10 = vld [vmem:[%s32196_s3 + $0x198] sm:$0xff]  ;;  %v10964_v31 = vld [vmem:[%s32196_s3 + $0x310] sm:$0xff]  ;;  %v10963_v37 = vld [vmem:[%s32196_s3 + $0x308] sm:$0xff] }
 0x31a   : > { %v28144_v23 = vadd.f32 %v8174_v62, %v27940_v14  ;;  %v28146_v33 = vpop.f32.mrf.mxu1  ;;  %11166 = vmatprep.subr.mxu0 %v10917_v10  ;;  %11266 = vmatpush2.msra.mxu1 %v10964_v31  ;;  %v10916_v14 = vld [vmem:[%s32196_s3 + $0x190] sm:$0xff]  ;;  %v10915_v62 = vld [vmem:[%s32196_s3 + $0x188] sm:$0xff]  ;;  %v10962_v1 = vld [vmem:[%s32196_s3 + $0x300] sm:$0xff] }
 0x31b   : > { %v28154_v8 = vpop.f32.mrf.mxu0  ;;  %11167 = vmatpush2.msra.mxu0 %v10916_v14  ;;  %11267 = vmatprep.subr.mxu1 %v10963_v37  ;;  %v11089_v14 = vld [vmem:[%s32196_s3 + $0x6f8] sm:$0xff] }
 0x31c   : > { %32295 = vst [vmem:[#allocation31_spill] sm:$0xff] %v28154_v8  ;;  %v8669_v57 = vpop.f32.mrf.mxu1  ;;  %11168 = vmatprep.subr.mxu0 %v10915_v62  ;;  %11268 = vmatpush2.msra.mxu1 %v10962_v1  ;;  %v10914_v8 = vld [vmem:[%s32196_s3 + $0x180] sm:$0xff]  ;;  %v10912_v62 = vld [vmem:[%s32196_s3 + $0x170] sm:$0xff] }
 0x31d   : > { %v28169_v10 = vadd.f32 %v8669_v57, %v27965_v2  ;;  %v8180_v31 = vpop.f32.mrf.mxu0  ;;  %11169 = vmatpush2.msra.mxu0 %v10914_v8  ;;  %11371 = vmatprep.subr.mxu1 %v11089_v14  ;;  %v10913_v2 = vld [vmem:[%s32196_s3 + $0x178] sm:$0xff]  ;;  %v10910_v14 = vld [vmem:[%s32196_s3 + $0x160] sm:$0xff] }
 0x31e   : > { %v28178_v37 = vadd.f32 %v8180_v31, %v27974_v58  ;;  %v28180_v61 = vpop.f32.mrf.mxu1  ;;  %11170 = vmatprep.subr.mxu0 %v10913_v2  ;;  %v10911_v58 = vld [vmem:[%s32196_s3 + $0x168] sm:$0xff] }
 0x31f   : > { %v28185_v57 = vpop.f32.mrf.mxu0  ;;  %11171 = vmatpush2.msra.mxu0 %v10912_v62  ;;  %v10909_v62 = vld [vmem:[%s32196_s3 + $0x158] sm:$0xff] }
 0x320   : > { %32296 = vst [vmem:[#allocation32_spill] sm:$0xff] %v28185_v57  ;;  %v8675_v1 = vpop.f32.mrf.mxu1  ;;  %11172 = vmatprep.subr.mxu0 %v10911_v58 }
 0x321   : > { %v28194_v8 = vadd.f32 %v8675_v1, %v27999_v25  ;;  %v8420_v31 = vpop.f32.mrf.mxu0  ;;  %11173 = vmatpush2.msra.mxu0 %v10910_v14  ;;  %v10908_v25 = vld [vmem:[%s32196_s3 + $0x150] sm:$0xff]  ;;  %v10906_v14 = vld [vmem:[%s32196_s3 + $0x140] sm:$0xff] }
 0x322   : > { %v28200_v2 = vadd.f32 %v8420_v31, %v28008_v9  ;;  %v28202_v57 = vpop.f32.mrf.mxu1  ;;  %11174 = vmatprep.subr.mxu0 %v10909_v62  ;;  %v10907_v9 = vld [vmem:[%s32196_s3 + $0x148] sm:$0xff] }
 0x323   : > { %32297 = vst [vmem:[#allocation33_spill] sm:$0xff] %v28202_v57  ;;  %v28207_v26 = vpop.f32.mrf.mxu0  ;;  %11175 = vmatpush2.msra.mxu0 %v10908_v25  ;;  %v10905_v25 = vld [vmem:[%s32196_s3 + $0x138] sm:$0xff] }
 0x324   : > { %32298 = vst [vmem:[#allocation34_spill] sm:$0xff] %v28207_v26  ;;  %v8681_v1 = vpop.f32.mrf.mxu1  ;;  %11176 = vmatprep.subr.mxu0 %v10907_v9 }
 0x325   : > { %v8708_v58 = vadd.f32 %v8681_v1, %v28033_v20  ;;  %v8426_v31 = vpop.f32.mrf.mxu0  ;;  %11177 = vmatpush2.msra.mxu0 %v10906_v14  ;;  %v10904_v20 = vld [vmem:[%s32196_s3 + $0x130] sm:$0xff]  ;;  %v10902_v14 = vld [vmem:[%s32196_s3 + $0x120] sm:$0xff] }
 0x326   : > { %v8694_v62 = vadd.f32 %v8426_v31, %v28042_v11  ;;  %v28220_v57 = vpop.f32.mrf.mxu1  ;;  %11178 = vmatprep.subr.mxu0 %v10905_v25  ;;  %v10903_v11 = vld [vmem:[%s32196_s3 + $0x128] sm:$0xff] }
 0x327   : > { %32299 = vst [vmem:[#allocation35_spill] sm:$0xff] %v28220_v57  ;;  %v28225_v40 = vpop.f32.mrf.mxu0  ;;  %11179 = vmatpush2.msra.mxu0 %v10904_v20  ;;  %v10901_v20 = vld [vmem:[%s32196_s3 + $0x118] sm:$0xff] }
 0x328   : > { %32300 = vst [vmem:[#allocation36_spill] sm:$0xff] %v28225_v40  ;;  %v8921_v1 = vpop.f32.mrf.mxu1  ;;  %11180 = vmatprep.subr.mxu0 %v10903_v11 }
 0x329   : > { %v9106_v9 = vadd.f32 %v8921_v1, %v28067_v7  ;;  %v8432_v31 = vpop.f32.mrf.mxu0  ;;  %11181 = vmatpush2.msra.mxu0 %v10902_v14  ;;  %v10900_v7 = vld [vmem:[%s32196_s3 + $0x110] sm:$0xff]  ;;  %v10898_v14 = vld [vmem:[%s32196_s3 + $0x100] sm:$0xff] }
 0x32a   : > { %v8702_v25 = vadd.f32 %v8432_v31, %v28076_v12  ;;  %v28238_v57 = vpop.f32.mrf.mxu1  ;;  %11182 = vmatprep.subr.mxu0 %v10901_v20  ;;  %v10899_v12 = vld [vmem:[%s32196_s3 + $0x108] sm:$0xff] }
 0x32b   : > { %v28243_v63 = vpop.f32.mrf.mxu0  ;;  %11183 = vmatpush2.msra.mxu0 %v10900_v7  ;;  %v11025_v7 = vld [vmem:[%s32196_s3 + $0x4f8] sm:$0xff] }
 0x32c   : > { %32301 = vst [vmem:[#allocation37_spill] sm:$0xff] %v28243_v63  ;;  %v8927_v1 = vpop.f32.mrf.mxu1  ;;  %11184 = vmatprep.subr.mxu0 %v10899_v12 }
 0x32d   : > { %v9114_v11 = vadd.f32 %v8927_v1, %v28101_v6  ;;  %v8586_v31 = vpop.f32.mrf.mxu0  ;;  %11185 = vmatpush2.msra.mxu0 %v10898_v14 }
 0x32e   : > { %v8690_v20 = vadd.f32 %v8586_v31, %v28110_v13  ;;  %v28256_v24 = vpop.f32.mrf.mxu1  ;;  %11288 = vmatprep.subr.mxu0 %v11025_v7 }
 0x32f   : > { %v28261_v53 = vpop.f32.mrf.mxu0 }
 0x330   : > { %32302 = vst [vmem:[#allocation38_spill] sm:$0xff] %v28261_v53  ;;  %v8933_v15 = vpop.f32.mrf.mxu1 }
 0x331   : > { %v9122_v6 = vadd.f32 %v8933_v15, %v28135_v17  ;;  %v8592_v1 = vpop.f32.mrf.mxu0 }
 0x332   : > { %v8698_v12 = vadd.f32 %v8592_v1, %v28144_v23  ;;  %v28265_v50 = vpop.f32.mrf.mxu1 }
 0x333   : > { %v28267_v54 = vpop.f32.mrf.mxu0 }
 0x334   : > { %32303 = vst [vmem:[#allocation39_spill] sm:$0xff] %v28267_v54  ;;  %v9087_v13 = vpop.f32.mrf.mxu1 }
 0x335   : > { %v9110_v31 = vadd.f32 %v9087_v13, %v28169_v10  ;;  %v8598_v14 = vpop.f32.mrf.mxu0 }
 0x336   : > { %v8706_v41 = vadd.f32 %v8598_v14, %v28178_v37  ;;  %v28271_v63 = vpop.f32.mrf.mxu1 }
 0x337   : > { %v28273_v53 = vpop.f32.mrf.mxu0 }
 0x338   : > { %32304 = vst [vmem:[#allocation40_spill] sm:$0xff] %v28273_v53  ;;  %v9093_v7 = vpop.f32.mrf.mxu1 }
 0x339   : > { %v9118_v15 = vadd.f32 %v9093_v7, %v28194_v8  ;;  %v8838_v17 = vpop.f32.mrf.mxu0 }
 0x33a   : > { %v9104_v23 = vadd.f32 %v8838_v17, %v28200_v2  ;;  %v28277_v1 = vpop.f32.mrf.mxu1 }
 0x33b   : > { %32305 = vst [vmem:[#allocation41_spill] sm:$0xff] %v28277_v1  ;;  %v28279_v49 = vpop.f32.mrf.mxu0 }
 0x33c   : > { %32306 = vst [vmem:[#allocation42_spill] sm:$0xff] %v28279_v49  ;;  %v9099_v54 = vpop.f32.mrf.mxu1 }
 0x33d   : > { %v9126_v59 = vadd.f32 %v9099_v54, %v8708_v58  ;;  %v8844_v10 = vpop.f32.mrf.mxu0 }
 0x33e   : > { %v9112_v13 = vadd.f32 %v8844_v10, %v8694_v62  ;;  %v28281_v16 = vpop.f32.mrf.mxu1 }
 0x33f   : > { %32307 = vst [vmem:[#allocation43_spill] sm:$0xff] %v28281_v16  ;;  %v28283_v37 = vpop.f32.mrf.mxu0 }
 0x340   : > { %32308 = vst [vmem:[#allocation44_spill] sm:$0xff] %v28283_v37  ;;  %v9339_v14 = vpop.f32.mrf.mxu1 }
 0x341   : > { %v28285_v53 = vadd.f32 %v9339_v14, %v9106_v9  ;;  %v8850_v32 = vpop.f32.mrf.mxu0 }
 0x342   : > { %v9120_v8 = vadd.f32 %v8850_v32, %v8702_v25  ;;  %v28287_v7 = vpop.f32.mrf.mxu1 }
 0x343   : > { %v28289_v2 = vpop.f32.mrf.mxu0 }
 0x344   : > { %32309 = vst [vmem:[#allocation45_spill] sm:$0xff] %v28289_v2  ;;  %v9345_v17 = vpop.f32.mrf.mxu1 }
 0x345   : > { %v28291_v1 = vadd.f32 %v9345_v17, %v9114_v11  ;;  %v9004_v40 = vpop.f32.mrf.mxu0 }
 0x346   : > { %v9108_v54 = vadd.f32 %v9004_v40, %v8690_v20  ;;  %v28293_v58 = vpop.f32.mrf.mxu1 }
 0x347   : > { %v28295_v62 = vpop.f32.mrf.mxu0 }
 0x348   : > { %32310 = vst [vmem:[#allocation46_spill] sm:$0xff] %v28295_v62  ;;  %v9351_v10 = vpop.f32.mrf.mxu1 }
 0x349   : > { %v28297_v16 = vadd.f32 %v9351_v10, %v9122_v6  ;;  %v9010_v9 = vpop.f32.mrf.mxu0 }
 0x34a   : > { %v9116_v14 = vadd.f32 %v9010_v9, %v8698_v12  ;;  %v28299_v37 = vpop.f32.mrf.mxu1 }
 0x34b   : > { %v28301_v32 = vpop.f32.mrf.mxu0 }
 0x34c   : > { %32311 = vst [vmem:[#allocation47_spill] sm:$0xff] %v28301_v32  ;;  %v9505_v25 = vpop.f32.mrf.mxu1 }
 0x34d   : > { %v9528_v2 = vadd.f32 %v9505_v25, %v9110_v31  ;;  %v9016_v51 = vpop.f32.mrf.mxu0 }
 0x34e   : > { %v9124_v11 = vadd.f32 %v9016_v51, %v8706_v41  ;;  %v28303_v17 = vpop.f32.mrf.mxu1 }
 0x34f   : > { %32312 = vst [vmem:[#allocation48_spill] sm:$0xff] %v28303_v17  ;;  %v28305_v40 = vpop.f32.mrf.mxu0 }
 0x350   : > { %32313 = vst [vmem:[#allocation49_spill] sm:$0xff] %v28305_v40  ;;  %v9511_v20 = vpop.f32.mrf.mxu1 }
 0x351   : > { %v9536_v49 = vadd.f32 %v9511_v20, %v9118_v15  ;;  %v9256_v62 = vpop.f32.mrf.mxu0 }
 0x352   : > { %v28307_v27 = vadd.f32 %v9256_v62, %v9104_v23  ;;  %v28309_v6 = vpop.f32.mrf.mxu1 }
 0x353   : > { %32315 = vst [vmem:[#allocation51_spill] sm:$0xff] %v28309_v6  ;;  %v28311_v12 = vpop.f32.mrf.mxu0 }
 0x354   : > { %32314 = vst [vmem:[#allocation50_spill] sm:$0xff] %v28307_v27  ;;  %32316 = vst [vmem:[#allocation52_spill] sm:$0xff] %v28311_v12  ;;  %v9517_v10 = vpop.f32.mrf.mxu1 }
 0x355   : > { %v9544_v9 = vadd.f32 %v9517_v10, %v9126_v59  ;;  %v9262_v32 = vpop.f32.mrf.mxu0 }
 0x356   : > { %v28313_v29 = vadd.f32 %v9262_v32, %v9112_v13  ;;  %v28315_v31 = vpop.f32.mrf.mxu1 }
 0x357   : > { %32318 = vst [vmem:[#allocation54_spill] sm:$0xff] %v28315_v31  ;;  %v28317_v51 = vpop.f32.mrf.mxu0 }
 0x358   : > { %32317 = vst [vmem:[#allocation53_spill] sm:$0xff] %v28313_v29  ;;  %32319 = vst [vmem:[#allocation55_spill] sm:$0xff] %v28317_v51  ;;  %v28319_v41 = vpop.f32.mrf.mxu1 }
 0x359   : > { %v9268_v25 = vpop.f32.mrf.mxu0 }
 0x35a   : > { %v28321_v15 = vadd.f32 %v9268_v25, %v9120_v8  ;;  %v28323_v23 = vpop.f32.mrf.mxu1 }
 0x35b   : > { %v28325_v62 = vpop.f32.mrf.mxu0 }
 0x35c   : > { %32320 = vst [vmem:[#allocation56_spill] sm:$0xff] %v28321_v15  ;;  %32321 = vst [vmem:[#allocation57_spill] sm:$0xff] %v28325_v62  ;;  %v28327_v20 = vpop.f32.mrf.mxu1 }
 0x35d   : > { %v9422_v40 = vpop.f32.mrf.mxu0 }
 0x35e   : > { %v9526_v59 = vadd.f32 %v9422_v40, %v9108_v54  ;;  %v28329_v10 = vpop.f32.mrf.mxu1 }
 0x35f   : > { %v28331_v13 = vpop.f32.mrf.mxu0 }
 0x360   : > { %32322 = vst [vmem:[#allocation58_spill] sm:$0xff] %v28331_v13  ;;  %v28333_v32 = vpop.f32.mrf.mxu1 }
 0x361   : > { %v9428_v31 = vpop.f32.mrf.mxu0 }
 0x362   : > { %v9534_v6 = vadd.f32 %v9428_v31, %v9116_v14  ;;  %v28335_v29 = vpop.f32.mrf.mxu1 }
 0x363   : > { %v28337_v8 = vpop.f32.mrf.mxu0 }
 0x364   : > { %32323 = vst [vmem:[#allocation59_spill] sm:$0xff] %v28337_v8  ;;  %v9923_v25 = vpop.f32.mrf.mxu1 }
 0x365   : > { %v9946_v15 = vadd.f32 %v9923_v25, %v9528_v2  ;;  %v9434_v51 = vpop.f32.mrf.mxu0 }
 0x366   : > { %v9542_v62 = vadd.f32 %v9434_v51, %v9124_v11  ;;  %v28339_v27 = vpop.f32.mrf.mxu1 }
 0x367   : > { %32324 = vst [vmem:[#allocation60_spill] sm:$0xff] %v28339_v27  ;;  %v28341_v12 = vpop.f32.mrf.mxu0 }
 0x368   : > { %32325 = vst [vmem:[#allocation61_spill] sm:$0xff] %v28341_v12  ;;  %v9929_v54 = vpop.f32.mrf.mxu1 }
 0x369   : > { %v9954_v40 = vadd.f32 %v9929_v54, %v9536_v49  ;;  %v28343_v36 = vpop.f32.mrf.mxu0 }
 0x36a   : > { %32326 = vst [vmem:[#allocation62_spill] sm:$0xff] %v28343_v36  ;;  %v28345_v13 = vpop.f32.mrf.mxu1 }
 0x36b   : > { %32327 = vst [vmem:[#allocation63_spill] sm:$0xff] %v28345_v13  ;;  %v28347_v26 = vpop.f32.mrf.mxu0 }
 0x36c   : > { %32328 = vst [vmem:[#allocation64_spill] sm:$0xff] %v28347_v26  ;;  %v9935_v14 = vpop.f32.mrf.mxu1 }
 0x36d   : > { %v9962_v31 = vadd.f32 %v9935_v14, %v9544_v9  ;;  %v28349_v46 = vpop.f32.mrf.mxu0 }
 0x36e   : > { %32329 = vst [vmem:[#allocation65_spill] sm:$0xff] %v28349_v46  ;;  %v28351_v8 = vpop.f32.mrf.mxu1 }
 0x36f   : > { %32330 = vst [vmem:[#allocation66_spill] sm:$0xff] %v28351_v8  ;;  %v28353_v2 = vpop.f32.mrf.mxu0 }
 0x370   : > { %32331 = vst [vmem:[#allocation67_spill] sm:$0xff] %v28353_v2  ;;  %v10175_v11 = vpop.f32.mrf.mxu1 }
 0x371   : > { %v28355_v51 = vpop.f32.mrf.mxu0 }
 0x372   : > { %32332 = vst [vmem:[#allocation68_spill] sm:$0xff] %v28355_v51  ;;  %v10177_v25 = vpop.f32.mrf.mxu1  ;;  %v7435_v51 = vadd.f32 %v27568_v34, %v27420_v60 }
 0x373   : > { %v28357_v12 = vpop.f32.mrf.mxu0 }
 0x374   : > { %32333 = vst [vmem:[#allocation69_spill] sm:$0xff] %v28357_v12  ;;  %v10181_v49 = vpop.f32.mrf.mxu1 }
 0x375   : > { %v9840_v54 = vpop.f32.mrf.mxu0 }
 0x376   : > { %v28359_v36 = vadd.f32 %v9840_v54, %v9526_v59  ;;  %v28361_v13 = vpop.f32.mrf.mxu1  ;;  %v7853_v59 = vadd.f32 %v27697_v4, %v7435_v51  ;;  %v9942_v51 = vadd.f32 %v28319_v41, %v28285_v53 }
 0x377   : > { %v28363_v26 = vpop.f32.mrf.mxu0 }
 0x378   : > { %32334 = vst [vmem:[#allocation70_spill] sm:$0xff] %v28363_v26  ;;  %v28365_v9 = vpop.f32.mrf.mxu1 }
 0x379   : > { %v9846_v14 = vpop.f32.mrf.mxu0 }
 0x37a   : > { %v28367_v8 = vadd.f32 %v9846_v14, %v9534_v6  ;;  %v28369_v2 = vpop.f32.mrf.mxu1  ;;  %v7443_v6 = vadd.f32 %v27599_v30, %v27451_v3  ;;  %v8271_v14 = vadd.f32 %v27874_v28, %v7853_v59 }
 0x37b   : > { %v28373_v46 = vpop.f32.mrf.mxu0 }
 0x37c   : > { %32335 = vst [vmem:[#allocation71_spill] sm:$0xff] %v28367_v8  ;;  %32336 = vst [vmem:[#allocation72_spill] sm:$0xff] %v28373_v46  ;;  %v10341_v12 = vpop.f32.mrf.mxu1  ;;  %v7861_v34 = vadd.f32 %v27722_v18, %v7443_v6  ;;  %v8689_v46 = vadd.f32 %v28078_v47, %v8271_v14 }
 0x37d   : > { %v28376_v54 = vadd.f32 %v10341_v12, %v9946_v15  ;;  %v9852_v27 = vpop.f32.mrf.mxu0 }
 0x37e   : > { %v28378_v17 = vadd.f32 %v9852_v27, %v9542_v62  ;;  %v28380_v26 = vpop.f32.mrf.mxu1  ;;  %v7451_v27 = vadd.f32 %v27617_v21, %v27470_v35  ;;  %v8279_v3 = vadd.f32 %v27908_v43, %v7861_v34  ;;  %v9107_v30 = vadd.f32 %v28238_v57, %v8689_v46 }
 0x37f   : > { %v28385_v8 = vpop.f32.mrf.mxu0  ;;  %v7439_v21 = vadd.f32 %v27633_v22, %v27499_v5  ;;  %v10360_v57 = vadd.f32 %v10175_v11, %v9942_v51  ;;  %v9950_v5 = vadd.f32 %v28327_v20, %v28291_v1  ;;  %v7433_v1 = vadd.f32 %v27657_v38, %v27526_v52 }
 0x380   : > { %v10347_v60 = vpop.f32.mrf.mxu1  ;;  %v7869_v62 = vadd.f32 %v27747_v42, %v7451_v27  ;;  %v8697_v47 = vadd.f32 %v28112_v19, %v8279_v3 }
 0x381   : > { %v28389_v4 = vadd.f32 %v10347_v60, %v9954_v40  ;;  %v28391_v12 = vpop.f32.mrf.mxu0  ;;  %v9525_v40 = vadd.f32 %v28287_v7, %v9107_v30  ;;  %v7857_v53 = vadd.f32 %v27772_v39, %v7439_v21 }
 0x382   : > { %v28395_v15 = vpop.f32.mrf.mxu1  ;;  %v8287_v46 = vadd.f32 %v27942_v48, %v7869_v62  ;;  %v9115_v42 = vadd.f32 %v28256_v24, %v8697_v47  ;;  %v28426_v24 = vpop.permute.xlu0 %10805 }
 0x383   : > { %v28399_v28 = vpop.f32.mrf.mxu0  ;;  %v9943_v19 = vadd.f32 %v28323_v23, %v9525_v40  ;;  %v8275_v23 = vadd.f32 %v27976_v0, %v7857_v53  ;;  %v32339_v53 = vld [vmem:[#allocation34_spill] sm:$0xff] }
 0x384   : > { %v10353_v18 = vpop.f32.mrf.mxu1  ;;  %v8705_v41 = vadd.f32 %v28146_v33, %v8287_v46  ;;  %v9533_v6 = vadd.f32 %v28293_v58, %v9115_v42  ;;  %v10368_v33 = vadd.f32 %v10181_v49, %v9950_v5  ;;  %v28433_v58 = vpop.permute.xlu1 %10810 }
 0x385   : > { %v28406_v59 = vadd.f32 %v10353_v18, %v9962_v31  ;;  %v28408_v35 = vpop.f32.mrf.mxu0  ;;  %v10361_v22 = vadd.f32 %v10177_v25, %v9943_v19  ;;  %v8693_v20 = vadd.f32 %v28180_v61, %v8275_v23  ;;  %v7851_v18 = vadd.f32 %v27814_v56, %v7433_v1  ;;  %v32338_v19 = vld [vmem:[#allocation21_spill] sm:$0xff] }
 0x386   : > { %v28413_v43 = vpop.f32.mrf.mxu1  ;;  %v9123_v11 = vadd.f32 %v28265_v50, %v8705_v41  ;;  %v9951_v39 = vadd.f32 %v28329_v10, %v9533_v6  ;;  %v9958_v50 = vadd.f32 %v28333_v32, %v28297_v16  ;;  %v32342_v6 = vld [vmem:[#allocation15_spill] sm:$0xff] }
 0x387   : > { %v28417_v7 = vpop.f32.mrf.mxu0  ;;  %v9111_v52 = vadd.f32 %v28271_v63, %v8693_v20  ;;  %v8269_v40 = vadd.f32 %v28018_v44, %v7851_v18  ;;  %v32346_v20 = vld [vmem:[#allocation22_spill] sm:$0xff] }
 0x388   : > { %v10593_v31 = vpop.f32.mrf.mxu1  ;;  %v9541_v25 = vadd.f32 %v28299_v37, %v9123_v11  ;;  %v10369_v10 = vadd.f32 %v28361_v13, %v9951_v39  ;;  %v10376_v47 = vadd.f32 %v28365_v9, %v9958_v50  ;;  %v7441_v13 = vadd.f32 %v27678_v55, %v27550_v45  ;;  %v28460_v42 = vpop.permute.xlu1 %10815  ;;  %v32340_v55 = vld [vmem:[#allocation71_spill] sm:$0xff]  ;;  %v32344_v11 = vld [vmem:[#allocation28_spill] sm:$0xff]  ;;  %v32345_v39 = vld [vmem:[#allocation42_spill] sm:$0xff] }
 0x389   : > { %v10778_v48 = vadd.f32 %v10593_v31, %v10360_v57  ;;  %v28424_v14 = vpop.f32.mrf.mxu0  ;;  %v8687_v45 = vadd.f32 %v32339_v53, %v8269_v40  ;;  %v32341_v31 = vld [vmem:[#allocation9_spill] sm:$0xff]  ;;  %v32349_v18 = vld [vmem:[#allocation50_spill] sm:$0xff] }
 0x38a   : > { %v10595_v60 = vpop.f32.mrf.mxu1  ;;  %v9959_v37 = vadd.f32 %v28335_v29, %v9541_v25  ;;  %v7859_v57 = vadd.f32 %v32338_v19, %v7441_v13  ;;  %v7449_v5 = vadd.f32 %v32342_v6, %v32341_v31  ;;  %v32352_v13 = vld [vmem:[#allocation16_spill] sm:$0xff]  ;;  %v32356_v19 = vld [vmem:[#allocation23_spill] sm:$0xff]  ;;  %v32359_v6 = vld [vmem:[#allocation53_spill] sm:$0xff] }
 0x38b   : > { %v10779_v34 = vadd.f32 %v10595_v60, %v10361_v22  ;;  %v28431_v27 = vpop.f32.mrf.mxu0  ;;  %v10820_v0 = vadd.f32 %v28426_v24, %v10778_v48  ;;  %v32343_v22 = vld [vmem:[#allocation60_spill] sm:$0xff] }
 0x38c   : > { %v10599_v3 = vpop.f32.mrf.mxu1  ;;  %v10377_v21 = vadd.f32 %v28369_v2, %v9959_v37  ;;  %v8277_v60 = vadd.f32 %v32344_v11, %v7859_v57  ;;  %v7867_v25 = vadd.f32 %v32346_v20, %v7449_v5  ;;  %v32357_v57 = vld [vmem:[#allocation37_spill] sm:$0xff]  ;;  %v32361_v11 = vld [vmem:[#allocation30_spill] sm:$0xff]  ;;  %v32363_v20 = vld [vmem:[#allocation67_spill] sm:$0xff] }
 0x38d   : > { %v10821_v49 = vadd.f32 %v28426_v24, %v10779_v34  ;;  %v10786_v30 = vadd.f32 %v10599_v3, %v10368_v33  ;;  %v10258_v62 = vpop.f32.mrf.mxu0  ;;  %v9105_v33 = vadd.f32 %v32345_v39, %v8687_v45  ;;  %v32360_v5 = vld [vmem:[#allocation65_spill] sm:$0xff] }
 0x38e   : > { %v28447_v38 = vadd.f32 %v10258_v62, %v28359_v36  ;;  %v10601_v61 = vpop.f32.mrf.mxu1  ;;  %v32337_v36 = vld [vmem:[#allocation48_spill] sm:$0xff] }
 0x38f   : > { %23382 = vtanh.f32 %v10821_v49  ;;  %v10787_v16 = vadd.f32 %v10601_v61, %v10369_v10  ;;  %v28451_v32 = vpop.f32.mrf.mxu0  ;;  %v10828_v63 = vadd.f32 %v28433_v58, %v10786_v30  ;;  %v9529_v51 = vadd.f32 %v32337_v36, %v9111_v52  ;;  %v32347_v10 = vld [vmem:[#allocation36_spill] sm:$0xff]  ;;  %v32350_v52 = vld [vmem:[#allocation62_spill] sm:$0xff] }
 0x390   : > { %23384 = vtanh.f32 %v10820_v0  ;;  %v10605_v56 = vpop.f32.mrf.mxu1  ;;  %v8695_v49 = vadd.f32 %v32347_v10, %v8277_v60  ;;  %v32348_v30 = vld [vmem:[#allocation52_spill] sm:$0xff]  ;;  %v9940_v61 = vadd.f32 %v32350_v52, %v32349_v18  ;;  %v11087_v18 = vld [vmem:[%s32196_s3 + $0x6e8] sm:$0xff]  ;;  %v32365_v52 = vld [vmem:[#allocation57_spill] sm:$0xff] }
 0x391   : > { %v10829_v29 = vadd.f32 %v28433_v58, %v10787_v16  ;;  %v10794_v9 = vadd.f32 %v10605_v56, %v10376_v47  ;;  %v10264_v46 = vpop.f32.mrf.mxu0  ;;  %v9947_v48 = vadd.f32 %v32343_v22, %v9529_v51  ;;  %v9523_v62 = vadd.f32 %v32348_v30, %v9105_v33  ;;  %v32351_v16 = vld [vmem:[#allocation10_spill] sm:$0xff]  ;;  %v32354_v51 = vld [vmem:[#allocation44_spill] sm:$0xff]  ;;  %v32362_v33 = vld [vmem:[#allocation45_spill] sm:$0xff] }
 0x392   : > { %v28465_v44 = vadd.f32 %v10264_v46, %v32340_v55  ;;  %v10607_v41 = vpop.f32.mrf.mxu1  ;;  %v7437_v40 = vadd.f32 %v32352_v13, %v32351_v16  ;;  %v10358_v46 = vadd.f32 %v28391_v12, %v9940_v61  ;;  %v9948_v22 = vadd.f32 %v32360_v5, %v32359_v6  ;;  %v11086_v13 = vld [vmem:[%s32196_s3 + $0x6e0] sm:$0xff] }
 0x393   : > { %23386 = vtanh.f32 %v10829_v29  ;;  %v10795_v2 = vadd.f32 %v10607_v41, %v10377_v21  ;;  %v28470_v23 = vpop.f32.mrf.mxu0  ;;  %v10836_v34 = vadd.f32 %v28460_v42, %v10794_v9  ;;  %v10365_v0 = vadd.f32 %v28380_v26, %v9947_v48  ;;  %v32355_v29 = vld [vmem:[#allocation64_spill] sm:$0xff]  ;;  %v32358_v41 = vld [vmem:[#allocation55_spill] sm:$0xff] }
 0x394   : > { %23388 = vtanh.f32 %v10828_v63  ;;  %v28475_v1 = vpop.f32.mrf.mxu1  ;;  %v32353_v63 = vld [vmem:[#allocation29_spill] sm:$0xff]  ;;  %v9113_v21 = vadd.f32 %v32354_v51, %v8695_v49  ;;  %v9941_v9 = vadd.f32 %v32355_v29, %v9523_v62  ;;  %v32364_v49 = vld [vmem:[#allocation38_spill] sm:$0xff] }
 0x395   : > { %v10837_v3 = vadd.f32 %v28460_v42, %v10795_v2  ;;  %v10270_v50 = vpop.f32.mrf.mxu0  ;;  %v8285_v56 = vadd.f32 %v32353_v63, %v7867_v25  ;;  %v11085_v29 = vld [vmem:[%s32196_s3 + $0x6d8] sm:$0xff] }
 0x396   : > { %v28485_v37 = vadd.f32 %v10270_v50, %v28378_v17  ;;  %v10761_v47 = vpop.f32.mrf.mxu1  ;;  %v7855_v17 = vadd.f32 %v32356_v19, %v7437_v40  ;;  %v9531_v31 = vadd.f32 %v32358_v41, %v9113_v21  ;;  %v10359_v48 = vadd.f32 %v28399_v28, %v9941_v9  ;;  %v11088_v50 = vld [vmem:[%s32196_s3 + $0x6f0] sm:$0xff]  ;;  %v32366_v40 = vld [vmem:[#allocation46_spill] sm:$0xff]  ;;  %v32369_v9 = vld [vmem:[#allocation69_spill] sm:$0xff] }
 0x397   : > { %23390 = vtanh.f32 %v10837_v3  ;;  %v10783_v26 = vadd.f32 %v10761_v47, %v10365_v0  ;;  %v28490_v36 = vpop.f32.mrf.mxu0  ;;  %v8703_v53 = vadd.f32 %v32357_v57, %v8285_v56  ;;  %v10366_v0 = vadd.f32 %v28408_v35, %v9948_v22  ;;  %v32367_v56 = vld [vmem:[#allocation56_spill] sm:$0xff] }
 0x398   : > { %23392 = vtanh.f32 %v10836_v34  ;;  %v8273_v60 = vadd.f32 %v32361_v11, %v7855_v17  ;;  %v9949_v25 = vadd.f32 %v32363_v20, %v9531_v31  ;;  %v11084_v17 = vld [vmem:[%s32196_s3 + $0x6d0] sm:$0xff]  ;;  %v11083_v31 = vld [vmem:[%s32196_s3 + $0x6c8] sm:$0xff]  ;;  %v11081_v11 = vld [vmem:[%s32196_s3 + $0x6b8] sm:$0xff] }
 0x399   : > { %v10825_v45 = vadd.f32 %v28426_v24, %v10783_v26  ;;  %v10510_v55 = vpop.f32.mrf.mxu0  ;;  %v9121_v34 = vadd.f32 %v32362_v33, %v8703_v53  ;;  %v32368_v26 = vld [vmem:[#allocation68_spill] sm:$0xff]  ;;  %v32370_v53 = vld [vmem:[#allocation58_spill] sm:$0xff] }
 0x39a   : > { %v10776_v2 = vadd.f32 %v10510_v55, %v10358_v46  ;;  %v8691_v28 = vadd.f32 %v32364_v49, %v8273_v60  ;;  %v10367_v35 = vadd.f32 %v28417_v7, %v9949_v25  ;;  %v9956_v51 = vadd.f32 %v32368_v26, %v32367_v56  ;;  %v11080_v33 = vld [vmem:[%s32196_s3 + $0x6b0] sm:$0xff]  ;;  %v11079_v25 = vld [vmem:[%s32196_s3 + $0x6a8] sm:$0xff]  ;;  %v11070_v26 = vld [vmem:[%s32196_s3 + $0x660] sm:$0xff] }
 0x39b   : > { %23394 = vtanh.f32 %v10825_v45  ;;  %v10512_v12 = vpop.f32.mrf.mxu0  ;;  %v9539_v61 = vadd.f32 %v32365_v52, %v9121_v34  ;;  %v11023_v56 = vld [vmem:[%s32196_s3 + $0x4e8] sm:$0xff] }
 0x39c   : > { %v23383_v39 = vpop.eup %23382  ;;  %v10777_v3 = vadd.f32 %v10512_v12, %v10359_v48  ;;  %v10818_v30 = vadd.f32 %v28426_v24, %v10776_v2  ;;  %v9109_v63 = vadd.f32 %v32366_v40, %v8691_v28  ;;  %v10374_v55 = vadd.f32 %v28424_v14, %v9956_v51  ;;  %v11082_v14 = vld [vmem:[%s32196_s3 + $0x6c0] sm:$0xff]  ;;  %v11077_v28 = vld [vmem:[%s32196_s3 + $0x698] sm:$0xff]  ;;  %v11071_v40 = vld [vmem:[%s32196_s3 + $0x668] sm:$0xff] }
 0x39d   : > { %v23385_v10 = vpop.eup %23384  ;;  %v10516_v62 = vpop.f32.mrf.mxu0  ;;  %11269 = vmatprep.mubr.f32.mxu1 %v23383_v39  ;;  %v9957_v46 = vadd.f32 %v32369_v9, %v9539_v61  ;;  %v32371_v12 = vld [vmem:[#allocation70_spill] sm:$0xff]  ;;  %v11068_v9 = vld [vmem:[%s32196_s3 + $0x650] sm:$0xff] }
 0x39e   : > { %v10819_v47 = vadd.f32 %v28426_v24, %v10777_v3  ;;  %v10784_v16 = vadd.f32 %v10516_v62, %v10366_v0  ;;  %11270 = vmatmul.mubr.f32.vlgmr.msra.gmra.mxu1 %v23385_v10  ;;  %v9527_v45 = vadd.f32 %v32370_v53, %v9109_v63  ;;  %v11076_v62 = vld [vmem:[%s32196_s3 + $0x690] sm:$0xff]  ;;  %v11074_v61 = vld [vmem:[%s32196_s3 + $0x680] sm:$0xff] }
 0x39f   : > { %11372 = vmatpush1.msra.mxu1 %v11088_v50  ;;  %v10518_v21 = vpop.f32.mrf.mxu0  ;;  %v10375_v6 = vadd.f32 %v28431_v27, %v9957_v46  ;;  %v11078_v50 = vld [vmem:[%s32196_s3 + $0x6a0] sm:$0xff]  ;;  %v11020_v46 = vld [vmem:[%s32196_s3 + $0x4d0] sm:$0xff] }
 0x3a0   : > { %v23387_v7 = vpop.eup %23386  ;;  %23396 = vtanh.f32 %v10819_v47  ;;  %v10785_v19 = vadd.f32 %v10518_v21, %v10367_v35  ;;  %11373 = vmatprep.subr.mxu1 %v11087_v18  ;;  %v10826_v5 = vadd.f32 %v28433_v58, %v10784_v16  ;;  %v9945_v27 = vadd.f32 %v32371_v12, %v9527_v45  ;;  %v11075_v18 = vld [vmem:[%s32196_s3 + $0x688] sm:$0xff]  ;;  %v11073_v35 = vld [vmem:[%s32196_s3 + $0x678] sm:$0xff]  ;;  %v11072_v47 = vld [vmem:[%s32196_s3 + $0x670] sm:$0xff] }
 0x3a1   : > { %v23389_v57 = vpop.eup %23388  ;;  %23398 = vtanh.f32 %v10818_v30  ;;  %11374 = vmatpush1.msra.mxu1 %v11086_v13  ;;  %v10522_v41 = vpop.f32.mrf.mxu0  ;;  %11275 = vmatprep.mubr.f32.mxu1 %v23387_v7  ;;  %v11024_v13 = vld [vmem:[%s32196_s3 + $0x4f0] sm:$0xff]  ;;  %v11022_v51 = vld [vmem:[%s32196_s3 + $0x4e0] sm:$0xff]  ;;  %v11069_v21 = vld [vmem:[%s32196_s3 + $0x658] sm:$0xff] }
 0x3a2   : > { %v10827_v22 = vadd.f32 %v28433_v58, %v10785_v19  ;;  %11375 = vmatprep.subr.mxu1 %v11085_v29  ;;  %11276 = vmatmul.mubr.f32.gmra.mxu1 %v23389_v57  ;;  %v10792_v48 = vadd.f32 %v10522_v41, %v10374_v55  ;;  %v10363_v0 = vadd.f32 %v28451_v32, %v9945_v27  ;;  %v11021_v29 = vld [vmem:[%s32196_s3 + $0x4d8] sm:$0xff]  ;;  %v11067_v19 = vld [vmem:[%s32196_s3 + $0x648] sm:$0xff]  ;;  %v11066_v53 = vld [vmem:[%s32196_s3 + $0x640] sm:$0xff] }
 0x3a3   : > { %11376 = vmatpush1.msra.mxu1 %v11084_v17  ;;  %v10524_v2 = vpop.f32.mrf.mxu0  ;;  %v11019_v57 = vld [vmem:[%s32196_s3 + $0x4c8] sm:$0xff]  ;;  %v11018_v45 = vld [vmem:[%s32196_s3 + $0x4c0] sm:$0xff]  ;;  %v11065_v55 = vld [vmem:[%s32196_s3 + $0x638] sm:$0xff] }
 0x3a4   : > { %v23391_v60 = vpop.eup %23390  ;;  %23400 = vtanh.f32 %v10827_v22  ;;  %v10793_v39 = vadd.f32 %v10524_v2, %v10375_v6  ;;  %11377 = vmatprep.subr.mxu1 %v11083_v31  ;;  %v10834_v10 = vadd.f32 %v28460_v42, %v10792_v48  ;;  %v11017_v31 = vld [vmem:[%s32196_s3 + $0x4b8] sm:$0xff]  ;;  %v11064_v6 = vld [vmem:[%s32196_s3 + $0x630] sm:$0xff]  ;;  %v11063_v22 = vld [vmem:[%s32196_s3 + $0x628] sm:$0xff] }
 0x3a5   : > { %v23393_v34 = vpop.eup %23392  ;;  %11378 = vmatpush1.msra.mxu1 %v11082_v14  ;;  %v28548_v20 = vpop.f32.mrf.mxu0  ;;  %11281 = vmatprep.mubr.f32.mxu1 %v23391_v60  ;;  %23402 = vtanh.f32 %v10826_v5  ;;  %v11016_v5 = vld [vmem:[%s32196_s3 + $0x4b0] sm:$0xff]  ;;  %v11015_v48 = vld [vmem:[%s32196_s3 + $0x4a8] sm:$0xff]  ;;  %v11062_v2 = vld [vmem:[%s32196_s3 + $0x620] sm:$0xff] }
 0x3a6   : > { %v10835_v3 = vadd.f32 %v28460_v42, %v10793_v39  ;;  %11379 = vmatprep.subr.mxu1 %v11081_v11  ;;  %11282 = vmatmul.mubr.f32.gmra.mxu1 %v23393_v34  ;;  %v11014_v11 = vld [vmem:[%s32196_s3 + $0x4a0] sm:$0xff]  ;;  %v11061_v60 = vld [vmem:[%s32196_s3 + $0x618] sm:$0xff]  ;;  %v32372_v27 = vld [vmem:[#allocation3_spill] sm:$0xff] }
 0x3a7   : > { %11380 = vmatpush1.msra.mxu1 %v11080_v33  ;;  %v10678_v49 = vpop.f32.mrf.mxu0  ;;  %v32373_v39 = vld [vmem:[#allocation7_spill] sm:$0xff]  ;;  %v11013_v34 = vld [vmem:[%s32196_s3 + $0x498] sm:$0xff] }
 0x3a8   : > { %v23395_v30 = vpop.eup %23394  ;;  %23404 = vtanh.f32 %v10835_v3  ;;  %v10781_v32 = vadd.f32 %v10678_v49, %v10363_v0  ;;  %11381 = vmatprep.subr.mxu1 %v11079_v25  ;;  %v7029_v33 = vadd.f32 %v32373_v39, %v32372_v27  ;;  %v11060_v25 = vld [vmem:[%s32196_s3 + $0x610] sm:$0xff]  ;;  %v32374_v3 = vld [vmem:[#allocation13_spill] sm:$0xff]  ;;  %v11011_v49 = vld [vmem:[%s32196_s3 + $0x488] sm:$0xff] }
 0x3a9   : > { %11382 = vmatpush1.msra.mxu1 %v11078_v50  ;;  %11435 = vmatprep.mubr.f32.mxu1 %v23395_v30  ;;  %23406 = vtanh.f32 %v10834_v10  ;;  %v11012_v0 = vld [vmem:[%s32196_s3 + $0x490] sm:$0xff]  ;;  %v11059_v10 = vld [vmem:[%s32196_s3 + $0x608] sm:$0xff]  ;;  %v11010_v30 = vld [vmem:[%s32196_s3 + $0x480] sm:$0xff] }
 0x3aa   : > { %v10823_v52 = vadd.f32 %v28426_v24, %v10781_v32  ;;  %11383 = vmatprep.subr.mxu1 %v11077_v28  ;;  %v7447_v50 = vadd.f32 %v32374_v3, %v7029_v33  ;;  %v11058_v28 = vld [vmem:[%s32196_s3 + $0x600] sm:$0xff]  ;;  %v32375_v32 = vld [vmem:[#allocation4_spill] sm:$0xff]  ;;  %v32385_v39 = vld [vmem:[#allocation51_spill] sm:$0xff] }
 0x3ab   : > { %11384 = vmatpush1.msra.mxu1 %v11076_v62  ;;  %v32376_v62 = vld [vmem:[#allocation8_spill] sm:$0xff] }
 0x3ac   : > { %11385 = vmatprep.subr.mxu1 %v11075_v18  ;;  %23408 = vtanh.f32 %v10823_v52  ;;  %v7037_v18 = vadd.f32 %v32376_v62, %v32375_v32  ;;  %v32377_v52 = vld [vmem:[#allocation19_spill] sm:$0xff]  ;;  %v11000_v3 = vld [vmem:[%s32196_s3 + $0x430] sm:$0xff] }
 0x3ad   : > { %v23397_v16 = vpop.eup %23396  ;;  %11386 = vmatpush1.msra.mxu1 %v11074_v61  ;;  %v7865_v61 = vadd.f32 %v32377_v52, %v7447_v50  ;;  %v32386_v50 = vld [vmem:[#allocation43_spill] sm:$0xff]  ;;  %v10998_v52 = vld [vmem:[%s32196_s3 + $0x420] sm:$0xff] }
 0x3ae   : > { %v23399_v63 = vpop.eup %23398  ;;  %11387 = vmatprep.subr.mxu1 %v11073_v35  ;;  %11186 = vmatprep.mubr.f32.mxu0 %v23397_v16  ;;  %v11121_v35 = vld [vmem:[%s32196_s3 + $0x7f8] sm:$0xff]  ;;  %v11120_v16 = vld [vmem:[%s32196_s3 + $0x7f0] sm:$0xff]  ;;  %v10999_v32 = vld [vmem:[%s32196_s3 + $0x428] sm:$0xff] }
 0x3af   : > { %11388 = vmatpush1.msra.mxu1 %v11072_v47  ;;  %11187 = vmatmul.mubr.f32.vlgmr.msra.gmra.mxu0 %v23399_v63  ;;  %v11009_v47 = vld [vmem:[%s32196_s3 + $0x478] sm:$0xff] }
 0x3b0   : > { %11289 = vmatpush1.msra.mxu0 %v11024_v13  ;;  %11389 = vmatprep.subr.mxu1 %v11071_v40  ;;  %v11008_v13 = vld [vmem:[%s32196_s3 + $0x470] sm:$0xff]  ;;  %v32378_v40 = vld [vmem:[#allocation14_spill] sm:$0xff] }
 0x3b1   : > { %v23401_v7 = vpop.eup %23400  ;;  %11290 = vmatprep.subr.mxu0 %v11023_v56  ;;  %11390 = vmatpush1.msra.mxu1 %v11070_v26  ;;  %v7455_v63 = vadd.f32 %v32378_v40, %v7037_v18  ;;  %v32379_v56 = vld [vmem:[#allocation26_spill] sm:$0xff] }
 0x3b2   : > { %11291 = vmatpush1.msra.mxu0 %v11022_v51  ;;  %11391 = vmatprep.subr.mxu1 %v11069_v21  ;;  %v23403_v17 = vpop.eup %23402  ;;  %v8283_v26 = vadd.f32 %v32379_v56, %v7865_v61  ;;  %v11119_v51 = vld [vmem:[%s32196_s3 + $0x7e8] sm:$0xff]  ;;  %v11110_v18 = vld [vmem:[%s32196_s3 + $0x7a0] sm:$0xff]  ;;  %v32388_v61 = vld [vmem:[#allocation5_spill] sm:$0xff] }
 0x3b3   : > { %11192 = vmatprep.mubr.f32.mxu0 %v23401_v7  ;;  %11292 = vmatprep.subr.mxu0 %v11021_v29  ;;  %v11007_v21 = vld [vmem:[%s32196_s3 + $0x468] sm:$0xff]  ;;  %v28691_v29 = vpop.f32.mrf.mxu1  ;;  %v11118_v7 = vld [vmem:[%s32196_s3 + $0x7e0] sm:$0xff]  ;;  %v10997_v56 = vld [vmem:[%s32196_s3 + $0x418] sm:$0xff] }
 0x3b4   : > { %11392 = vmatpush1.msra.mxu1 %v11068_v9  ;;  %11193 = vmatmul.mubr.f32.gmra.mxu0 %v23403_v17  ;;  %v11006_v9 = vld [vmem:[%s32196_s3 + $0x460] sm:$0xff]  ;;  %v32381_v17 = vld [vmem:[#allocation33_spill] sm:$0xff] }
 0x3b5   : > { %v23405_v41 = vpop.eup %23404  ;;  %11293 = vmatpush1.msra.mxu0 %v11020_v46  ;;  %11393 = vmatprep.subr.mxu1 %v11067_v19  ;;  %v32380_v46 = vld [vmem:[#allocation20_spill] sm:$0xff] }
 0x3b6   : > { %11294 = vmatprep.subr.mxu0 %v11019_v57  ;;  %11394 = vmatpush1.msra.mxu1 %v11066_v53  ;;  %v23407_v14 = vpop.eup %23406  ;;  %v7873_v19 = vadd.f32 %v32380_v46, %v7455_v63  ;;  %v8701_v57 = vadd.f32 %v32381_v17, %v8283_v26  ;;  %v11117_v53 = vld [vmem:[%s32196_s3 + $0x7d8] sm:$0xff]  ;;  %v10782_v26 = vadd.f32 %v28475_v1, %v28376_v54  ;;  %v11107_v54 = vld [vmem:[%s32196_s3 + $0x788] sm:$0xff]  ;;  %v32393_v17 = vld [vmem:[#allocation6_spill] sm:$0xff] }
 0x3b7   : > { %11295 = vmatpush1.msra.mxu0 %v11018_v45  ;;  %11395 = vmatprep.subr.mxu1 %v11065_v55  ;;  %v11005_v45 = vld [vmem:[%s32196_s3 + $0x458] sm:$0xff]  ;;  %v11116_v55 = vld [vmem:[%s32196_s3 + $0x7d0] sm:$0xff]  ;;  %v10995_v1 = vld [vmem:[%s32196_s3 + $0x408] sm:$0xff] }
 0x3b8   : > { %11198 = vmatprep.mubr.f32.mxu0 %v23405_v41  ;;  %11296 = vmatprep.subr.mxu0 %v11017_v31  ;;  %v11004_v41 = vld [vmem:[%s32196_s3 + $0x450] sm:$0xff]  ;;  %v32382_v31 = vld [vmem:[#allocation27_spill] sm:$0xff]  ;;  %v11109_v63 = vld [vmem:[%s32196_s3 + $0x798] sm:$0xff] }
 0x3b9   : > { %11396 = vmatpush1.msra.mxu1 %v11064_v6  ;;  %11199 = vmatmul.mubr.f32.gmra.mxu0 %v23407_v14  ;;  %v23409_v12 = vpop.eup %23408  ;;  %v8291_v6 = vadd.f32 %v32382_v31, %v7873_v19  ;;  %v11115_v14 = vld [vmem:[%s32196_s3 + $0x7c8] sm:$0xff]  ;;  %v32395_v31 = vld [vmem:[#allocation24_spill] sm:$0xff] }
 0x3ba   : > { %11297 = vmatpush1.msra.mxu0 %v11016_v5  ;;  %11397 = vmatprep.subr.mxu1 %v11063_v22  ;;  %v32383_v5 = vld [vmem:[#allocation41_spill] sm:$0xff] }
 0x3bb   : > { %11298 = vmatprep.subr.mxu0 %v11015_v48  ;;  %11398 = vmatpush1.msra.mxu1 %v11062_v2  ;;  %v9119_v22 = vadd.f32 %v32383_v5, %v8701_v57  ;;  %v11003_v48 = vld [vmem:[%s32196_s3 + $0x448] sm:$0xff]  ;;  %v10767_v2 = vpop.f32.mrf.mxu1  ;;  %v32394_v57 = vld [vmem:[#allocation12_spill] sm:$0xff] }
 0x3bc   : > { %11299 = vmatpush1.msra.mxu0 %v11014_v11  ;;  %11399 = vmatprep.subr.mxu1 %v11061_v60  ;;  %v11114_v11 = vld [vmem:[%s32196_s3 + $0x7c0] sm:$0xff] }
 0x3bd   : > { %11300 = vmatprep.subr.mxu0 %v11013_v34  ;;  %11352 = vmatprep.mubr.f32.mxu0 %v23409_v12  ;;  %v11002_v60 = vld [vmem:[%s32196_s3 + $0x440] sm:$0xff]  ;;  %v32384_v12 = vld [vmem:[#allocation35_spill] sm:$0xff]  ;;  %v9537_v33 = vadd.f32 %v32385_v39, %v9119_v22  ;;  %v11113_v34 = vld [vmem:[%s32196_s3 + $0x7b8] sm:$0xff]  ;;  %v28749_v62 = vpop.f32.mrf.mxu1 }
 0x3be   : > { %11400 = vmatpush1.msra.mxu1 %v11060_v25  ;;  %11301 = vmatpush1.msra.mxu0 %v11012_v0  ;;  %v8709_v27 = vadd.f32 %v32384_v12, %v8291_v6  ;;  %v11001_v25 = vld [vmem:[%s32196_s3 + $0x438] sm:$0xff]  ;;  %v11112_v0 = vld [vmem:[%s32196_s3 + $0x7b0] sm:$0xff] }
 0x3bf   : > { %11401 = vmatprep.subr.mxu1 %v11059_v10  ;;  %11302 = vmatprep.subr.mxu0 %v11011_v49  ;;  %v32387_v49 = vld [vmem:[#allocation63_spill] sm:$0xff]  ;;  %v11105_v22 = vld [vmem:[%s32196_s3 + $0x778] sm:$0xff]  ;;  %v11056_v12 = vld [vmem:[%s32196_s3 + $0x5f0] sm:$0xff] }
 0x3c0   : > { %11402 = vmatpush1.msra.mxu1 %v11058_v28  ;;  %11303 = vmatpush1.msra.mxu0 %v11010_v30  ;;  %v9127_v10 = vadd.f32 %v32386_v50, %v8709_v27  ;;  %v9955_v28 = vadd.f32 %v32387_v49, %v9537_v33  ;;  %v11111_v30 = vld [vmem:[%s32196_s3 + $0x7a8] sm:$0xff]  ;;  %v32398_v50 = vld [vmem:[#allocation25_spill] sm:$0xff] }
 0x3c1   : > { %11403 = vmatprep.subr.mxu1 %v11121_v35  ;;  %11304 = vmatprep.subr.mxu0 %v11009_v47  ;;  %v32389_v35 = vld [vmem:[#allocation11_spill] sm:$0xff] }
 0x3c2   : > { %11404 = vmatpush2.msra.mxu1 %v11120_v16  ;;  %11305 = vmatpush1.msra.mxu0 %v11008_v13  ;;  %v7027_v47 = vadd.f32 %v32389_v35, %v32388_v61  ;;  %v32390_v16 = vld [vmem:[#allocation54_spill] sm:$0xff]  ;;  %v10373_v40 = vadd.f32 %v28395_v15, %v9955_v28  ;;  %v10996_v15 = vld [vmem:[%s32196_s3 + $0x410] sm:$0xff]  ;;  %v32397_v27 = vld [vmem:[#allocation31_spill] sm:$0xff] }
 0x3c3   : > { %11405 = vmatprep.subr.mxu1 %v11119_v51  ;;  %11306 = vmatprep.subr.mxu0 %v11007_v21  ;;  %v9545_v13 = vadd.f32 %v32390_v16, %v9127_v10  ;;  %v11108_v51 = vld [vmem:[%s32196_s3 + $0x790] sm:$0xff]  ;;  %v32391_v21 = vld [vmem:[#allocation17_spill] sm:$0xff]  ;;  %v32399_v49 = vld [vmem:[#allocation39_spill] sm:$0xff] }
 0x3c4   : > { %11406 = vmatpush2.msra.mxu1 %v11118_v7  ;;  %11307 = vmatpush1.msra.mxu0 %v11006_v9  ;;  %v7445_v7 = vadd.f32 %v32391_v21, %v7027_v47  ;;  %v32392_v9 = vld [vmem:[#allocation66_spill] sm:$0xff]  ;;  %v10791_v19 = vadd.f32 %v10767_v2, %v10373_v40  ;;  %v11100_v61 = vld [vmem:[%s32196_s3 + $0x750] sm:$0xff] }
 0x3c5   : > { %11407 = vmatprep.subr.mxu1 %v11117_v53  ;;  %11308 = vmatprep.subr.mxu0 %v11005_v45  ;;  %v9963_v46 = vadd.f32 %v32392_v9, %v9545_v13  ;;  %v7035_v53 = vadd.f32 %v32394_v57, %v32393_v17  ;;  %v10773_v45 = vpop.f32.mrf.mxu1  ;;  %v11052_v35 = vld [vmem:[%s32196_s3 + $0x5d0] sm:$0xff]  ;;  %v32401_v13 = vld [vmem:[#allocation47_spill] sm:$0xff]  ;;  %v32404_v57 = vld [vmem:[#allocation49_spill] sm:$0xff] }
 0x3c6   : > { %11408 = vmatpush2.msra.mxu1 %v11116_v55  ;;  %11309 = vmatpush1.msra.mxu0 %v11004_v41  ;;  %v11106_v55 = vld [vmem:[%s32196_s3 + $0x780] sm:$0xff]  ;;  %v7863_v6 = vadd.f32 %v32395_v31, %v7445_v7  ;;  %v10833_v33 = vadd.f32 %v28433_v58, %v10791_v19  ;;  %v32400_v47 = vld [vmem:[#allocation32_spill] sm:$0xff]  ;;  %v32403_v7 = vld [vmem:[#allocation59_spill] sm:$0xff] }
 0x3c7   : > { %11409 = vmatprep.subr.mxu1 %v11115_v14  ;;  %11310 = vmatprep.subr.mxu0 %v11003_v48  ;;  %v10994_v41 = vld [vmem:[%s32196_s3 + $0x400] sm:$0xff]  ;;  %v10381_v5 = vadd.f32 %v28413_v43, %v9963_v46  ;;  %v11057_v14 = vld [vmem:[%s32196_s3 + $0x5f8] sm:$0xff]  ;;  %v11104_v43 = vld [vmem:[%s32196_s3 + $0x770] sm:$0xff] }
 0x3c8   : > { %11410 = vmatpush2.msra.mxu1 %v11114_v11  ;;  %11311 = vmatpush1.msra.mxu0 %v11002_v60  ;;  %v32396_v48 = vld [vmem:[#allocation18_spill] sm:$0xff]  ;;  %v10824_v11 = vadd.f32 %v28426_v24, %v10782_v26  ;;  %v10790_v60 = vadd.f32 %v28691_v29, %v28389_v4  ;;  %v8281_v39 = vadd.f32 %v32397_v27, %v7863_v6  ;;  %v11103_v4 = vld [vmem:[%s32196_s3 + $0x768] sm:$0xff]  ;;  %v11097_v46 = vld [vmem:[%s32196_s3 + $0x738] sm:$0xff] }
 0x3c9   : > { %11411 = vmatprep.subr.mxu1 %v11113_v34  ;;  %11312 = vmatprep.subr.mxu0 %v11001_v25  ;;  %v7453_v2 = vadd.f32 %v32396_v48, %v7035_v53  ;;  %v10799_v34 = vadd.f32 %v10773_v45, %v10381_v5  ;;  %v11055_v29 = vld [vmem:[%s32196_s3 + $0x5e8] sm:$0xff]  ;;  %v28817_v25 = vpop.f32.mrf.mxu0  ;;  %v11098_v26 = vld [vmem:[%s32196_s3 + $0x740] sm:$0xff]  ;;  %v11049_v19 = vld [vmem:[%s32196_s3 + $0x5b8] sm:$0xff] }
 0x3ca   : > { %11412 = vmatpush2.msra.mxu1 %v11112_v0  ;;  %11313 = vmatpush1.msra.mxu0 %v11000_v3  ;;  %v11102_v0 = vld [vmem:[%s32196_s3 + $0x760] sm:$0xff]  ;;  %v8699_v28 = vadd.f32 %v32399_v49, %v8281_v39  ;;  %23410 = vtanh.f32 %v10824_v11  ;;  %v11048_v17 = vld [vmem:[%s32196_s3 + $0x5b0] sm:$0xff]  ;;  %v11047_v31 = vld [vmem:[%s32196_s3 + $0x5a8] sm:$0xff] }
 0x3cb   : > { %11413 = vmatprep.subr.mxu1 %v11111_v30  ;;  %11314 = vmatprep.subr.mxu0 %v10999_v32  ;;  %v11054_v3 = vld [vmem:[%s32196_s3 + $0x5e0] sm:$0xff]  ;;  %v7871_v10 = vadd.f32 %v32398_v50, %v7453_v2  ;;  %v11101_v30 = vld [vmem:[%s32196_s3 + $0x758] sm:$0xff]  ;;  %23412 = vtanh.f32 %v10833_v33  ;;  %v32405_v45 = vld [vmem:[#allocation72_spill] sm:$0xff] }
 0x3cc   : > { %11414 = vmatpush2.msra.mxu1 %v11110_v18  ;;  %11315 = vmatpush1.msra.mxu0 %v10998_v52  ;;  %v11053_v32 = vld [vmem:[%s32196_s3 + $0x5d8] sm:$0xff]  ;;  %v10832_v18 = vadd.f32 %v28433_v58, %v10790_v60  ;;  %v10798_v52 = vadd.f32 %v28749_v62, %v28406_v59  ;;  %v9117_v40 = vadd.f32 %v32401_v13, %v8699_v28  ;;  %v11099_v59 = vld [vmem:[%s32196_s3 + $0x748] sm:$0xff]  ;;  %v11094_v5 = vld [vmem:[%s32196_s3 + $0x720] sm:$0xff] }
 0x3cd   : > { %11415 = vmatprep.subr.mxu1 %v11109_v63  ;;  %11316 = vmatprep.subr.mxu0 %v10997_v56  ;;  %v8289_v16 = vadd.f32 %v32400_v47, %v7871_v10  ;;  %v10841_v63 = vadd.f32 %v28460_v42, %v10799_v34  ;;  %v11051_v62 = vld [vmem:[%s32196_s3 + $0x5c8] sm:$0xff]  ;;  %v10684_v56 = vpop.f32.mrf.mxu0  ;;  %v11093_v11 = vld [vmem:[%s32196_s3 + $0x718] sm:$0xff]  ;;  %v11090_v34 = vld [vmem:[%s32196_s3 + $0x700] sm:$0xff] }
 0x3ce   : > { %11416 = vmatpush2.msra.mxu1 %v11108_v51  ;;  %11317 = vmatpush1.msra.mxu0 %v10996_v15  ;;  %v11050_v51 = vld [vmem:[%s32196_s3 + $0x5c0] sm:$0xff]  ;;  %v32402_v15 = vld [vmem:[#allocation40_spill] sm:$0xff]  ;;  %v9535_v9 = vadd.f32 %v32403_v7, %v9117_v40  ;;  %23414 = vtanh.f32 %v10832_v18  ;;  %v11045_v60 = vld [vmem:[%s32196_s3 + $0x598] sm:$0xff] }
 0x3cf   : > { %11417 = vmatprep.subr.mxu1 %v11107_v54  ;;  %11318 = vmatprep.subr.mxu0 %v10995_v1  ;;  %v8707_v21 = vadd.f32 %v32402_v15, %v8289_v16  ;;  %v10840_v54 = vadd.f32 %v28460_v42, %v10798_v52  ;;  %v11096_v1 = vld [vmem:[%s32196_s3 + $0x730] sm:$0xff]  ;;  %23416 = vtanh.f32 %v10841_v63  ;;  %v10688_v6 = vpop.f32.mrf.mxu0  ;;  %v11091_v33 = vld [vmem:[%s32196_s3 + $0x708] sm:$0xff] }
 0x3d0   : > { %11418 = vmatpush2.msra.mxu1 %v11106_v55  ;;  %11319 = vmatpush1.msra.mxu0 %v10994_v41  ;;  %v9953_v55 = vadd.f32 %v32405_v45, %v9535_v9  ;;  %v11095_v41 = vld [vmem:[%s32196_s3 + $0x728] sm:$0xff]  ;;  %v11040_v50 = vld [vmem:[%s32196_s3 + $0x570] sm:$0xff] }
 0x3d1   : > { %11419 = vmatprep.subr.mxu1 %v11105_v22  ;;  %11320 = vmatprep.subr.mxu0 %v11057_v14  ;;  %v9125_v53 = vadd.f32 %v32404_v57, %v8707_v21  ;;  %v11046_v22 = vld [vmem:[%s32196_s3 + $0x5a0] sm:$0xff]  ;;  %v32406_v14 = vld [vmem:[#allocation61_spill] sm:$0xff]  ;;  %23418 = vtanh.f32 %v10840_v54  ;;  %v11039_v28 = vld [vmem:[%s32196_s3 + $0x568] sm:$0xff] }
 0x3d2   : > { %11420 = vmatpush2.msra.mxu1 %v11104_v43  ;;  %11321 = vmatpush2.msra.mxu0 %v11056_v12  ;;  %v10371_v2 = vadd.f32 %v28470_v23, %v9953_v55  ;;  %v10780_v43 = vadd.f32 %v28548_v20, %v28447_v38  ;;  %v11092_v23 = vld [vmem:[%s32196_s3 + $0x710] sm:$0xff]  ;;  %v11043_v38 = vld [vmem:[%s32196_s3 + $0x588] sm:$0xff]  ;;  %v10690_v20 = vpop.f32.mrf.mxu0 }
 0x3d3   : > { %11421 = vmatprep.subr.mxu1 %v11103_v4  ;;  %11322 = vmatprep.subr.mxu0 %v11055_v29  ;;  %v9543_v48 = vadd.f32 %v32406_v14, %v9125_v53  ;;  %v11044_v12 = vld [vmem:[%s32196_s3 + $0x590] sm:$0xff]  ;;  %v11041_v29 = vld [vmem:[%s32196_s3 + $0x578] sm:$0xff]  ;;  %v11031_v63 = vld [vmem:[%s32196_s3 + $0x528] sm:$0xff] }
 0x3d4   : > { %11422 = vmatpush2.msra.mxu1 %v11102_v0  ;;  %11323 = vmatpush2.msra.mxu0 %v11054_v3  ;;  %v10789_v39 = vadd.f32 %v10684_v56, %v10371_v2  ;;  %v10822_v0 = vadd.f32 %v28426_v24, %v10780_v43  ;;  %v10788_v3 = vadd.f32 %v28817_v25, %v28465_v44  ;;  %v11038_v44 = vld [vmem:[%s32196_s3 + $0x560] sm:$0xff]  ;;  %v11037_v25 = vld [vmem:[%s32196_s3 + $0x558] sm:$0xff]  ;;  %v11036_v18 = vld [vmem:[%s32196_s3 + $0x550] sm:$0xff] }
 0x3d5   : > { %11423 = vmatprep.subr.mxu1 %v11101_v30  ;;  %11324 = vmatprep.subr.mxu0 %v11053_v32  ;;  %v9961_v27 = vadd.f32 %v28385_v8, %v9543_v48  ;;  %v11042_v8 = vld [vmem:[%s32196_s3 + $0x580] sm:$0xff]  ;;  %v10796_v32 = vadd.f32 %v10688_v6, %v28485_v37  ;;  %v11033_v37 = vld [vmem:[%s32196_s3 + $0x538] sm:$0xff]  ;;  %v11032_v13 = vld [vmem:[%s32196_s3 + $0x530] sm:$0xff] }
 0x3d6   : > { %11424 = vmatpush2.msra.mxu1 %v11100_v61  ;;  %11325 = vmatpush2.msra.mxu0 %v11052_v35  ;;  %23420 = vtanh.f32 %v10822_v0  ;;  %v10830_v30 = vadd.f32 %v28433_v58, %v10788_v3  ;;  %v11035_v35 = vld [vmem:[%s32196_s3 + $0x548] sm:$0xff] }
 0x3d7   : > { %11425 = vmatprep.subr.mxu1 %v11099_v59  ;;  %11326 = vmatprep.subr.mxu0 %v11051_v62  ;;  %v10379_v4 = vadd.f32 %v28490_v36, %v9961_v27  ;;  %v23411_v10 = vpop.eup %23410  ;;  %v10831_v36 = vadd.f32 %v28433_v58, %v10789_v39  ;;  %v11034_v58 = vld [vmem:[%s32196_s3 + $0x540] sm:$0xff]  ;;  %v10838_v16 = vadd.f32 %v28460_v42, %v10796_v32  ;;  %v11028_v62 = vld [vmem:[%s32196_s3 + $0x510] sm:$0xff]  ;;  %v11027_v56 = vld [vmem:[%s32196_s3 + $0x508] sm:$0xff] }
 0x3d8   : > { %11426 = vmatpush2.msra.mxu1 %v11098_v26  ;;  %11327 = vmatpush2.msra.mxu0 %v11050_v51  ;;  %v23413_v24 = vpop.eup %23412  ;;  %v11030_v59 = vld [vmem:[%s32196_s3 + $0x520] sm:$0xff] }
 0x3d9   : > { %11427 = vmatprep.subr.mxu1 %v11097_v46  ;;  %11328 = vmatprep.subr.mxu0 %v11049_v19  ;;  %v10797_v49 = vadd.f32 %v10690_v20, %v10379_v4  ;;  %23422 = vtanh.f32 %v10831_v36  ;;  %v11026_v26 = vld [vmem:[%s32196_s3 + $0x500] sm:$0xff] }
 0x3da   : > { %11428 = vmatpush2.msra.mxu1 %v11096_v1  ;;  %11329 = vmatpush2.msra.mxu0 %v11048_v17  ;;  %23424 = vtanh.f32 %v10830_v30 }
 0x3db   : > { %11429 = vmatprep.subr.mxu1 %v11095_v41  ;;  %11330 = vmatprep.subr.mxu0 %v11047_v31  ;;  %v23415_v52 = vpop.eup %23414  ;;  %v10839_v61 = vadd.f32 %v28460_v42, %v10797_v49  ;;  %v11029_v42 = vld [vmem:[%s32196_s3 + $0x518] sm:$0xff] }
 0x3dc   : > { %11430 = vmatpush2.msra.mxu1 %v11094_v5  ;;  %11331 = vmatpush2.msra.mxu0 %v11046_v22  ;;  %v23417_v47 = vpop.eup %23416 }
 0x3dd   : > { %11431 = vmatprep.subr.mxu1 %v11093_v11  ;;  %11332 = vmatprep.subr.mxu0 %v11045_v60  ;;  %23426 = vtanh.f32 %v10839_v61 }
 0x3de   : > { %11432 = vmatpush2.msra.mxu1 %v11092_v23  ;;  %11333 = vmatpush2.msra.mxu0 %v11044_v12  ;;  %v23419_v40 = vpop.eup %23418  ;;  %23428 = vtanh.f32 %v10838_v16 }
 0x3df   : > { %11433 = vmatprep.subr.mxu1 %v11091_v33  ;;  %11334 = vmatprep.subr.mxu0 %v11043_v38 }
 0x3e0   : > { %11434 = vmatpush2.msra.mxu1 %v11090_v34  ;;  %11335 = vmatpush2.msra.mxu0 %v11042_v8 }
 0x3e1   : > { %11436 = vmatmul.mubr.f32.vlgmr.msra.gmra.mxu1 %v23411_v10  ;;  %11336 = vmatprep.subr.mxu0 %v11041_v29 }
 0x3e2   : > { %11441 = vmatprep.mubr.f32.mxu1 %v23413_v24  ;;  %11337 = vmatpush2.msra.mxu0 %v11040_v50 }
 0x3e3   : > { %11338 = vmatprep.subr.mxu0 %v11039_v28  ;;  %v23421_v51 = vpop.eup %23420 }
 0x3e4   : > { %11339 = vmatpush2.msra.mxu0 %v11038_v44 }
 0x3e5   : > { %11442 = vmatmul.mubr.f32.gmra.mxu1 %v23415_v52  ;;  %11340 = vmatprep.subr.mxu0 %v11037_v25 }
 0x3e6   : > { %11447 = vmatprep.mubr.f32.mxu1 %v23417_v47  ;;  %11341 = vmatpush2.msra.mxu0 %v11036_v18  ;;  %v23423_v15 = vpop.eup %23422 }
 0x3e7   : > { %11342 = vmatprep.subr.mxu0 %v11035_v35  ;;  %v23425_v21 = vpop.eup %23424 }
 0x3e8   : > { %11343 = vmatpush2.msra.mxu0 %v11034_v58 }
 0x3e9   : > { %11448 = vmatmul.mubr.f32.gmra.mxu1 %v23419_v40  ;;  %11344 = vmatprep.subr.mxu0 %v11033_v37 }
 0x3ea   : > { %11345 = vmatpush2.msra.mxu0 %v11032_v13  ;;  %v23427_v7 = vpop.eup %23426 }
 0x3eb   : > { %11346 = vmatprep.subr.mxu0 %v11031_v63  ;;  %v23429_v9 = vpop.eup %23428 }
 0x3ec   : > { %11347 = vmatpush2.msra.mxu0 %v11030_v59 }
 0x3ed   : > { %11348 = vmatprep.subr.mxu0 %v11029_v42 }
 0x3ee   : > { %11349 = vmatpush2.msra.mxu0 %v11028_v62 }
 0x3ef   : > { %11350 = vmatprep.subr.mxu0 %v11027_v56 }
 0x3f0   : > { %11351 = vmatpush2.msra.mxu0 %v11026_v26 }
 0x3f1   : > { %11353 = vmatmul.mubr.f32.vlgmr.msra.gmra.mxu0 %v23421_v51 }
 0x3f2   : > { %11358 = vmatprep.mubr.f32.mxu0 %v23423_v15 }
 0x3f5   : > { %11359 = vmatmul.mubr.f32.gmra.mxu0 %v23425_v21 }
 0x3f6   : > { %11364 = vmatprep.mubr.f32.mxu0 %v23427_v7 }
 0x3f9   : > { %11365 = vmatmul.mubr.f32.gmra.mxu0 %v23429_v9 }
 0x45e   : > { %v11271_v46 = vpop.f32.mrf.mxu1 }
 0x460   : > { %v11273_v19 = vpop.f32.mrf.mxu1 }
 0x462   : > { %v11277_v1 = vpop.f32.mrf.mxu1 }
 0x464   : > { %v28972_v57 = vpop.f32.mrf.mxu1 }
 0x466   : > { %v11283_v45 = vpop.f32.mrf.mxu1 }
 0x468   : > { %v28976_v41 = vpop.f32.mrf.mxu1 }
 0x46f   : > { %v11188_v54 = vpop.f32.mrf.mxu0 }
 0x470   : > { %v11272_v14 = vadd.f32 %v11271_v46, %v11188_v54 }
 0x471   : > { %v11190_v17 = vpop.f32.mrf.mxu0 }
 0x472   : > { %v11274_v2 = vadd.f32 %v11273_v19, %v11190_v17 }
 0x474   : > { %v11194_v53 = vpop.f32.mrf.mxu0 }
 0x475   : > { %v11278_v20 = vadd.f32 %v11277_v1, %v11194_v53 }
 0x476   : > { %v28974_v55 = vpop.f32.mrf.mxu0 }
 0x477   : > { %v11280_v10 = vadd.f32 %v28972_v57, %v28974_v55 }
 0x479   : > { %v11200_v31 = vpop.f32.mrf.mxu0 }
 0x47a   : > { %v11284_v34 = vadd.f32 %v11283_v45, %v11200_v31 }
 0x47b   : > { %v28978_v5 = vpop.f32.mrf.mxu0 }
 0x4a1   : > { %v11437_v6 = vpop.f32.mrf.mxu1 }
 0x4a3   : > { %v11439_v22 = vpop.f32.mrf.mxu1 }
 0x4a5   : > { %v11443_v60 = vpop.f32.mrf.mxu1 }
 0x4a7   : > { %v28986_v33 = vpop.f32.mrf.mxu1 }
 0x4a9   : > { %v11449_v0 = vpop.f32.mrf.mxu1 }
 0x4b1   : > { %v11354_v48 = vpop.f32.mrf.mxu0 }
 0x4b2   : > { %v11355_v11 = vadd.f32 %v11354_v48, %v11272_v14 }
 0x4b3   : > { %v11356_v43 = vpop.f32.mrf.mxu0 }
 0x4b4   : > { %v28980_v23 = vadd.f32 %v11437_v6, %v11355_v11  ;;  %v11357_v12 = vadd.f32 %v11356_v43, %v11274_v2 }
 0x4b5   : > { %v11360_v27 = vpop.f32.mrf.mxu0 }
 0x4b6   : > { %v28982_v39 = vadd.f32 %v11439_v22, %v11357_v12  ;;  %11460 = vrot.lane.b32.xlu0 %v28980_v23, %s32259_s27  ;;  %v11361_v4 = vadd.f32 %v11360_v27, %v11278_v20  ;;  %v21262_v12 = vld [vmem:[%s32197_s4 + $0x30] sm:$0xff]  ;;  %v11454_v27 = vld [vmem:[%s32197_s4] sm:$0xff]  ;;  %v11451_v20 = vpop.f32.mrf.mxu1 }
 0x4b7   : > { %v28988_v38 = vpop.f32.mrf.mxu0  ;;  %22382 = vmatprep.mubr.msk.f32.mxu0 %vm11482_vm2, %v21262_v12  ;;  %22397 = vmatprep.mubr.msk.f32.mxu1 %vm11482_vm2, %v11454_v27 }
 0x4b8   : > { %11466 = vrot.lane.b32.xlu1 %v28982_v39, %s32259_s27  ;;  %v28998_v50 = vadd.f32 %v11443_v60, %v11361_v4  ;;  %v11363_v36 = vadd.f32 %v28988_v38, %v11280_v10  ;;  %v11286_v60 = vadd.f32 %v28976_v41, %v28978_v5  ;;  %v11455_v41 = vld [vmem:[%s32197_s4 + $0x8] sm:$0xff]  ;;  %v11458_v10 = vld [vmem:[%s32197_s4 + $0x20] sm:$0xff] }
 0x4b9   : > { %v11366_v8 = vpop.f32.mrf.mxu0 }
 0x4ba   : > { %v11367_v29 = vadd.f32 %v11366_v8, %v11284_v34  ;;  %11716 = vrot.lane.b32.xlu0 %v28980_v23, %s32255_s28  ;;  %v29104_v49 = vadd.f32 %v28986_v33, %v11363_v36  ;;  %v11456_v34 = vld [vmem:[%s32197_s4 + $0x10] sm:$0xff] }
 0x4bb   : > { %v11368_v11 = vpop.f32.mrf.mxu0 }
 0x4bc   : > { %v28994_v3 = vadd.f32 %v11449_v0, %v11367_v29  ;;  %11722 = vrot.lane.b32.xlu1 %v28982_v39, %s32255_s28  ;;  %v11369_v33 = vadd.f32 %v11368_v11, %v11286_v60  ;;  %v11457_v29 = vld [vmem:[%s32197_s4 + $0x18] sm:$0xff]  ;;  %v11459_v11 = vld [vmem:[%s32197_s4 + $0x28] sm:$0xff] }
 0x4be   : > { %22391 = vmatprep.subr.msk.mxu1 %vm11501_vm1, %v28994_v3  ;;  %11860 = vrot.lane.b32.xlu0 %v28980_v23, %s32253_s29  ;;  %v29317_v8 = vadd.f32 %v11451_v20, %v11369_v33 }
 0x4bf   : > { %22392 = vmatpush3.msk.msra.mxu1 %vm11501_vm1, %v28994_v3 }
 0x4c0   : > { %22393 = vmatprep.subr.mxu1 %v28998_v50  ;;  %11866 = vrot.lane.b32.xlu1 %v28982_v39, %s32253_s29 }
 0x4c1   : > { %22394 = vmatpush3.msra.mxu1 %v28998_v50 }
 0x4c2   : > { %12004 = vrot.lane.b32.xlu0 %v28980_v23, %s32245_s30  ;;  %22395 = vmatprep.subr.mxu1 %v28980_v23 }
 0x4c3   : > { %22396 = vmatpush3.msra.mxu1 %v28980_v23 }
 0x4c4   : > { %12010 = vrot.lane.b32.xlu1 %v28982_v39, %s32245_s30  ;;  %22398 = vmatmul.mubr.msk.f32.vlgmr.msra.gmra.mxu1 %vm11482_vm2, %v11455_v41  ;;  %v21295_v41 = vld [vmem:[%s32197_s4 + $0x90] sm:$0xff] }
 0x4c5   : > { %22400 = vmatprep.mubr.msk.f32.mxu1 %vm11482_vm2, %v11456_v34 }
 0x4c6   : > { %12148 = vrot.lane.b32.xlu0 %v28980_v23, %s32243_s23 }
 0x4c8   : > { %12154 = vrot.lane.b32.xlu1 %v28982_v39, %s32243_s23  ;;  %22401 = vmatmul.mubr.msk.f32.gmra.mxu1 %vm11482_vm2, %v11457_v29 }
 0x4c9   : > { %22403 = vmatprep.mubr.msk.f32.mxu1 %vm11482_vm2, %v11458_v10 }
 0x4ca   : > { %12293 = vrot.lane.b32.xlu0 %v28980_v23, %s32241_s24 }
 0x4cc   : > { %12299 = vrot.lane.b32.xlu1 %v28982_v39, %s32241_s24  ;;  %22404 = vmatmul.mubr.msk.f32.gmra.mxu1 %vm11482_vm2, %v11459_v11 }
 0x4cd   : > { %22427 = vmatprep.mubr.msk.f32.mxu1 %vm11482_vm2, %v21295_v41 }
 0x4ce   : > { %12438 = vrot.lane.b32.xlu0 %v28980_v23, %s32239_s25 }
 0x4d0   : > { %12444 = vrot.lane.b32.xlu1 %v28982_v39, %s32239_s25 }
 0x4d2   : > { %12583 = vrot.lane.b32.xlu0 %v28980_v23, %s32229_s15 }
 0x4d4   : > { %12589 = vrot.lane.b32.xlu1 %v28982_v39, %s32229_s15 }
 0x4d6   : > { %12728 = vrot.lane.b32.xlu0 %v28980_v23, %s32237_s16 }
 0x4d8   : > { %12734 = vrot.lane.b32.xlu1 %v28982_v39, %s32237_s16 }
 0x4da   : > { %12873 = vrot.lane.b32.xlu0 %v28980_v23, %s32231_s17 }
 0x4dc   : > { %12879 = vrot.lane.b32.xlu1 %v28982_v39, %s32231_s17 }
 0x4de   : > { %13018 = vrot.lane.b32.xlu0 %v28980_v23, %s32211_s26 }
 0x4e0   : > { %13024 = vrot.lane.b32.xlu1 %v28982_v39, %s32211_s26  ;;  %s32215_s26 = smov 99  }
 0x4e2   : > { %13163 = vrot.lane.b32.xlu0 %v28980_v23, %s32233_s18 }
 0x4e4   : > { %13169 = vrot.lane.b32.xlu1 %v28982_v39, %s32233_s18 }
 0x4e6   : > { %13308 = vrot.lane.b32.xlu0 %v28980_v23, %s32235_s19 }
 0x4e8   : > { %13314 = vrot.lane.b32.xlu1 %v28982_v39, %s32235_s19 }
 0x4ea   : > { %13453 = vrot.lane.b32.xlu0 %v28980_v23, %s32213_s20 }
 0x4ec   : > { %13459 = vrot.lane.b32.xlu1 %v28982_v39, %s32213_s20  ;;  %s32221_s20 = smov 89  }
 0x4ee   : > { %13598 = vrot.lane.b32.xlu0 %v28980_v23, %s32215_s26 }
 0x4f0   : > { %13604 = vrot.lane.b32.xlu1 %v28982_v39, %s32215_s26  ;;  %s32223_s26 = smov 88  }
 0x4f2   : > { %13743 = vrot.lane.b32.xlu0 %v28980_v23, %s32217_s13 }
 0x4f4   : > { %13749 = vrot.lane.b32.xlu1 %v28982_v39, %s32217_s13  ;;  %s32225_s13 = smov 87  }
 0x4f6   : > { %13887 = vrot.lane.b32.xlu0 %v28980_v23, %s32219_s14 }
 0x4f8   : > { %13893 = vrot.lane.b32.xlu1 %v28982_v39, %s32219_s14  ;;  %s32249_s14 = smov 86  }
 0x4fa   : > { %14031 = vrot.lane.b32.xlu0 %v28980_v23, %s32221_s20 }
 0x4fc   : > { %14037 = vrot.lane.b32.xlu1 %v28982_v39, %s32221_s20  ;;  %s32227_s20 = smov 85  }
 0x4fe   : > { %14176 = vrot.lane.b32.xlu0 %v28980_v23, %s32223_s26 }
 0x500   : > { %14182 = vrot.lane.b32.xlu1 %v28982_v39, %s32223_s26  ;;  %s32247_s26 = smov 84  }
 0x502   : > { %14321 = vrot.lane.b32.xlu0 %v28980_v23, %s32225_s13 }
 0x504   : > { %14327 = vrot.lane.b32.xlu1 %v28982_v39, %s32225_s13  ;;  %s32251_s13 = smov 76  }
 0x506   : > { %14466 = vrot.lane.b32.xlu0 %v28980_v23, %s32249_s14 }
 0x508   : > { %14472 = vrot.lane.b32.xlu1 %v28982_v39, %s32249_s14 }
 0x50a   : > { %14611 = vrot.lane.b32.xlu0 %v28980_v23, %s32227_s20 }
 0x50c   : > { %14617 = vrot.lane.b32.xlu1 %v28982_v39, %s32227_s20  ;;  %s32257_s20 = smov 75  }
 0x50e   : > { %14756 = vrot.lane.b32.xlu0 %v28980_v23, %s32247_s26 }
 0x510   : > { %14762 = vrot.lane.b32.xlu1 %v28982_v39, %s32247_s26 }
 0x512   : > { %14901 = vrot.lane.b32.xlu0 %v28980_v23, %s32251_s13 }
 0x514   : > { %14907 = vrot.lane.b32.xlu1 %v28982_v39, %s32251_s13 }
 0x516   : > { %15046 = vrot.lane.b32.xlu0 %v28980_v23, %s32257_s20 }
 0x518   : > { %15052 = vrot.lane.b32.xlu1 %v28982_v39, %s32257_s20 }
 0x51a   : > { %11462 = vrot.lane.b32.xlu0 %v28998_v50, %s32259_s27 }
 0x51c   : > { %11468 = vrot.lane.b32.xlu1 %v29104_v49, %s32259_s27  ;;  %s32437_s27 = smov 127  }
 0x51e   : > { %11718 = vrot.lane.b32.xlu0 %v28998_v50, %s32255_s28 }
 0x520   : > { %11724 = vrot.lane.b32.xlu1 %v29104_v49, %s32255_s28  ;;  %s23509_s28 = smov 74  }
 0x522   : > { %11862 = vrot.lane.b32.xlu0 %v28998_v50, %s32253_s29 }
 0x524   : > { %11868 = vrot.lane.b32.xlu1 %v29104_v49, %s32253_s29  ;;  %s32445_s29 = smov 123  }
 0x526   : > { %12006 = vrot.lane.b32.xlu0 %v28998_v50, %s32245_s30 }
 0x528   : > { %12012 = vrot.lane.b32.xlu1 %v29104_v49, %s32245_s30  ;;  %v29122_v28 = vpop.permute.xlu0 %11460  ;;  %s32426_s30 = smov 85  }
 0x52a   : > { %v29124_v24 = vpop.permute.xlu1 %11466  ;;  %12150 = vrot.lane.b32.xlu0 %v28998_v50, %s32243_s23 }
 0x52c   : > { %12156 = vrot.lane.b32.xlu1 %v29104_v49, %s32243_s23  ;;  %v29130_v44 = vpop.permute.xlu0 %11716  ;;  %s32421_s23 = smov 87  }
 0x52e   : > { %v29132_v25 = vpop.permute.xlu1 %11722  ;;  %12295 = vrot.lane.b32.xlu0 %v28998_v50, %s32241_s24 }
 0x530   : > { %12301 = vrot.lane.b32.xlu1 %v29104_v49, %s32241_s24  ;;  %v29138_v30 = vpop.permute.xlu0 %11860  ;;  %s32418_s24 = smov 88  }
 0x532   : > { %v29140_v32 = vpop.permute.xlu1 %11866  ;;  %12440 = vrot.lane.b32.xlu0 %v28998_v50, %s32239_s25 }
 0x534   : > { %12446 = vrot.lane.b32.xlu1 %v29104_v49, %s32239_s25  ;;  %v29146_v18 = vpop.permute.xlu0 %12004  ;;  %s32415_s25 = smov 89  }
 0x536   : > { %v29148_v52 = vpop.permute.xlu1 %12010  ;;  %12585 = vrot.lane.b32.xlu0 %v28998_v50, %s32229_s15 }
 0x538   : > { %12591 = vrot.lane.b32.xlu1 %v29104_v49, %s32229_s15  ;;  %v29154_v61 = vpop.permute.xlu0 %12148  ;;  %s32407_s15 = smov 110  }
 0x53a   : > { %v29156_v35 = vpop.permute.xlu1 %12154  ;;  %12730 = vrot.lane.b32.xlu0 %v28998_v50, %s32237_s16 }
 0x53c   : > { %12736 = vrot.lane.b32.xlu1 %v29104_v49, %s32237_s16  ;;  %v29162_v47 = vpop.permute.xlu0 %12293  ;;  %s32412_s16 = smov 97  }
 0x53e   : > { %v29164_v58 = vpop.permute.xlu1 %12299  ;;  %12875 = vrot.lane.b32.xlu0 %v28998_v50, %s32231_s17 }
 0x540   : > { %12881 = vrot.lane.b32.xlu1 %v29104_v49, %s32231_s17  ;;  %v29170_v37 = vpop.permute.xlu0 %12438  ;;  %s32408_s17 = smov 100  }
 0x542   : > { %v29172_v16 = vpop.permute.xlu1 %12444  ;;  %13020 = vrot.lane.b32.xlu0 %v28998_v50, %s32407_s15 }
 0x544   : > { %13026 = vrot.lane.b32.xlu1 %v29104_v49, %s32407_s15  ;;  %v29178_v13 = vpop.permute.xlu0 %12583 }
 0x546   : > { %v29180_v40 = vpop.permute.xlu1 %12589  ;;  %13165 = vrot.lane.b32.xlu0 %v28998_v50, %s32233_s18 }
 0x548   : > { %13171 = vrot.lane.b32.xlu1 %v29104_v49, %s32233_s18  ;;  %v29186_v63 = vpop.permute.xlu0 %12728  ;;  %s32409_s18 = smov 99  }
 0x54a   : > { %v29188_v59 = vpop.permute.xlu1 %12734  ;;  %13310 = vrot.lane.b32.xlu0 %v28998_v50, %s32235_s19 }
 0x54c   : > { %13316 = vrot.lane.b32.xlu1 %v29104_v49, %s32235_s19  ;;  %v29194_v42 = vpop.permute.xlu0 %12873  ;;  %s32410_s19 = smov 98  }
 0x54e   : > { %v29196_v62 = vpop.permute.xlu1 %12879  ;;  %13455 = vrot.lane.b32.xlu0 %v28998_v50, %s32408_s17 }
 0x550   : > { %13461 = vrot.lane.b32.xlu1 %v29104_v49, %s32408_s17  ;;  %v29202_v56 = vpop.permute.xlu0 %13018 }
 0x552   : > { %v29204_v26 = vpop.permute.xlu1 %13024  ;;  %13600 = vrot.lane.b32.xlu0 %v28998_v50, %s32409_s18 }
 0x554   : > { %13606 = vrot.lane.b32.xlu1 %v29104_v49, %s32409_s18  ;;  %v29210_v51 = vpop.permute.xlu0 %13163 }
 0x556   : > { %v29212_v15 = vpop.permute.xlu1 %13169  ;;  %13745 = vrot.lane.b32.xlu0 %v28998_v50, %s32410_s19 }
 0x558   : > { %13751 = vrot.lane.b32.xlu1 %v29104_v49, %s32410_s19  ;;  %v29218_v21 = vpop.permute.xlu0 %13308 }
 0x559   : > { %32411 = vst [vmem:[#allocation48_spill] sm:$0xff] %v29218_v21 }
 0x55a   : > { %v29220_v7 = vpop.permute.xlu1 %13314  ;;  %13889 = vrot.lane.b32.xlu0 %v28998_v50, %s32412_s16 }
 0x55c   : > { %13895 = vrot.lane.b32.xlu1 %v29104_v49, %s32412_s16  ;;  %v29226_v9 = vpop.permute.xlu0 %13453 }
 0x55d   : > { %32413 = vst [vmem:[#allocation21_spill] sm:$0xff] %v29226_v9 }
 0x55e   : > { %v29228_v46 = vpop.permute.xlu1 %13459  ;;  %14033 = vrot.lane.b32.xlu0 %v28998_v50, %s32415_s25 }
 0x55f   : > { %32414 = vst [vmem:[#allocation34_spill] sm:$0xff] %v29228_v46 }
 0x560   : > { %14039 = vrot.lane.b32.xlu1 %v29104_v49, %s32415_s25  ;;  %v29234_v19 = vpop.permute.xlu0 %13598 }
 0x561   : > { %32416 = vst [vmem:[#allocation71_spill] sm:$0xff] %v29234_v19 }
 0x562   : > { %v29236_v54 = vpop.permute.xlu1 %13604  ;;  %14178 = vrot.lane.b32.xlu0 %v28998_v50, %s32418_s24 }
 0x563   : > { %32417 = vst [vmem:[#allocation9_spill] sm:$0xff] %v29236_v54 }
 0x564   : > { %14184 = vrot.lane.b32.xlu1 %v29104_v49, %s32418_s24  ;;  %v29242_v1 = vpop.permute.xlu0 %13743 }
 0x565   : > { %32419 = vst [vmem:[#allocation15_spill] sm:$0xff] %v29242_v1 }
 0x566   : > { %v29244_v17 = vpop.permute.xlu1 %13749  ;;  %14323 = vrot.lane.b32.xlu0 %v28998_v50, %s32421_s23 }
 0x567   : > { %32420 = vst [vmem:[#allocation60_spill] sm:$0xff] %v29244_v17 }
 0x568   : > { %14329 = vrot.lane.b32.xlu1 %v29104_v49, %s32421_s23  ;;  %v29250_v57 = vpop.permute.xlu0 %13887 }
 0x569   : > { %32422 = vst [vmem:[#allocation28_spill] sm:$0xff] %v29250_v57 }
 0x56a   : > { %v29252_v53 = vpop.permute.xlu1 %13893  ;;  %14468 = vrot.lane.b32.xlu0 %v28998_v50, %s32249_s14 }
 0x56b   : > { %32423 = vst [vmem:[#allocation42_spill] sm:$0xff] %v29252_v53 }
 0x56c   : > { %14474 = vrot.lane.b32.xlu1 %v29104_v49, %s32249_s14  ;;  %v29258_v45 = vpop.permute.xlu0 %14031  ;;  %s32444_s14 = smov 124  }
 0x56d   : > { %32424 = vst [vmem:[#allocation22_spill] sm:$0xff] %v29258_v45 }
 0x56e   : > { %v29260_v55 = vpop.permute.xlu1 %14037  ;;  %14613 = vrot.lane.b32.xlu0 %v28998_v50, %s32426_s30 }
 0x56f   : > { %32425 = vst [vmem:[#allocation36_spill] sm:$0xff] %v29260_v55 }
 0x570   : > { %14619 = vrot.lane.b32.xlu1 %v29104_v49, %s32426_s30  ;;  %v29266_v31 = vpop.permute.xlu0 %14176 }
 0x571   : > { %32427 = vst [vmem:[#allocation52_spill] sm:$0xff] %v29266_v31 }
 0x572   : > { %v29268_v6 = vpop.permute.xlu1 %14182  ;;  %14758 = vrot.lane.b32.xlu0 %v28998_v50, %s32247_s26 }
 0x573   : > { %32428 = vst [vmem:[#allocation50_spill] sm:$0xff] %v29268_v6 }
 0x574   : > { %14764 = vrot.lane.b32.xlu1 %v29104_v49, %s32247_s26  ;;  %v29274_v22 = vpop.permute.xlu0 %14321  ;;  %s32261_s26 = smov 73  }
 0x575   : > { %32429 = vst [vmem:[#allocation62_spill] sm:$0xff] %v29274_v22 }
 0x576   : > { %v29276_v14 = vpop.permute.xlu1 %14327  ;;  %14903 = vrot.lane.b32.xlu0 %v28998_v50, %s32251_s13 }
 0x577   : > { %32430 = vst [vmem:[#allocation10_spill] sm:$0xff] %v29276_v14 }
 0x578   : > { %14909 = vrot.lane.b32.xlu1 %v29104_v49, %s32251_s13  ;;  %v29282_v48 = vpop.permute.xlu0 %14466  ;;  %s32448_s13 = smov 113  }
 0x579   : > { %32431 = vst [vmem:[#allocation16_spill] sm:$0xff] %v29282_v48 }
 0x57a   : > { %v29284_v2 = vpop.permute.xlu1 %14472  ;;  %15048 = vrot.lane.b32.xlu0 %v28998_v50, %s32257_s20 }
 0x57b   : > { %32432 = vst [vmem:[#allocation29_spill] sm:$0xff] %v29284_v2 }
 0x57c   : > { %15054 = vrot.lane.b32.xlu1 %v29104_v49, %s32257_s20  ;;  %v29292_v43 = vpop.permute.xlu0 %14611  ;;  %s32443_s20 = smov 125  }
 0x57d   : > { %32433 = vst [vmem:[#allocation44_spill] sm:$0xff] %v29292_v43 }
 0x57e   : > { %v29300_v38 = vpop.permute.xlu1 %14617  ;;  %15193 = vrot.lane.b32.xlu0 %v28998_v50, %s23509_s28 }
 0x57f   : > { %32434 = vst [vmem:[#allocation64_spill] sm:$0xff] %v29300_v38 }
 0x580   : > { %15199 = vrot.lane.b32.xlu1 %v29104_v49, %s23509_s28  ;;  %v29311_v5 = vpop.permute.xlu0 %14756 }
 0x581   : > { %32435 = vst [vmem:[#allocation23_spill] sm:$0xff] %v29311_v5 }
 0x582   : > { %v29319_v4 = vpop.permute.xlu1 %14762  ;;  %11464 = vrot.lane.b32.xlu0 %v28994_v3, %s32437_s27 }
 0x583   : > { %32436 = vst [vmem:[#allocation37_spill] sm:$0xff] %v29319_v4 }
 0x584   : > { %v29327_v0 = vpop.permute.xlu0 %14901  ;;  %11470 = vrot.lane.b32.xlu1 %v29317_v8, %s32437_s27  ;;  %s32442_s27 = smov 126  }
 0x585   : > { %32438 = vst [vmem:[#allocation55_spill] sm:$0xff] %v29327_v0 }
 0x586   : > { %v29335_v36 = vpop.permute.xlu1 %14907  ;;  %15191 = vrot.lane.b32.xlu0 %v28980_v23, %s23509_s28 }
 0x587   : > { %32439 = vst [vmem:[#allocation53_spill] sm:$0xff] %v29335_v36 }
 0x588   : > { %v29343_v60 = vpop.permute.xlu0 %15046  ;;  %15197 = vrot.lane.b32.xlu1 %v28982_v39, %s23509_s28 }
 0x589   : > { %32440 = vst [vmem:[#allocation65_spill] sm:$0xff] %v29343_v60 }
 0x58a   : > { %v29348_v12 = vpop.permute.xlu1 %15052  ;;  %11720 = vrot.lane.b32.xlu0 %v28994_v3, %s32442_s27 }
 0x58b   : > { %32441 = vst [vmem:[#allocation30_spill] sm:$0xff] %v29348_v12 }
 0x58c   : > { %v29352_v27 = vpop.permute.xlu0 %11462  ;;  %15344 = vrot.lane.b32.xlu1 %v29104_v49, %s32261_s26 }
 0x58e   : > { %v29356_v33 = vpop.permute.xlu1 %11468  ;;  %11864 = vrot.lane.b32.xlu0 %v28994_v3, %s32443_s20 }
 0x590   : > { %v29364_v20 = vpop.permute.xlu0 %11718  ;;  %11726 = vrot.lane.b32.xlu1 %v29317_v8, %s32442_s27  ;;  %s32446_s27 = smov 115  }
 0x592   : > { %v29368_v34 = vpop.permute.xlu1 %11724  ;;  %12008 = vrot.lane.b32.xlu0 %v28994_v3, %s32444_s14 }
 0x594   : > { %v29372_v29 = vpop.permute.xlu0 %11862  ;;  %11870 = vrot.lane.b32.xlu1 %v29317_v8, %s32443_s20  ;;  %s32447_s20 = smov 114  }
 0x596   : > { %v29376_v10 = vpop.permute.xlu1 %11868  ;;  %12152 = vrot.lane.b32.xlu0 %v28994_v3, %s32445_s29 }
 0x598   : > { %v29380_v11 = vpop.permute.xlu0 %12006  ;;  %15342 = vrot.lane.b32.xlu1 %v28982_v39, %s32261_s26  ;;  %s32263_s26 = smov 72  }
 0x59a   : > { %v29384_v41 = vpop.permute.xlu1 %12012  ;;  %12297 = vrot.lane.b32.xlu0 %v28994_v3, %s32446_s27 }
 0x59c   : > { %v29388_v60 = vpop.permute.xlu0 %12150  ;;  %12014 = vrot.lane.b32.xlu1 %v29317_v8, %s32444_s14  ;;  %s32449_s14 = smov 112  }
 0x59e   : > { %v29392_v12 = vpop.permute.xlu1 %12156  ;;  %12442 = vrot.lane.b32.xlu0 %v28994_v3, %s32447_s20 }
 0x5a0   : > { %v29396_v0 = vpop.permute.xlu0 %12295  ;;  %12158 = vrot.lane.b32.xlu1 %v29317_v8, %s32445_s29  ;;  %s32450_s29 = smov 111  }
 0x5a2   : > { %v29400_v36 = vpop.permute.xlu1 %12301  ;;  %12587 = vrot.lane.b32.xlu0 %v28994_v3, %s32448_s13 }
 0x5a4   : > { %v29404_v5 = vpop.permute.xlu0 %12440  ;;  %15489 = vrot.lane.b32.xlu1 %v29104_v49, %s32263_s26 }
 0x5a6   : > { %v29408_v4 = vpop.permute.xlu1 %12446  ;;  %12732 = vrot.lane.b32.xlu0 %v28994_v3, %s32449_s14 }
 0x5a8   : > { %v29412_v43 = vpop.permute.xlu0 %12585  ;;  %12303 = vrot.lane.b32.xlu1 %v29317_v8, %s32446_s27  ;;  %s32451_s27 = smov 102  }
 0x5aa   : > { %v29416_v38 = vpop.permute.xlu1 %12591  ;;  %12877 = vrot.lane.b32.xlu0 %v28994_v3, %s32450_s29 }
 0x5ac   : > { %v29420_v48 = vpop.permute.xlu0 %12730  ;;  %12448 = vrot.lane.b32.xlu1 %v29317_v8, %s32447_s20  ;;  %s32452_s20 = smov 101  }
 0x5ae   : > { %v29424_v2 = vpop.permute.xlu1 %12736  ;;  %13022 = vrot.lane.b32.xlu0 %v28994_v3, %s32407_s15 }
 0x5b0   : > { %v29428_v22 = vpop.permute.xlu0 %12875  ;;  %15487 = vrot.lane.b32.xlu1 %v28982_v39, %s32263_s26  ;;  %s23512_s26 = smov 71  }
 0x5b2   : > { %v29432_v14 = vpop.permute.xlu1 %12881  ;;  %13167 = vrot.lane.b32.xlu0 %v28994_v3, %s32451_s27 }
 0x5b4   : > { %v29436_v31 = vpop.permute.xlu0 %13020  ;;  %12593 = vrot.lane.b32.xlu1 %v29317_v8, %s32448_s13  ;;  %s32465_s13 = smov 86  }
 0x5b6   : > { %v29440_v6 = vpop.permute.xlu1 %13026  ;;  %13312 = vrot.lane.b32.xlu0 %v28994_v3, %s32452_s20 }
 0x5b8   : > { %v29444_v45 = vpop.permute.xlu0 %13165  ;;  %12738 = vrot.lane.b32.xlu1 %v29317_v8, %s32449_s14  ;;  %s32470_s14 = smov 84  }
 0x5ba   : > { %v29448_v55 = vpop.permute.xlu1 %13171  ;;  %13457 = vrot.lane.b32.xlu0 %v28994_v3, %s32408_s17 }
 0x5bc   : > { %v29452_v57 = vpop.permute.xlu0 %13310  ;;  %15634 = vrot.lane.b32.xlu1 %v29104_v49, %s23512_s26 }
 0x5be   : > { %v29456_v53 = vpop.permute.xlu1 %13316  ;;  %13602 = vrot.lane.b32.xlu0 %v28994_v3, %s32409_s18 }
 0x5c0   : > { %v29460_v1 = vpop.permute.xlu0 %13455  ;;  %12883 = vrot.lane.b32.xlu1 %v29317_v8, %s32450_s29  ;;  %s23514_s29 = smov 62  }
 0x5c1   : > { %32453 = vst [vmem:[#allocation45_spill] sm:$0xff] %v29460_v1 }
 0x5c2   : > { %v29464_v17 = vpop.permute.xlu1 %13461  ;;  %13747 = vrot.lane.b32.xlu0 %v28994_v3, %s32410_s19 }
 0x5c3   : > { %32454 = vst [vmem:[#allocation67_spill] sm:$0xff] %v29464_v17 }
 0x5c4   : > { %v29468_v19 = vpop.permute.xlu0 %13600  ;;  %13028 = vrot.lane.b32.xlu1 %v29317_v8, %s32407_s15  ;;  %s23513_s15 = smov 63  }
 0x5c5   : > { %32455 = vst [vmem:[#allocation38_spill] sm:$0xff] %v29468_v19 }
 0x5c6   : > { %v29472_v54 = vpop.permute.xlu1 %13606  ;;  %13891 = vrot.lane.b32.xlu0 %v28994_v3, %s32412_s16 }
 0x5c7   : > { %32456 = vst [vmem:[#allocation57_spill] sm:$0xff] %v29472_v54 }
 0x5c8   : > { %v29476_v9 = vpop.permute.xlu0 %13745  ;;  %15632 = vrot.lane.b32.xlu1 %v28982_v39, %s23512_s26 }
 0x5c9   : > { %32457 = vst [vmem:[#allocation46_spill] sm:$0xff] %v29476_v9 }
 0x5ca   : > { %v29480_v46 = vpop.permute.xlu1 %13751  ;;  %14035 = vrot.lane.b32.xlu0 %v28994_v3, %s32415_s25 }
 0x5cb   : > { %32458 = vst [vmem:[#allocation56_spill] sm:$0xff] %v29480_v46 }
 0x5cc   : > { %v29484_v1 = vpop.permute.xlu0 %13889  ;;  %13173 = vrot.lane.b32.xlu1 %v29317_v8, %s32451_s27 }
 0x5cd   : > { %32459 = vst [vmem:[#allocation68_spill] sm:$0xff] %v29484_v1 }
 0x5ce   : > { %v29488_v19 = vpop.permute.xlu1 %13895  ;;  %14180 = vrot.lane.b32.xlu0 %v28994_v3, %s32418_s24 }
 0x5cf   : > { %32460 = vst [vmem:[#allocation69_spill] sm:$0xff] %v29488_v19 }
 0x5d0   : > { %v29492_v54 = vpop.permute.xlu0 %14033  ;;  %13318 = vrot.lane.b32.xlu1 %v29317_v8, %s32452_s20 }
 0x5d1   : > { %32461 = vst [vmem:[#allocation58_spill] sm:$0xff] %v29492_v54 }
 0x5d2   : > { %v29496_v9 = vpop.permute.xlu1 %14039  ;;  %14325 = vrot.lane.b32.xlu0 %v28994_v3, %s32421_s23 }
 0x5d3   : > { %32462 = vst [vmem:[#allocation70_spill] sm:$0xff] %v29496_v9 }
 0x5d4   : > { %v29500_v46 = vpop.permute.xlu0 %14178  ;;  %15779 = vrot.lane.b32.xlu1 %v29104_v49, %s23513_s15 }
 0x5d5   : > { %32463 = vst [vmem:[#allocation3_spill] sm:$0xff] %v29500_v46 }
 0x5d6   : > { %v29504_v1 = vpop.permute.xlu1 %14184  ;;  %14470 = vrot.lane.b32.xlu0 %v28994_v3, %s32465_s13 }
 0x5d7   : > { %32464 = vst [vmem:[#allocation7_spill] sm:$0xff] %v29504_v1 }
 0x5d8   : > { %v29508_v54 = vpop.permute.xlu0 %14323  ;;  %13463 = vrot.lane.b32.xlu1 %v29317_v8, %s32408_s17  ;;  %s32473_s17 = smov 76  }
 0x5d9   : > { %32466 = vst [vmem:[#allocation13_spill] sm:$0xff] %v29508_v54 }
 0x5da   : > { %v29512_v9 = vpop.permute.xlu1 %14329  ;;  %14615 = vrot.lane.b32.xlu0 %v28994_v3, %s32426_s30 }
 0x5db   : > { %32467 = vst [vmem:[#allocation4_spill] sm:$0xff] %v29512_v9 }
 0x5dc   : > { %v29516_v46 = vpop.permute.xlu0 %14468  ;;  %13608 = vrot.lane.b32.xlu1 %v29317_v8, %s32409_s18  ;;  %s32476_s18 = smov 75  }
 0x5dd   : > { %32468 = vst [vmem:[#allocation8_spill] sm:$0xff] %v29516_v46 }
 0x5de   : > { %v29520_v19 = vpop.permute.xlu1 %14474  ;;  %14760 = vrot.lane.b32.xlu0 %v28994_v3, %s32470_s14 }
 0x5df   : > { %32469 = vst [vmem:[#allocation19_spill] sm:$0xff] %v29520_v19 }
 0x5e0   : > { %v29524_v1 = vpop.permute.xlu0 %14613  ;;  %15777 = vrot.lane.b32.xlu1 %v28982_v39, %s23513_s15 }
 0x5e1   : > { %32471 = vst [vmem:[#allocation14_spill] sm:$0xff] %v29524_v1 }
 0x5e2   : > { %v29528_v54 = vpop.permute.xlu1 %14619  ;;  %14905 = vrot.lane.b32.xlu0 %v28994_v3, %s32473_s17 }
 0x5e3   : > { %32472 = vst [vmem:[#allocation26_spill] sm:$0xff] %v29528_v54 }
 0x5e4   : > { %v29532_v9 = vpop.permute.xlu0 %14758  ;;  %13753 = vrot.lane.b32.xlu1 %v29317_v8, %s32410_s19  ;;  %s32481_s19 = smov 73  }
 0x5e5   : > { %32474 = vst [vmem:[#allocation20_spill] sm:$0xff] %v29532_v9 }
 0x5e6   : > { %v29536_v46 = vpop.permute.xlu1 %14764  ;;  %15050 = vrot.lane.b32.xlu0 %v28994_v3, %s32476_s18 }
 0x5e7   : > { %32475 = vst [vmem:[#allocation33_spill] sm:$0xff] %v29536_v46  ;;  %v32484_v46 = vld [vmem:[#allocation2_spill] sm:$0xff] }
 0x5e8   : > { %v29540_v19 = vpop.permute.xlu0 %14903  ;;  %13897 = vrot.lane.b32.xlu1 %v29317_v8, %s32412_s16  ;;  %vm12740_vm10 = vcmp.lt.s32.totalorder %v32484_v46, 112  ;;  %vm12885_vm11 = vcmp.lt.s32.totalorder %v32484_v46, 111  ;;  %s23517_s16 = smov 59   ;;  %vm13030_vm12 = vcmp.lt.s32.totalorder %v32484_v46, 110  ;;  %vm13175_vm13 = vcmp.lt.s32.totalorder %v32484_v46, 102 }
 0x5e9   : > { %32477 = vst [vmem:[#allocation27_spill] sm:$0xff] %v29540_v19  ;;  %vm13320_vm14 = vcmp.lt.s32.totalorder %v32484_v46, 101  ;;  %vm13465_vm15 = vcmp.lt.s32.totalorder %v32484_v46, 100  ;;  %vm13610_vm8 = vcmp.lt.s32.totalorder %v32484_v46, 99  ;;  %vm14333_vm9 = vcmp.lt.s32.totalorder %v32484_v46, 87 }
 0x5ea   : > { %v29544_v1 = vpop.permute.xlu1 %14909  ;;  %15195 = vrot.lane.b32.xlu0 %v28994_v3, %s23509_s28 }
 0x5eb   : > { %32478 = vst [vmem:[#allocation41_spill] sm:$0xff] %v29544_v1 }
 0x5ec   : > { %v29548_v54 = vpop.permute.xlu0 %15048  ;;  %15924 = vrot.lane.b32.xlu1 %v29104_v49, %s23514_s29 }
 0x5ed   : > { %32479 = vst [vmem:[#allocation35_spill] sm:$0xff] %v29548_v54 }
 0x5ee   : > { %v29552_v9 = vpop.permute.xlu1 %15054  ;;  %15340 = vrot.lane.b32.xlu0 %v28994_v3, %s32481_s19 }
 0x5ef   : > { %32480 = vst [vmem:[#allocation51_spill] sm:$0xff] %v29552_v9 }
 0x5f0   : > { %v29556_v19 = vpop.permute.xlu0 %15193  ;;  %14041 = vrot.lane.b32.xlu1 %v29317_v8, %s32415_s25 }
 0x5f1   : > { %32482 = vst [vmem:[#allocation43_spill] sm:$0xff] %v29556_v19 }
 0x5f2   : > { %v29560_v1 = vpop.permute.xlu1 %15199  ;;  %15338 = vrot.lane.b32.xlu0 %v28998_v50, %s32481_s19 }
 0x5f3   : > { %32483 = vst [vmem:[#allocation63_spill] sm:$0xff] %v29560_v1  ;;  %v11473_v1 = vsel %vm449_vm0, %v29352_v27, %v29356_v33  ;;  %v21264_v27 = vld [vmem:[%s32197_s4 + $0x40] sm:$0xff]  ;;  %v21266_v33 = vld [vmem:[%s32197_s4 + $0x50] sm:$0xff] }
 0x5f4   : > { %v11465_v54 = vpop.permute.xlu0 %11464  ;;  %14186 = vrot.lane.b32.xlu1 %v29317_v8, %s32418_s24  ;;  %s32486_s24 = smov 72  }
 0x5f6   : > { %15336 = vrot.lane.b32.xlu0 %v28980_v23, %s32481_s19  ;;  %v11471_v9 = vpop.permute.xlu1 %11470 }
 0x5f7   : > { %v11474_v17 = vsel %vm449_vm0, %v11465_v54, %v11471_v9  ;;  %v11472_v9 = vsel %vm449_vm0, %v29122_v28, %v29124_v24  ;;  %v21263_v54 = vld [vmem:[%s32197_s4 + $0x38] sm:$0xff]  ;;  %v21265_v24 = vld [vmem:[%s32197_s4 + $0x48] sm:$0xff]  ;;  %vm12160_vm0 = vcmp.lt.s32.totalorder %v32484_v46, 123 }
 0x5f8   : > { %v29570_v19 = vpop.permute.xlu0 %15191  ;;  %15922 = vrot.lane.b32.xlu1 %v28982_v39, %s23514_s29  ;;  %22376 = vmatprep.subr.msk.mxu0 %vm11501_vm1, %v11474_v17 }
 0x5f9   : > { %32485 = vst [vmem:[#allocation5_spill] sm:$0xff] %v29570_v19  ;;  %22377 = vmatpush3.msk.msra.mxu0 %vm11501_vm1, %v11474_v17 }
 0x5fa   : > { %15485 = vrot.lane.b32.xlu0 %v28994_v3, %s32486_s24  ;;  %22378 = vmatprep.subr.mxu0 %v11473_v1  ;;  %v29582_v21 = vpop.permute.xlu1 %15197 }
 0x5fb   : > { %22379 = vmatpush3.msra.mxu0 %v11473_v1 }
 0x5fc   : > { %v11721_v17 = vpop.permute.xlu0 %11720  ;;  %14331 = vrot.lane.b32.xlu1 %v29317_v8, %s32421_s23  ;;  %22380 = vmatprep.subr.mxu0 %v11472_v9  ;;  %s23516_s23 = smov 60  }
 0x5fd   : > { %22381 = vmatpush3.msra.mxu0 %v11472_v9 }
 0x5fe   : > { %15483 = vrot.lane.b32.xlu0 %v28998_v50, %s32486_s24  ;;  %22383 = vmatmul.mubr.msk.f32.vlgmr.msra.gmra.mxu0 %vm11482_vm2, %v21263_v54  ;;  %v29599_v28 = vpop.permute.xlu1 %15344 }
 0x5ff   : > { %32487 = vst [vmem:[#allocation11_spill] sm:$0xff] %v29599_v28  ;;  %22385 = vmatprep.mubr.msk.f32.mxu0 %vm11482_vm2, %v21264_v27  ;;  %v21267_v27 = vld [vmem:[%s32197_s4 + $0x58] sm:$0xff] }
 0x600   : > { %v11865_v1 = vpop.permute.xlu0 %11864  ;;  %14476 = vrot.lane.b32.xlu1 %v29317_v8, %s32465_s13  ;;  %s23515_s13 = smov 61  }
 0x602   : > { %15630 = vrot.lane.b32.xlu0 %v28994_v3, %s23512_s26  ;;  %22386 = vmatmul.mubr.msk.f32.gmra.mxu0 %vm11482_vm2, %v21265_v24  ;;  %v11727_v9 = vpop.permute.xlu1 %11726  ;;  %v21282_v24 = vld [vmem:[%s32197_s4 + $0x60] sm:$0xff] }
 0x603   : > { %v11730_v54 = vsel %vm1202_vm3, %v11721_v17, %v11727_v9  ;;  %22388 = vmatprep.mubr.msk.f32.mxu0 %vm11482_vm2, %v21266_v33  ;;  %v11729_v17 = vsel %vm1202_vm3, %v29364_v20, %v29368_v34  ;;  %v21283_v20 = vld [vmem:[%s32197_s4 + $0x68] sm:$0xff] }
 0x604   : > { %v12009_v28 = vpop.permute.xlu0 %12008  ;;  %16069 = vrot.lane.b32.xlu1 %v29104_v49, %s23515_s13  ;;  %22406 = vmatprep.subr.msk.mxu0 %vm11501_vm1, %v11730_v54 }
 0x605   : > { %22407 = vmatpush3.msk.msra.mxu0 %vm11501_vm1, %v11730_v54  ;;  %v11728_v54 = vsel %vm1202_vm3, %v29130_v44, %v29132_v25  ;;  %v11873_v44 = vsel %vm1620_vm4, %v29372_v29, %v29376_v10  ;;  %v21296_v29 = vld [vmem:[%s32197_s4 + $0x98] sm:$0xff]  ;;  %vm12305_vm3 = vcmp.lt.s32.totalorder %v32484_v46, 115 }
 0x606   : > { %15481 = vrot.lane.b32.xlu0 %v28980_v23, %s32486_s24  ;;  %22389 = vmatmul.mubr.msk.f32.gmra.mxu0 %vm11482_vm2, %v21267_v27  ;;  %v11871_v33 = vpop.permute.xlu1 %11870  ;;  %v11872_v27 = vsel %vm1620_vm4, %v29138_v30, %v29140_v32  ;;  %v21286_v30 = vld [vmem:[%s32197_s4 + $0x80] sm:$0xff] }
 0x607   : > { %22408 = vmatprep.subr.mxu0 %v11729_v17  ;;  %v11874_v9 = vsel %vm1620_vm4, %v11865_v1, %v11871_v33  ;;  %22412 = vmatprep.mubr.msk.f32.mxu0 %vm11482_vm2, %v21282_v24  ;;  %v21284_v1 = vld [vmem:[%s32197_s4 + $0x70] sm:$0xff]  ;;  %v21285_v24 = vld [vmem:[%s32197_s4 + $0x78] sm:$0xff]  ;;  %v21297_v32 = vld [vmem:[%s32197_s4 + $0xa0] sm:$0xff]  ;;  %vm12450_vm4 = vcmp.lt.s32.totalorder %v32484_v46, 114 }
 0x608   : > { %22409 = vmatpush3.msra.mxu0 %v11729_v17  ;;  %v12153_v19 = vpop.permute.xlu0 %12152  ;;  %14621 = vrot.lane.b32.xlu1 %v29317_v8, %s32426_s30 }
 0x609   : > { %22410 = vmatprep.subr.mxu0 %v11728_v54  ;;  %22421 = vmatprep.subr.msk.mxu1 %vm11501_vm1, %v11874_v9 }
 0x60a   : > { %22411 = vmatpush3.msra.mxu0 %v11728_v54  ;;  %22422 = vmatpush3.msk.msra.mxu1 %vm11501_vm1, %v11874_v9  ;;  %v29647_v34 = vpop.permute.xlu1 %15342  ;;  %v21298_v9 = vld [vmem:[%s32197_s4 + $0xa8] sm:$0xff] }
 0x60b   : > { %15628 = vrot.lane.b32.xlu0 %v28998_v50, %s23512_s26  ;;  %22413 = vmatmul.mubr.msk.f32.vlgmr.msra.gmra.mxu0 %vm11482_vm2, %v21283_v20 }
 0x60c   : > { %22423 = vmatprep.subr.mxu1 %v11873_v44  ;;  %v29659_v25 = vpop.permute.xlu0 %12297  ;;  %14766 = vrot.lane.b32.xlu1 %v29317_v8, %s32470_s14 }
 0x60d   : > { %22424 = vmatpush3.msra.mxu1 %v11873_v44  ;;  %22415 = vmatprep.mubr.msk.f32.mxu0 %vm11482_vm2, %v21284_v1  ;;  %v12017_v1 = vsel %vm2038_vm5, %v29380_v11, %v29384_v41  ;;  %v12016_v11 = vsel %vm2038_vm5, %v29146_v18, %v29148_v52  ;;  %v21310_v18 = vld [vmem:[%s32197_s4 + $0xd0] sm:$0xff]  ;;  %v12162_v52 = vsel %vm12160_vm0, %v29388_v60, %v29392_v12  ;;  %v21311_v60 = vld [vmem:[%s32197_s4 + $0xd8] sm:$0xff] }
 0x60e   : > { %22425 = vmatprep.subr.mxu1 %v11872_v27  ;;  %v12015_v10 = vpop.permute.xlu1 %12014  ;;  %v21322_v12 = vld [vmem:[%s32197_s4 + $0xf8] sm:$0xff] }
 0x60f   : > { %22426 = vmatpush3.msra.mxu1 %v11872_v27  ;;  %15626 = vrot.lane.b32.xlu0 %v28980_v23, %s23512_s26  ;;  %v12018_v17 = vsel %vm2038_vm5, %v12009_v28, %v12015_v10  ;;  %v21287_v28 = vld [vmem:[%s32197_s4 + $0x88] sm:$0xff]  ;;  %v21299_v27 = vld [vmem:[%s32197_s4 + $0xb0] sm:$0xff]  ;;  %vm12595_vm5 = vcmp.lt.s32.totalorder %v32484_v46, 113 }
 0x610   : > { %22416 = vmatmul.mubr.msk.f32.gmra.mxu0 %vm11482_vm2, %v21285_v24  ;;  %22428 = vmatmul.mubr.msk.f32.vlgmr.msra.gmra.mxu1 %vm11482_vm2, %v21296_v29  ;;  %v29686_v33 = vpop.permute.xlu0 %12442  ;;  %v21300_v24 = vld [vmem:[%s32197_s4 + $0xb8] sm:$0xff]  ;;  %v21309_v29 = vld [vmem:[%s32197_s4 + $0xc8] sm:$0xff] }
 0x611   : > { %16067 = vrot.lane.b32.xlu1 %v28982_v39, %s23515_s13  ;;  %22436 = vmatprep.subr.msk.mxu0 %vm11501_vm1, %v12018_v17 }
 0x612   : > { %22418 = vmatprep.mubr.msk.f32.mxu0 %vm11482_vm2, %v21286_v30  ;;  %22430 = vmatprep.mubr.msk.f32.mxu1 %vm11482_vm2, %v21297_v32  ;;  %v12159_v54 = vpop.permute.xlu1 %12158  ;;  %v12161_v32 = vsel %vm12160_vm0, %v29154_v61, %v29156_v35  ;;  %v21312_v35 = vld [vmem:[%s32197_s4 + $0xe0] sm:$0xff] }
 0x613   : > { %22437 = vmatpush3.msk.msra.mxu0 %vm11501_vm1, %v12018_v17  ;;  %15775 = vrot.lane.b32.xlu0 %v28994_v3, %s23513_s15  ;;  %v12163_v20 = vsel %vm12160_vm0, %v12153_v19, %v12159_v54  ;;  %v21308_v19 = vld [vmem:[%s32197_s4 + $0xc0] sm:$0xff]  ;;  %v21321_v17 = vld [vmem:[%s32197_s4 + $0xf0] sm:$0xff]  ;;  %vm14478_vm0 = vcmp.lt.s32.totalorder %v32484_v46, 86 }
 0x614   : > { %22419 = vmatmul.mubr.msk.f32.gmra.mxu0 %vm11482_vm2, %v21287_v28  ;;  %22431 = vmatmul.mubr.msk.f32.gmra.mxu1 %vm11482_vm2, %v21298_v9  ;;  %v29711_v44 = vpop.permute.xlu0 %12587  ;;  %v21323_v9 = vld [vmem:[%s32197_s4 + $0x100] sm:$0xff] }
 0x615   : > { %22438 = vmatprep.subr.mxu0 %v12017_v1  ;;  %14911 = vrot.lane.b32.xlu1 %v29317_v8, %s32473_s17 }
 0x616   : > { %22439 = vmatpush3.msra.mxu0 %v12017_v1  ;;  %22451 = vmatprep.subr.msk.mxu1 %vm11501_vm1, %v12163_v20  ;;  %v29726_v41 = vpop.permute.xlu1 %15489 }
 0x617   : > { %22440 = vmatprep.subr.mxu0 %v12016_v11  ;;  %22433 = vmatprep.mubr.msk.f32.mxu1 %vm11482_vm2, %v21299_v27 }
 0x618   : > { %22441 = vmatpush3.msra.mxu0 %v12016_v11  ;;  %22442 = vmatprep.mubr.msk.f32.mxu0 %vm11482_vm2, %v21308_v19  ;;  %v29736_v10 = vpop.permute.xlu0 %12732  ;;  %v12307_v11 = vsel %vm12305_vm3, %v29396_v0, %v29400_v36  ;;  %v12306_v0 = vsel %vm12305_vm3, %v29162_v47, %v29164_v58  ;;  %v21326_v36 = vld [vmem:[%s32197_s4 + $0x118] sm:$0xff]  ;;  %v21336_v47 = vld [vmem:[%s32197_s4 + $0x130] sm:$0xff] }
 0x619   : > { %22452 = vmatpush3.msk.msra.mxu1 %vm11501_vm1, %v12163_v20  ;;  %15773 = vrot.lane.b32.xlu0 %v28998_v50, %s23513_s15  ;;  %v21324_v20 = vld [vmem:[%s32197_s4 + $0x108] sm:$0xff] }
 0x61a   : > { %22434 = vmatmul.mubr.msk.f32.gmra.mxu1 %vm11482_vm2, %v21300_v24  ;;  %22443 = vmatmul.mubr.msk.f32.vlgmr.msra.gmra.mxu0 %vm11482_vm2, %v21309_v29  ;;  %v12304_v30 = vpop.permute.xlu1 %12303  ;;  %v21325_v24 = vld [vmem:[%s32197_s4 + $0x110] sm:$0xff] }
 0x61b   : > { %22453 = vmatprep.subr.mxu1 %v12162_v52  ;;  %15056 = vrot.lane.b32.xlu1 %v29317_v8, %s32476_s18  ;;  %v12308_v61 = vsel %vm12305_vm3, %v29659_v25, %v12304_v30  ;;  %v21313_v25 = vld [vmem:[%s32197_s4 + $0xe8] sm:$0xff]  ;;  %v21347_v30 = vld [vmem:[%s32197_s4 + $0x150] sm:$0xff]  ;;  %vm14623_vm3 = vcmp.lt.s32.totalorder %v32484_v46, 85 }
 0x61c   : > { %22454 = vmatpush3.msra.mxu1 %v12162_v52  ;;  %22445 = vmatprep.mubr.msk.f32.mxu0 %vm11482_vm2, %v21310_v18  ;;  %v29767_v28 = vpop.permute.xlu0 %12877  ;;  %v21335_v18 = vld [vmem:[%s32197_s4 + $0x128] sm:$0xff] }
 0x61d   : > { %22455 = vmatprep.subr.mxu1 %v12161_v32  ;;  %22457 = vmatprep.mubr.msk.f32.mxu1 %vm11482_vm2, %v21321_v17  ;;  %v12452_v17 = vsel %vm12450_vm4, %v29404_v5, %v29408_v4  ;;  %v21337_v5 = vld [vmem:[%s32197_s4 + $0x138] sm:$0xff] }
 0x61e   : > { %22456 = vmatpush3.msra.mxu1 %v12161_v32  ;;  %15920 = vrot.lane.b32.xlu0 %v28994_v3, %s23514_s29  ;;  %v12449_v54 = vpop.permute.xlu1 %12448  ;;  %v21348_v4 = vld [vmem:[%s32197_s4 + $0x158] sm:$0xff] }
 0x61f   : > { %22446 = vmatmul.mubr.msk.f32.gmra.mxu0 %vm11482_vm2, %v21311_v60  ;;  %22458 = vmatmul.mubr.msk.f32.vlgmr.msra.gmra.mxu1 %vm11482_vm2, %v21322_v12  ;;  %v12453_v27 = vsel %vm12450_vm4, %v29686_v33, %v12449_v54  ;;  %v21334_v33 = vld [vmem:[%s32197_s4 + $0x120] sm:$0xff]  ;;  %v12451_v60 = vsel %vm12450_vm4, %v29170_v37, %v29172_v16  ;;  %vm14768_vm4 = vcmp.lt.s32.totalorder %v32484_v46, 84 }
 0x620   : > { %16214 = vrot.lane.b32.xlu1 %v29104_v49, %s23516_s23  ;;  %22466 = vmatprep.subr.msk.mxu0 %vm11501_vm1, %v12308_v61  ;;  %v29792_v1 = vpop.permute.xlu0 %13022  ;;  %v21338_v16 = vld [vmem:[%s32197_s4 + $0x140] sm:$0xff] }
 0x621   : > { %22448 = vmatprep.mubr.msk.f32.mxu0 %vm11482_vm2, %v21312_v35  ;;  %22460 = vmatprep.mubr.msk.f32.mxu1 %vm11482_vm2, %v21323_v9  ;;  %v21350_v9 = vld [vmem:[%s32197_s4 + $0x168] sm:$0xff] }
 0x622   : > { %22467 = vmatpush3.msk.msra.mxu0 %vm11501_vm1, %v12308_v61  ;;  %15771 = vrot.lane.b32.xlu0 %v28980_v23, %s23513_s15  ;;  %v29803_v19 = vpop.permute.xlu1 %15487  ;;  %v21349_v61 = vld [vmem:[%s32197_s4 + $0x160] sm:$0xff] }
 0x623   : > { %22449 = vmatmul.mubr.msk.f32.gmra.mxu0 %vm11482_vm2, %v21313_v25  ;;  %22461 = vmatmul.mubr.msk.f32.gmra.mxu1 %vm11482_vm2, %v21324_v20  ;;  %v12597_v20 = vsel %vm12595_vm5, %v29412_v43, %v29416_v38  ;;  %v21352_v38 = vld [vmem:[%s32197_s4 + $0x178] sm:$0xff] }
 0x624   : > { %22468 = vmatprep.subr.mxu0 %v12307_v11  ;;  %15201 = vrot.lane.b32.xlu1 %v29317_v8, %s23509_s28  ;;  %v29819_v29 = vpop.permute.xlu0 %13167 }
 0x625   : > { %22469 = vmatpush3.msra.mxu0 %v12307_v11  ;;  %22481 = vmatprep.subr.msk.mxu1 %vm11501_vm1, %v12453_v27 }
 0x626   : > { %22470 = vmatprep.subr.mxu0 %v12306_v0  ;;  %22463 = vmatprep.mubr.msk.f32.mxu1 %vm11482_vm2, %v21325_v24  ;;  %v12594_v52 = vpop.permute.xlu1 %12593  ;;  %v12596_v24 = vsel %vm12595_vm5, %v29178_v13, %v29180_v40  ;;  %v21362_v13 = vld [vmem:[%s32197_s4 + $0x190] sm:$0xff]  ;;  %v12742_v40 = vsel %vm12740_vm10, %v29420_v48, %v29424_v2  ;;  %v21363_v48 = vld [vmem:[%s32197_s4 + $0x198] sm:$0xff] }
 0x627   : > { %22471 = vmatpush3.msra.mxu0 %v12306_v0  ;;  %22472 = vmatprep.mubr.msk.f32.mxu0 %vm11482_vm2, %v21334_v33  ;;  %v12598_v12 = vsel %vm12595_vm5, %v29711_v44, %v12594_v52  ;;  %v21339_v44 = vld [vmem:[%s32197_s4 + $0x148] sm:$0xff]  ;;  %v12741_v52 = vsel %vm12740_vm10, %v29186_v63, %v29188_v59  ;;  %v21374_v2 = vld [vmem:[%s32197_s4 + $0x1b8] sm:$0xff]  ;;  %v21364_v59 = vld [vmem:[%s32197_s4 + $0x1a0] sm:$0xff]  ;;  %vm14913_vm5 = vcmp.lt.s32.totalorder %v32484_v46, 76 }
 0x628   : > { %22482 = vmatpush3.msk.msra.mxu1 %vm11501_vm1, %v12453_v27  ;;  %15918 = vrot.lane.b32.xlu0 %v28998_v50, %s23514_s29  ;;  %v29840_v58 = vpop.permute.xlu0 %13312  ;;  %v21351_v27 = vld [vmem:[%s32197_s4 + $0x170] sm:$0xff]  ;;  %v21361_v33 = vld [vmem:[%s32197_s4 + $0x188] sm:$0xff] }
 0x629   : > { %22464 = vmatmul.mubr.msk.f32.gmra.mxu1 %vm11482_vm2, %v21326_v36  ;;  %22473 = vmatmul.mubr.msk.f32.vlgmr.msra.gmra.mxu0 %vm11482_vm2, %v21335_v18  ;;  %v21373_v36 = vld [vmem:[%s32197_s4 + $0x1b0] sm:$0xff] }
 0x62a   : > { %22483 = vmatprep.subr.mxu1 %v12452_v17  ;;  %15346 = vrot.lane.b32.xlu1 %v29317_v8, %s32481_s19  ;;  %v12739_v32 = vpop.permute.xlu1 %12738 }
 0x62b   : > { %22484 = vmatpush3.msra.mxu1 %v12452_v17  ;;  %22475 = vmatprep.mubr.msk.f32.mxu0 %vm11482_vm2, %v21336_v47  ;;  %v12743_v25 = vsel %vm12740_vm10, %v29736_v10, %v12739_v32  ;;  %v21360_v10 = vld [vmem:[%s32197_s4 + $0x180] sm:$0xff]  ;;  %v21376_v32 = vld [vmem:[%s32197_s4 + $0x1c8] sm:$0xff]  ;;  %vm15058_vm10 = vcmp.lt.s32.totalorder %v32484_v46, 75 }
 0x62c   : > { %22485 = vmatprep.subr.mxu1 %v12451_v60  ;;  %22487 = vmatprep.mubr.msk.f32.mxu1 %vm11482_vm2, %v21347_v30  ;;  %v29869_v37 = vpop.permute.xlu0 %13457  ;;  %v21375_v17 = vld [vmem:[%s32197_s4 + $0x1c0] sm:$0xff] }
 0x62d   : > { %22486 = vmatpush3.msra.mxu1 %v12451_v60  ;;  %15916 = vrot.lane.b32.xlu0 %v28980_v23, %s23514_s29 }
 0x62e   : > { %22476 = vmatmul.mubr.msk.f32.gmra.mxu0 %vm11482_vm2, %v21337_v5  ;;  %22488 = vmatmul.mubr.msk.f32.vlgmr.msra.gmra.mxu1 %vm11482_vm2, %v21348_v4  ;;  %v29881_v35 = vpop.permute.xlu1 %15634 }
 0x62f   : > { %16212 = vrot.lane.b32.xlu1 %v28982_v39, %s23516_s23  ;;  %22496 = vmatprep.subr.msk.mxu0 %vm11501_vm1, %v12598_v12 }
 0x630   : > { %22478 = vmatprep.mubr.msk.f32.mxu0 %vm11482_vm2, %v21338_v16  ;;  %22490 = vmatprep.mubr.msk.f32.mxu1 %vm11482_vm2, %v21349_v61  ;;  %v29895_v54 = vpop.permute.xlu0 %13602  ;;  %v21377_v16 = vld [vmem:[%s32197_s4 + $0x1d0] sm:$0xff] }
 0x631   : > { %22497 = vmatpush3.msk.msra.mxu0 %vm11501_vm1, %v12598_v12  ;;  %16065 = vrot.lane.b32.xlu0 %v28994_v3, %s23515_s13  ;;  %v12887_v12 = vsel %vm12885_vm11, %v29428_v22, %v29432_v14  ;;  %v21378_v22 = vld [vmem:[%s32197_s4 + $0x1d8] sm:$0xff]  ;;  %v21387_v14 = vld [vmem:[%s32197_s4 + $0x1e8] sm:$0xff] }
 0x632   : > { %22479 = vmatmul.mubr.msk.f32.gmra.mxu0 %vm11482_vm2, %v21339_v44  ;;  %22491 = vmatmul.mubr.msk.f32.gmra.mxu1 %vm11482_vm2, %v21350_v9  ;;  %v12884_v11 = vpop.permute.xlu1 %12883  ;;  %v12886_v44 = vsel %vm12885_vm11, %v29194_v42, %v29196_v62  ;;  %v21388_v42 = vld [vmem:[%s32197_s4 + $0x1f0] sm:$0xff] }
 0x633   : > { %22498 = vmatprep.subr.mxu0 %v12597_v20  ;;  %15491 = vrot.lane.b32.xlu1 %v29317_v8, %s32486_s24  ;;  %v12888_v63 = vsel %vm12885_vm11, %v29767_v28, %v12884_v11  ;;  %v21365_v28 = vld [vmem:[%s32197_s4 + $0x1a8] sm:$0xff]  ;;  %v13031_v11 = vsel %vm13030_vm12, %v29202_v56, %v29204_v26  ;;  %v21390_v26 = vld [vmem:[%s32197_s4 + $0x200] sm:$0xff]  ;;  %vm15203_vm11 = vcmp.lt.s32.totalorder %v32484_v46, 74 }
 0x634   : > { %22499 = vmatpush3.msra.mxu0 %v12597_v20  ;;  %22511 = vmatprep.subr.msk.mxu1 %vm11501_vm1, %v12743_v25  ;;  %v29922_v43 = vpop.permute.xlu0 %13747  ;;  %v21399_v20 = vld [vmem:[%s32197_s4 + $0x210] sm:$0xff] }
 0x635   : > { %22500 = vmatprep.subr.mxu0 %v12596_v24  ;;  %22493 = vmatprep.mubr.msk.f32.mxu1 %vm11482_vm2, %v21351_v27 }
 0x636   : > { %22501 = vmatpush3.msra.mxu0 %v12596_v24  ;;  %22502 = vmatprep.mubr.msk.f32.mxu0 %vm11482_vm2, %v21360_v10  ;;  %v13029_v0 = vpop.permute.xlu1 %13028  ;;  %v21401_v24 = vld [vmem:[%s32197_s4 + $0x220] sm:$0xff] }
 0x637   : > { %22512 = vmatpush3.msk.msra.mxu1 %vm11501_vm1, %v12743_v25  ;;  %16063 = vrot.lane.b32.xlu0 %v28998_v50, %s23515_s13  ;;  %v13033_v5 = vsel %vm13030_vm12, %v29792_v1, %v13029_v0  ;;  %v21386_v1 = vld [vmem:[%s32197_s4 + $0x1e0] sm:$0xff]  ;;  %v13032_v25 = vsel %vm13030_vm12, %v29436_v31, %v29440_v6  ;;  %v21389_v31 = vld [vmem:[%s32197_s4 + $0x1f8] sm:$0xff]  ;;  %vm15348_vm12 = vcmp.lt.s32.totalorder %v32484_v46, 73 }
 0x638   : > { %22494 = vmatmul.mubr.msk.f32.gmra.mxu1 %vm11482_vm2, %v21352_v38  ;;  %22503 = vmatmul.mubr.msk.f32.vlgmr.msra.gmra.mxu0 %vm11482_vm2, %v21361_v33  ;;  %v29947_v18 = vpop.permute.xlu0 %13891  ;;  %v21400_v6 = vld [vmem:[%s32197_s4 + $0x218] sm:$0xff]  ;;  %v21402_v33 = vld [vmem:[%s32197_s4 + $0x228] sm:$0xff] }
 0x639   : > { %22513 = vmatprep.subr.mxu1 %v12742_v40  ;;  %15636 = vrot.lane.b32.xlu1 %v29317_v8, %s23512_s26 }
 0x63a   : > { %22514 = vmatpush3.msra.mxu1 %v12742_v40  ;;  %22505 = vmatprep.mubr.msk.f32.mxu0 %vm11482_vm2, %v21362_v13  ;;  %v29963_v47 = vpop.permute.xlu1 %15632  ;;  %v13177_v40 = vsel %vm13175_vm13, %v29444_v45, %v29448_v55  ;;  %v13176_v45 = vsel %vm13175_vm13, %v29210_v51, %v29212_v15  ;;  %v21414_v51 = vld [vmem:[%s32197_s4 + $0x250] sm:$0xff]  ;;  %v13322_v15 = vsel %vm13320_vm14, %v29452_v57, %v29456_v53  ;;  %v21415_v57 = vld [vmem:[%s32197_s4 + $0x258] sm:$0xff] }
 0x63b   : > { %22515 = vmatprep.subr.mxu1 %v12741_v52  ;;  %22517 = vmatprep.mubr.msk.f32.mxu1 %vm11482_vm2, %v21373_v36  ;;  %v21403_v36 = vld [vmem:[%s32197_s4 + $0x230] sm:$0xff]  ;;  %v21426_v53 = vld [vmem:[%s32197_s4 + $0x278] sm:$0xff] }
 0x63c   : > { %22516 = vmatpush3.msra.mxu1 %v12741_v52  ;;  %16210 = vrot.lane.b32.xlu0 %v28994_v3, %s23516_s23  ;;  %v29977_v30 = vpop.permute.xlu0 %14035 }
 0x63d   : > { %22506 = vmatmul.mubr.msk.f32.gmra.mxu0 %vm11482_vm2, %v21363_v48  ;;  %22518 = vmatmul.mubr.msk.f32.vlgmr.msra.gmra.mxu1 %vm11482_vm2, %v21374_v2  ;;  %v21404_v48 = vld [vmem:[%s32197_s4 + $0x238] sm:$0xff]  ;;  %v21413_v2 = vld [vmem:[%s32197_s4 + $0x248] sm:$0xff] }
 0x63e   : > { %16359 = vrot.lane.b32.xlu1 %v29104_v49, %s23517_s16  ;;  %22526 = vmatprep.subr.msk.mxu0 %vm11501_vm1, %v12888_v63  ;;  %v13174_v60 = vpop.permute.xlu1 %13173 }
 0x63f   : > { %22508 = vmatprep.mubr.msk.f32.mxu0 %vm11482_vm2, %v21364_v59  ;;  %22520 = vmatprep.mubr.msk.f32.mxu1 %vm11482_vm2, %v21375_v17  ;;  %v13178_v10 = vsel %vm13175_vm13, %v29819_v29, %v13174_v60  ;;  %v21391_v29 = vld [vmem:[%s32197_s4 + $0x208] sm:$0xff]  ;;  %v21425_v59 = vld [vmem:[%s32197_s4 + $0x270] sm:$0xff]  ;;  %vm15493_vm13 = vcmp.lt.s32.totalorder %v32484_v46, 72 }
 0x640   : > { %22527 = vmatpush3.msk.msra.mxu0 %vm11501_vm1, %v12888_v63  ;;  %16061 = vrot.lane.b32.xlu0 %v28980_v23, %s23515_s13  ;;  %v29999_v4 = vpop.permute.xlu0 %14180 }
 0x641   : > { %22509 = vmatmul.mubr.msk.f32.gmra.mxu0 %vm11482_vm2, %v21365_v28  ;;  %22521 = vmatmul.mubr.msk.f32.gmra.mxu1 %vm11482_vm2, %v21376_v32  ;;  %v32488_v28 = vld [vmem:[#allocation48_spill] sm:$0xff] }
 0x642   : > { %22528 = vmatprep.subr.mxu0 %v12887_v12  ;;  %15781 = vrot.lane.b32.xlu1 %v29317_v8, %s23513_s15  ;;  %v13319_v61 = vpop.permute.xlu1 %13318  ;;  %v13321_v32 = vsel %vm13320_vm14, %v32488_v28, %v29220_v7  ;;  %v16642_v28 = vld [vmem:[%s32198_s5 + $0x8] sm:$0xff]  ;;  %s20689_s15 = sshll.u32 %s32571_s22, 3 }
 0x643   : > { %22529 = vmatpush3.msra.mxu0 %v12887_v12  ;;  %22541 = vmatprep.subr.msk.mxu1 %vm11501_vm1, %v13033_v5  ;;  %v13323_v13 = vsel %vm13320_vm14, %v29840_v58, %v13319_v61  ;;  %v21412_v58 = vld [vmem:[%s32197_s4 + $0x240] sm:$0xff]  ;;  %vm15638_vm14 = vcmp.lt.s32.totalorder %v32484_v46, 71  ;;  %s411_s27 = scalar_lea.vmem %s32205_s12, %s20689_s15 }
 0x644   : > { %22530 = vmatprep.subr.mxu0 %v12886_v44  ;;  %22523 = vmatprep.mubr.msk.f32.mxu1 %vm11482_vm2, %v21377_v16  ;;  %v30027_v9 = vpop.permute.xlu0 %14325  ;;  %v21427_v12 = vld [vmem:[%s32197_s4 + $0x280] sm:$0xff] }
 0x645   : > { %22531 = vmatpush3.msra.mxu0 %v12886_v44  ;;  %22532 = vmatprep.mubr.msk.f32.mxu0 %vm11482_vm2, %v21386_v1  ;;  %v32489_v44 = vld [vmem:[#allocation67_spill] sm:$0xff] }
 0x646   : > { %22542 = vmatpush3.msk.msra.mxu1 %vm11501_vm1, %v13033_v5  ;;  %16208 = vrot.lane.b32.xlu0 %v28998_v50, %s23516_s23  ;;  %v30036_v62 = vpop.permute.xlu1 %15779  ;;  %v21416_v5 = vld [vmem:[%s32197_s4 + $0x260] sm:$0xff] }
 0x647   : > { %22524 = vmatmul.mubr.msk.f32.gmra.mxu1 %vm11482_vm2, %v21378_v22  ;;  %22533 = vmatmul.mubr.msk.f32.vlgmr.msra.gmra.mxu0 %vm11482_vm2, %v21387_v14  ;;  %v32490_v22 = vld [vmem:[#allocation45_spill] sm:$0xff] }
 0x648   : > { %22543 = vmatprep.subr.mxu1 %v13032_v25  ;;  %15926 = vrot.lane.b32.xlu1 %v29317_v8, %s23514_s29  ;;  %v30049_v27 = vpop.permute.xlu0 %14470  ;;  %v13467_v14 = vsel %vm13465_vm15, %v32490_v22, %v32489_v44  ;;  %v21456_v22 = vld [vmem:[%s32197_s4 + $0x2f8] sm:$0xff] }
 0x649   : > { %22544 = vmatpush3.msra.mxu1 %v13032_v25  ;;  %22535 = vmatprep.mubr.msk.f32.mxu0 %vm11482_vm2, %v21388_v42  ;;  %v21429_v42 = vld [vmem:[%s32197_s4 + $0x290] sm:$0xff] }
 0x64a   : > { %22545 = vmatprep.subr.mxu1 %v13031_v11  ;;  %22547 = vmatprep.mubr.msk.f32.mxu1 %vm11482_vm2, %v21399_v20  ;;  %v13464_v56 = vpop.permute.xlu1 %13463  ;;  %v32491_v20 = vld [vmem:[#allocation34_spill] sm:$0xff] }
 0x64b   : > { %22546 = vmatpush3.msra.mxu1 %v13031_v11  ;;  %16206 = vrot.lane.b32.xlu0 %v28980_v23, %s23516_s23  ;;  %v13468_v7 = vsel %vm13465_vm15, %v29869_v37, %v13464_v56  ;;  %v21428_v37 = vld [vmem:[%s32197_s4 + $0x288] sm:$0xff]  ;;  %v32492_v11 = vld [vmem:[#allocation21_spill] sm:$0xff] }
 0x64c   : > { %22536 = vmatmul.mubr.msk.f32.gmra.mxu0 %vm11482_vm2, %v21389_v31  ;;  %22548 = vmatmul.mubr.msk.f32.vlgmr.msra.gmra.mxu1 %vm11482_vm2, %v21400_v6  ;;  %v30077_v38 = vpop.permute.xlu0 %14615  ;;  %v13466_v31 = vsel %vm13465_vm15, %v32492_v11, %v32491_v20  ;;  %v21430_v6 = vld [vmem:[%s32197_s4 + $0x298] sm:$0xff]  ;;  %v21466_v20 = vld [vmem:[%s32197_s4 + $0x310] sm:$0xff]  ;;  %vm15783_vm15 = vcmp.lt.s32.totalorder %v32484_v46, 63 }
 0x64d   : > { %16357 = vrot.lane.b32.xlu1 %v28982_v39, %s23517_s16  ;;  %22556 = vmatprep.subr.msk.mxu0 %vm11501_vm1, %v13178_v10  ;;  %v32501_v11 = vld [vmem:[#allocation69_spill] sm:$0xff] }
 0x64e   : > { %22538 = vmatprep.mubr.msk.f32.mxu0 %vm11482_vm2, %v21390_v26  ;;  %22550 = vmatprep.mubr.msk.f32.mxu1 %vm11482_vm2, %v21401_v24  ;;  %v13609_v0 = vpop.permute.xlu1 %13608  ;;  %v21440_v26 = vld [vmem:[%s32197_s4 + $0x2b0] sm:$0xff] }
 0x64f   : > { %22557 = vmatpush3.msk.msra.mxu0 %vm11501_vm1, %v13178_v10  ;;  %16355 = vrot.lane.b32.xlu0 %v28994_v3, %s23517_s16  ;;  %v21439_v10 = vld [vmem:[%s32197_s4 + $0x2a8] sm:$0xff] }
 0x650   : > { %22539 = vmatmul.mubr.msk.f32.gmra.mxu0 %vm11482_vm2, %v21391_v29  ;;  %22551 = vmatmul.mubr.msk.f32.gmra.mxu1 %vm11482_vm2, %v21402_v33  ;;  %v30106_v52 = vpop.permute.xlu0 %14760  ;;  %v32493_v29 = vld [vmem:[#allocation57_spill] sm:$0xff]  ;;  %v32494_v33 = vld [vmem:[#allocation38_spill] sm:$0xff] }
 0x651   : > { %22558 = vmatprep.subr.mxu0 %v13177_v40  ;;  %16071 = vrot.lane.b32.xlu1 %v29317_v8, %s23515_s13 }
 0x652   : > { %22559 = vmatpush3.msra.mxu0 %v13177_v40  ;;  %22571 = vmatprep.subr.msk.mxu1 %vm11501_vm1, %v13323_v13  ;;  %v30118_v55 = vpop.permute.xlu1 %15777  ;;  %v32495_v40 = vld [vmem:[#allocation9_spill] sm:$0xff] }
 0x653   : > { %22560 = vmatprep.subr.mxu0 %v13176_v45  ;;  %22553 = vmatprep.mubr.msk.f32.mxu1 %vm11482_vm2, %v21403_v36  ;;  %v32496_v36 = vld [vmem:[#allocation71_spill] sm:$0xff] }
 0x654   : > { %22561 = vmatpush3.msra.mxu0 %v13176_v45  ;;  %22562 = vmatprep.mubr.msk.f32.mxu0 %vm11482_vm2, %v21412_v58  ;;  %v30128_v63 = vpop.permute.xlu0 %14905  ;;  %v13611_v58 = vsel %vm13610_vm8, %v32496_v36, %v32495_v40  ;;  %v21441_v45 = vld [vmem:[%s32197_s4 + $0x2b8] sm:$0xff] }
 0x655   : > { %22572 = vmatpush3.msk.msra.mxu1 %vm11501_vm1, %v13323_v13  ;;  %16353 = vrot.lane.b32.xlu0 %v28998_v50, %s23517_s16  ;;  %v21451_v13 = vld [vmem:[%s32197_s4 + $0x2d0] sm:$0xff]  ;;  %v21467_v40 = vld [vmem:[%s32197_s4 + $0x318] sm:$0xff] }
 0x656   : > { %22554 = vmatmul.mubr.msk.f32.gmra.mxu1 %vm11482_vm2, %v21404_v48  ;;  %22563 = vmatmul.mubr.msk.f32.vlgmr.msra.gmra.mxu0 %vm11482_vm2, %v21413_v2  ;;  %v30145_v17 = vpop.permute.xlu1 %13753  ;;  %v21452_v48 = vld [vmem:[%s32197_s4 + $0x2d8] sm:$0xff] }
 0x657   : > { %22573 = vmatprep.subr.mxu1 %v13322_v15  ;;  %16216 = vrot.lane.b32.xlu1 %v29317_v8, %s23516_s23  ;;  %s23518_s23 = smov 58   ;;  %v21478_v36 = vld [vmem:[%s32197_s4 + $0x338] sm:$0xff] }
 0x658   : > { %22574 = vmatpush3.msra.mxu1 %v13322_v15  ;;  %22565 = vmatprep.mubr.msk.f32.mxu0 %vm11482_vm2, %v21414_v51  ;;  %v30161_v60 = vpop.permute.xlu0 %15050  ;;  %v21442_v51 = vld [vmem:[%s32197_s4 + $0x2c0] sm:$0xff] }
 0x659   : > { %22575 = vmatprep.subr.mxu1 %v13321_v32  ;;  %22577 = vmatprep.mubr.msk.f32.mxu1 %vm11482_vm2, %v21425_v59  ;;  %v21453_v15 = vld [vmem:[%s32197_s4 + $0x2e0] sm:$0xff] }
 0x65a   : > { %22576 = vmatpush3.msra.mxu1 %v13321_v32  ;;  %16500 = vrot.lane.b32.xlu0 %v28994_v3, %s23518_s23  ;;  %v30175_v16 = vpop.permute.xlu1 %13897  ;;  %v21417_v3 = vld [vmem:[%s32197_s4 + $0x268] sm:$0xff] }
 0x65b   : > { %22566 = vmatmul.mubr.msk.f32.gmra.mxu0 %vm11482_vm2, %v21415_v57  ;;  %22578 = vmatmul.mubr.msk.f32.vlgmr.msra.gmra.mxu1 %vm11482_vm2, %v21426_v53  ;;  %v32497_v57 = vld [vmem:[#allocation56_spill] sm:$0xff]  ;;  %v32498_v53 = vld [vmem:[#allocation46_spill] sm:$0xff] }
 0x65c   : > { %16504 = vrot.lane.b32.xlu1 %v29104_v49, %s23518_s23  ;;  %22586 = vmatprep.subr.msk.mxu0 %vm11501_vm1, %v13468_v7  ;;  %v30188_v1 = vpop.permute.xlu0 %15195  ;;  %v13613_v49 = vsel %vm13610_vm8, %v29895_v54, %v13609_v0  ;;  %v21438_v54 = vld [vmem:[%s32197_s4 + $0x2a0] sm:$0xff]  ;;  %v13612_v0 = vsel %vm13610_vm8, %v32494_v33, %v32493_v29  ;;  %vm15928_vm8 = vcmp.lt.s32.totalorder %v32484_v46, 62 }
 0x65d   : > { %22568 = vmatprep.mubr.msk.f32.mxu0 %vm11482_vm2, %v21416_v5  ;;  %22580 = vmatprep.mubr.msk.f32.mxu1 %vm11482_vm2, %v21427_v12  ;;  %v21455_v5 = vld [vmem:[%s32197_s4 + $0x2f0] sm:$0xff]  ;;  %v16645_v29 = vld [vmem:[%s32198_s5 + $0x20] sm:$0xff] }
 0x65e   : > { %22587 = vmatpush3.msk.msra.mxu0 %vm11501_vm1, %v13468_v7  ;;  %16351 = vrot.lane.b32.xlu0 %v28980_v23, %s23517_s16  ;;  %v30199_v61 = vpop.permute.xlu1 %15924  ;;  %v13756_v7 = vsel %vm2456_vm6, %v32498_v53, %v32497_v57  ;;  %v32503_v33 = vld [vmem:[#allocation42_spill] sm:$0xff]  ;;  %v21482_v53 = vld [vmem:[%s32197_s4 + $0x358] sm:$0xff] }
 0x65f   : > { %22569 = vmatmul.mubr.msk.f32.gmra.mxu0 %vm11482_vm2, %v21417_v3  ;;  %22581 = vmatmul.mubr.msk.f32.gmra.mxu1 %vm11482_vm2, %v21428_v37  ;;  %v32500_v3 = vld [vmem:[#allocation15_spill] sm:$0xff] }
 0x660   : > { %22588 = vmatprep.subr.mxu0 %v13467_v14  ;;  %16361 = vrot.lane.b32.xlu1 %v29317_v8, %s23517_s16  ;;  %v30215_v25 = vpop.permute.xlu0 %15340 }
 0x661   : > { %22589 = vmatpush3.msra.mxu0 %v13467_v14  ;;  %22601 = vmatprep.subr.msk.mxu1 %vm11501_vm1, %v13613_v49  ;;  %v21465_v14 = vld [vmem:[%s32197_s4 + $0x308] sm:$0xff] }
 0x662   : > { %22590 = vmatprep.subr.mxu0 %v13466_v31  ;;  %22583 = vmatprep.mubr.msk.f32.mxu1 %vm11482_vm2, %v21429_v42  ;;  %v30229_v56 = vpop.permute.xlu1 %14041  ;;  %v16644_v42 = vld [vmem:[%s32198_s5 + $0x18] sm:$0xff] }
 0x663   : > { %22591 = vmatpush3.msra.mxu0 %v13466_v31  ;;  %22592 = vmatprep.mubr.msk.f32.mxu0 %vm11482_vm2, %v21438_v54  ;;  %v32502_v31 = vld [vmem:[#allocation68_spill] sm:$0xff] }
 0x664   : > { %22602 = vmatpush3.msk.msra.mxu1 %vm11501_vm1, %v13613_v49  ;;  %16498 = vrot.lane.b32.xlu0 %v28998_v50, %s23518_s23  ;;  %v30238_v24 = vpop.permute.xlu0 %15338  ;;  %v16643_v49 = vld [vmem:[%s32198_s5 + $0x10] sm:$0xff] }
 0x665   : > { %22584 = vmatmul.mubr.msk.f32.gmra.mxu1 %vm11482_vm2, %v21430_v6  ;;  %22593 = vmatmul.mubr.msk.f32.vlgmr.msra.gmra.mxu0 %vm11482_vm2, %v21439_v10  ;;  %v13900_v6 = vsel %vm2874_vm7, %v32502_v31, %v32501_v11  ;;  %v21477_v10 = vld [vmem:[%s32197_s4 + $0x330] sm:$0xff]  ;;  %v32511_v31 = vld [vmem:[#allocation50_spill] sm:$0xff] }
 0x666   : > { %22603 = vmatprep.subr.mxu1 %v13612_v0  ;;  %16506 = vrot.lane.b32.xlu1 %v29317_v8, %s23518_s23  ;;  %v30251_v50 = vpop.permute.xlu1 %14186  ;;  %v13757_v8 = vsel %vm2456_vm6, %v29922_v43, %v30145_v17  ;;  %v16641_v43 = vld [vmem:[%s32198_s5] sm:$0xff]  ;;  %v21454_v17 = vld [vmem:[%s32197_s4 + $0x2e8] sm:$0xff] }
 0x667   : > { %22604 = vmatpush3.msra.mxu1 %v13612_v0  ;;  %22595 = vmatprep.mubr.msk.f32.mxu0 %vm11482_vm2, %v21440_v26  ;;  %v32504_v0 = vld [vmem:[#allocation28_spill] sm:$0xff] }
 0x668   : > { %22605 = vmatprep.subr.mxu1 %v13611_v58  ;;  %22607 = vmatprep.mubr.msk.f32.mxu1 %vm11482_vm2, %v21451_v13  ;;  %v30269_v2 = vpop.permute.xlu0 %15336  ;;  %v13899_v13 = vsel %vm2874_vm7, %v32504_v0, %v32503_v33  ;;  %v21504_v33 = vld [vmem:[%s32197_s4 + $0x398] sm:$0xff] }
 0x669   : > { %22606 = vmatpush3.msra.mxu1 %v13611_v58  ;;  %16496 = vrot.lane.b32.xlu0 %v28980_v23, %s23518_s23  ;;  %v21443_v23 = vld [vmem:[%s32197_s4 + $0x2c8] sm:$0xff] }
 0x66a   : > { %22596 = vmatmul.mubr.msk.f32.gmra.mxu0 %vm11482_vm2, %v21441_v45  ;;  %22608 = vmatmul.mubr.msk.f32.vlgmr.msra.gmra.mxu1 %vm11482_vm2, %v21452_v48  ;;  %v30284_v59 = vpop.permute.xlu1 %15922  ;;  %v16646_v48 = vld [vmem:[%s32198_s5 + $0x28] sm:$0xff] }
 0x66b   : > { %16502 = vrot.lane.b32.xlu1 %v28982_v39, %s23518_s23  ;;  %22616 = vmatprep.subr.msk.mxu0 %vm11501_vm1, %v13757_v8  ;;  %v13901_v39 = vsel %vm2874_vm7, %v29947_v18, %v30175_v16  ;;  %v21464_v18 = vld [vmem:[%s32197_s4 + $0x300] sm:$0xff]  ;;  %v32499_v16 = vld [vmem:[#allocation60_spill] sm:$0xff]  ;;  %vm14188_vm7 = vcmp.lt.s32.totalorder %v32484_v46, 88 }
 0x66c   : > { %22598 = vmatprep.mubr.msk.f32.mxu0 %vm11482_vm2, %v21442_v51  ;;  %22610 = vmatprep.mubr.msk.f32.mxu1 %vm11482_vm2, %v21453_v15  ;;  %v30300_v32 = vpop.permute.xlu0 %15485  ;;  %v13755_v37 = vsel %vm2456_vm6, %v32500_v3, %v32499_v16  ;;  %vm14043_vm6 = vcmp.lt.s32.totalorder %v32484_v46, 89  ;;  %v21479_v51 = vld [vmem:[%s32197_s4 + $0x340] sm:$0xff]  ;;  %v21491_v3 = vld [vmem:[%s32197_s4 + $0x368] sm:$0xff] }
 0x66d   : > { %22617 = vmatpush3.msk.msra.mxu0 %vm11501_vm1, %v13757_v8  ;;  %16649 = vperm.xlu0 %23376, %v16641_v43   ;;  %v14046_v45 = vsel %vm14043_vm6, %v29977_v30, %v30229_v56  ;;  %v21468_v8 = vld [vmem:[%s32197_s4 + $0x320] sm:$0xff]  ;;  %v14191_v30 = vsel %vm14188_vm7, %v29999_v4, %v30251_v50  ;;  %v21469_v56 = vld [vmem:[%s32197_s4 + $0x328] sm:$0xff]  ;;  %v21481_v4 = vld [vmem:[%s32197_s4 + $0x350] sm:$0xff] }
 0x66e   : > { %22599 = vmatmul.mubr.msk.f32.gmra.mxu0 %vm11482_vm2, %v21443_v23  ;;  %22611 = vmatmul.mubr.msk.f32.gmra.mxu1 %vm11482_vm2, %v21454_v17  ;;  %v30316_v12 = vpop.permute.xlu1 %14331  ;;  %v21480_v43 = vld [vmem:[%s32197_s4 + $0x348] sm:$0xff]  ;;  %v21490_v50 = vld [vmem:[%s32197_s4 + $0x360] sm:$0xff] }
 0x66f   : > { %22618 = vmatprep.subr.mxu0 %v13756_v7  ;;  %16654 = vperm.xlu1 %23377, %v16642_v28   ;;  %v32505_v17 = vld [vmem:[#allocation70_spill] sm:$0xff]  ;;  %v14336_v11 = vsel %vm14333_vm9, %v30027_v9, %v30316_v12 }
 0x670   : > { %22619 = vmatpush3.msra.mxu0 %v13756_v7  ;;  %22631 = vmatprep.subr.msk.mxu1 %vm11501_vm1, %v13901_v39  ;;  %v30329_v44 = vpop.permute.xlu0 %15483  ;;  %v32506_v28 = vld [vmem:[#allocation58_spill] sm:$0xff] }
 0x671   : > { %22620 = vmatprep.subr.mxu0 %v13755_v37  ;;  %22613 = vmatprep.mubr.msk.f32.mxu1 %vm11482_vm2, %v21455_v5  ;;  %v32507_v5 = vld [vmem:[#allocation36_spill] sm:$0xff]  ;;  %v21494_v9 = vld [vmem:[%s32197_s4 + $0x380] sm:$0xff] }
 0x672   : > { %22621 = vmatpush3.msra.mxu0 %v13755_v37  ;;  %22622 = vmatprep.mubr.msk.f32.mxu0 %vm11482_vm2, %v21464_v18  ;;  %v30342_v54 = vpop.permute.xlu1 %14476  ;;  %v32508_v18 = vld [vmem:[#allocation22_spill] sm:$0xff]  ;;  %v21492_v37 = vld [vmem:[%s32197_s4 + $0x370] sm:$0xff] }
 0x673   : > { %22632 = vmatpush3.msk.msra.mxu1 %vm11501_vm1, %v13901_v39  ;;  %16659 = vperm.xlu0 %23376, %v16643_v49   ;;  %v14045_v39 = vsel %vm14043_vm6, %v32506_v28, %v32505_v17  ;;  %v14044_v16 = vsel %vm14043_vm6, %v32508_v18, %v32507_v5  ;;  %v32509_v49 = vld [vmem:[#allocation7_spill] sm:$0xff]  ;;  %v21505_v12 = vld [vmem:[%s32197_s4 + $0x3a0] sm:$0xff]  ;;  %v21518_v18 = vld [vmem:[%s32197_s4 + $0x3d0] sm:$0xff]  ;;  %vm16073_vm6 = vcmp.lt.s32.totalorder %v32484_v46, 61 }
 0x674   : > { %22614 = vmatmul.mubr.msk.f32.gmra.mxu1 %vm11482_vm2, %v21456_v22  ;;  %22623 = vmatmul.mubr.msk.f32.vlgmr.msra.gmra.mxu0 %vm11482_vm2, %v21465_v14  ;;  %v30357_v26 = vpop.permute.xlu0 %15630  ;;  %v32510_v22 = vld [vmem:[#allocation3_spill] sm:$0xff] }
 0x675   : > { %22633 = vmatprep.subr.mxu1 %v13900_v6  ;;  %16664 = vperm.xlu1 %23377, %v16644_v42   ;;  %v14190_v14 = vsel %vm14188_vm7, %v32510_v22, %v32509_v49  ;;  %v21503_v42 = vld [vmem:[%s32197_s4 + $0x390] sm:$0xff]  ;;  %v21517_v17 = vld [vmem:[%s32197_s4 + $0x3c8] sm:$0xff]  ;;  %v32519_v49 = vld [vmem:[#allocation29_spill] sm:$0xff] }
 0x676   : > { %22634 = vmatpush3.msra.mxu1 %v13900_v6  ;;  %22625 = vmatprep.mubr.msk.f32.mxu0 %vm11482_vm2, %v21466_v20  ;;  %v30374_v58 = vpop.permute.xlu1 %16069  ;;  %v32512_v6 = vld [vmem:[#allocation52_spill] sm:$0xff] }
 0x677   : > { %22635 = vmatprep.subr.mxu1 %v13899_v13  ;;  %22637 = vmatprep.mubr.msk.f32.mxu1 %vm11482_vm2, %v21477_v10  ;;  %v14189_v10 = vsel %vm14188_vm7, %v32512_v6, %v32511_v31  ;;  %v32520_v22 = vld [vmem:[#allocation16_spill] sm:$0xff]  ;;  %vm16218_vm7 = vcmp.lt.s32.totalorder %v32484_v46, 60 }
 0x678   : > { %22636 = vmatpush3.msra.mxu1 %v13899_v13  ;;  %16669 = vperm.xlu0 %23376, %v16645_v29   ;;  %v30391_v15 = vpop.permute.xlu0 %15481  ;;  %v21493_v29 = vld [vmem:[%s32197_s4 + $0x378] sm:$0xff]  ;;  %v14481_v13 = vsel %vm14478_vm0, %v30049_v27, %v30342_v54  ;;  %v32513_v27 = vld [vmem:[#allocation4_spill] sm:$0xff] }
 0x679   : > { %22626 = vmatmul.mubr.msk.f32.gmra.mxu0 %vm11482_vm2, %v21467_v40  ;;  %22638 = vmatmul.mubr.msk.f32.vlgmr.msra.gmra.mxu1 %vm11482_vm2, %v21478_v36  ;;  %v21495_v36 = vld [vmem:[%s32197_s4 + $0x388] sm:$0xff]  ;;  %v32514_v54 = vld [vmem:[#allocation13_spill] sm:$0xff] }
 0x67a   : > { %16674 = vperm.xlu1 %23377, %v16646_v48   ;;  %22646 = vmatprep.subr.msk.mxu0 %vm11501_vm1, %v14046_v45  ;;  %v30406_v23 = vpop.permute.xlu1 %14621 }
 0x67b   : > { %22628 = vmatprep.mubr.msk.f32.mxu0 %vm11482_vm2, %v21468_v8  ;;  %22640 = vmatprep.mubr.msk.f32.mxu1 %vm11482_vm2, %v21479_v51  ;;  %v14335_v8 = vsel %vm14333_vm9, %v32514_v54, %v32513_v27  ;;  %v21507_v51 = vld [vmem:[%s32197_s4 + $0x3b0] sm:$0xff] }
 0x67c   : > { %22647 = vmatpush3.msk.msra.mxu0 %vm11501_vm1, %v14046_v45  ;;  %22661 = vmatprep.subr.msk.mxu1 %vm11501_vm1, %v14191_v30  ;;  %v21506_v45 = vld [vmem:[%s32197_s4 + $0x3a8] sm:$0xff]  ;;  %v32523_v27 = vld [vmem:[#allocation64_spill] sm:$0xff] }
 0x67d   : > { %22629 = vmatmul.mubr.msk.f32.gmra.mxu0 %vm11482_vm2, %v21469_v56  ;;  %22641 = vmatmul.mubr.msk.f32.gmra.mxu1 %vm11482_vm2, %v21480_v43  ;;  %v30424_v57 = vpop.permute.xlu0 %15628  ;;  %v32515_v56 = vld [vmem:[#allocation10_spill] sm:$0xff]  ;;  %v32524_v54 = vld [vmem:[#allocation44_spill] sm:$0xff] }
 0x67e   : > { %22648 = vmatprep.subr.mxu0 %v14045_v39  ;;  %22643 = vmatprep.mubr.msk.f32.mxu1 %vm11482_vm2, %v21481_v4  ;;  %v30430_v7 = vpop.permute.xlu1 %14766  ;;  %v32516_v43 = vld [vmem:[#allocation62_spill] sm:$0xff] }
 0x67f   : > { %22649 = vmatpush3.msra.mxu0 %v14045_v39  ;;  %22652 = vmatprep.mubr.msk.f32.mxu0 %vm11482_vm2, %v21490_v50  ;;  %v14334_v4 = vsel %vm14333_vm9, %v32516_v43, %v32515_v56  ;;  %v21508_v50 = vld [vmem:[%s32197_s4 + $0x3b8] sm:$0xff]  ;;  %v32517_v39 = vld [vmem:[#allocation19_spill] sm:$0xff]  ;;  %v14771_v6 = vsel %vm14768_vm4, %v30106_v52, %v30430_v7  ;;  %v32521_v52 = vld [vmem:[#allocation26_spill] sm:$0xff]  ;;  %vm16363_vm9 = vcmp.lt.s32.totalorder %v32484_v46, 59 }
 0x680   : > { %22650 = vmatprep.subr.mxu0 %v14044_v16  ;;  %22662 = vmatpush3.msk.msra.mxu1 %vm11501_vm1, %v14191_v30  ;;  %v21516_v30 = vld [vmem:[%s32197_s4 + $0x3c0] sm:$0xff]  ;;  %v32525_v56 = vld [vmem:[#allocation33_spill] sm:$0xff]  ;;  %v32526_v43 = vld [vmem:[#allocation20_spill] sm:$0xff] }
 0x681   : > { %22651 = vmatpush3.msra.mxu0 %v14044_v16  ;;  %22644 = vmatmul.mubr.msk.f32.gmra.mxu1 %vm11482_vm2, %v21482_v53  ;;  %v30453_v20 = vpop.permute.xlu0 %15626  ;;  %v32518_v53 = vld [vmem:[#allocation8_spill] sm:$0xff]  ;;  %v32522_v7 = vld [vmem:[#allocation14_spill] sm:$0xff] }
 0x682   : > { %22653 = vmatmul.mubr.msk.f32.vlgmr.msra.gmra.mxu0 %vm11482_vm2, %v21491_v3  ;;  %22663 = vmatprep.subr.mxu1 %v14190_v14  ;;  %v14480_v5 = vsel %vm14478_vm0, %v32518_v53, %v32517_v39  ;;  %v21529_v16 = vld [vmem:[%s32197_s4 + $0x3f0] sm:$0xff] }
 0x683   : > { %22664 = vmatpush3.msra.mxu1 %v14190_v14  ;;  %22655 = vmatprep.mubr.msk.f32.mxu0 %vm11482_vm2, %v21492_v37  ;;  %v30471_v0 = vpop.permute.xlu1 %16067  ;;  %v14626_v37 = vsel %vm14623_vm3, %v30077_v38, %v30406_v23  ;;  %v14479_v14 = vsel %vm14478_vm0, %v32520_v22, %v32519_v49  ;;  %v21520_v38 = vld [vmem:[%s32197_s4 + $0x3e0] sm:$0xff]  ;;  %v21556_v49 = vld [vmem:[%s32197_s4 + $0x458] sm:$0xff]  ;;  %vm16508_vm0 = vcmp.lt.s32.totalorder %v32484_v46, 58 }
 0x684   : > { %22665 = vmatprep.subr.mxu1 %v14189_v10  ;;  %22667 = vmatprep.mubr.msk.f32.mxu1 %vm11482_vm2, %v21503_v42  ;;  %v21519_v42 = vld [vmem:[%s32197_s4 + $0x3d8] sm:$0xff]  ;;  %v21531_v23 = vld [vmem:[%s32197_s4 + $0x400] sm:$0xff] }
 0x685   : > { %22666 = vmatpush3.msra.mxu1 %v14189_v10  ;;  %22676 = vmatprep.subr.msk.mxu0 %vm11501_vm1, %v14336_v11  ;;  %v30486_v40 = vpop.permute.xlu0 %15775  ;;  %v21701_v46 = vld [vmem:[%s32197_s4 + $0x678] sm:$0xff] }
 0x686   : > { %22656 = vmatmul.mubr.msk.f32.gmra.mxu0 %vm11482_vm2, %v21493_v29  ;;  %22668 = vmatmul.mubr.msk.f32.vlgmr.msra.gmra.mxu1 %vm11482_vm2, %v21504_v33  ;;  %v21521_v29 = vld [vmem:[%s32197_s4 + $0x3e8] sm:$0xff] }
 0x687   : > { %22658 = vmatprep.mubr.msk.f32.mxu0 %vm11482_vm2, %v21494_v9  ;;  %22670 = vmatprep.mubr.msk.f32.mxu1 %vm11482_vm2, %v21505_v12  ;;  %v30498_v48 = vpop.permute.xlu1 %14911  ;;  %v21532_v33 = vld [vmem:[%s32197_s4 + $0x408] sm:$0xff]  ;;  %v14625_v9 = vsel %vm14623_vm3, %v32522_v7, %v32521_v52  ;;  %v21533_v12 = vld [vmem:[%s32197_s4 + $0x410] sm:$0xff]  ;;  %v32531_v52 = vld [vmem:[#allocation53_spill] sm:$0xff] }
 0x688   : > { %22677 = vmatpush3.msk.msra.mxu0 %vm11501_vm1, %v14336_v11  ;;  %22691 = vmatprep.subr.msk.mxu1 %vm11501_vm1, %v14481_v13  ;;  %v21530_v11 = vld [vmem:[%s32197_s4 + $0x3f8] sm:$0xff]  ;;  %v14916_v39 = vsel %vm14913_vm5, %v30128_v63, %v30498_v48  ;;  %v21546_v63 = vld [vmem:[%s32197_s4 + $0x440] sm:$0xff]  ;;  %v32532_v7 = vld [vmem:[#allocation55_spill] sm:$0xff] }
 0x689   : > { %22678 = vmatprep.subr.mxu0 %v14335_v8  ;;  %22692 = vmatpush3.msk.msra.mxu1 %vm11501_vm1, %v14481_v13  ;;  %v21557_v48 = vld [vmem:[%s32197_s4 + $0x460] sm:$0xff] }
 0x68a   : > { %22659 = vmatmul.mubr.msk.f32.gmra.mxu0 %vm11482_vm2, %v21495_v36  ;;  %22671 = vmatmul.mubr.msk.f32.gmra.mxu1 %vm11482_vm2, %v21506_v45  ;;  %v21542_v36 = vld [vmem:[%s32197_s4 + $0x420] sm:$0xff] }
 0x68b   : > { %22679 = vmatpush3.msra.mxu0 %v14335_v8  ;;  %22673 = vmatprep.mubr.msk.f32.mxu1 %vm11482_vm2, %v21507_v51  ;;  %v30526_v28 = vpop.permute.xlu0 %15773  ;;  %v14624_v8 = vsel %vm14623_vm3, %v32524_v54, %v32523_v27  ;;  %v21534_v51 = vld [vmem:[%s32197_s4 + $0x418] sm:$0xff]  ;;  %v32533_v54 = vld [vmem:[#allocation51_spill] sm:$0xff]  ;;  %vm16823_vm3 = vcmask 130048  }
 0x68c   : > { %22680 = vmatprep.subr.mxu0 %v14334_v4  ;;  %22682 = vmatprep.mubr.msk.f32.mxu0 %vm11482_vm2, %v21516_v30  ;;  %v21543_v30 = vld [vmem:[%s32197_s4 + $0x428] sm:$0xff] }
 0x68d   : > { %22681 = vmatpush3.msra.mxu0 %v14334_v4  ;;  %22693 = vmatprep.subr.mxu1 %v14480_v5  ;;  %v30540_v3 = vpop.permute.xlu1 %15056  ;;  %v14770_v4 = vsel %vm14768_vm4, %v32526_v43, %v32525_v56  ;;  %v21581_v56 = vld [vmem:[%s32197_s4 + $0x4b0] sm:$0xff] }
 0x68e   : > { %22674 = vmatmul.mubr.msk.f32.gmra.mxu1 %vm11482_vm2, %v21508_v50  ;;  %22683 = vmatmul.mubr.msk.f32.vlgmr.msra.gmra.mxu0 %vm11482_vm2, %v21517_v17  ;;  %v21544_v50 = vld [vmem:[%s32197_s4 + $0x430] sm:$0xff] }
 0x68f   : > { %22694 = vmatpush3.msra.mxu1 %v14480_v5  ;;  %22685 = vmatprep.mubr.msk.f32.mxu0 %vm11482_vm2, %v21518_v18  ;;  %v21555_v17 = vld [vmem:[%s32197_s4 + $0x450] sm:$0xff]  ;;  %v32527_v5 = vld [vmem:[#allocation37_spill] sm:$0xff]  ;;  %v32528_v18 = vld [vmem:[#allocation23_spill] sm:$0xff] }
 0x690   : > { %22695 = vmatprep.subr.mxu1 %v14479_v14  ;;  %22697 = vmatprep.mubr.msk.f32.mxu1 %vm11482_vm2, %v21529_v16  ;;  %v30567_v31 = vpop.permute.xlu0 %15920  ;;  %v14769_v16 = vsel %vm14768_vm4, %v32528_v18, %v32527_v5  ;;  %v21571_v5 = vld [vmem:[%s32197_s4 + $0x498] sm:$0xff]  ;;  %vm20533_vm4 = vcmask 1043456  }
 0x691   : > { %22696 = vmatpush3.msra.mxu1 %v14479_v14  ;;  %22706 = vmatprep.subr.msk.mxu0 %vm11501_vm1, %v14626_v37  ;;  %v15061_v14 = vsel %vm15058_vm10, %v30161_v60, %v30540_v3  ;;  %v32529_v60 = vld [vmem:[#allocation41_spill] sm:$0xff]  ;;  %v32530_v3 = vld [vmem:[#allocation27_spill] sm:$0xff] }
 0x692   : > { %22686 = vmatmul.mubr.msk.f32.gmra.mxu0 %vm11482_vm2, %v21519_v42  ;;  %22698 = vmatmul.mubr.msk.f32.vlgmr.msra.gmra.mxu1 %vm11482_vm2, %v21530_v11  ;;  %v30576_v10 = vpop.permute.xlu1 %16214  ;;  %v21547_v42 = vld [vmem:[%s32197_s4 + $0x448] sm:$0xff]  ;;  %v21582_v18 = vld [vmem:[%s32197_s4 + $0x4b8] sm:$0xff] }
 0x693   : > { %22688 = vmatprep.mubr.msk.f32.mxu0 %vm11482_vm2, %v21520_v38  ;;  %22700 = vmatprep.mubr.msk.f32.mxu1 %vm11482_vm2, %v21531_v23  ;;  %v21558_v11 = vld [vmem:[%s32197_s4 + $0x468] sm:$0xff]  ;;  %v14915_v23 = vsel %vm14913_vm5, %v32530_v3, %v32529_v60  ;;  %v32539_v3 = vld [vmem:[#allocation5_spill] sm:$0xff] }
 0x694   : > { %22707 = vmatpush3.msk.msra.mxu0 %vm11501_vm1, %v14626_v37  ;;  %22721 = vmatprep.subr.msk.mxu1 %vm11501_vm1, %v14771_v6  ;;  %v30595_v13 = vpop.permute.xlu0 %15771  ;;  %v21545_v37 = vld [vmem:[%s32197_s4 + $0x438] sm:$0xff] }
 0x695   : > { %22708 = vmatprep.subr.mxu0 %v14625_v9  ;;  %22722 = vmatpush3.msk.msra.mxu1 %vm11501_vm1, %v14771_v6  ;;  %v21559_v6 = vld [vmem:[%s32197_s4 + $0x470] sm:$0xff] }
 0x696   : > { %22689 = vmatmul.mubr.msk.f32.gmra.mxu0 %vm11482_vm2, %v21521_v29  ;;  %22701 = vmatmul.mubr.msk.f32.gmra.mxu1 %vm11482_vm2, %v21532_v33  ;;  %v30603_v45 = vpop.permute.xlu1 %15201  ;;  %v21568_v29 = vld [vmem:[%s32197_s4 + $0x480] sm:$0xff] }
 0x697   : > { %22709 = vmatpush3.msra.mxu0 %v14625_v9  ;;  %22703 = vmatprep.mubr.msk.f32.mxu1 %vm11482_vm2, %v21533_v12  ;;  %v14914_v9 = vsel %vm14913_vm5, %v32532_v7, %v32531_v52  ;;  %v21560_v12 = vld [vmem:[%s32197_s4 + $0x478] sm:$0xff]  ;;  %v32540_v52 = vld [vmem:[#allocation11_spill] sm:$0xff]  ;;  %vm20529_vm5 = vcmask 687104  }
 0x698   : > { %22710 = vmatprep.subr.mxu0 %v14624_v8  ;;  %22712 = vmatprep.mubr.msk.f32.mxu0 %vm11482_vm2, %v21542_v36  ;;  %v21569_v36 = vld [vmem:[%s32197_s4 + $0x488] sm:$0xff]  ;;  %v15350_v7 = vsel %vm15348_vm12, %v30238_v24, %v32540_v52 }
 0x699   : > { %22711 = vmatpush3.msra.mxu0 %v14624_v8  ;;  %22723 = vmatprep.subr.mxu1 %v14770_v4  ;;  %v32534_v8 = vld [vmem:[#allocation35_spill] sm:$0xff] }
 0x69a   : > { %22704 = vmatmul.mubr.msk.f32.gmra.mxu1 %vm11482_vm2, %v21534_v51  ;;  %22713 = vmatmul.mubr.msk.f32.vlgmr.msra.gmra.mxu0 %vm11482_vm2, %v21543_v30  ;;  %v30634_v53 = vpop.permute.xlu0 %15918  ;;  %v15060_v51 = vsel %vm15058_vm10, %v32534_v8, %v32533_v54  ;;  %v21570_v30 = vld [vmem:[%s32197_s4 + $0x490] sm:$0xff]  ;;  %v15349_v54 = vsel %vm15348_vm12, %v30269_v2, %v29647_v34  ;;  %v21597_v8 = vld [vmem:[%s32197_s4 + $0x4f8] sm:$0xff]  ;;  %v21609_v34 = vld [vmem:[%s32197_s4 + $0x520] sm:$0xff] }
 0x69b   : > { %22724 = vmatpush3.msra.mxu1 %v14770_v4  ;;  %22715 = vmatprep.mubr.msk.f32.mxu0 %vm11482_vm2, %v21544_v50  ;;  %v15206_v4 = vsel %vm15203_vm11, %v30188_v1, %v30603_v45  ;;  %v32535_v50 = vld [vmem:[#allocation30_spill] sm:$0xff] }
 0x69c   : > { %22725 = vmatprep.subr.mxu1 %v14769_v16  ;;  %22727 = vmatprep.mubr.msk.f32.mxu1 %vm11482_vm2, %v21555_v17  ;;  %v15347_v22 = vpop.permute.xlu1 %15346  ;;  %v32536_v17 = vld [vmem:[#allocation65_spill] sm:$0xff]  ;;  %v21572_v1 = vld [vmem:[%s32197_s4 + $0x4a0] sm:$0xff] }
 0x69d   : > { %22726 = vmatpush3.msra.mxu1 %v14769_v16  ;;  %22736 = vmatprep.subr.msk.mxu0 %vm11501_vm1, %v14916_v39  ;;  %v21583_v45 = vld [vmem:[%s32197_s4 + $0x4c0] sm:$0xff]  ;;  %v15351_v16 = vsel %vm15348_vm12, %v30215_v25, %v15347_v22  ;;  %v32537_v25 = vld [vmem:[#allocation63_spill] sm:$0xff] }
 0x69e   : > { %22716 = vmatmul.mubr.msk.f32.gmra.mxu0 %vm11482_vm2, %v21545_v37  ;;  %22728 = vmatmul.mubr.msk.f32.vlgmr.msra.gmra.mxu1 %vm11482_vm2, %v21556_v49  ;;  %v21573_v49 = vld [vmem:[%s32197_s4 + $0x4a8] sm:$0xff] }
 0x69f   : > { %22718 = vmatprep.mubr.msk.f32.mxu0 %vm11482_vm2, %v21546_v63  ;;  %22730 = vmatprep.mubr.msk.f32.mxu1 %vm11482_vm2, %v21557_v48  ;;  %v30670_v38 = vpop.permute.xlu0 %15916  ;;  %v21584_v63 = vld [vmem:[%s32197_s4 + $0x4c8] sm:$0xff] }
 0x6a0   : > { %22737 = vmatpush3.msk.msra.mxu0 %vm11501_vm1, %v14916_v39  ;;  %22751 = vmatprep.subr.msk.mxu1 %vm11501_vm1, %v15061_v14  ;;  %v15059_v39 = vsel %vm15058_vm10, %v32536_v17, %v32535_v50  ;;  %v32538_v22 = vld [vmem:[#allocation43_spill] sm:$0xff]  ;;  %v21620_v17 = vld [vmem:[%s32197_s4 + $0x540] sm:$0xff]  ;;  %vm20514_vm10 = vcmask 679936  }
 0x6a1   : > { %22738 = vmatprep.subr.mxu0 %v14915_v23  ;;  %22752 = vmatpush3.msk.msra.mxu1 %vm11501_vm1, %v15061_v14  ;;  %v30685_v33 = vpop.permute.xlu1 %16212  ;;  %v15205_v14 = vsel %vm15203_vm11, %v32538_v22, %v32537_v25 }
 0x6a2   : > { %22719 = vmatmul.mubr.msk.f32.gmra.mxu0 %vm11482_vm2, %v21547_v42  ;;  %22731 = vmatmul.mubr.msk.f32.gmra.mxu1 %vm11482_vm2, %v21558_v11  ;;  %v21585_v42 = vld [vmem:[%s32197_s4 + $0x4d0] sm:$0xff]  ;;  %v21594_v11 = vld [vmem:[%s32197_s4 + $0x4e0] sm:$0xff] }
 0x6a3   : > { %22739 = vmatpush3.msra.mxu0 %v14915_v23  ;;  %22733 = vmatprep.mubr.msk.f32.mxu1 %vm11482_vm2, %v21559_v6  ;;  %v30700_v27 = vpop.permute.xlu0 %16065  ;;  %v15204_v23 = vsel %vm15203_vm11, %v32539_v3, %v29582_v21  ;;  %v21586_v6 = vld [vmem:[%s32197_s4 + $0x4d8] sm:$0xff]  ;;  %v21596_v21 = vld [vmem:[%s32197_s4 + $0x4f0] sm:$0xff] }
 0x6a4   : > { %22740 = vmatprep.subr.mxu0 %v14914_v9  ;;  %22742 = vmatprep.mubr.msk.f32.mxu0 %vm11482_vm2, %v21568_v29  ;;  %v21595_v29 = vld [vmem:[%s32197_s4 + $0x4e8] sm:$0xff] }
 0x6a5   : > { %22741 = vmatpush3.msra.mxu0 %v14914_v9  ;;  %22753 = vmatprep.subr.mxu1 %v15060_v51  ;;  %v15492_v43 = vpop.permute.xlu1 %15491 }
 0x6a6   : > { %22734 = vmatmul.mubr.msk.f32.gmra.mxu1 %vm11482_vm2, %v21560_v12  ;;  %22743 = vmatmul.mubr.msk.f32.vlgmr.msra.gmra.mxu0 %vm11482_vm2, %v21569_v36  ;;  %v21607_v12 = vld [vmem:[%s32197_s4 + $0x510] sm:$0xff]  ;;  %v15496_v24 = vsel %vm15493_vm13, %v30300_v32, %v15492_v43  ;;  %v21598_v32 = vld [vmem:[%s32197_s4 + $0x500] sm:$0xff]  ;;  %v21610_v43 = vld [vmem:[%s32197_s4 + $0x528] sm:$0xff] }
 0x6a7   : > { %22754 = vmatpush3.msra.mxu1 %v15060_v51  ;;  %22745 = vmatprep.mubr.msk.f32.mxu0 %vm11482_vm2, %v21570_v30  ;;  %v21608_v51 = vld [vmem:[%s32197_s4 + $0x518] sm:$0xff] }
 0x6a8   : > { %22755 = vmatprep.subr.mxu1 %v15059_v39  ;;  %22757 = vmatprep.mubr.msk.f32.mxu1 %vm11482_vm2, %v21581_v56  ;;  %v21599_v56 = vld [vmem:[%s32197_s4 + $0x508] sm:$0xff] }
 0x6a9   : > { %22756 = vmatpush3.msra.mxu1 %v15059_v39  ;;  %22766 = vmatprep.subr.msk.mxu0 %vm11501_vm1, %v15206_v4  ;;  %v30743_v37 = vpop.permute.xlu0 %16063  ;;  %v21612_v39 = vld [vmem:[%s32197_s4 + $0x538] sm:$0xff] }
 0x6aa   : > { %22746 = vmatmul.mubr.msk.f32.gmra.mxu0 %vm11482_vm2, %v21571_v5  ;;  %22758 = vmatmul.mubr.msk.f32.vlgmr.msra.gmra.mxu1 %vm11482_vm2, %v21582_v18  ;;  %v21621_v5 = vld [vmem:[%s32197_s4 + $0x548] sm:$0xff]  ;;  %v30865_v18 = vpop.f32.mrf.mxu1 }
 0x6ab   : > { %22748 = vmatprep.mubr.msk.f32.mxu0 %vm11482_vm2, %v21572_v1  ;;  %22760 = vmatprep.mubr.msk.f32.mxu1 %vm11482_vm2, %v21583_v45  ;;  %v15637_v48 = vpop.permute.xlu1 %15636  ;;  %v21633_v1 = vld [vmem:[%s32197_s4 + $0x570] sm:$0xff] }
 0x6ac   : > { %22767 = vmatpush3.msk.msra.mxu0 %vm11501_vm1, %v15206_v4  ;;  %22781 = vmatprep.subr.msk.mxu1 %vm11501_vm1, %v15351_v16  ;;  %v15641_v30 = vsel %vm15638_vm14, %v30357_v26, %v15637_v48  ;;  %v15495_v26 = vsel %vm15493_vm13, %v30329_v44, %v29726_v41  ;;  %v21611_v4 = vld [vmem:[%s32197_s4 + $0x530] sm:$0xff]  ;;  %v15494_v44 = vsel %vm15493_vm13, %v30391_v15, %v29803_v19 }
 0x6ad   : > { %22768 = vmatprep.subr.mxu0 %v15205_v14  ;;  %22782 = vmatpush3.msk.msra.mxu1 %vm11501_vm1, %v15351_v16  ;;  %v15640_v19 = vsel %vm15638_vm14, %v30424_v57, %v29881_v35  ;;  %v21622_v15 = vld [vmem:[%s32197_s4 + $0x550] sm:$0xff]  ;;  %v15639_v16 = vsel %vm15638_vm14, %v30453_v20, %v29963_v47  ;;  %v21624_v47 = vld [vmem:[%s32197_s4 + $0x560] sm:$0xff] }
 0x6ae   : > { %22749 = vmatmul.mubr.msk.f32.gmra.mxu0 %vm11482_vm2, %v21573_v49  ;;  %22761 = vmatmul.mubr.msk.f32.gmra.mxu1 %vm11482_vm2, %v21584_v63  ;;  %v30770_v60 = vpop.permute.xlu0 %16210  ;;  %v21623_v49 = vld [vmem:[%s32197_s4 + $0x558] sm:$0xff]  ;;  %v21635_v20 = vld [vmem:[%s32197_s4 + $0x580] sm:$0xff] }
 0x6af   : > { %22769 = vmatpush3.msra.mxu0 %v15205_v14  ;;  %22763 = vmatprep.mubr.msk.f32.mxu1 %vm11482_vm2, %v21585_v42  ;;  %v21634_v63 = vld [vmem:[%s32197_s4 + $0x578] sm:$0xff] }
 0x6b0   : > { %22770 = vmatprep.subr.mxu0 %v15204_v23  ;;  %22772 = vmatprep.mubr.msk.f32.mxu0 %vm11482_vm2, %v21594_v11  ;;  %v30791_v9 = vpop.permute.xlu1 %16359  ;;  %v21625_v11 = vld [vmem:[%s32197_s4 + $0x568] sm:$0xff] }
 0x6b1   : > { %22771 = vmatpush3.msra.mxu0 %v15204_v23  ;;  %22783 = vmatprep.subr.mxu1 %v15350_v7 }
 0x6b2   : > { %22764 = vmatmul.mubr.msk.f32.gmra.mxu1 %vm11482_vm2, %v21586_v6  ;;  %22773 = vmatmul.mubr.msk.f32.vlgmr.msra.gmra.mxu0 %vm11482_vm2, %v21595_v29  ;;  %v30802_v36 = vpop.permute.xlu0 %16061  ;;  %v15785_v6 = vsel %vm15783_vm15, %v30526_v28, %v30036_v62  ;;  %v21637_v29 = vld [vmem:[%s32197_s4 + $0x590] sm:$0xff]  ;;  %v15784_v28 = vsel %vm15783_vm15, %v30595_v13, %v30118_v55  ;;  %v15930_v55 = vsel %vm15928_vm8, %v30634_v53, %v30199_v61 }
 0x6b3   : > { %22784 = vmatpush3.msra.mxu1 %v15350_v7  ;;  %22775 = vmatprep.mubr.msk.f32.mxu0 %vm11482_vm2, %v21596_v21  ;;  %v21646_v7 = vld [vmem:[%s32197_s4 + $0x5a0] sm:$0xff]  ;;  %v21638_v21 = vld [vmem:[%s32197_s4 + $0x598] sm:$0xff]  ;;  %v21648_v13 = vld [vmem:[%s32197_s4 + $0x5b0] sm:$0xff] }
 0x6b4   : > { %22785 = vmatprep.subr.mxu1 %v15349_v54  ;;  %22787 = vmatprep.mubr.msk.f32.mxu1 %vm11482_vm2, %v21607_v12  ;;  %v15782_v2 = vpop.permute.xlu1 %15781  ;;  %v21647_v12 = vld [vmem:[%s32197_s4 + $0x5a8] sm:$0xff] }
 0x6b5   : > { %22786 = vmatpush3.msra.mxu1 %v15349_v54  ;;  %22796 = vmatprep.subr.msk.mxu0 %vm11501_vm1, %v15496_v24  ;;  %v15786_v35 = vsel %vm15783_vm15, %v30486_v40, %v15782_v2  ;;  %v30899_v40 = vpop.f32.mrf.mxu1  ;;  %v21649_v2 = vld [vmem:[%s32197_s4 + $0x5b8] sm:$0xff] }
 0x6b6   : > { %22776 = vmatmul.mubr.msk.f32.gmra.mxu0 %vm11482_vm2, %v21597_v8  ;;  %22788 = vmatmul.mubr.msk.f32.vlgmr.msra.gmra.mxu1 %vm11482_vm2, %v21608_v51  ;;  %v21659_v51 = vld [vmem:[%s32197_s4 + $0x5d0] sm:$0xff] }
 0x6b7   : > { %22778 = vmatprep.mubr.msk.f32.mxu0 %vm11482_vm2, %v21598_v32  ;;  %22790 = vmatprep.mubr.msk.f32.mxu1 %vm11482_vm2, %v21609_v34  ;;  %v22402_v23 = vpop.f32.mrf.mxu1  ;;  %v15929_v34 = vsel %vm15928_vm8, %v30670_v38, %v30284_v59  ;;  %v21661_v59 = vld [vmem:[%s32197_s4 + $0x5e0] sm:$0xff] }
 0x6b8   : > { %22797 = vmatpush3.msk.msra.mxu0 %vm11501_vm1, %v15496_v24  ;;  %22811 = vmatprep.subr.msk.mxu1 %vm11501_vm1, %v15641_v30  ;;  %v30846_v50 = vpop.permute.xlu0 %16208 }
 0x6b9   : > { %22798 = vmatprep.subr.mxu0 %v15495_v26  ;;  %22812 = vmatpush3.msk.msra.mxu1 %vm11501_vm1, %v15641_v30  ;;  %v30961_v54 = vpop.f32.mrf.mxu1  ;;  %v21660_v30 = vld [vmem:[%s32197_s4 + $0x5d8] sm:$0xff] }
 0x6ba   : > { %22779 = vmatmul.mubr.msk.f32.gmra.mxu0 %vm11482_vm2, %v21599_v56  ;;  %22791 = vmatmul.mubr.msk.f32.gmra.mxu1 %vm11482_vm2, %v21610_v43  ;;  %v15927_v41 = vpop.permute.xlu1 %15926  ;;  %v21650_v43 = vld [vmem:[%s32197_s4 + $0x5c0] sm:$0xff] }
 0x6bb   : > { %22799 = vmatpush3.msra.mxu0 %v15495_v26  ;;  %22793 = vmatprep.mubr.msk.f32.mxu1 %vm11482_vm2, %v21611_v4  ;;  %v15931_v22 = vsel %vm15928_vm8, %v30567_v31, %v15927_v41  ;;  %v21636_v31 = vld [vmem:[%s32197_s4 + $0x588] sm:$0xff]  ;;  %v22405_v56 = vpop.f32.mrf.mxu1 }
 0x6bc   : > { %22800 = vmatprep.subr.mxu0 %v15494_v44  ;;  %22802 = vmatprep.mubr.msk.f32.mxu0 %vm11482_vm2, %v21620_v17 }
 0x6bd   : > { %22801 = vmatpush3.msra.mxu0 %v15494_v44  ;;  %22813 = vmatprep.subr.mxu1 %v15640_v19  ;;  %v30879_v45 = vpop.permute.xlu0 %16206  ;;  %v21651_v44 = vld [vmem:[%s32197_s4 + $0x5c8] sm:$0xff] }
 0x6be   : > { %22794 = vmatmul.mubr.msk.f32.gmra.mxu1 %vm11482_vm2, %v21612_v39  ;;  %22803 = vmatmul.mubr.msk.f32.vlgmr.msra.gmra.mxu0 %vm11482_vm2, %v21621_v5  ;;  %v22384_v57 = vpop.f32.mrf.mxu0  ;;  %v31023_v5 = vpop.f32.mrf.mxu1 }
 0x6bf   : > { %22814 = vmatpush3.msra.mxu1 %v15640_v19  ;;  %22805 = vmatprep.mubr.msk.f32.mxu0 %vm11482_vm2, %v21622_v15  ;;  %v30897_v48 = vpop.permute.xlu1 %16357  ;;  %v11693_v53 = vadd.f32 %v30865_v18, %v22384_v57  ;;  %v16075_v18 = vsel %vm16073_vm6, %v30743_v37, %v30374_v58  ;;  %v21663_v19 = vld [vmem:[%s32197_s4 + $0x5f0] sm:$0xff] }
 0x6c0   : > { %22815 = vmatprep.subr.mxu1 %v15639_v16  ;;  %22817 = vmatprep.mubr.msk.f32.mxu1 %vm11482_vm2, %v21633_v1  ;;  %v30909_v25 = vpop.f32.mrf.mxu0  ;;  %v21672_v1 = vld [vmem:[%s32197_s4 + $0x600] sm:$0xff] }
 0x6c1   : > { %22816 = vmatpush3.msra.mxu1 %v15639_v16  ;;  %22826 = vmatprep.subr.msk.mxu0 %vm11501_vm1, %v15786_v35  ;;  %v30915_v14 = vpop.permute.xlu0 %16355 }
 0x6c2   : > { %22806 = vmatmul.mubr.msk.f32.gmra.mxu0 %vm11482_vm2, %v21623_v49  ;;  %22818 = vmatmul.mubr.msk.f32.vlgmr.msra.gmra.mxu1 %vm11482_vm2, %v21634_v63  ;;  %v30919_v42 = vpop.f32.mrf.mxu0  ;;  %v16074_v49 = vsel %vm16073_vm6, %v30802_v36, %v30471_v0  ;;  %v21664_v63 = vld [vmem:[%s32197_s4 + $0x5f8] sm:$0xff]  ;;  %v16220_v0 = vsel %vm16218_vm7, %v30846_v50, %v30576_v10  ;;  %v21674_v36 = vld [vmem:[%s32197_s4 + $0x610] sm:$0xff] }
 0x6c3   : > { %22808 = vmatprep.mubr.msk.f32.mxu0 %vm11482_vm2, %v21624_v47  ;;  %22820 = vmatprep.mubr.msk.f32.mxu1 %vm11482_vm2, %v21635_v20  ;;  %v16072_v3 = vpop.permute.xlu1 %16071  ;;  %v11703_v39 = vadd.f32 %v22402_v23, %v30919_v42  ;;  %v21673_v47 = vld [vmem:[%s32197_s4 + $0x608] sm:$0xff] }
 0x6c4   : > { %22827 = vmatpush3.msk.msra.mxu0 %vm11501_vm1, %v15786_v35  ;;  %22841 = vmatprep.subr.msk.mxu1 %vm11501_vm1, %v15931_v22  ;;  %v30938_v52 = vpop.f32.mrf.mxu0  ;;  %v16076_v61 = vsel %vm16073_vm6, %v30700_v27, %v16072_v3 }
 0x6c5   : > { %22828 = vmatprep.subr.mxu0 %v15785_v6  ;;  %22842 = vmatpush3.msk.msra.mxu1 %vm11501_vm1, %v15931_v22 }
 0x6c6   : > { %22809 = vmatmul.mubr.msk.f32.gmra.mxu0 %vm11482_vm2, %v21625_v11  ;;  %22821 = vmatmul.mubr.msk.f32.gmra.mxu1 %vm11482_vm2, %v21636_v31  ;;  %v30946_v62 = vpop.f32.mrf.mxu0  ;;  %v21685_v31 = vld [vmem:[%s32197_s4 + $0x630] sm:$0xff] }
 0x6c7   : > { %22829 = vmatpush3.msra.mxu0 %v15785_v6  ;;  %22823 = vmatprep.mubr.msk.f32.mxu1 %vm11482_vm2, %v21637_v29  ;;  %v30959_v24 = vpop.permute.xlu0 %16353  ;;  %v11713_v22 = vadd.f32 %v22405_v56, %v30946_v62  ;;  %v16219_v29 = vsel %vm16218_vm7, %v30879_v45, %v30685_v33  ;;  %v21686_v62 = vld [vmem:[%s32197_s4 + $0x638] sm:$0xff]  ;;  %v21687_v33 = vld [vmem:[%s32197_s4 + $0x640] sm:$0xff] }
 0x6c8   : > { %22830 = vmatprep.subr.mxu0 %v15784_v28  ;;  %22832 = vmatprep.mubr.msk.f32.mxu0 %vm11482_vm2, %v21646_v7  ;;  %v30971_v8 = vpop.f32.mrf.mxu0  ;;  %v21675_v7 = vld [vmem:[%s32197_s4 + $0x618] sm:$0xff] }
 0x6c9   : > { %22831 = vmatpush3.msra.mxu0 %v15784_v28  ;;  %22843 = vmatprep.subr.mxu1 %v15930_v55  ;;  %v16217_v32 = vpop.permute.xlu1 %16216  ;;  %v21676_v28 = vld [vmem:[%s32197_s4 + $0x620] sm:$0xff] }
 0x6ca   : > { %22824 = vmatmul.mubr.msk.f32.gmra.mxu1 %vm11482_vm2, %v21638_v21  ;;  %22833 = vmatmul.mubr.msk.f32.vlgmr.msra.gmra.mxu0 %vm11482_vm2, %v21647_v12  ;;  %v16221_v26 = vsel %vm16218_vm7, %v30770_v60, %v16217_v32  ;;  %v21662_v60 = vld [vmem:[%s32197_s4 + $0x5e8] sm:$0xff] }
 0x6cb   : > { %22844 = vmatpush3.msra.mxu1 %v15930_v55  ;;  %22835 = vmatprep.mubr.msk.f32.mxu0 %vm11482_vm2, %v21648_v13  ;;  %v22414_v27 = vpop.f32.mrf.mxu0  ;;  %v21688_v32 = vld [vmem:[%s32197_s4 + $0x648] sm:$0xff] }
 0x6cc   : > { %22845 = vmatprep.subr.mxu1 %v15929_v34  ;;  %22847 = vmatprep.mubr.msk.f32.mxu1 %vm11482_vm2, %v21659_v51  ;;  %v11855_v38 = vadd.f32 %v22414_v27, %v11693_v53  ;;  %v31006_v4 = vpop.permute.xlu0 %16500  ;;  %v21677_v51 = vld [vmem:[%s32197_s4 + $0x628] sm:$0xff]  ;;  %v21698_v27 = vld [vmem:[%s32197_s4 + $0x660] sm:$0xff] }
 0x6cd   : > { %22846 = vmatpush3.msra.mxu1 %v15929_v34  ;;  %22856 = vmatprep.subr.msk.mxu0 %vm11501_vm1, %v16076_v61  ;;  %v31008_v17 = vpop.f32.mrf.mxu0  ;;  %v16365_v34 = vsel %vm16363_vm9, %v30959_v24, %v30791_v9 }
 0x6ce   : > { %22836 = vmatmul.mubr.msk.f32.gmra.mxu0 %vm11482_vm2, %v21649_v2  ;;  %22848 = vmatmul.mubr.msk.f32.vlgmr.msra.gmra.mxu1 %vm11482_vm2, %v21660_v30  ;;  %v31012_v41 = vpop.permute.xlu1 %16504  ;;  %v21689_v2 = vld [vmem:[%s32197_s4 + $0x650] sm:$0xff] }
 0x6cf   : > { %22838 = vmatprep.mubr.msk.f32.mxu0 %vm11482_vm2, %v21650_v43  ;;  %22850 = vmatprep.mubr.msk.f32.mxu1 %vm11482_vm2, %v21661_v59  ;;  %v21690_v43 = vld [vmem:[%s32197_s4 + $0x658] sm:$0xff]  ;;  %v21699_v59 = vld [vmem:[%s32197_s4 + $0x668] sm:$0xff] }
 0x6d0   : > { %22857 = vmatpush3.msk.msra.mxu0 %vm11501_vm1, %v16076_v61  ;;  %22871 = vmatprep.subr.msk.mxu1 %vm11501_vm1, %v16221_v26  ;;  %v22417_v15 = vpop.f32.mrf.mxu0  ;;  %v22429_v57 = vpop.f32.mrf.mxu1 }
 0x6d1   : > { %22858 = vmatprep.subr.mxu0 %v16075_v18  ;;  %22872 = vmatpush3.msk.msra.mxu1 %vm11501_vm1, %v16221_v26  ;;  %v11857_v35 = vadd.f32 %v22417_v15, %v11703_v39  ;;  %v11999_v37 = vadd.f32 %v22429_v57, %v11855_v38  ;;  %v16352_v20 = vpop.permute.xlu0 %16351 }
 0x6d2   : > { %22839 = vmatmul.mubr.msk.f32.gmra.mxu0 %vm11482_vm2, %v21651_v44  ;;  %22851 = vmatmul.mubr.msk.f32.gmra.mxu1 %vm11482_vm2, %v21662_v60  ;;  %v16362_v58 = vpop.permute.xlu1 %16361  ;;  %v31040_v16 = vpop.f32.mrf.mxu0  ;;  %v16364_v24 = vsel %vm16363_vm9, %v16352_v20, %v30897_v48  ;;  %v21700_v44 = vld [vmem:[%s32197_s4 + $0x670] sm:$0xff] }
 0x6d3   : > { %22859 = vmatpush3.msra.mxu0 %v16075_v18  ;;  %22853 = vmatprep.mubr.msk.f32.mxu1 %vm11482_vm2, %v21663_v19  ;;  %v31054_v42 = vpop.f32.mrf.mxu1  ;;  %v16366_v10 = vsel %vm16363_vm9, %v30915_v14, %v16362_v58  ;;  %v21711_v19 = vld [vmem:[%s32197_s4 + $0x690] sm:$0xff]  ;;  %v21702_v58 = vld [vmem:[%s32197_s4 + $0x680] sm:$0xff] }
 0x6d4   : > { %22860 = vmatprep.subr.mxu0 %v16074_v49  ;;  %22862 = vmatprep.mubr.msk.f32.mxu0 %vm11482_vm2, %v21672_v1  ;;  %v22420_v11 = vpop.f32.mrf.mxu0 }
 0x6d5   : > { %22861 = vmatpush3.msra.mxu0 %v16074_v49  ;;  %22873 = vmatprep.subr.mxu1 %v16220_v0  ;;  %v11859_v3 = vadd.f32 %v22420_v11, %v11713_v22  ;;  %v22432_v23 = vpop.f32.mrf.mxu1  ;;  %v21703_v22 = vld [vmem:[%s32197_s4 + $0x688] sm:$0xff]  ;;  %v32541_v11 = vmov 0.0  }
 0x6d6   : > { %22854 = vmatmul.mubr.msk.f32.gmra.mxu1 %vm11482_vm2, %v21664_v63  ;;  %22863 = vmatmul.mubr.msk.f32.vlgmr.msra.gmra.mxu0 %vm11482_vm2, %v21673_v47  ;;  %v12001_v50 = vadd.f32 %v22432_v23, %v11857_v35  ;;  %v31073_v6 = vpop.f32.mrf.mxu0  ;;  %v16499_v21 = vpop.permute.xlu0 %16498 }
 0x6d7   : > { %22874 = vmatpush3.msra.mxu1 %v16220_v0  ;;  %22865 = vmatprep.mubr.msk.f32.mxu0 %vm11482_vm2, %v21674_v36  ;;  %v31086_v14 = vpop.f32.mrf.mxu1  ;;  %v16510_v48 = vsel %vm16508_vm0, %v16499_v21, %v31012_v41  ;;  %v21712_v41 = vld [vmem:[%s32197_s4 + $0x698] sm:$0xff]  ;;  %v21714_v0 = vld [vmem:[%s32197_s4 + $0x6a8] sm:$0xff]  ;;  %v21715_v36 = vld [vmem:[%s32197_s4 + $0x6b0] sm:$0xff] }
 0x6d8   : > { %22875 = vmatprep.subr.mxu1 %v16219_v29  ;;  %22877 = vmatprep.mubr.msk.f32.mxu1 %vm11482_vm2, %v21685_v31  ;;  %v16507_v45 = vpop.permute.xlu1 %16506 }
 0x6d9   : > { %22876 = vmatpush3.msra.mxu1 %v16219_v29  ;;  %22886 = vmatprep.subr.msk.mxu0 %vm11501_vm1, %v16366_v10  ;;  %v16511_v12 = vsel %vm16508_vm0, %v31006_v4, %v16507_v45 }
 0x6da   : > { %22866 = vmatmul.mubr.msk.f32.gmra.mxu0 %vm11482_vm2, %v21675_v7  ;;  %22878 = vmatmul.mubr.msk.f32.vlgmr.msra.gmra.mxu1 %vm11482_vm2, %v21686_v62  ;;  %v22435_v55 = vpop.f32.mrf.mxu1  ;;  %v22444_v13 = vpop.f32.mrf.mxu0 }
 0x6db   : > { %22868 = vmatprep.mubr.msk.f32.mxu0 %vm11482_vm2, %v21676_v28  ;;  %22880 = vmatprep.mubr.msk.f32.mxu1 %vm11482_vm2, %v21687_v33  ;;  %v12003_v61 = vadd.f32 %v22435_v55, %v11859_v3  ;;  %v12143_v53 = vadd.f32 %v22444_v13, %v11999_v37  ;;  %v16497_v4 = vpop.permute.xlu0 %16496  ;;  %v21713_v37 = vld [vmem:[%s32197_s4 + $0x6a0] sm:$0xff] }
 0x6dc   : > { %22887 = vmatpush3.msk.msra.mxu0 %vm11501_vm1, %v16366_v10  ;;  %22901 = vmatprep.subr.msk.mxu1 %vm11501_vm1, %v16511_v12  ;;  %v31119_v30 = vpop.f32.mrf.mxu1  ;;  %v31121_v56 = vpop.f32.mrf.mxu0 }
 0x6dd   : > { %22888 = vmatprep.subr.mxu0 %v16365_v34  ;;  %22902 = vmatpush3.msk.msra.mxu1 %vm11501_vm1, %v16511_v12  ;;  %v16503_v9 = vpop.permute.xlu1 %16502  ;;  %vm16702_vm1 = vcmask 850944  }
 0x6de   : > { %22869 = vmatmul.mubr.msk.f32.gmra.mxu0 %vm11482_vm2, %v21677_v51  ;;  %22881 = vmatmul.mubr.msk.f32.gmra.mxu1 %vm11482_vm2, %v21688_v32  ;;  %v16509_v18 = vsel %vm16508_vm0, %v16497_v4, %v16503_v9 }
 0x6df   : > { %22889 = vmatpush3.msra.mxu0 %v16365_v34  ;;  %22883 = vmatprep.mubr.msk.f32.mxu1 %vm11482_vm2, %v21689_v2  ;;  %v22447_v38 = vpop.f32.mrf.mxu0  ;;  %v22459_v26 = vpop.f32.mrf.mxu1 }
 0x6e0   : > { %22890 = vmatprep.subr.mxu0 %v16364_v24  ;;  %22892 = vmatprep.mubr.msk.f32.mxu0 %vm11482_vm2, %v21698_v27  ;;  %v12145_v60 = vadd.f32 %v22447_v38, %v12001_v50  ;;  %v12288_v39 = vadd.f32 %v22459_v26, %v12143_v53  ;;  %v21716_v50 = vld [vmem:[%s32197_s4 + $0x6b8] sm:$0xff] }
 0x6e1   : > { %22891 = vmatpush3.msra.mxu0 %v16364_v24  ;;  %22903 = vmatprep.subr.mxu1 %v16510_v48  ;;  %v31151_v15 = vpop.f32.mrf.mxu0  ;;  %v31153_v1 = vpop.f32.mrf.mxu1 }
 0x6e2   : > { %22884 = vmatmul.mubr.msk.f32.gmra.mxu1 %vm11482_vm2, %v21690_v43  ;;  %22893 = vmatmul.mubr.msk.f32.vlgmr.msra.gmra.mxu0 %vm11482_vm2, %v21699_v59 }
 0x6e3   : > { %22904 = vmatpush3.msra.mxu1 %v16510_v48  ;;  %22895 = vmatprep.mubr.msk.f32.mxu0 %vm11482_vm2, %v21700_v44  ;;  %v22450_v35 = vpop.f32.mrf.mxu0  ;;  %v22462_v57 = vpop.f32.mrf.mxu1 }
 0x6e4   : > { %22905 = vmatprep.subr.mxu1 %v16509_v18  ;;  %22907 = vmatprep.mubr.msk.f32.mxu1 %vm11482_vm2, %v21711_v19  ;;  %v12147_v49 = vadd.f32 %v22450_v35, %v12003_v61  ;;  %v12290_v63 = vadd.f32 %v22462_v57, %v12145_v60 }
 0x6e5   : > { %22906 = vmatpush3.msra.mxu1 %v16509_v18  ;;  %v31171_v47 = vpop.f32.mrf.mxu0  ;;  %v31173_v20 = vpop.f32.mrf.mxu1 }
 0x6e6   : > { %22896 = vmatmul.mubr.msk.f32.gmra.mxu0 %vm11482_vm2, %v21701_v46  ;;  %22908 = vmatmul.mubr.msk.f32.vlgmr.msra.gmra.mxu1 %vm11482_vm2, %v21712_v41 }
 0x6e7   : > { %22898 = vmatprep.mubr.msk.f32.mxu0 %vm11482_vm2, %v21702_v58  ;;  %22910 = vmatprep.mubr.msk.f32.mxu1 %vm11482_vm2, %v21713_v37 }
 0x6e8   : > { %22951 = vmatprep.subr.mxu1 %v32541_v11 }
 0x6e9   : > { %v22465_v31 = vpop.f32.mrf.mxu1  ;;  %v22474_v3 = vpop.f32.mrf.mxu0 }
 0x6ea   : > { %22899 = vmatmul.mubr.msk.f32.gmra.mxu0 %vm11482_vm2, %v21703_v22  ;;  %22911 = vmatmul.mubr.msk.f32.gmra.mxu1 %vm11482_vm2, %v21714_v0  ;;  %v12292_v23 = vadd.f32 %v22465_v31, %v12147_v49  ;;  %v12433_v10 = vadd.f32 %v22474_v3, %v12288_v39 }
 0x6eb   : > { %22913 = vmatprep.mubr.msk.f32.mxu1 %vm11482_vm2, %v21715_v36  ;;  %v31195_v29 = vpop.f32.mrf.mxu1  ;;  %v31197_v7 = vpop.f32.mrf.mxu0 }
 0x6ee   : > { %22914 = vmatmul.mubr.msk.f32.gmra.mxu1 %vm11482_vm2, %v21716_v50  ;;  %v22477_v62 = vpop.f32.mrf.mxu0  ;;  %v22489_v33 = vpop.f32.mrf.mxu1  ;;  %vm23519_vm2 = vmmov 0  }
 0x6ef   : > { %v12435_v28 = vadd.f32 %v22477_v62, %v12290_v63  ;;  %v12578_v45 = vadd.f32 %v22489_v33, %v12433_v10 }
 0x6f0   : > { %v31200_v21 = vpop.f32.mrf.mxu0  ;;  %v31202_v12 = vpop.f32.mrf.mxu1 }
 0x6f2   : > { %v22480_v55 = vpop.f32.mrf.mxu0  ;;  %v22492_v51 = vpop.f32.mrf.mxu1 }
 0x6f3   : > { %v12437_v13 = vadd.f32 %v22480_v55, %v12292_v23  ;;  %v12580_v32 = vadd.f32 %v22492_v51, %v12435_v28 }
 0x6f4   : > { %v31204_v61 = vpop.f32.mrf.mxu0  ;;  %v31206_v53 = vpop.f32.mrf.mxu1 }
 0x6f8   : > { %v22495_v34 = vpop.f32.mrf.mxu1  ;;  %v22504_v2 = vpop.f32.mrf.mxu0 }
 0x6f9   : > { %v12582_v27 = vadd.f32 %v22495_v34, %v12437_v13  ;;  %v12723_v9 = vadd.f32 %v22504_v2, %v12578_v45 }
 0x6fa   : > { %v31208_v24 = vpop.f32.mrf.mxu1  ;;  %v31210_v43 = vpop.f32.mrf.mxu0 }
 0x6fd   : > { %v22507_v59 = vpop.f32.mrf.mxu0  ;;  %v22519_v38 = vpop.f32.mrf.mxu1 }
 0x6fe   : > { %v12725_v26 = vadd.f32 %v22507_v59, %v12580_v32  ;;  %v12868_v4 = vadd.f32 %v22519_v38, %v12723_v9 }
 0x6ff   : > { %v31212_v48 = vpop.f32.mrf.mxu0  ;;  %v31214_v44 = vpop.f32.mrf.mxu1 }
 0x701   : > { %v22510_v60 = vpop.f32.mrf.mxu0  ;;  %v22522_v39 = vpop.f32.mrf.mxu1 }
 0x702   : > { %v12727_v18 = vadd.f32 %v22510_v60, %v12582_v27  ;;  %v12870_v19 = vadd.f32 %v22522_v39, %v12725_v26  ;;  %v11698_v60 = vadd.f32 %v30961_v54, %v30938_v52  ;;  %v11688_v52 = vadd.f32 %v30899_v40, %v30909_v25  ;;  %v16700_v54 = vld [vmem:[%s32199_s6 + $0x58] sm:$0xff] }
 0x703   : > { %v31216_v46 = vpop.f32.mrf.mxu0  ;;  %v31218_v41 = vpop.f32.mrf.mxu1 }
 0x707   : > { %v22525_v35 = vpop.f32.mrf.mxu1  ;;  %v22534_v57 = vpop.f32.mrf.mxu0 }
 0x708   : > { %v12872_v58 = vadd.f32 %v22525_v35, %v12727_v18  ;;  %v13013_v37 = vadd.f32 %v22534_v57, %v12868_v4 }
 0x709   : > { %v31220_v49 = vpop.f32.mrf.mxu1  ;;  %v31222_v63 = vpop.f32.mrf.mxu0 }
 0x70c   : > { %v22537_v22 = vpop.f32.mrf.mxu0  ;;  %v22549_v0 = vpop.f32.mrf.mxu1 }
 0x70d   : > { %v13015_v36 = vadd.f32 %v22537_v22, %v12870_v19  ;;  %v13158_v31 = vadd.f32 %v22549_v0, %v13013_v37  ;;  %v11856_v19 = vadd.f32 %v31040_v16, %v11698_v60  ;;  %v16701_v22 = vld [vmem:[%s32199_s6 + $0x60] sm:$0xff]  ;;  %v11708_v0 = vadd.f32 %v31023_v5, %v30971_v8  ;;  %v16699_v5 = vld [vmem:[%s32199_s6 + $0x50] sm:$0xff] }
 0x70e   : > { %v31224_v3 = vpop.f32.mrf.mxu0  ;;  %v31226_v23 = vpop.f32.mrf.mxu1  ;;  %22916 = vmatprep.subr.mxu0 %v16701_v22 }
 0x70f   : > { %22917 = vmatpush3.msra.mxu0 %v16701_v22  ;;  %v11858_v16 = vadd.f32 %v31073_v6, %v11708_v0 }
 0x710   : > { %v22540_v10 = vpop.f32.mrf.mxu0  ;;  %v22552_v50 = vpop.f32.mrf.mxu1  ;;  %22918 = vmatprep.subr.mxu0 %v16700_v54 }
 0x711   : > { %v13017_v62 = vadd.f32 %v22540_v10, %v12872_v58  ;;  %v13160_v28 = vadd.f32 %v22552_v50, %v13015_v36  ;;  %v12000_v36 = vadd.f32 %v31086_v14, %v11856_v19  ;;  %v11854_v10 = vadd.f32 %v31008_v17, %v11688_v52  ;;  %22919 = vmatpush3.msra.mxu0 %v16700_v54  ;;  %v16698_v17 = vld [vmem:[%s32199_s6 + $0x48] sm:$0xff] }
 0x712   : > { %v31228_v33 = vpop.f32.mrf.mxu0  ;;  %v31230_v45 = vpop.f32.mrf.mxu1  ;;  %v12002_v40 = vadd.f32 %v31119_v30, %v11858_v16  ;;  %22920 = vmatprep.subr.mxu0 %v16699_v5 }
 0x713   : > { %v11998_v6 = vadd.f32 %v31054_v42, %v11854_v10  ;;  %22921 = vmatpush3.msra.mxu0 %v16699_v5  ;;  %v16697_v42 = vld [vmem:[%s32199_s6 + $0x40] sm:$0xff] }
 0x714   : > { %22922 = vmatprep.subr.mxu0 %v16698_v17 }
 0x715   : > { %22923 = vmatpush3.msra.mxu0 %v16698_v17 }
 0x716   : > { %v22555_v55 = vpop.f32.mrf.mxu1  ;;  %v22564_v13 = vpop.f32.mrf.mxu0  ;;  %22924 = vmatprep.subr.mxu0 %v16697_v42 }
 0x717   : > { %v13162_v51 = vadd.f32 %v22555_v55, %v13017_v62  ;;  %v13303_v32 = vadd.f32 %v22564_v13, %v13158_v31  ;;  %v12144_v31 = vadd.f32 %v31151_v15, %v12000_v36  ;;  %v12146_v55 = vadd.f32 %v31171_v47, %v12002_v40  ;;  %22925 = vmatpush3.msra.mxu0 %v16697_v42 }
 0x718   : > { %v31232_v34 = vpop.f32.mrf.mxu1  ;;  %v31234_v2 = vpop.f32.mrf.mxu0 }
 0x719   : > { %v12289_v25 = vadd.f32 %v31173_v20, %v12144_v31  ;;  %v12142_v20 = vadd.f32 %v31121_v56, %v11998_v6  ;;  %v12291_v13 = vadd.f32 %v31195_v29, %v12146_v55  ;;  %v16696_v56 = vld [vmem:[%s32199_s6 + $0x38] sm:$0xff] }
 0x71a   : > { %22926 = vmatprep.subr.mxu0 %v16696_v56 }
 0x71b   : > { %v22567_v27 = vpop.f32.mrf.mxu0  ;;  %v22579_v9 = vpop.f32.mrf.mxu1  ;;  %v12434_v30 = vadd.f32 %v31200_v21, %v12289_v25  ;;  %v12436_v21 = vadd.f32 %v31204_v61, %v12291_v13  ;;  %22927 = vmatpush3.msra.mxu0 %v16696_v56  ;;  %v16689_v25 = vld [vmem:[%s32199_s6] sm:$0xff] }
 0x71c   : > { %v13305_v59 = vadd.f32 %v22567_v27, %v13160_v28  ;;  %v13448_v38 = vadd.f32 %v22579_v9, %v13303_v32  ;;  %v12287_v9 = vadd.f32 %v31153_v1, %v12142_v20  ;;  %v16695_v1 = vld [vmem:[%s32199_s6 + $0x30] sm:$0xff] }
 0x71d   : > { %v31236_v26 = vpop.f32.mrf.mxu0  ;;  %v31238_v4 = vpop.f32.mrf.mxu1  ;;  %22928 = vmatprep.subr.mxu0 %v16695_v1 }
 0x71e   : > { %22929 = vmatpush3.msra.mxu0 %v16695_v1 }
 0x71f   : > { %v22570_v39 = vpop.f32.mrf.mxu0  ;;  %v22582_v18 = vpop.f32.mrf.mxu1 }
 0x720   : > { %v13307_v35 = vadd.f32 %v22570_v39, %v13162_v51  ;;  %v13450_v57 = vadd.f32 %v22582_v18, %v13305_v59  ;;  %v12579_v51 = vadd.f32 %v31206_v53, %v12434_v30  ;;  %v12432_v53 = vadd.f32 %v31197_v7, %v12287_v9  ;;  %v16694_v7 = vld [vmem:[%s32199_s6 + $0x28] sm:$0xff] }
 0x721   : > { %v31243_v58 = vpop.f32.mrf.mxu0  ;;  %v31245_v37 = vpop.f32.mrf.mxu1  ;;  %v12581_v39 = vadd.f32 %v31208_v24, %v12436_v21  ;;  %22930 = vmatprep.subr.mxu0 %v16694_v7 }
 0x722   : > { %v12577_v61 = vadd.f32 %v31202_v12, %v12432_v53  ;;  %22931 = vmatpush3.msra.mxu0 %v16694_v7  ;;  %v16693_v12 = vld [vmem:[%s32199_s6 + $0x20] sm:$0xff] }
 0x723   : > { %v12726_v22 = vadd.f32 %v31216_v46, %v12581_v39  ;;  %22932 = vmatprep.subr.mxu0 %v16693_v12  ;;  %v16692_v46 = vld [vmem:[%s32199_s6 + $0x18] sm:$0xff] }
 0x724   : > { %22933 = vmatpush3.msra.mxu0 %v16693_v12 }
 0x725   : > { %v22585_v50 = vpop.f32.mrf.mxu1  ;;  %v22594_v8 = vpop.f32.mrf.mxu0  ;;  %v12871_v52 = vadd.f32 %v31220_v49, %v12726_v22  ;;  %22934 = vmatprep.subr.mxu0 %v16692_v46 }
 0x726   : > { %v13452_v14 = vadd.f32 %v22585_v50, %v13307_v35  ;;  %v13593_v62 = vadd.f32 %v22594_v8, %v13448_v38  ;;  %v12724_v38 = vadd.f32 %v31212_v48, %v12579_v51  ;;  %22935 = vmatpush3.msra.mxu0 %v16692_v46 }
 0x727   : > { %v31267_v15 = vpop.f32.mrf.mxu1  ;;  %v31269_v28 = vpop.f32.mrf.mxu0 }
 0x728   : > { %v12869_v18 = vadd.f32 %v31218_v41, %v12724_v38  ;;  %v12722_v41 = vadd.f32 %v31210_v43, %v12577_v61 }
 0x72a   : > { %v22597_v32 = vpop.f32.mrf.mxu0  ;;  %v22609_v27 = vpop.f32.mrf.mxu1  ;;  %v13014_v0 = vadd.f32 %v31224_v3, %v12869_v18  ;;  %v12867_v16 = vadd.f32 %v31214_v44, %v12722_v41  ;;  %v13016_v3 = vadd.f32 %v31228_v33, %v12871_v52  ;;  %v16691_v44 = vld [vmem:[%s32199_s6 + $0x10] sm:$0xff] }
 0x72b   : > { %v13595_v47 = vadd.f32 %v22597_v32, %v13450_v57  ;;  %v13738_v59 = vadd.f32 %v22609_v27, %v13593_v62  ;;  %22936 = vmatprep.subr.mxu0 %v16691_v44 }
 0x72c   : > { %v13573_v60 = vpop.f32.mrf.mxu0  ;;  %v31288_v29 = vpop.f32.mrf.mxu1  ;;  %v13159_v54 = vadd.f32 %v31230_v45, %v13014_v0  ;;  %v13012_v50 = vadd.f32 %v31222_v63, %v12867_v16  ;;  %v16690_v45 = vld [vmem:[%s32199_s6 + $0x8] sm:$0xff]  ;;  %v13161_v33 = vadd.f32 %v31232_v34, %v13016_v3  ;;  %22937 = vmatpush3.msra.mxu0 %v16691_v44 }
 0x72d   : > { %22938 = vmatprep.subr.mxu0 %v16690_v45 }
 0x72e   : > { %v22600_v19 = vpop.f32.mrf.mxu0  ;;  %v22612_v35 = vpop.f32.mrf.mxu1  ;;  %v13304_v43 = vadd.f32 %v31236_v26, %v13159_v54  ;;  %v13157_v63 = vadd.f32 %v31226_v23, %v13012_v50  ;;  %22939 = vmatpush3.msra.mxu0 %v16690_v45 }
 0x72f   : > { %v13597_v48 = vadd.f32 %v22600_v19, %v13452_v14  ;;  %v13740_v57 = vadd.f32 %v22612_v35, %v13595_v47  ;;  %v13306_v14 = vadd.f32 %v31243_v58, %v13161_v33  ;;  %22940 = vmatprep.subr.mxu0 %v16689_v25 }
 0x730   : > { %v13583_v36 = vpop.f32.mrf.mxu0  ;;  %v13718_v24 = vpop.f32.mrf.mxu1  ;;  %v13449_v26 = vadd.f32 %v31245_v37, %v13304_v43  ;;  %v13302_v6 = vadd.f32 %v31234_v2, %v13157_v63  ;;  %22941 = vmatpush3.msra.mxu0 %v16689_v25 }
 0x731   : > { %v13451_v37 = vadd.f32 %v31267_v15, %v13306_v14  ;;  %23000 = vmatprep.subr.mxu0 %v32541_v11 }
 0x732   : > { %v13594_v62 = vadd.f32 %v13573_v60, %v13449_v26  ;;  %v13447_v23 = vadd.f32 %v31238_v4, %v13302_v6 }
 0x733   : > { %v13596_v51 = vadd.f32 %v13583_v36, %v13451_v37 }
 0x734   : > { %v22615_v31 = vpop.f32.mrf.mxu1  ;;  %v22624_v10 = vpop.f32.mrf.mxu0  ;;  %v13739_v55 = vadd.f32 %v13718_v24, %v13594_v62  ;;  %v13592_v2 = vadd.f32 %v31269_v28, %v13447_v23 }
 0x735   : > { %v13742_v49 = vadd.f32 %v22615_v31, %v13597_v48  ;;  %v13882_v8 = vadd.f32 %v22624_v10, %v13738_v59 }
 0x736   : > { %v13728_v5 = vpop.f32.mrf.mxu1  ;;  %v13852_v40 = vpop.f32.mrf.mxu0  ;;  %v13737_v59 = vadd.f32 %v31288_v29, %v13592_v2 }
 0x737   : > { %v13741_v9 = vadd.f32 %v13728_v5, %v13596_v51 }
 0x738   : > { %v13881_v4 = vadd.f32 %v13852_v40, %v13737_v59 }
 0x739   : > { %v22627_v17 = vpop.f32.mrf.mxu0  ;;  %v22639_v34 = vpop.f32.mrf.mxu1 }
 0x73a   : > { %v13884_v30 = vadd.f32 %v22627_v17, %v13740_v57  ;;  %v14026_v20 = vadd.f32 %v22639_v34, %v13882_v8 }
 0x73b   : > { %v13862_v42 = vpop.f32.mrf.mxu0  ;;  %v13996_v13 = vpop.f32.mrf.mxu1 }
 0x73c   : > { %v13883_v58 = vadd.f32 %v13862_v42, %v13739_v55  ;;  %v14025_v39 = vadd.f32 %v13996_v13, %v13881_v4 }
 0x73d   : > { %v22630_v32 = vpop.f32.mrf.mxu0  ;;  %v22642_v27 = vpop.f32.mrf.mxu1 }
 0x73e   : > { %v13886_v47 = vadd.f32 %v22630_v32, %v13742_v49  ;;  %v14028_v15 = vadd.f32 %v22642_v27, %v13884_v30 }
 0x73f   : > { %v13872_v56 = vpop.f32.mrf.mxu0  ;;  %v14006_v21 = vpop.f32.mrf.mxu1 }
 0x740   : > { %v13885_v38 = vadd.f32 %v13872_v56, %v13741_v9  ;;  %v14027_v7 = vadd.f32 %v14006_v21, %v13883_v58 }
 0x741   : > { %v22645_v60 = vpop.f32.mrf.mxu1 }
 0x742   : > { %v14030_v53 = vadd.f32 %v22645_v60, %v13886_v47  ;;  %v22654_v1 = vpop.f32.mrf.mxu0 }
 0x743   : > { %v14171_v18 = vadd.f32 %v22654_v1, %v14026_v20  ;;  %v14016_v19 = vpop.f32.mrf.mxu1 }
 0x744   : > { %v14029_v35 = vadd.f32 %v14016_v19, %v13885_v38  ;;  %v14141_v61 = vpop.f32.mrf.mxu0 }
 0x745   : > { %v14170_v28 = vadd.f32 %v14141_v61, %v14025_v39 }
 0x746   : > { %v22657_v48 = vpop.f32.mrf.mxu0  ;;  %v22669_v57 = vpop.f32.mrf.mxu1 }
 0x747   : > { %v14173_v22 = vadd.f32 %v22657_v48, %v14028_v15  ;;  %v31334_v0 = vadd.f32 %v22669_v57, %v14171_v18 }
 0x748   : > { %v14151_v29 = vpop.f32.mrf.mxu0  ;;  %v14286_v36 = vpop.f32.mrf.mxu1 }
 0x749   : > { %v14172_v24 = vadd.f32 %v14151_v29, %v14027_v7  ;;  %v31336_v41 = vadd.f32 %v14286_v36, %v14170_v28 }
 0x74a   : > { %v22660_v12 = vpop.f32.mrf.mxu0  ;;  %v22672_v52 = vpop.f32.mrf.mxu1 }
 0x74b   : > { %v14175_v54 = vadd.f32 %v22660_v12, %v14030_v53  ;;  %v31338_v16 = vadd.f32 %v22672_v52, %v14173_v22 }
 0x74c   : > { %v14161_v46 = vpop.f32.mrf.mxu0  ;;  %v14296_v3 = vpop.f32.mrf.mxu1 }
 0x74d   : > { %v14174_v43 = vadd.f32 %v14161_v46, %v14029_v35  ;;  %v31340_v31 = vadd.f32 %v14296_v3, %v14172_v24 }
 0x74e   : > { %v22675_v10 = vpop.f32.mrf.mxu1  ;;  %v22684_v50 = vpop.f32.mrf.mxu0 }
 0x74f   : > { %v31342_v49 = vadd.f32 %v22675_v10, %v14175_v54 }
 0x750   : > { %v14306_v8 = vpop.f32.mrf.mxu1  ;;  %v14431_v44 = vpop.f32.mrf.mxu0 }
 0x751   : > { %v31344_v45 = vadd.f32 %v14306_v8, %v14174_v43 }
 0x752   : > { %v31346_v33 = vpop.f32.mrf.mxu0  ;;  %v22699_v26 = vpop.f32.mrf.mxu1 }
 0x754   : > { %v31348_v5 = vpop.f32.mrf.mxu0  ;;  %v14576_v40 = vpop.f32.mrf.mxu1 }
 0x756   : > { %v31350_v63 = vpop.f32.mrf.mxu0  ;;  %v31352_v25 = vpop.f32.mrf.mxu1 }
 0x758   : > { %v31354_v14 = vpop.f32.mrf.mxu0  ;;  %v31356_v62 = vpop.f32.mrf.mxu1 }
 0x75a   : > { %v31358_v6 = vpop.f32.mrf.mxu1  ;;  %v22714_v17 = vpop.f32.mrf.mxu0 }
 0x75c   : > { %v31360_v34 = vpop.f32.mrf.mxu1  ;;  %v14721_v37 = vpop.f32.mrf.mxu0 }
 0x75e   : > { %v31362_v55 = vpop.f32.mrf.mxu0  ;;  %v22729_v30 = vpop.f32.mrf.mxu1 }
 0x760   : > { %v31364_v20 = vpop.f32.mrf.mxu0  ;;  %v14866_v23 = vpop.f32.mrf.mxu1 }
 0x762   : > { %v31366_v42 = vpop.f32.mrf.mxu0  ;;  %v31368_v13 = vpop.f32.mrf.mxu1 }
 0x764   : > { %v31370_v51 = vpop.f32.mrf.mxu0  ;;  %v31372_v58 = vpop.f32.mrf.mxu1 }
 0x766   : > { %v31374_v2 = vpop.f32.mrf.mxu1  ;;  %v22744_v32 = vpop.f32.mrf.mxu0 }
 0x768   : > { %v31376_v27 = vpop.f32.mrf.mxu1  ;;  %v15011_v9 = vpop.f32.mrf.mxu0 }
 0x76a   : > { %v31378_v47 = vpop.f32.mrf.mxu0  ;;  %v22759_v15 = vpop.f32.mrf.mxu1 }
 0x76c   : > { %v31380_v59 = vpop.f32.mrf.mxu0  ;;  %v31382_v56 = vpop.f32.mrf.mxu1 }
 0x76e   : > { %v31384_v21 = vpop.f32.mrf.mxu0  ;;  %v31386_v38 = vpop.f32.mrf.mxu1 }
 0x770   : > { %v31388_v4 = vpop.f32.mrf.mxu0  ;;  %v31390_v60 = vpop.f32.mrf.mxu1 }
 0x772   : > { %v31392_v53 = vpop.f32.mrf.mxu1  ;;  %v22774_v1 = vpop.f32.mrf.mxu0 }
 0x774   : > { %v31394_v39 = vpop.f32.mrf.mxu1  ;;  %v31396_v18 = vpop.f32.mrf.mxu0 }
 0x776   : > { %v31398_v19 = vpop.f32.mrf.mxu0  ;;  %v31400_v35 = vpop.f32.mrf.mxu1 }
 0x778   : > { %v31402_v61 = vpop.f32.mrf.mxu0  ;;  %v31404_v28 = vpop.f32.mrf.mxu1 }
 0x77a   : > { %v31406_v48 = vpop.f32.mrf.mxu0  ;;  %v31408_v57 = vpop.f32.mrf.mxu1 }
 0x77b   : > { %32542 = vst [vmem:[#allocation54_spill] sm:$0xff] %v31406_v48 }
 0x77c   : > { %v31410_v7 = vpop.f32.mrf.mxu0  ;;  %v31412_v22 = vpop.f32.mrf.mxu1 }
 0x77d   : > { %32543 = vst [vmem:[#allocation17_spill] sm:$0xff] %v31410_v7  ;;  %32544 = vst [vmem:[#allocation66_spill] sm:$0xff] %v31412_v22 }
 0x77e   : > { %v31414_v29 = vpop.f32.mrf.mxu1  ;;  %v31416_v36 = vpop.f32.mrf.mxu0 }
 0x77f   : > { %32545 = vst [vmem:[#allocation6_spill] sm:$0xff] %v31414_v29 }
 0x780   : > { %v31418_v24 = vpop.f32.mrf.mxu1  ;;  %v31420_v12 = vpop.f32.mrf.mxu0 }
 0x781   : > { %32546 = vst [vmem:[#allocation12_spill] sm:$0xff] %v31418_v24  ;;  %v14461_v24 = vadd.f32 %v22684_v50, %v31334_v0  ;;  %v14462_v0 = vadd.f32 %v31348_v5, %v31340_v31  ;;  %v14464_v31 = vadd.f32 %v31354_v14, %v31344_v45 }
 0x782   : > { %v31422_v52 = vpop.f32.mrf.mxu0  ;;  %v31424_v54 = vpop.f32.mrf.mxu1 }
 0x783   : > { %32547 = vst [vmem:[#allocation24_spill] sm:$0xff] %v31422_v52  ;;  %v14460_v52 = vadd.f32 %v14431_v44, %v31336_v41  ;;  %v14606_v22 = vadd.f32 %v22699_v26, %v14461_v24  ;;  %v14465_v26 = vadd.f32 %v31350_v63, %v31342_v49 }
 0x784   : > { %v31426_v46 = vpop.f32.mrf.mxu0  ;;  %v31428_v3 = vpop.f32.mrf.mxu1 }
 0x785   : > { %32548 = vst [vmem:[#allocation18_spill] sm:$0xff] %v31426_v46  ;;  %32549 = vst [vmem:[#allocation31_spill] sm:$0xff] %v31428_v3  ;;  %v14610_v5 = vadd.f32 %v31358_v6, %v14465_v26  ;;  %v32556_v26 = vld [vmem:[#allocation66_spill] sm:$0xff] }
 0x786   : > { %v31430_v43 = vpop.f32.mrf.mxu0  ;;  %v31432_v10 = vpop.f32.mrf.mxu1 }
 0x787   : > { %32550 = vst [vmem:[#allocation25_spill] sm:$0xff] %v31430_v43  ;;  %32551 = vst [vmem:[#allocation39_spill] sm:$0xff] %v31432_v10  ;;  %v14463_v43 = vadd.f32 %v31346_v33, %v31338_v16  ;;  %v14605_v10 = vadd.f32 %v14576_v40, %v14460_v52  ;;  %v14607_v16 = vadd.f32 %v31356_v62, %v14462_v0 }
 0x788   : > { %v31434_v8 = vpop.f32.mrf.mxu0  ;;  %v31436_v11 = vpop.f32.mrf.mxu1  ;;  %v14609_v62 = vadd.f32 %v31360_v34, %v14464_v31  ;;  %v32560_v31 = vld [vmem:[#allocation6_spill] sm:$0xff] }
 0x789   : > { %32552 = vst [vmem:[#allocation32_spill] sm:$0xff] %v31434_v8  ;;  %32553 = vst [vmem:[#allocation47_spill] sm:$0xff] %v31436_v11  ;;  %v14751_v8 = vadd.f32 %v22714_v17, %v14606_v22  ;;  %v14608_v50 = vadd.f32 %v31352_v25, %v14463_v43  ;;  %v14750_v41 = vadd.f32 %v14721_v37, %v14605_v10 }
 0x78a   : > { %v31439_v29 = vpop.f32.mrf.mxu1  ;;  %v31441_v7 = vpop.f32.mrf.mxu0  ;;  %v14752_v49 = vadd.f32 %v31364_v20, %v14607_v16  ;;  %v14754_v20 = vadd.f32 %v31370_v51, %v14609_v62  ;;  %v32557_v16 = vld [vmem:[#allocation24_spill] sm:$0xff] }
 0x78b   : > { %v14896_v44 = vadd.f32 %v22729_v30, %v14751_v8  ;;  %v14753_v33 = vadd.f32 %v31362_v55, %v14608_v50  ;;  %v14895_v40 = vadd.f32 %v14866_v23, %v14750_v41  ;;  %v14755_v55 = vadd.f32 %v31366_v42, %v14610_v5  ;;  %v32555_v41 = vld [vmem:[#allocation54_spill] sm:$0xff] }
 0x78c   : > { %v31444_v46 = vpop.f32.mrf.mxu1  ;;  %v31446_v3 = vpop.f32.mrf.mxu0  ;;  %v14897_v45 = vadd.f32 %v31372_v58, %v14752_v49  ;;  %v32561_v49 = vld [vmem:[#allocation18_spill] sm:$0xff] }
 0x78d   : > { %32554 = vst [vmem:[#allocation40_spill] sm:$0xff] %v31444_v46  ;;  %v15041_v17 = vadd.f32 %v22744_v32, %v14896_v44  ;;  %v14898_v63 = vadd.f32 %v31368_v13, %v14753_v33  ;;  %v15040_v30 = vadd.f32 %v15011_v9, %v14895_v40  ;;  %v14900_v13 = vadd.f32 %v31374_v2, %v14755_v55  ;;  %v32558_v33 = vld [vmem:[#allocation31_spill] sm:$0xff]  ;;  %v32563_v55 = vld [vmem:[#allocation12_spill] sm:$0xff] }
 0x78e   : > { %v31450_v48 = vpop.f32.mrf.mxu0  ;;  %v31452_v11 = vpop.f32.mrf.mxu1  ;;  %v15042_v42 = vadd.f32 %v31380_v59, %v14897_v45 }
 0x78f   : > { %v15186_v22 = vadd.f32 %v22759_v15, %v15041_v17  ;;  %v15043_v14 = vadd.f32 %v31378_v47, %v14898_v63  ;;  %v15185_v6 = vadd.f32 %v31382_v56, %v15040_v30  ;;  %v14899_v47 = vadd.f32 %v31376_v27, %v14754_v20  ;;  %v32559_v17 = vld [vmem:[#allocation17_spill] sm:$0xff]  ;;  %v32562_v63 = vld [vmem:[#allocation39_spill] sm:$0xff] }
 0x790   : > { %v31459_v24 = vpop.f32.mrf.mxu0  ;;  %v31461_v46 = vpop.f32.mrf.mxu1  ;;  %v15045_v56 = vadd.f32 %v31384_v21, %v14900_v13  ;;  %v15187_v2 = vadd.f32 %v31390_v60, %v15042_v42  ;;  %v32565_v20 = vld [vmem:[#allocation47_spill] sm:$0xff] }
 0x791   : > { %v15331_v52 = vadd.f32 %v22774_v1, %v15186_v22  ;;  %v15188_v15 = vadd.f32 %v31386_v38, %v15043_v14  ;;  %v15330_v43 = vadd.f32 %v31396_v18, %v15185_v6  ;;  %v15044_v38 = vadd.f32 %v31388_v4, %v14899_v47  ;;  %v32564_v14 = vld [vmem:[#allocation25_spill] sm:$0xff] }
 0x792   : > { %v31468_v25 = vpop.f32.mrf.mxu0  ;;  %v31470_v37 = vpop.f32.mrf.mxu1  ;;  %v15190_v18 = vadd.f32 %v31392_v53, %v15045_v56  ;;  %v15332_v27 = vadd.f32 %v31402_v61, %v15187_v2 }
 0x793   : > { %v15476_v58 = vadd.f32 %v31400_v35, %v15331_v52  ;;  %v15333_v10 = vadd.f32 %v31398_v19, %v15188_v15  ;;  %v15475_v8 = vadd.f32 %v31404_v28, %v15330_v43  ;;  %v15189_v19 = vadd.f32 %v31394_v39, %v15044_v38 }
 0x794   : > { %v31476_v23 = vpop.f32.mrf.mxu0  ;;  %v31478_v32 = vpop.f32.mrf.mxu1  ;;  %v15335_v28 = vadd.f32 %v32555_v41, %v15190_v18  ;;  %v15477_v4 = vadd.f32 %v32556_v26, %v15332_v27  ;;  %v32567_v38 = vld [vmem:[#allocation40_spill] sm:$0xff] }
 0x795   : > { %v15621_v59 = vadd.f32 %v31416_v36, %v15476_v58  ;;  %v15478_v21 = vadd.f32 %v31408_v57, %v15333_v10  ;;  %v15620_v50 = vadd.f32 %v31420_v12, %v15475_v8  ;;  %v15334_v57 = vadd.f32 %v32559_v17, %v15189_v19  ;;  %v32566_v58 = vld [vmem:[#allocation32_spill] sm:$0xff] }
 0x796   : > { %v31485_v9 = vpop.f32.mrf.mxu1  ;;  %v22864_v34 = vpop.f32.mrf.mxu0  ;;  %v15480_v12 = vadd.f32 %v32560_v31, %v15335_v28  ;;  %v15622_v39 = vadd.f32 %v32561_v49, %v15477_v4 }
 0x797   : > { %v15766_v60 = vadd.f32 %v31424_v54, %v15621_v59  ;;  %v15623_v53 = vadd.f32 %v32557_v16, %v15478_v21  ;;  %v15765_v40 = vadd.f32 %v32558_v33, %v15620_v50  ;;  %v15479_v45 = vadd.f32 %v32563_v55, %v15334_v57 }
 0x798   : > { %v31493_v1 = vpop.f32.mrf.mxu1  ;;  %v16171_v51 = vpop.f32.mrf.mxu0  ;;  %v15625_v6 = vadd.f32 %v32564_v14, %v15480_v12  ;;  %v15767_v13 = vadd.f32 %v32565_v20, %v15622_v39 }
 0x799   : > { %v15911_v61 = vadd.f32 %v31441_v7, %v15766_v60  ;;  %v15768_v30 = vadd.f32 %v32562_v63, %v15623_v53  ;;  %v15910_v22 = vadd.f32 %v31446_v3, %v15765_v40  ;;  %v15624_v47 = vadd.f32 %v32566_v58, %v15479_v45 }
 0x79a   : > { %v22867_v35 = vpop.f32.mrf.mxu0  ;;  %v22879_v0 = vpop.f32.mrf.mxu1  ;;  %v15770_v56 = vadd.f32 %v31439_v29, %v15625_v6 }
 0x79b   : > { %v16056_v62 = vadd.f32 %v31452_v11, %v15911_v61  ;;  %v15913_v42 = vadd.f32 %v31450_v48, %v15768_v30  ;;  %v16055_v15 = vadd.f32 %v31461_v46, %v15910_v22  ;;  %v15912_v11 = vadd.f32 %v31459_v24, %v15767_v13  ;;  %v16650_v46 = vpop.permute.xlu0 %16649 }
 0x79c   : > { %v16181_v44 = vpop.f32.mrf.mxu0  ;;  %v16316_v36 = vpop.f32.mrf.mxu1  ;;  %v15769_v18 = vadd.f32 %v32567_v38, %v15624_v47  ;;  %v15915_v27 = vadd.f32 %v31468_v25, %v15770_v56 }
 0x79d   : > { %v16201_v43 = vadd.f32 %v22864_v34, %v16056_v62  ;;  %v16058_v10 = vadd.f32 %v31470_v37, %v15913_v42  ;;  %v16200_v8 = vadd.f32 %v16171_v51, %v16055_v15  ;;  %v16655_v34 = vpop.permute.xlu1 %16654  ;;  %v16057_v50 = vadd.f32 %v31478_v32, %v15912_v11 }
 0x79e   : > { %v22870_v5 = vpop.f32.mrf.mxu0  ;;  %v22882_v54 = vpop.f32.mrf.mxu1  ;;  %v15914_v41 = vadd.f32 %v31476_v23, %v15769_v18  ;;  %v16060_v24 = vadd.f32 %v31485_v9, %v15915_v27  ;;  %v32568_v11 = vmov 0.0  }
 0x79f   : > { %v16346_v59 = vadd.f32 %v22879_v0, %v16201_v43  ;;  %v16203_v60 = vadd.f32 %v22867_v35, %v16058_v10  ;;  %v16345_v29 = vadd.f32 %v16316_v36, %v16200_v8  ;;  %v16202_v0 = vadd.f32 %v16181_v44, %v16057_v50  ;;  %v16660_v57 = vpop.permute.xlu0 %16659  ;;  %v21730_v10 = vld [vmem:[%s32200_s7 + $0x10] sm:$0xff]  ;;  %22955 = vmatprep.mubr.msk.f32.mxu1 %vm23519_vm2, %v32568_v11 }
 0x7a0   : > { %v16191_v52 = vpop.f32.mrf.mxu0  ;;  %v16326_v7 = vpop.f32.mrf.mxu1  ;;  %v16059_v25 = vadd.f32 %v31493_v1, %v15914_v41  ;;  %v16205_v33 = vadd.f32 %v22870_v5, %v16060_v24  ;;  %v21749_v8 = vld [vmem:[%s32200_s7 + $0x70] sm:$0xff] }
 0x7a1   : > { %v16348_v28 = vadd.f32 %v22882_v54, %v16203_v60  ;;  %v16347_v40 = vadd.f32 %v16326_v7, %v16202_v0  ;;  %v16665_v9 = vpop.permute.xlu1 %16664  ;;  %v21735_v60 = vld [vmem:[%s32200_s7 + $0x28] sm:$0xff]  ;;  %v21761_v41 = vld [vmem:[%s32200_s7 + $0xb0] sm:$0xff]  ;;  %v21768_v0 = vld [vmem:[%s32200_s7 + $0xd8] sm:$0xff] }
 0x7a2   : > { %v22885_v3 = vpop.f32.mrf.mxu1  ;;  %v22894_v2 = vpop.f32.mrf.mxu0  ;;  %v16204_v36 = vadd.f32 %v16191_v52, %v16059_v25 }
 0x7a3   : > { %v16491_v19 = vadd.f32 %v22894_v2, %v16346_v59  ;;  %v16350_v31 = vadd.f32 %v22885_v3, %v16205_v33  ;;  %v16670_v7 = vpop.permute.xlu0 %16669  ;;  %v21731_v3 = vld [vmem:[%s32200_s7 + $0x18] sm:$0xff]  ;;  %v21740_v33 = vld [vmem:[%s32200_s7 + $0x40] sm:$0xff] }
 0x7a4   : > { %v16336_v48 = vpop.f32.mrf.mxu1  ;;  %v16461_v21 = vpop.f32.mrf.mxu0  ;;  %22952 = vmatpush3.msra.mxu1 %v21731_v3  ;;  %v21750_v2 = vld [vmem:[%s32200_s7 + $0x78] sm:$0xff] }
 0x7a5   : > { %v16490_v26 = vadd.f32 %v16461_v21, %v16345_v29  ;;  %v16349_v63 = vadd.f32 %v16336_v48, %v16204_v36  ;;  %v16675_v6 = vpop.permute.xlu1 %16674  ;;  %22953 = vmatprep.subr.mxu1 %v32568_v11  ;;  %v16817_v48 = vld [vmem:[%s32200_s7 + $0x8] sm:$0xff]  ;;  %v21756_v21 = vld [vmem:[%s32200_s7 + $0x98] sm:$0xff] }
 0x7a6   : > { %v22897_v37 = vpop.f32.mrf.mxu0  ;;  %v22909_v51 = vpop.f32.mrf.mxu1  ;;  %22954 = vmatpush3.msra.mxu1 %v21730_v10  ;;  %v21762_v29 = vld [vmem:[%s32200_s7 + $0xb8] sm:$0xff]  ;;  %v21809_v10 = vld [vmem:[%s32200_s7 + $0x1b0] sm:$0xff] }
 0x7a7   : > { %v16636_v4 = vadd.f32 %v22909_v51, %v16491_v19  ;;  %v16493_v32 = vadd.f32 %v22897_v37, %v16348_v28  ;;  %22958 = vmatprep.subr.mxu1 %v32568_v11  ;;  %v21734_v19 = vld [vmem:[%s32200_s7 + $0x20] sm:$0xff]  ;;  %v21738_v51 = vld [vmem:[%s32200_s7 + $0x38] sm:$0xff]  ;;  %v21737_v28 = vld [vmem:[%s32200_s7 + $0x30] sm:$0xff] }
 0x7a8   : > { %v16471_v16 = vpop.f32.mrf.mxu0  ;;  %v16606_v53 = vpop.f32.mrf.mxu1  ;;  %v21810_v3 = vld [vmem:[%s32200_s7 + $0x1b8] sm:$0xff] }
 0x7a9   : > { %v16635_v35 = vadd.f32 %v16606_v53, %v16490_v26  ;;  %v16678_v61 = vadd.f32 %v16655_v34, %v16636_v4  ;;  %v16492_v12 = vadd.f32 %v16471_v16, %v16347_v40  ;;  %v21755_v34 = vld [vmem:[%s32200_s7 + $0x90] sm:$0xff]  ;;  %v21741_v16 = vld [vmem:[%s32200_s7 + $0x48] sm:$0xff]  ;;  %v21774_v53 = vld [vmem:[%s32200_s7 + $0xf8] sm:$0xff] }
 0x7aa   : > { %v22900_v17 = vpop.f32.mrf.mxu0  ;;  %v22912_v23 = vpop.f32.mrf.mxu1  ;;  %v21767_v26 = vld [vmem:[%s32200_s7 + $0xd0] sm:$0xff] }
 0x7ab   : > { %v16677_v44 = vadd.f32 %v16650_v46, %v16635_v35  ;;  %v16638_v54 = vadd.f32 %v22912_v23, %v16493_v32  ;;  %v16495_v1 = vadd.f32 %v22900_v17, %v16350_v31  ;;  %v16816_v46 = vld [vmem:[%s32200_s7] sm:$0xff]  ;;  %v21773_v40 = vld [vmem:[%s32200_s7 + $0xf0] sm:$0xff]  ;;  %v21780_v17 = vld [vmem:[%s32200_s7 + $0x118] sm:$0xff] }
 0x7ac   : > { %v16481_v49 = vpop.f32.mrf.mxu0  ;;  %v16616_v39 = vpop.f32.mrf.mxu1  ;;  %v21743_v23 = vld [vmem:[%s32200_s7 + $0x50] sm:$0xff] }
 0x7ad   : > { %23430 = vtanh.f32 %v16677_v44  ;;  %v16637_v30 = vadd.f32 %v16616_v39, %v16492_v12  ;;  %v16680_v5 = vadd.f32 %v16665_v9, %v16638_v54  ;;  %v16494_v62 = vadd.f32 %v16481_v49, %v16349_v63  ;;  %v21779_v9 = vld [vmem:[%s32200_s7 + $0x110] sm:$0xff]  ;;  %v21747_v44 = vld [vmem:[%s32200_s7 + $0x68] sm:$0xff]  ;;  %v21786_v54 = vld [vmem:[%s32200_s7 + $0x138] sm:$0xff] }
 0x7ae   : > { %23432 = vtanh.f32 %v16678_v61  ;;  %v22915_v22 = vpop.f32.mrf.mxu1  ;;  %v21744_v61 = vld [vmem:[%s32200_s7 + $0x58] sm:$0xff]  ;;  %v21746_v49 = vld [vmem:[%s32200_s7 + $0x60] sm:$0xff]  ;;  %v21785_v39 = vld [vmem:[%s32200_s7 + $0x130] sm:$0xff] }
 0x7af   : > { %v16679_v55 = vadd.f32 %v16660_v57, %v16637_v30  ;;  %v16640_v45 = vadd.f32 %v22915_v22, %v16495_v1  ;;  %v21753_v30 = vld [vmem:[%s32200_s7 + $0x88] sm:$0xff]  ;;  %v21752_v22 = vld [vmem:[%s32200_s7 + $0x80] sm:$0xff] }
 0x7b0   : > { %v16626_v14 = vpop.f32.mrf.mxu1 }
 0x7b1   : > { %23434 = vtanh.f32 %v16679_v55  ;;  %v16639_v52 = vadd.f32 %v16626_v14, %v16494_v62  ;;  %v16682_v20 = vadd.f32 %v16675_v6, %v16640_v45  ;;  %v21791_v62 = vld [vmem:[%s32200_s7 + $0x150] sm:$0xff]  ;;  %v21759_v45 = vld [vmem:[%s32200_s7 + $0xa8] sm:$0xff]  ;;  %v21798_v14 = vld [vmem:[%s32200_s7 + $0x178] sm:$0xff] }
 0x7b2   : > { %23436 = vtanh.f32 %v16680_v5  ;;  %v21792_v5 = vld [vmem:[%s32200_s7 + $0x158] sm:$0xff]  ;;  %v21758_v6 = vld [vmem:[%s32200_s7 + $0xa0] sm:$0xff] }
 0x7b3   : > { %v16681_v13 = vadd.f32 %v16670_v7, %v16639_v52  ;;  %v21797_v52 = vld [vmem:[%s32200_s7 + $0x170] sm:$0xff] }
 0x7b5   : > { %23438 = vtanh.f32 %v16681_v13  ;;  %v21765_v13 = vld [vmem:[%s32200_s7 + $0xc8] sm:$0xff] }
 0x7b6   : > { %23440 = vtanh.f32 %v16682_v20 }
 0x7ba   : > { %v23431_v42 = vpop.eup %23430 }
 0x7bb   : > { %v23433_v15 = vpop.eup %23432  ;;  %22942 = vmatprep.mubr.msk.f32.mxu0 %vm16702_vm1, %v23431_v42  ;;  %v21804_v42 = vld [vmem:[%s32200_s7 + $0x198] sm:$0xff] }
 0x7bc   : > { %22943 = vmatmul.mubr.msk.f32.vlgmr.msra.gmra.mxu0 %vm16702_vm1, %v23433_v15  ;;  %v21764_v15 = vld [vmem:[%s32200_s7 + $0xc0] sm:$0xff] }
 0x7bd   : > { %23001 = vmatpush3.msra.mxu0 %v21750_v2  ;;  %v21770_v2 = vld [vmem:[%s32200_s7 + $0xe0] sm:$0xff] }
 0x7be   : > { %v23435_v43 = vpop.eup %23434  ;;  %23002 = vmatprep.subr.mxu0 %v32568_v11 }
 0x7bf   : > { %v23437_v58 = vpop.eup %23436  ;;  %22945 = vmatprep.mubr.msk.f32.mxu0 %vm16702_vm1, %v23435_v43  ;;  %23003 = vmatpush3.msra.mxu0 %v21749_v8  ;;  %v21803_v43 = vld [vmem:[%s32200_s7 + $0x190] sm:$0xff] }
 0x7c0   : > { %22946 = vmatmul.mubr.msk.f32.gmra.mxu0 %vm16702_vm1, %v23437_v58  ;;  %23014 = vmatprep.subr.mxu0 %v32568_v11 }
 0x7c2   : > { %v23439_v47 = vpop.eup %23438 }
 0x7c3   : > { %v23441_v56 = vpop.eup %23440  ;;  %22948 = vmatprep.mubr.msk.f32.mxu0 %vm16702_vm1, %v23439_v47 }
 0x7c4   : > { %22949 = vmatmul.mubr.msk.f32.gmra.mxu0 %vm16702_vm1, %v23441_v56  ;;  %v21771_v56 = vld [vmem:[%s32200_s7 + $0xe8] sm:$0xff] }
 0x7c5   : > { %23004 = vmatprep.mubr.msk.f32.mxu0 %vm23519_vm2, %v32568_v11 }
 0x87c   : > { %v31552_v59 = vpop.f32.mrf.mxu0 }
 0x87d   : > { %v17510_v50 = vrot.slane %v31552_v59, 1  ;;  %v17664_v37 = vrot.slane %v31552_v59, 3  ;;  %v17818_v25 = vrot.slane %v31552_v59, 5  ;;  %v17972_v36 = vrot.slane %v31552_v59, 7 }
 0x87e   : > { %v31554_v38 = vpop.f32.mrf.mxu0  ;;  %v17587_v7 = vrot.slane %v31552_v59, 2  ;;  %v17741_v58 = vrot.slane %v31552_v59, 4  ;;  %v17895_v8 = vrot.slane %v31552_v59, 6 }
 0x87f   : > { %v16822_v18 = vrot.slane %v31554_v38, 1  ;;  %v17356_v27 = vrot.slane %v31554_v38, 7  ;;  %v16971_v24 = vrot.slane %v31554_v38, 2  ;;  %v17048_v4 = vrot.slane %v31554_v38, 3 }
 0x880   : > { %v31646_v32 = vpop.f32.mrf.mxu0  ;;  %v17125_v35 = vrot.slane %v31554_v38, 4  ;;  %v17202_v31 = vrot.slane %v31554_v38, 5  ;;  %v17279_v63 = vrot.slane %v31554_v38, 6 }
 0x881   : > { %22956 = vmatmul.mubr.msk.f32.vlgmr.msra.gmra.mxu1 %vm16823_vm3, %v16822_v18  ;;  %23005 = vmatmul.mubr.msk.f32.vlgmr.msra.gmra.mxu0 %vm16823_vm3, %v17356_v27  ;;  %v18742_v47 = vrot.slane %v31646_v32, 1  ;;  %v21777_v18 = vld [vmem:[%s32200_s7 + $0x108] sm:$0xff]  ;;  %v21816_v27 = vld [vmem:[%s32200_s7 + $0x1d8] sm:$0xff] }
 0x882   : > { %22959 = vmatpush3.msra.mxu1 %v16817_v48  ;;  %23015 = vmatpush3.msra.mxu0 %v21756_v21  ;;  %v31667_v57 = vpop.f32.mrf.mxu0  ;;  %v21815_v48 = vld [vmem:[%s32200_s7 + $0x1d0] sm:$0xff]  ;;  %v19050_v21 = vrot.slane %v31646_v32, 5 }
 0x883   : > { %22960 = vmatprep.subr.mxu1 %v32568_v11  ;;  %23016 = vmatprep.subr.mxu0 %v32568_v11  ;;  %v18126_v12 = vrot.slane %v31667_v57, 1  ;;  %v18280_v1 = vrot.slane %v31667_v57, 3  ;;  %v18434_v55 = vrot.slane %v31667_v57, 5  ;;  %v18588_v20 = vrot.slane %v31667_v57, 7 }
 0x884   : > { %22961 = vmatpush3.msra.mxu1 %v16816_v46  ;;  %22962 = vmatprep.mubr.msk.f32.mxu1 %vm23519_vm2, %v32568_v11  ;;  %v21783_v46 = vld [vmem:[%s32200_s7 + $0x128] sm:$0xff] }
 0x885   : > { %23017 = vmatpush3.msra.mxu0 %v21755_v34  ;;  %23018 = vmatprep.mubr.msk.f32.mxu0 %vm23519_vm2, %v32568_v11  ;;  %v21822_v34 = vld [vmem:[%s32200_s7 + $0x1f8] sm:$0xff] }
 0x886   : > { %22963 = vmatmul.mubr.msk.f32.vlgmr.msra.gmra.mxu1 %vm16823_vm3, %v31554_v38  ;;  %22965 = vmatprep.subr.mxu1 %v32568_v11  ;;  %v18896_v38 = vrot.slane %v31646_v32, 3 }
 0x887   : > { %23019 = vmatmul.mubr.msk.f32.vlgmr.msra.gmra.mxu0 %vm16823_vm3, %v17510_v50  ;;  %23028 = vmatprep.subr.mxu0 %v32568_v11  ;;  %v21782_v50 = vld [vmem:[%s32200_s7 + $0x120] sm:$0xff] }
 0x888   : > { %22966 = vmatpush3.msra.mxu1 %v21735_v60  ;;  %23029 = vmatpush3.msra.mxu0 %v21762_v29  ;;  %v21821_v60 = vld [vmem:[%s32200_s7 + $0x1f0] sm:$0xff]  ;;  %v31842_v29 = vpop.f32.mrf.mxu0 }
 0x889   : > { %22967 = vmatprep.subr.mxu1 %v32568_v11  ;;  %23030 = vmatprep.subr.mxu0 %v32568_v11 }
 0x88a   : > { %22968 = vmatpush3.msra.mxu1 %v21734_v19  ;;  %22969 = vmatprep.mubr.msk.f32.mxu1 %vm23519_vm2, %v32568_v11  ;;  %v18203_v19 = vrot.slane %v31667_v57, 2 }
 0x88b   : > { %23031 = vmatpush3.msra.mxu0 %v21761_v41  ;;  %23032 = vmatprep.mubr.msk.f32.mxu0 %vm23519_vm2, %v32568_v11  ;;  %v19204_v41 = vrot.slane %v31646_v32, 7 }
 0x88c   : > { %22970 = vmatmul.mubr.msk.f32.vlgmr.msra.gmra.mxu1 %vm16823_vm3, %v16971_v24  ;;  %22972 = vmatprep.subr.mxu1 %v32568_v11  ;;  %v21789_v24 = vld [vmem:[%s32200_s7 + $0x148] sm:$0xff] }
 0x88d   : > { %23033 = vmatmul.mubr.msk.f32.vlgmr.msra.gmra.mxu0 %vm16823_vm3, %v17664_v37  ;;  %23042 = vmatprep.subr.mxu0 %v32568_v11  ;;  %v21828_v37 = vld [vmem:[%s32200_s7 + $0x218] sm:$0xff] }
 0x88e   : > { %22973 = vmatpush3.msra.mxu1 %v21738_v51  ;;  %23043 = vmatpush3.msra.mxu0 %v21768_v0  ;;  %v21788_v51 = vld [vmem:[%s32200_s7 + $0x140] sm:$0xff]  ;;  %v31863_v0 = vpop.f32.mrf.mxu0 }
 0x88f   : > { %22974 = vmatprep.subr.mxu1 %v32568_v11  ;;  %23044 = vmatprep.subr.mxu0 %v32568_v11 }
 0x890   : > { %22975 = vmatpush3.msra.mxu1 %v21737_v28  ;;  %22976 = vmatprep.mubr.msk.f32.mxu1 %vm23519_vm2, %v32568_v11  ;;  %v21827_v28 = vld [vmem:[%s32200_s7 + $0x210] sm:$0xff] }
 0x891   : > { %23045 = vmatpush3.msra.mxu0 %v21767_v26  ;;  %23046 = vmatprep.mubr.msk.f32.mxu0 %vm23519_vm2, %v32568_v11  ;;  %v18357_v26 = vrot.slane %v31667_v57, 4 }
 0x892   : > { %22977 = vmatmul.mubr.msk.f32.vlgmr.msra.gmra.mxu1 %vm16823_vm3, %v17048_v4  ;;  %22979 = vmatprep.subr.mxu1 %v32568_v11  ;;  %v19358_v4 = vrot.slane %v31863_v0, 1 }
 0x893   : > { %23047 = vmatmul.mubr.msk.f32.vlgmr.msra.gmra.mxu0 %vm16823_vm3, %v17818_v25  ;;  %23056 = vmatprep.subr.mxu0 %v32568_v11  ;;  %v21795_v25 = vld [vmem:[%s32200_s7 + $0x168] sm:$0xff] }
 0x894   : > { %22980 = vmatpush3.msra.mxu1 %v21741_v16  ;;  %23057 = vmatpush3.msra.mxu0 %v21774_v53  ;;  %v21834_v16 = vld [vmem:[%s32200_s7 + $0x238] sm:$0xff]  ;;  %v21794_v53 = vld [vmem:[%s32200_s7 + $0x160] sm:$0xff] }
 0x895   : > { %22981 = vmatprep.subr.mxu1 %v32568_v11  ;;  %23058 = vmatprep.subr.mxu0 %v32568_v11 }
 0x896   : > { %22982 = vmatpush3.msra.mxu1 %v21740_v33  ;;  %22983 = vmatprep.mubr.msk.f32.mxu1 %vm23519_vm2, %v32568_v11  ;;  %v21833_v33 = vld [vmem:[%s32200_s7 + $0x230] sm:$0xff] }
 0x897   : > { %23059 = vmatpush3.msra.mxu0 %v21773_v40  ;;  %23060 = vmatprep.mubr.msk.f32.mxu0 %vm23519_vm2, %v32568_v11  ;;  %v18511_v40 = vrot.slane %v31667_v57, 6 }
 0x898   : > { %22984 = vmatmul.mubr.msk.f32.vlgmr.msra.gmra.mxu1 %vm16823_vm3, %v17125_v35  ;;  %22986 = vmatprep.subr.mxu1 %v32568_v11  ;;  %v19512_v35 = vrot.slane %v31863_v0, 3 }
 0x899   : > { %23061 = vmatmul.mubr.msk.f32.vlgmr.msra.gmra.mxu0 %vm16823_vm3, %v17972_v36  ;;  %23070 = vmatprep.subr.mxu0 %v32568_v11  ;;  %v21801_v36 = vld [vmem:[%s32200_s7 + $0x188] sm:$0xff] }
 0x89a   : > { %22987 = vmatpush3.msra.mxu1 %v21744_v61  ;;  %23071 = vmatpush3.msra.mxu0 %v21780_v17  ;;  %v21840_v61 = vld [vmem:[%s32200_s7 + $0x258] sm:$0xff]  ;;  %v21800_v17 = vld [vmem:[%s32200_s7 + $0x180] sm:$0xff] }
 0x89b   : > { %22988 = vmatprep.subr.mxu1 %v32568_v11  ;;  %23072 = vmatprep.subr.mxu0 %v32568_v11 }
 0x89c   : > { %22989 = vmatpush3.msra.mxu1 %v21743_v23  ;;  %22990 = vmatprep.mubr.msk.f32.mxu1 %vm23519_vm2, %v32568_v11  ;;  %v21839_v23 = vld [vmem:[%s32200_s7 + $0x250] sm:$0xff] }
 0x89d   : > { %23073 = vmatpush3.msra.mxu0 %v21779_v9  ;;  %23074 = vmatprep.mubr.msk.f32.mxu0 %vm23519_vm2, %v32568_v11  ;;  %v21807_v9 = vld [vmem:[%s32200_s7 + $0x1a8] sm:$0xff] }
 0x89e   : > { %22991 = vmatmul.mubr.msk.f32.vlgmr.msra.gmra.mxu1 %vm16823_vm3, %v17202_v31  ;;  %22993 = vmatprep.subr.mxu1 %v32568_v11  ;;  %v21846_v31 = vld [vmem:[%s32200_s7 + $0x278] sm:$0xff] }
 0x89f   : > { %23075 = vmatmul.mubr.msk.f32.vlgmr.msra.gmra.mxu0 %vm16823_vm3, %v18126_v12  ;;  %23084 = vmatprep.subr.mxu0 %v32568_v11  ;;  %v21806_v12 = vld [vmem:[%s32200_s7 + $0x1a0] sm:$0xff] }
 0x8a0   : > { %22994 = vmatpush3.msra.mxu1 %v21747_v44  ;;  %23085 = vmatpush3.msra.mxu0 %v21786_v54  ;;  %v21845_v44 = vld [vmem:[%s32200_s7 + $0x270] sm:$0xff]  ;;  %v18819_v54 = vrot.slane %v31646_v32, 2 }
 0x8a1   : > { %22995 = vmatprep.subr.mxu1 %v32568_v11  ;;  %23086 = vmatprep.subr.mxu0 %v32568_v11 }
 0x8a2   : > { %22996 = vmatpush3.msra.mxu1 %v21746_v49  ;;  %22997 = vmatprep.mubr.msk.f32.mxu1 %vm23519_vm2, %v32568_v11  ;;  %v19820_v49 = vrot.slane %v31863_v0, 7 }
 0x8a3   : > { %23087 = vmatpush3.msra.mxu0 %v21785_v39  ;;  %23088 = vmatprep.mubr.msk.f32.mxu0 %vm23519_vm2, %v32568_v11  ;;  %v21813_v39 = vld [vmem:[%s32200_s7 + $0x1c8] sm:$0xff] }
 0x8a4   : > { %22998 = vmatmul.mubr.msk.f32.vlgmr.msra.gmra.mxu1 %vm16823_vm3, %v17279_v63  ;;  %23007 = vmatprep.subr.mxu1 %v32568_v11  ;;  %v21852_v63 = vld [vmem:[%s32200_s7 + $0x298] sm:$0xff] }
 0x8a5   : > { %23089 = vmatmul.mubr.msk.f32.vlgmr.msra.gmra.mxu0 %vm16823_vm3, %v18280_v1  ;;  %23098 = vmatprep.subr.mxu0 %v32568_v11  ;;  %v21812_v1 = vld [vmem:[%s32200_s7 + $0x1c0] sm:$0xff] }
 0x8a6   : > { %23008 = vmatpush3.msra.mxu1 %v21753_v30  ;;  %23099 = vmatpush3.msra.mxu0 %v21792_v5  ;;  %v21851_v30 = vld [vmem:[%s32200_s7 + $0x290] sm:$0xff]  ;;  %v18973_v5 = vrot.slane %v31646_v32, 4 }
 0x8a7   : > { %23009 = vmatprep.subr.mxu1 %v32568_v11  ;;  %23100 = vmatprep.subr.mxu0 %v32568_v11 }
 0x8a8   : > { %23010 = vmatpush3.msra.mxu1 %v21752_v22  ;;  %23011 = vmatprep.mubr.msk.f32.mxu1 %vm23519_vm2, %v32568_v11  ;;  %v19974_v22 = vrot.slane %v31842_v29, 1 }
 0x8a9   : > { %23101 = vmatpush3.msra.mxu0 %v21791_v62  ;;  %23102 = vmatprep.mubr.msk.f32.mxu0 %vm23519_vm2, %v32568_v11  ;;  %v21819_v62 = vld [vmem:[%s32200_s7 + $0x1e8] sm:$0xff] }
 0x8aa   : > { %23012 = vmatmul.mubr.msk.f32.vlgmr.msra.gmra.mxu1 %vm16823_vm3, %v31552_v59  ;;  %23021 = vmatprep.subr.mxu1 %v32568_v11  ;;  %v21776_v59 = vld [vmem:[%s32200_s7 + $0x100] sm:$0xff] }
 0x8ab   : > { %23103 = vmatmul.mubr.msk.f32.vlgmr.msra.gmra.mxu0 %vm16823_vm3, %v18434_v55  ;;  %23112 = vmatprep.subr.mxu0 %v32568_v11  ;;  %v21858_v55 = vld [vmem:[%s32200_s7 + $0x2b8] sm:$0xff] }
 0x8ac   : > { %23022 = vmatpush3.msra.mxu1 %v21759_v45  ;;  %23113 = vmatpush3.msra.mxu0 %v21798_v14  ;;  %v21818_v45 = vld [vmem:[%s32200_s7 + $0x1e0] sm:$0xff]  ;;  %v21857_v14 = vld [vmem:[%s32200_s7 + $0x2b0] sm:$0xff] }
 0x8ad   : > { %23023 = vmatprep.subr.mxu1 %v32568_v11  ;;  %23114 = vmatprep.subr.mxu0 %v32568_v11 }
 0x8ae   : > { %23024 = vmatpush3.msra.mxu1 %v21758_v6  ;;  %23025 = vmatprep.mubr.msk.f32.mxu1 %vm23519_vm2, %v32568_v11  ;;  %v19127_v6 = vrot.slane %v31646_v32, 6 }
 0x8af   : > { %23115 = vmatpush3.msra.mxu0 %v21797_v52  ;;  %23116 = vmatprep.mubr.msk.f32.mxu0 %vm23519_vm2, %v32568_v11  ;;  %v20128_v52 = vrot.slane %v31842_v29, 3 }
 0x8b0   : > { %23026 = vmatmul.mubr.msk.f32.vlgmr.msra.gmra.mxu1 %vm16823_vm3, %v17587_v7  ;;  %23035 = vmatprep.subr.mxu1 %v32568_v11  ;;  %v21825_v7 = vld [vmem:[%s32200_s7 + $0x208] sm:$0xff] }
 0x8b1   : > { %23117 = vmatmul.mubr.msk.f32.vlgmr.msra.gmra.mxu0 %vm16823_vm3, %v18588_v20  ;;  %23126 = vmatprep.subr.mxu0 %v32568_v11  ;;  %v21864_v20 = vld [vmem:[%s32200_s7 + $0x2d8] sm:$0xff] }
 0x8b2   : > { %23036 = vmatpush3.msra.mxu1 %v21765_v13  ;;  %23127 = vmatpush3.msra.mxu0 %v21804_v42  ;;  %v21863_v13 = vld [vmem:[%s32200_s7 + $0x2d0] sm:$0xff]  ;;  %v20282_v42 = vrot.slane %v31842_v29, 5 }
 0x8b3   : > { %23037 = vmatprep.subr.mxu1 %v32568_v11  ;;  %23128 = vmatprep.subr.mxu0 %v32568_v11 }
 0x8b4   : > { %23038 = vmatpush3.msra.mxu1 %v21764_v15  ;;  %23039 = vmatprep.mubr.msk.f32.mxu1 %vm23519_vm2, %v32568_v11  ;;  %v21831_v15 = vld [vmem:[%s32200_s7 + $0x228] sm:$0xff] }
 0x8b5   : > { %23129 = vmatpush3.msra.mxu0 %v21803_v43  ;;  %23130 = vmatprep.mubr.msk.f32.mxu0 %vm23519_vm2, %v32568_v11  ;;  %v21870_v43 = vld [vmem:[%s32200_s7 + $0x2f8] sm:$0xff] }
 0x8b6   : > { %23040 = vmatmul.mubr.msk.f32.vlgmr.msra.gmra.mxu1 %vm16823_vm3, %v17741_v58  ;;  %23049 = vmatprep.subr.mxu1 %v32568_v11  ;;  %v21830_v58 = vld [vmem:[%s32200_s7 + $0x220] sm:$0xff] }
 0x8b7   : > { %23131 = vmatmul.mubr.msk.f32.vlgmr.msra.gmra.mxu0 %vm16823_vm3, %v18742_v47  ;;  %23140 = vmatprep.subr.mxu0 %v32568_v11  ;;  %v21869_v47 = vld [vmem:[%s32200_s7 + $0x2f0] sm:$0xff] }
 0x8b8   : > { %23050 = vmatpush3.msra.mxu1 %v21771_v56  ;;  %23141 = vmatpush3.msra.mxu0 %v21810_v3  ;;  %v19435_v56 = vrot.slane %v31863_v0, 2  ;;  %v21837_v3 = vld [vmem:[%s32200_s7 + $0x248] sm:$0xff] }
 0x8b9   : > { %23051 = vmatprep.subr.mxu1 %v32568_v11  ;;  %23142 = vmatprep.subr.mxu0 %v32568_v11 }
 0x8ba   : > { %23052 = vmatpush3.msra.mxu1 %v21770_v2  ;;  %23053 = vmatprep.mubr.msk.f32.mxu1 %vm23519_vm2, %v32568_v11  ;;  %v20436_v2 = vrot.slane %v31842_v29, 7 }
 0x8bb   : > { %23143 = vmatpush3.msra.mxu0 %v21809_v10  ;;  %23144 = vmatprep.mubr.msk.f32.mxu0 %vm23519_vm2, %v32568_v11  ;;  %v21836_v10 = vld [vmem:[%s32200_s7 + $0x240] sm:$0xff] }
 0x8bc   : > { %23054 = vmatmul.mubr.msk.f32.vlgmr.msra.gmra.mxu1 %vm16823_vm3, %v17895_v8  ;;  %23063 = vmatprep.subr.mxu1 %v32568_v11  ;;  %v19589_v8 = vrot.slane %v31863_v0, 4 }
 0x8bd   : > { %23145 = vmatmul.mubr.msk.f32.vlgmr.msra.gmra.mxu0 %vm16823_vm3, %v18896_v38  ;;  %23154 = vmatprep.subr.mxu0 %v32568_v11  ;;  %v21843_v38 = vld [vmem:[%s32200_s7 + $0x268] sm:$0xff] }
 0x8be   : > { %23064 = vmatpush3.msra.mxu1 %v21777_v18  ;;  %23155 = vmatpush3.msra.mxu0 %v21816_v27  ;;  %v21842_v18 = vld [vmem:[%s32200_s7 + $0x260] sm:$0xff]  ;;  %v19743_v27 = vrot.slane %v31863_v0, 6 }
 0x8bf   : > { %23065 = vmatprep.subr.mxu1 %v32568_v11  ;;  %23156 = vmatprep.subr.mxu0 %v32568_v11 }
 0x8c0   : > { %23066 = vmatpush3.msra.mxu1 %v21776_v59  ;;  %23067 = vmatprep.mubr.msk.f32.mxu1 %vm23519_vm2, %v32568_v11  ;;  %v21849_v59 = vld [vmem:[%s32200_s7 + $0x288] sm:$0xff] }
 0x8c1   : > { %23157 = vmatpush3.msra.mxu0 %v21815_v48  ;;  %23158 = vmatprep.mubr.msk.f32.mxu0 %vm23519_vm2, %v32568_v11  ;;  %v21848_v48 = vld [vmem:[%s32200_s7 + $0x280] sm:$0xff] }
 0x8c2   : > { %23068 = vmatmul.mubr.msk.f32.vlgmr.msra.gmra.mxu1 %vm16823_vm3, %v31667_v57  ;;  %23077 = vmatprep.subr.mxu1 %v32568_v11  ;;  %v19666_v57 = vrot.slane %v31863_v0, 5 }
 0x8c3   : > { %23159 = vmatmul.mubr.msk.f32.vlgmr.msra.gmra.mxu0 %vm16823_vm3, %v19050_v21  ;;  %23168 = vmatprep.subr.mxu0 %v32568_v11  ;;  %v21855_v21 = vld [vmem:[%s32200_s7 + $0x2a8] sm:$0xff] }
 0x8c4   : > { %23078 = vmatpush3.msra.mxu1 %v21783_v46  ;;  %23169 = vmatpush3.msra.mxu0 %v21822_v34  ;;  %v21854_v46 = vld [vmem:[%s32200_s7 + $0x2a0] sm:$0xff]  ;;  %v20051_v34 = vrot.slane %v31842_v29, 2 }
 0x8c5   : > { %23079 = vmatprep.subr.mxu1 %v32568_v11  ;;  %23170 = vmatprep.subr.mxu0 %v32568_v11 }
 0x8c6   : > { %23080 = vmatpush3.msra.mxu1 %v21782_v50  ;;  %23081 = vmatprep.mubr.msk.f32.mxu1 %vm23519_vm2, %v32568_v11  ;;  %v21861_v50 = vld [vmem:[%s32200_s7 + $0x2c8] sm:$0xff] }
 0x8c7   : > { %23171 = vmatpush3.msra.mxu0 %v21821_v60  ;;  %23172 = vmatprep.mubr.msk.f32.mxu0 %vm23519_vm2, %v32568_v11  ;;  %v21860_v60 = vld [vmem:[%s32200_s7 + $0x2c0] sm:$0xff] }
 0x8c8   : > { %23082 = vmatmul.mubr.msk.f32.vlgmr.msra.gmra.mxu1 %vm16823_vm3, %v18203_v19  ;;  %23091 = vmatprep.subr.mxu1 %v32568_v11  ;;  %v20205_v19 = vrot.slane %v31842_v29, 4 }
 0x8c9   : > { %23173 = vmatmul.mubr.msk.f32.vlgmr.msra.gmra.mxu0 %vm16823_vm3, %v19204_v41  ;;  %23182 = vmatprep.subr.mxu0 %v32568_v11  ;;  %v21867_v41 = vld [vmem:[%s32200_s7 + $0x2e8] sm:$0xff] }
 0x8ca   : > { %23092 = vmatpush3.msra.mxu1 %v21789_v24  ;;  %23183 = vmatpush3.msra.mxu0 %v21828_v37  ;;  %v21866_v24 = vld [vmem:[%s32200_s7 + $0x2e0] sm:$0xff]  ;;  %v20359_v37 = vrot.slane %v31842_v29, 6 }
 0x8cb   : > { %23093 = vmatprep.subr.mxu1 %v32568_v11  ;;  %23184 = vmatprep.subr.mxu0 %v32568_v11 }
 0x8cc   : > { %23094 = vmatpush3.msra.mxu1 %v21788_v51  ;;  %23095 = vmatprep.mubr.msk.f32.mxu1 %vm23519_vm2, %v32568_v11 }
 0x8cd   : > { %23185 = vmatpush3.msra.mxu0 %v21827_v28  ;;  %23186 = vmatprep.mubr.msk.f32.mxu0 %vm23519_vm2, %v32568_v11 }
 0x8ce   : > { %23096 = vmatmul.mubr.msk.f32.vlgmr.msra.gmra.mxu1 %vm16823_vm3, %v18357_v26  ;;  %23105 = vmatprep.subr.mxu1 %v32568_v11 }
 0x8cf   : > { %23187 = vmatmul.mubr.msk.f32.vlgmr.msra.gmra.mxu0 %vm16823_vm3, %v19358_v4  ;;  %23196 = vmatprep.subr.mxu0 %v32568_v11 }
 0x8d0   : > { %23106 = vmatpush3.msra.mxu1 %v21795_v25  ;;  %23197 = vmatpush3.msra.mxu0 %v21834_v16 }
 0x8d1   : > { %23107 = vmatprep.subr.mxu1 %v32568_v11  ;;  %23198 = vmatprep.subr.mxu0 %v32568_v11 }
 0x8d2   : > { %23108 = vmatpush3.msra.mxu1 %v21794_v53  ;;  %23109 = vmatprep.mubr.msk.f32.mxu1 %vm23519_vm2, %v32568_v11 }
 0x8d3   : > { %23199 = vmatpush3.msra.mxu0 %v21833_v33  ;;  %23200 = vmatprep.mubr.msk.f32.mxu0 %vm23519_vm2, %v32568_v11 }
 0x8d4   : > { %23110 = vmatmul.mubr.msk.f32.vlgmr.msra.gmra.mxu1 %vm16823_vm3, %v18511_v40  ;;  %23119 = vmatprep.subr.mxu1 %v32568_v11 }
 0x8d5   : > { %23201 = vmatmul.mubr.msk.f32.vlgmr.msra.gmra.mxu0 %vm16823_vm3, %v19512_v35  ;;  %23210 = vmatprep.subr.mxu0 %v32568_v11 }
 0x8d6   : > { %23120 = vmatpush3.msra.mxu1 %v21801_v36  ;;  %23211 = vmatpush3.msra.mxu0 %v21840_v61  ;;  %v20528_v36 = vld [vmem:[%s32202_s9 + $0x50] sm:$0xf] }
 0x8d7   : > { %23121 = vmatprep.subr.mxu1 %v32568_v11  ;;  %23212 = vmatprep.subr.mxu0 %v32568_v11 }
 0x8d8   : > { %23122 = vmatpush3.msra.mxu1 %v21800_v17  ;;  %23123 = vmatprep.mubr.msk.f32.mxu1 %vm23519_vm2, %v32568_v11  ;;  %v20527_v17 = vld [vmem:[%s32202_s9 + $0x48] sm:$0xff] }
 0x8d9   : > { %23213 = vmatpush3.msra.mxu0 %v21839_v23  ;;  %23214 = vmatprep.mubr.msk.f32.mxu0 %vm23519_vm2, %v32568_v11 }
 0x8da   : > { %23124 = vmatmul.mubr.msk.f32.vlgmr.msra.gmra.mxu1 %vm16823_vm3, %v31646_v32  ;;  %23133 = vmatprep.subr.mxu1 %v32568_v11  ;;  %v21824_v32 = vld [vmem:[%s32200_s7 + $0x200] sm:$0xff] }
 0x8db   : > { %23215 = vmatmul.mubr.msk.f32.vlgmr.msra.gmra.mxu0 %vm16823_vm3, %v19666_v57  ;;  %23224 = vmatprep.subr.mxu0 %v32568_v11 }
 0x8dc   : > { %23134 = vmatpush3.msra.mxu1 %v21807_v9  ;;  %23225 = vmatpush3.msra.mxu0 %v21846_v31  ;;  %v20526_v9 = vld [vmem:[%s32202_s9 + $0x40] sm:$0xff] }
 0x8dd   : > { %23135 = vmatprep.subr.mxu1 %v32568_v11  ;;  %23226 = vmatprep.subr.mxu0 %v32568_v11 }
 0x8de   : > { %23136 = vmatpush3.msra.mxu1 %v21806_v12  ;;  %23137 = vmatprep.mubr.msk.f32.mxu1 %vm23519_vm2, %v32568_v11  ;;  %v20525_v12 = vld [vmem:[%s32202_s9 + $0x38] sm:$0xff] }
 0x8df   : > { %23227 = vmatpush3.msra.mxu0 %v21845_v44  ;;  %23228 = vmatprep.mubr.msk.f32.mxu0 %vm23519_vm2, %v32568_v11  ;;  %v20524_v44 = vld [vmem:[%s32202_s9 + $0x30] sm:$0xff] }
 0x8e0   : > { %23138 = vmatmul.mubr.msk.f32.vlgmr.msra.gmra.mxu1 %vm16823_vm3, %v18819_v54  ;;  %23147 = vmatprep.subr.mxu1 %v32568_v11 }
 0x8e1   : > { %23229 = vmatmul.mubr.msk.f32.vlgmr.msra.gmra.mxu0 %vm16823_vm3, %v19820_v49  ;;  %23238 = vmatprep.subr.mxu0 %v32568_v11  ;;  %v20523_v49 = vld [vmem:[%s32202_s9 + $0x28] sm:$0xff] }
 0x8e2   : > { %23148 = vmatpush3.msra.mxu1 %v21813_v39  ;;  %23239 = vmatpush3.msra.mxu0 %v21852_v63 }
 0x8e3   : > { %23149 = vmatprep.subr.mxu1 %v32568_v11  ;;  %23240 = vmatprep.subr.mxu0 %v32568_v11 }
 0x8e4   : > { %23150 = vmatpush3.msra.mxu1 %v21812_v1  ;;  %23151 = vmatprep.mubr.msk.f32.mxu1 %vm23519_vm2, %v32568_v11  ;;  %v20522_v1 = vld [vmem:[%s32202_s9 + $0x20] sm:$0xff] }
 0x8e5   : > { %23241 = vmatpush3.msra.mxu0 %v21851_v30  ;;  %23242 = vmatprep.mubr.msk.f32.mxu0 %vm23519_vm2, %v32568_v11 }
 0x8e6   : > { %23152 = vmatmul.mubr.msk.f32.vlgmr.msra.gmra.mxu1 %vm16823_vm3, %v18973_v5  ;;  %23161 = vmatprep.subr.mxu1 %v32568_v11 }
 0x8e7   : > { %23243 = vmatmul.mubr.msk.f32.vlgmr.msra.gmra.mxu0 %vm16823_vm3, %v19974_v22  ;;  %23252 = vmatprep.subr.mxu0 %v32568_v11  ;;  %v20521_v22 = vld [vmem:[%s32202_s9 + $0x18] sm:$0xff] }
 0x8e8   : > { %23162 = vmatpush3.msra.mxu1 %v21819_v62  ;;  %23253 = vmatpush3.msra.mxu0 %v21858_v55 }
 0x8e9   : > { %23163 = vmatprep.subr.mxu1 %v32568_v11  ;;  %23254 = vmatprep.subr.mxu0 %v32568_v11 }
 0x8ea   : > { %23164 = vmatpush3.msra.mxu1 %v21818_v45  ;;  %23165 = vmatprep.mubr.msk.f32.mxu1 %vm23519_vm2, %v32568_v11  ;;  %v20520_v45 = vld [vmem:[%s32202_s9 + $0x10] sm:$0xff] }
 0x8eb   : > { %23255 = vmatpush3.msra.mxu0 %v21857_v14  ;;  %23256 = vmatprep.mubr.msk.f32.mxu0 %vm23519_vm2, %v32568_v11 }
 0x8ec   : > { %23166 = vmatmul.mubr.msk.f32.vlgmr.msra.gmra.mxu1 %vm16823_vm3, %v19127_v6  ;;  %23175 = vmatprep.subr.mxu1 %v32568_v11 }
 0x8ed   : > { %23257 = vmatmul.mubr.msk.f32.vlgmr.msra.gmra.mxu0 %vm16823_vm3, %v20128_v52  ;;  %23266 = vmatprep.subr.mxu0 %v32568_v11 }
 0x8ee   : > { %23176 = vmatpush3.msra.mxu1 %v21825_v7  ;;  %23267 = vmatpush3.msra.mxu0 %v21864_v20  ;;  %v20519_v7 = vld [vmem:[%s32202_s9 + $0x8] sm:$0xff] }
 0x8ef   : > { %23177 = vmatprep.subr.mxu1 %v32568_v11  ;;  %23268 = vmatprep.subr.mxu0 %v32568_v11 }
 0x8f0   : > { %23178 = vmatpush3.msra.mxu1 %v21824_v32  ;;  %23179 = vmatprep.mubr.msk.f32.mxu1 %vm23519_vm2, %v32568_v11 }
 0x8f1   : > { %23269 = vmatpush3.msra.mxu0 %v21863_v13  ;;  %23270 = vmatprep.mubr.msk.f32.mxu0 %vm23519_vm2, %v32568_v11  ;;  %v20518_v13 = vld [vmem:[%s32202_s9] sm:$0xff] }
 0x8f2   : > { %23180 = vmatmul.mubr.msk.f32.vlgmr.msra.gmra.mxu1 %vm16823_vm3, %v31863_v0  ;;  %23189 = vmatprep.subr.mxu1 %v32568_v11 }
 0x8f3   : > { %23271 = vmatmul.mubr.msk.f32.vlgmr.msra.gmra.mxu0 %vm16823_vm3, %v20282_v42  ;;  %23280 = vmatprep.subr.mxu0 %v32568_v11 }
 0x8f4   : > { %23190 = vmatpush3.msra.mxu1 %v21831_v15  ;;  %23281 = vmatpush3.msra.mxu0 %v21870_v43 }
 0x8f5   : > { %23191 = vmatprep.subr.mxu1 %v32568_v11  ;;  %23282 = vmatprep.subr.mxu0 %v32568_v11 }
 0x8f6   : > { %23192 = vmatpush3.msra.mxu1 %v21830_v58  ;;  %23193 = vmatprep.mubr.msk.f32.mxu1 %vm23519_vm2, %v32568_v11 }
 0x8f7   : > { %23283 = vmatpush3.msra.mxu0 %v21869_v47  ;;  %23284 = vmatprep.mubr.msk.f32.mxu0 %vm23519_vm2, %v32568_v11 }
 0x8f8   : > { %23194 = vmatmul.mubr.msk.f32.vlgmr.msra.gmra.mxu1 %vm16823_vm3, %v19435_v56  ;;  %23203 = vmatprep.subr.mxu1 %v32568_v11 }
 0x8f9   : > { %23285 = vmatmul.mubr.msk.f32.vlgmr.msra.gmra.mxu0 %vm16823_vm3, %v20436_v2  ;;  %23204 = vmatpush3.msra.mxu1 %v21837_v3 }
 0x8fa   : > { %23205 = vmatprep.subr.mxu1 %v32568_v11  ;;  %23207 = vmatprep.mubr.msk.f32.mxu1 %vm23519_vm2, %v32568_v11 }
 0x8fb   : > { %23206 = vmatpush3.msra.mxu1 %v21836_v10 }
 0x8fc   : > { %23208 = vmatmul.mubr.msk.f32.vlgmr.msra.gmra.mxu1 %vm16823_vm3, %v19589_v8  ;;  %23217 = vmatprep.subr.mxu1 %v32568_v11 }
 0x8fd   : > { %23218 = vmatpush3.msra.mxu1 %v21843_v38  ;;  %23221 = vmatprep.mubr.msk.f32.mxu1 %vm23519_vm2, %v32568_v11 }
 0x8fe   : > { %23219 = vmatprep.subr.mxu1 %v32568_v11 }
 0x8ff   : > { %23220 = vmatpush3.msra.mxu1 %v21842_v18 }
 0x900   : > { %23222 = vmatmul.mubr.msk.f32.vlgmr.msra.gmra.mxu1 %vm16823_vm3, %v19743_v27  ;;  %23231 = vmatprep.subr.mxu1 %v32568_v11 }
 0x901   : > { %23232 = vmatpush3.msra.mxu1 %v21849_v59  ;;  %23235 = vmatprep.mubr.msk.f32.mxu1 %vm23519_vm2, %v32568_v11 }
 0x902   : > { %23233 = vmatprep.subr.mxu1 %v32568_v11 }
 0x903   : > { %23234 = vmatpush3.msra.mxu1 %v21848_v48 }
 0x904   : > { %23236 = vmatmul.mubr.msk.f32.vlgmr.msra.gmra.mxu1 %vm16823_vm3, %v31842_v29  ;;  %23245 = vmatprep.subr.mxu1 %v32568_v11 }
 0x905   : > { %23246 = vmatpush3.msra.mxu1 %v21855_v21  ;;  %23249 = vmatprep.mubr.msk.f32.mxu1 %vm23519_vm2, %v32568_v11 }
 0x906   : > { %23247 = vmatprep.subr.mxu1 %v32568_v11 }
 0x907   : > { %23248 = vmatpush3.msra.mxu1 %v21854_v46 }
 0x908   : > { %23250 = vmatmul.mubr.msk.f32.vlgmr.msra.gmra.mxu1 %vm16823_vm3, %v20051_v34  ;;  %23259 = vmatprep.subr.mxu1 %v32568_v11 }
 0x909   : > { %23260 = vmatpush3.msra.mxu1 %v21861_v50  ;;  %23263 = vmatprep.mubr.msk.f32.mxu1 %vm23519_vm2, %v32568_v11 }
 0x90a   : > { %23261 = vmatprep.subr.mxu1 %v32568_v11 }
 0x90b   : > { %23262 = vmatpush3.msra.mxu1 %v21860_v60 }
 0x90c   : > { %23264 = vmatmul.mubr.msk.f32.vlgmr.msra.gmra.mxu1 %vm16823_vm3, %v20205_v19  ;;  %23273 = vmatprep.subr.mxu1 %v32568_v11 }
 0x90d   : > { %23274 = vmatpush3.msra.mxu1 %v21867_v41  ;;  %23277 = vmatprep.mubr.msk.f32.mxu1 %vm23519_vm2, %v32568_v11 }
 0x90e   : > { %23275 = vmatprep.subr.mxu1 %v32568_v11 }
 0x90f   : > { %23276 = vmatpush3.msra.mxu1 %v21866_v24 }
 0x910   : > { %23278 = vmatmul.mubr.msk.f32.vlgmr.msra.gmra.mxu1 %vm16823_vm3, %v20359_v37  ;;  %23287 = vmatprep.subr.mxu1 %v32568_v11 }
 0x911   : > { %23309 = vmatprep.mubr.msk.f32.mxu1 %vm23519_vm2, %v32568_v11  ;;  %23288 = vmatpush3.msk.msra.mxu1 %vm20533_vm4, %v20528_v36 }
 0x912   : > { %23289 = vmatprep.subr.mxu1 %v32568_v11 }
 0x913   : > { %23290 = vmatpush3.msra.mxu1 %v20527_v17 }
 0x914   : > { %23291 = vmatprep.subr.mxu1 %v32568_v11 }
 0x915   : > { %23292 = vmatpush3.msra.mxu1 %v20526_v9 }
 0x916   : > { %23293 = vmatprep.subr.mxu1 %v32568_v11 }
 0x917   : > { %23294 = vmatpush3.msra.mxu1 %v20525_v12 }
 0x918   : > { %23295 = vmatprep.subr.mxu1 %v32568_v11 }
 0x919   : > { %23296 = vmatpush3.msra.mxu1 %v20524_v44 }
 0x91a   : > { %23297 = vmatprep.subr.mxu1 %v32568_v11 }
 0x91b   : > { %23298 = vmatpush3.msra.mxu1 %v20523_v49 }
 0x91c   : > { %23299 = vmatprep.subr.mxu1 %v32568_v11 }
 0x91d   : > { %23300 = vmatpush3.msra.mxu1 %v20522_v1 }
 0x91e   : > { %23301 = vmatprep.subr.mxu1 %v32568_v11 }
 0x91f   : > { %23302 = vmatpush3.msra.mxu1 %v20521_v22 }
 0x920   : > { %23303 = vmatprep.subr.mxu1 %v32568_v11 }
 0x921   : > { %23304 = vmatpush3.msra.mxu1 %v20520_v45 }
 0x922   : > { %23305 = vmatprep.subr.mxu1 %v32568_v11 }
 0x923   : > { %23306 = vmatpush3.msra.mxu1 %v20519_v7 }
 0x924   : > { %23307 = vmatprep.subr.mxu1 %v32568_v11 }
 0x925   : > { %23308 = vmatpush3.msra.mxu1 %v20518_v13 }
 0x941   : > { %v16892_v51 = vpop.f32.mrf.mxu1  ;;  %v32121_v0 = vpop.f32.mrf.mxu0 }
 0x943   : > { %v22957_v28 = vpop.f32.mrf.mxu1  ;;  %v23006_v26 = vpop.f32.mrf.mxu0 }
 0x946   : > { %v16964_v4 = vpop.f32.mrf.mxu1 }
 0x947   : > { %v32123_v25 = vpop.f32.mrf.mxu0  ;;  %v16965_v30 = vadd.f32 %v16964_v4, %v16892_v51 }
 0x948   : > { %v22964_v16 = vpop.f32.mrf.mxu1 }
 0x949   : > { %v23020_v53 = vpop.f32.mrf.mxu0 }
 0x94c   : > { %v17040_v33 = vpop.f32.mrf.mxu1 }
 0x94d   : > { %v32125_v29 = vpop.f32.mrf.mxu0  ;;  %v17044_v62 = vadd.f32 %v17040_v33, %v16965_v30 }
 0x94e   : > { %v22971_v40 = vpop.f32.mrf.mxu1 }
 0x94f   : > { %v23034_v35 = vpop.f32.mrf.mxu0 }
 0x952   : > { %v17117_v61 = vpop.f32.mrf.mxu1 }
 0x953   : > { %v32134_v23 = vpop.f32.mrf.mxu0  ;;  %v17121_v14 = vadd.f32 %v17117_v61, %v17044_v62 }
 0x954   : > { %v22978_v57 = vpop.f32.mrf.mxu1 }
 0x955   : > { %v23048_v31 = vpop.f32.mrf.mxu0 }
 0x958   : > { %v17194_v54 = vpop.f32.mrf.mxu1 }
 0x959   : > { %v18041_v39 = vpop.f32.mrf.mxu0  ;;  %v17198_v20 = vadd.f32 %v17194_v54, %v17121_v14 }
 0x95a   : > { %v22985_v63 = vpop.f32.mrf.mxu1 }
 0x95b   : > { %v23062_v5 = vpop.f32.mrf.mxu0 }
 0x95e   : > { %v17271_v55 = vpop.f32.mrf.mxu1 }
 0x95f   : > { %v18195_v6 = vpop.f32.mrf.mxu0  ;;  %v17275_v42 = vadd.f32 %v17271_v55, %v17198_v20 }
 0x960   : > { %v22992_v52 = vpop.f32.mrf.mxu1 }
 0x961   : > { %v23076_v32 = vpop.f32.mrf.mxu0 }
 0x964   : > { %v17348_v15 = vpop.f32.mrf.mxu1 }
 0x965   : > { %v17352_v43 = vadd.f32 %v17348_v15, %v17275_v42  ;;  %v18349_v58 = vpop.f32.mrf.mxu0 }
 0x966   : > { %v22999_v47 = vpop.f32.mrf.mxu1 }
 0x967   : > { %v23090_v56 = vpop.f32.mrf.mxu0  ;;  %v17429_v3 = vadd.f32 %v32121_v0, %v17352_v43 }
 0x96a   : > { %v17502_v2 = vpop.f32.mrf.mxu1 }
 0x96b   : > { %v17506_v10 = vadd.f32 %v17502_v2, %v17429_v3  ;;  %v18503_v8 = vpop.f32.mrf.mxu0 }
 0x96c   : > { %v23013_v38 = vpop.f32.mrf.mxu1 }
 0x96d   : > { %v23104_v18 = vpop.f32.mrf.mxu0  ;;  %v17583_v27 = vadd.f32 %v32123_v25, %v17506_v10 }
 0x970   : > { %v17656_v59 = vpop.f32.mrf.mxu1 }
 0x971   : > { %v17660_v48 = vadd.f32 %v17656_v59, %v17583_v27  ;;  %v18657_v21 = vpop.f32.mrf.mxu0 }
 0x972   : > { %v23027_v46 = vpop.f32.mrf.mxu1 }
 0x973   : > { %v23118_v34 = vpop.f32.mrf.mxu0  ;;  %v17737_v11 = vadd.f32 %v32125_v29, %v17660_v48 }
 0x976   : > { %v17810_v50 = vpop.f32.mrf.mxu1 }
 0x977   : > { %v17814_v60 = vadd.f32 %v17810_v50, %v17737_v11  ;;  %v18811_v19 = vpop.f32.mrf.mxu0 }
 0x978   : > { %v23041_v41 = vpop.f32.mrf.mxu1 }
 0x979   : > { %v23132_v24 = vpop.f32.mrf.mxu0  ;;  %v17891_v37 = vadd.f32 %v32134_v23, %v17814_v60 }
 0x97c   : > { %v17964_v51 = vpop.f32.mrf.mxu1 }
 0x97d   : > { %v17968_v0 = vadd.f32 %v17964_v51, %v17891_v37  ;;  %v18965_v28 = vpop.f32.mrf.mxu0 }
 0x97e   : > { %v23055_v26 = vpop.f32.mrf.mxu1 }
 0x97f   : > { %v23146_v4 = vpop.f32.mrf.mxu0  ;;  %v18045_v25 = vadd.f32 %v18041_v39, %v17968_v0 }
 0x982   : > { %v18118_v16 = vpop.f32.mrf.mxu1 }
 0x983   : > { %v18122_v53 = vadd.f32 %v18118_v16, %v18045_v25  ;;  %v19119_v33 = vpop.f32.mrf.mxu0 }
 0x984   : > { %v23069_v40 = vpop.f32.mrf.mxu1 }
 0x985   : > { %v23160_v35 = vpop.f32.mrf.mxu0  ;;  %v18199_v36 = vadd.f32 %v18195_v6, %v18122_v53 }
 0x988   : > { %v18272_v29 = vpop.f32.mrf.mxu1 }
 0x989   : > { %v18276_v61 = vadd.f32 %v18272_v29, %v18199_v36  ;;  %v19273_v17 = vpop.f32.mrf.mxu0 }
 0x98a   : > { %v23083_v57 = vpop.f32.mrf.mxu1 }
 0x98b   : > { %v23174_v9 = vpop.f32.mrf.mxu0  ;;  %v18353_v31 = vadd.f32 %v18349_v58, %v18276_v61 }
 0x98e   : > { %v18426_v12 = vpop.f32.mrf.mxu1 }
 0x98f   : > { %v18430_v23 = vadd.f32 %v18426_v12, %v18353_v31  ;;  %v19427_v44 = vpop.f32.mrf.mxu0 }
 0x990   : > { %v23097_v54 = vpop.f32.mrf.mxu1 }
 0x991   : > { %v23188_v49 = vpop.f32.mrf.mxu0  ;;  %v18507_v63 = vadd.f32 %v18503_v8, %v18430_v23 }
 0x994   : > { %v18580_v1 = vpop.f32.mrf.mxu1 }
 0x995   : > { %v18584_v39 = vadd.f32 %v18580_v1, %v18507_v63  ;;  %v19581_v30 = vpop.f32.mrf.mxu0  ;;  %v20510_v1 = vld [vmem:[%s32201_s8] sm:$0x1] }
 0x996   : > { %v23111_v5 = vpop.f32.mrf.mxu1 }
 0x997   : > { %v23202_v22 = vpop.f32.mrf.mxu0  ;;  %v18661_v62 = vadd.f32 %v18657_v21, %v18584_v39 }
 0x99a   : > { %v18734_v55 = vpop.f32.mrf.mxu1 }
 0x99b   : > { %v18738_v45 = vadd.f32 %v18734_v55, %v18661_v62  ;;  %v19735_v14 = vpop.f32.mrf.mxu0 }
 0x99c   : > { %v23125_v6 = vpop.f32.mrf.mxu1 }
 0x99d   : > { %v23216_v52 = vpop.f32.mrf.mxu0  ;;  %v18815_v7 = vadd.f32 %v18811_v19, %v18738_v45  ;;  %v20607_v45 = vld [vmem:[%s32203_s10] sm:$0x1] }
 0x9a0   : > { %v18888_v20 = vpop.f32.mrf.mxu1 }
 0x9a1   : > { %v18892_v32 = vadd.f32 %v18888_v20, %v18815_v7  ;;  %v19889_v13 = vpop.f32.mrf.mxu0 }
 0x9a2   : > { %v23139_v42 = vpop.f32.mrf.mxu1 }
 0x9a3   : > { %v23230_v15 = vpop.f32.mrf.mxu0  ;;  %v18969_v43 = vadd.f32 %v18965_v28, %v18892_v32 }
 0x9a6   : > { %v19042_v58 = vpop.f32.mrf.mxu1 }
 0x9a7   : > { %v19046_v47 = vadd.f32 %v19042_v58, %v18969_v43  ;;  %v20043_v56 = vpop.f32.mrf.mxu0 }
 0x9a8   : > { %v23153_v3 = vpop.f32.mrf.mxu1 }
 0x9a9   : > { %v23244_v2 = vpop.f32.mrf.mxu0  ;;  %v19123_v10 = vadd.f32 %v19119_v33, %v19046_v47 }
 0x9ac   : > { %v19196_v8 = vpop.f32.mrf.mxu1 }
 0x9ad   : > { %v19200_v38 = vadd.f32 %v19196_v8, %v19123_v10  ;;  %v20197_v18 = vpop.f32.mrf.mxu0  ;;  %v32569_v8 = vlaneseq }
 0x9ae   : > { %v23167_v27 = vpop.f32.mrf.mxu1 }
 0x9af   : > { %v23258_v59 = vpop.f32.mrf.mxu0  ;;  %v19277_v48 = vadd.f32 %v19273_v17, %v19200_v38  ;;  %v20625_v38 = vshrl.u32 %v32569_v8, 7 }
 0x9b2   : > { %v19350_v21 = vpop.f32.mrf.mxu1 }
 0x9b3   : > { %v19354_v46 = vadd.f32 %v19350_v21, %v19277_v48  ;;  %v20351_v34 = vpop.f32.mrf.mxu0 }
 0x9b4   : > { %v23181_v11 = vpop.f32.mrf.mxu1 }
 0x9b5   : > { %v23272_v50 = vpop.f32.mrf.mxu0  ;;  %v19431_v60 = vadd.f32 %v19427_v44, %v19354_v46 }
 0x9b8   : > { %v19504_v19 = vpop.f32.mrf.mxu1 }
 0x9b9   : > { %v19508_v41 = vadd.f32 %v19504_v19, %v19431_v60  ;;  %v20505_v24 = vpop.f32.mrf.mxu0 }
 0x9ba   : > { %v23195_v37 = vpop.f32.mrf.mxu1 }
 0x9bb   : > { %v23286_v51 = vpop.f32.mrf.mxu0  ;;  %v19585_v0 = vadd.f32 %v19581_v30, %v19508_v41 }
 0x9bc   : > { %v19658_v28 = vpop.f32.mrf.mxu1 }
 0x9bd   : > { %v19662_v26 = vadd.f32 %v19658_v28, %v19585_v0 }
 0x9be   : > { %v23209_v4 = vpop.f32.mrf.mxu1 }
 0x9bf   : > { %v19739_v25 = vadd.f32 %v19735_v14, %v19662_v26 }
 0x9c0   : > { %v19812_v16 = vpop.f32.mrf.mxu1 }
 0x9c1   : > { %v19816_v53 = vadd.f32 %v19812_v16, %v19739_v25 }
 0x9c2   : > { %v23223_v33 = vpop.f32.mrf.mxu1 }
 0x9c3   : > { %v19893_v40 = vadd.f32 %v19889_v13, %v19816_v53 }
 0x9c4   : > { %v19966_v35 = vpop.f32.mrf.mxu1 }
 0x9c5   : > { %v19970_v36 = vadd.f32 %v19966_v35, %v19893_v40 }
 0x9c6   : > { %v23237_v29 = vpop.f32.mrf.mxu1 }
 0x9c7   : > { %v20047_v61 = vadd.f32 %v20043_v56, %v19970_v36  ;;  %v20620_v56 = vld [vmem:[%s32204_s11] sm:$0x1] }
 0x9c8   : > { %v20120_v17 = vpop.f32.mrf.mxu1 }
 0x9c9   : > { %v20124_v57 = vadd.f32 %v20120_v17, %v20047_v61 }
 0x9ca   : > { %v23251_v9 = vpop.f32.mrf.mxu1 }
 0x9cb   : > { %v20201_v31 = vadd.f32 %v20197_v18, %v20124_v57  ;;  %v20626_v18 = vsub.s32 0, %v20625_v38 }
 0x9cc   : > { %v20274_v12 = vpop.f32.mrf.mxu1 }
 0x9cd   : > { %v20278_v23 = vadd.f32 %v20274_v12, %v20201_v31 }
 0x9ce   : > { %v23265_v44 = vpop.f32.mrf.mxu1 }
 0x9cf   : > { %v20355_v54 = vadd.f32 %v20351_v34, %v20278_v23 }
 0x9d0   : > { %v20428_v49 = vpop.f32.mrf.mxu1 }
 0x9d1   : > { %v20432_v63 = vadd.f32 %v20428_v49, %v20355_v54 }
 0x9d2   : > { %v23279_v39 = vpop.f32.mrf.mxu1 }
 0x9d3   : > { %v20509_v30 = vadd.f32 %v20505_v24, %v20432_v63 }
 0x9d5   : > { %v20511_v5 = vadd.f32 %v20510_v1, %v20509_v30 }
 0x9d7   : > { %23442 = vtanh.f32 %v20511_v5 }
 0x9e4   : > { %v23443_v22 = vpop.eup %23442 }
 0x9e5   : > { %23310 = vmatmul.mubr.msk.f32.vlgmr.msra.gmra.mxu1 %vm20529_vm5, %v23443_v22  ;;  %v20513_v62 = vmul.f32 %v23443_v22, %v23443_v22 }
 0x9e7   : > { %v20515_v55 = vsel %vm20514_vm10, %v20513_v62, 0.0 }
 0x9e8   : > { %20516 = vadd.xlane.f32.xlu0 %v20515_v55 }
 0xa71   : > { %v20517_v14 = vpop.xlane.xlu0 %20516 }
 0xa72   : > { %v20608_v52 = vadd.f32 %v20607_v45, %v20517_v14 }
 0xaa5   : > { %v20603_v6 = vpop.f32.mrf.mxu1 }
 0xaa6   : > { %v20609_v7 = vmul.f32 2.0, %v20603_v6 }
 0xaa7   : > { %v23311_v20 = vpop.f32.mrf.mxu1 }
 0xaa8   : > { %v20610_v32 = vsub.f32 %v20608_v52, %v20609_v7 }
 0xaaa   : > { %v20611_v13 = vmax.f32 %v20610_v32, 0.0 }
 0xaac   : > { %23444 = vrsqrt.f32 %v20611_v13  ;;  %vm20614_vm11 = vcmp.eq.f32.partialorder %v20611_v13, inf  ;;  %v20617_v43 = vand.u32 2147483648, %v20611_v13  ;;  %vm20616_vm12 = vcmp.eq.f32.partialorder %v20611_v13, 0.0 }
 0xab9   : > { %v23445_v42 = vpop.eup %23444 }
 0xaba   : > { %v20613_v15 = vmul.f32 %v23445_v42, %v20611_v13 }
 0xabc   : > { %v20615_v58 = vsel %vm20614_vm11, %v20611_v13, %v20613_v15 }
 0xabd   : > { %v20618_v47 = vsel %vm20616_vm12, %v20617_v43, %v20615_v58 }
 0xabe   : > { %v20619_v3 = vsub.f32 0.0, %v20618_v47 }
 0xac0   : > { %v20621_v2 = vmul.f32 %v20620_v56, %v20619_v3 }
 0xac2   : > { %v20622_v10 = vmul.f32 1.442695, %v20621_v2 }
 0xac4   : > { %23446 = vpow2.f32 %v20622_v10 }
 0xad1   : > { %v23447_v27 = vpop.eup %23446 }
 0xad2   : > { %v20627_v59 = vrot.slane %v23447_v27, %v20626_v18 }
 0xad4   : > { %20628 = vst [vmem:[%s411_s27] sm:$0xff] %v20627_v59 }
 0xad5 PF: > { %s22_s21 = sadd.s32 1, %s23462_s21  }
 0xad6   : > { %p19_p4 = scmp.ge.s32.totalorder %s22_s21, 4  }
 0xad8   :  { %21 = sbr.rel (!%p19_p4) target bundleno = 1 (0x1), region = 204 }

</bundles_post_ra>
